<compile_context>
chip_gen: v5e
topology: v5e:2x2
jax: 0.10.0
libtpu: 0.0.40
codegen_flags: <defaults>
</compile_context>

<pallas_src>
import functools
import math

import jax
import jax.numpy as jnp
from jax.experimental import pallas as pl
from jax.experimental.pallas import tpu as pltpu


def _round_up(x, m):
    return (x + m - 1) // m * m


# ---------------------------------------------------------------------------
# Kernel A: fused Conv3x3(pad=1) + bias + ReLU + 2x2 MaxPool, one grid step per
# stream (RGB / optical flow).
#
# x_ref   : (NTOT, Cin)  bf16 flat padded image, rows ordered (b, h_padded, w)
# w_ref   : (9, Cin, C)  bf16 conv taps, index t = di*3 + dj
# b_ref   : (1, C)       f32
# m_ref   : (Rext, 2)    f32  column-validity masks (col 0: w!=0, col 1: w!=W-1)
# o_ref   : (R, C)       bf16 pooled values; row r holds the max over conv rows
#                             {r, r+1, r+W, r+W+1}
# ybuf    : (Rext, C)    f32  VMEM scratch holding relu(conv+bias)
# ---------------------------------------------------------------------------
def _feature_kernel(x_ref, w_ref, b_ref, m_ref, o_ref, ybuf,
                    *, W, Cout, G, R, Rext):
    not_left = m_ref[:, 0:1]     # zero where w == 0   (kernel col offset -1 invalid)
    not_right = m_ref[:, 1:2]    # zero where w == W-1 (kernel col offset +1 invalid)

    acc = jnp.zeros((Rext, Cout), jnp.float32)
    for dj in range(3):
        part = jnp.zeros((Rext, Cout), jnp.float32)
        for di in range(3):
            off = (di - 1) * W + (dj - 1)
            xs = x_ref[pl.ds(G + off, Rext), :]            # bf16, static offset
            part = part + jnp.dot(xs, w_ref[di * 3 + dj],
                                  preferred_element_type=jnp.float32)
        if dj == 0:
            part = part * not_left
        elif dj == 2:
            part = part * not_right
        acc = acc + part

    # bias + ReLU (f32 epilogue), stash in VMEM scratch
    ybuf[...] = jnp.maximum(acc + b_ref[...], 0.0)

    # fused 2x2 max-pool: max over conv rows (r, r+1, r+W, r+W+1)
    p = jnp.maximum(
        jnp.maximum(ybuf[pl.ds(0, R), :], ybuf[pl.ds(1, R), :]),
        jnp.maximum(ybuf[pl.ds(W, R), :], ybuf[pl.ds(W + 1, R), :]))
    o_ref[...] = p.astype(o_ref.dtype)


def features_both_streams(x_flat, col_mask, conv_w, conv_b, *, W, R, Rext, G):
    """x_flat: (2, NTOT, Cin) bf16; conv_w: (2, 9, Cin, C) bf16; conv_b: (2, 1, C) f32."""
    NTOT, Cin = x_flat.shape[1], x_flat.shape[2]
    Cout = conv_w.shape[3]
    kern = functools.partial(_feature_kernel, W=W, Cout=Cout, G=G, R=R, Rext=Rext)
    return pl.pallas_call(
        kern,
        out_shape=jax.ShapeDtypeStruct((2, R, Cout), jnp.bfloat16),
        grid=(2,),
        in_specs=[
            pl.BlockSpec((None, NTOT, Cin), lambda s: (s, 0, 0)),
            pl.BlockSpec((None, 9, Cin, Cout), lambda s: (s, 0, 0, 0)),
            pl.BlockSpec((None, 1, Cout), lambda s: (s, 0, 0)),
            pl.BlockSpec((Rext, 2), lambda s: (0, 0)),
        ],
        out_specs=pl.BlockSpec((None, R, Cout), lambda s: (s, 0, 0)),
        scratch_shapes=[pltpu.VMEM((Rext, Cout), jnp.float32)],
        compiler_params=pltpu.CompilerParams(
            dimension_semantics=("parallel",)),
    )(x_flat, conv_w, conv_b, col_mask)


# ---------------------------------------------------------------------------
# Kernel B: whole classifier head in one call.
#   fc6_rgb / fc6_of (+ReLU)  ->  implicit concat  ->  fc7 (+ReLU)  ->  fc8
# The concat is removed by splitting W7 into per-stream halves.
# hidden is zero-padded to 128 (lane-dense); padded lanes stay exactly 0.
# ---------------------------------------------------------------------------
def _head_kernel(f_ref, w6_ref, b6_ref, w7_ref, b7_ref, w8_ref, b8_ref, o_ref):
    f_rgb = f_ref[0]                                            # (B, K6) bf16
    f_of = f_ref[1]

    a_rgb = jnp.maximum(
        jnp.dot(f_rgb, w6_ref[0], preferred_element_type=jnp.float32) + b6_ref[0], 0.0)
    a_of = jnp.maximum(
        jnp.dot(f_of, w6_ref[1], preferred_element_type=jnp.float32) + b6_ref[1], 0.0)
    # TODO(synk): Dropout after fc6/fc7 is identity (inference mode).

    h = jnp.dot(a_rgb.astype(jnp.bfloat16), w7_ref[0], preferred_element_type=jnp.float32)
    h = h + jnp.dot(a_of.astype(jnp.bfloat16), w7_ref[1], preferred_element_type=jnp.float32)
    h = jnp.maximum(h + b7_ref[...], 0.0)

    out = jnp.dot(h.astype(jnp.bfloat16), w8_ref[...],
                  preferred_element_type=jnp.float32) + b8_ref[...]
    o_ref[...] = out.astype(o_ref.dtype)


def classifier_head(feats, w6, b6, w7, b7, w8, b8):
    _, B, K6 = feats.shape
    HP = w6.shape[2]
    NC = w8.shape[1]
    return pl.pallas_call(
        _head_kernel,
        out_shape=jax.ShapeDtypeStruct((B, NC), jnp.float32),
        grid=(1,),
        in_specs=[
            pl.BlockSpec((2, B, K6), lambda i: (0, 0, 0)),
            pl.BlockSpec((2, K6, HP), lambda i: (0, 0, 0)),
            pl.BlockSpec((2, 1, HP), lambda i: (0, 0, 0)),
            pl.BlockSpec((2, HP, HP), lambda i: (0, 0, 0)),
            pl.BlockSpec((1, HP), lambda i: (0, 0)),
            pl.BlockSpec((HP, NC), lambda i: (0, 0)),
            pl.BlockSpec((1, NC), lambda i: (0, 0)),
        ],
        out_specs=pl.BlockSpec((B, NC), lambda i: (0, 0)),
        compiler_params=pltpu.CompilerParams(
            dimension_semantics=("arbitrary",)),
    )(feats, w6, b6, w7, b7, w8, b8)


# ---------------------------------------------------------------------------
# Parameters: PyTorch-layout init (matching _initialize_weights), then a ONE-TIME
# conversion to kernel layouts (transposes, NHWC permutation of fc6, pad hidden
# to a lane-dense multiple of 128, bf16 weights).
# ---------------------------------------------------------------------------
def init_params(key, cin=3, cfeat=128, pooled_hw=7, hidden=64, num_classes=2):
    ks = jax.random.split(key, 6)
    n = 3 * 3 * cfeat
    kfc = cfeat * pooled_hw * pooled_hw
    return {
        "conv_rgb_w": jax.random.normal(ks[0], (cfeat, cin, 3, 3), jnp.float32) * math.sqrt(2.0 / n),
        "conv_rgb_b": jnp.zeros((cfeat,), jnp.float32),
        "conv_of_w": jax.random.normal(ks[1], (cfeat, cin, 3, 3), jnp.float32) * math.sqrt(2.0 / n),
        "conv_of_b": jnp.zeros((cfeat,), jnp.float32),
        "fc6_rgb_w": jax.random.normal(ks[2], (hidden, kfc), jnp.float32) * 0.01,
        "fc6_rgb_b": jnp.zeros((hidden,), jnp.float32),
        "fc6_of_w": jax.random.normal(ks[3], (hidden, kfc), jnp.float32) * 0.01,
        "fc6_of_b": jnp.zeros((hidden,), jnp.float32),
        "fc7_w": jax.random.normal(ks[4], (hidden, 2 * hidden), jnp.float32) * 0.01,
        "fc7_b": jnp.zeros((hidden,), jnp.float32),
        "fc8_w": jax.random.normal(ks[5], (num_classes, hidden), jnp.float32) * 0.01,
        "fc8_b": jnp.zeros((num_classes,), jnp.float32),
    }


def prepare_params(p, *, pooled_hw=7):
    cfeat, cin = p["conv_rgb_w"].shape[:2]
    hidden = p["fc7_b"].shape[0]
    nc = p["fc8_b"].shape[0]
    HP = _round_up(hidden, 128)
    Ho = Wo = pooled_hw
    K6 = Ho * Wo * cfeat

    def conv_w(w):   # (C, Cin, 3, 3) -> (9, Cin, C) bf16
        return jnp.transpose(w, (2, 3, 1, 0)).reshape(9, cin, cfeat).astype(jnp.bfloat16)

    def fc6_w(w):    # (hidden, C*Ho*Wo) in (c,h,w) order -> (K6, HP) in (h,w,c) order
        w = w.reshape(hidden, cfeat, Ho, Wo).transpose(0, 2, 3, 1).reshape(hidden, K6)
        w = jnp.transpose(w)
        return jnp.pad(w, ((0, 0), (0, HP - hidden))).astype(jnp.bfloat16)

    def pad_vec(b):
        return jnp.pad(b, (0, HP - hidden)).reshape(1, HP).astype(jnp.float32)

    w7t = jnp.transpose(p["fc7_w"])                        # (2*hidden, hidden)
    w7_rgb = jnp.pad(w7t[:hidden], ((0, HP - hidden), (0, HP - hidden)))
    w7_of = jnp.pad(w7t[hidden:], ((0, HP - hidden), (0, HP - hidden)))
    w8 = jnp.pad(jnp.transpose(p["fc8_w"]), ((0, HP - hidden), (0, 0)))

    return {
        "conv_w": jnp.stack([conv_w(p["conv_rgb_w"]), conv_w(p["conv_of_w"])], 0),
        "conv_b": jnp.stack([p["conv_rgb_b"].reshape(1, cfeat).astype(jnp.float32),
                             p["conv_of_b"].reshape(1, cfeat).astype(jnp.float32)], 0),
        "fc6_w": jnp.stack([fc6_w(p["fc6_rgb_w"]), fc6_w(p["fc6_of_w"])], 0),
        "fc6_b": jnp.stack([pad_vec(p["fc6_rgb_b"]), pad_vec(p["fc6_of_b"])], 0),
        "fc7_w": jnp.stack([w7_rgb, w7_of], 0).astype(jnp.bfloat16),
        "fc7_b": pad_vec(p["fc7_b"]),
        "fc8_w": w8.astype(jnp.bfloat16),
        "fc8_b": p["fc8_b"].reshape(1, nc).astype(jnp.float32),
    }


# ---------------------------------------------------------------------------
# Forward pass (2 pallas_calls + small XLA glue)
# ---------------------------------------------------------------------------
def vgg_fc6_forward(kp, x, of):
    B, Cin, H, W = x.shape
    assert H % 2 == 0 and W % 2 == 0
    Cout = kp["conv_w"].shape[3]
    Ho, Wo = H // 2, W // 2

    R = B * (H + 2) * W                    # conv-output row space (rows = (b, h_pad, w))
    G = _round_up(W + 2, 8)                # top zero margin (covers tap offsets up to W+1)
    Rext = _round_up(R + W + 2, 8)         # extra rows so pooling offsets stay in range
    NTOT = G + Rext + G

    def prep(img):                         # (B, Cin, H, W) -> flat padded NHWC rows (bf16)
        t = jnp.transpose(img, (0, 2, 3, 1))               # NHWC
        t = jnp.pad(t, ((0, 0), (1, 1), (0, 0), (0, 0)))   # pad H by 1 (conv padding)
        t = t.reshape(B * (H + 2) * W, Cin)
        return jnp.pad(t, ((G, NTOT - G - R), (0, 0))).astype(jnp.bfloat16)

    x_flat = jnp.stack([prep(x), prep(of)], axis=0)        # (2, NTOT, Cin) bf16

    ridx = jnp.arange(Rext) % W
    col_mask = jnp.stack([(ridx != 0), (ridx != W - 1)], axis=1).astype(jnp.float32)

    pooled = features_both_streams(x_flat, col_mask, kp["conv_w"], kp["conv_b"],
                                   W=W, R=R, Rext=Rext, G=G)     # (2, R, Cout) bf16

    # compact the valid pooled rows (h_pad odd, w even) and flatten in (h, w, c) order
    pooled = pooled.reshape(2, B, H + 2, W, Cout)
    feats = pooled[:, :, 1:H + 1:2, 0:W:2, :].reshape(2, B, Ho * Wo * Cout)

    return classifier_head(feats, kp["fc6_w"], kp["fc6_b"],
                           kp["fc7_w"], kp["fc7_b"], kp["fc8_w"], kp["fc8_b"])


# ---------------------------------------------------------------------------
if __name__ == "__main__":
    B, CIN, S = 2, 3, 14            # 14x14 -> 7x7 after the 2x2 pool (matches the *7*7 head)
    CFEAT, HIDDEN, NCLS = 128, 64, 2

    key = jax.random.PRNGKey(0)
    kx, kof, kparam = jax.random.split(key, 3)
    x = jax.random.normal(kx, (B, CIN, S, S), jnp.float32)
    of = jax.random.normal(kof, (B, CIN, S, S), jnp.float32)

    raw = init_params(kparam, cin=CIN, cfeat=CFEAT, pooled_hw=S // 2,
                      hidden=HIDDEN, num_classes=NCLS)
    params = prepare_params(raw, pooled_hw=S // 2)         # one-time layout conversion

    fwd = jax.jit(vgg_fc6_forward)
    out = jax.block_until_ready(fwd(params, x, of))

    assert out.shape == (B, NCLS), out.shape
    assert bool(jnp.all(jnp.isfinite(out)))
    print("KERNEL_OK")
</pallas_src>

<mosaic_0001>
module attributes {stable_mosaic.version = 11 : i64} {
  func.func @_feature_kernel(%arg0: i32, %arg1: memref<1x496x3xbf16, #tpu.memory_space<vmem>>, %arg2: memref<1x9x3x128xbf16, #tpu.memory_space<vmem>>, %arg3: memref<1x1x128xf32, #tpu.memory_space<vmem>>, %arg4: memref<464x2xf32, #tpu.memory_space<vmem>>, %arg5: memref<1x448x128xbf16, #tpu.memory_space<vmem>>, %arg6: memref<464x128xf32, #tpu.memory_space<vmem>>) attributes {dimension_semantics = [#tpu.dimension_semantics<parallel>], iteration_bounds = array<i64: 2>, scalar_prefetch = 0 : i64, scratch_operands = 1 : i64, tpu.core_type = #tpu.core_type<tc>, window_params = [{transform_indices = @transform_0, window_bounds = array<i64: 1, 496, 3>}, {transform_indices = @transform_1, window_bounds = array<i64: 1, 9, 3, 128>}, {transform_indices = @transform_2, window_bounds = array<i64: 1, 1, 128>}, {pipeline_mode = #tpu.pipeline_mode<synchronous>, transform_indices = @transform_3, window_bounds = array<i64: 464, 2>}, {transform_indices = @transform_4, window_bounds = array<i64: 1, 448, 128>}]} {
    %c0 = arith.constant 0 : index
    %c0_0 = arith.constant 0 : index
    %0 = vector.load %arg4[%c0, %c0_0] : memref<464x2xf32, #tpu.memory_space<vmem>>, vector<464x1xf32>
    %c0_1 = arith.constant 0 : index
    %c1 = arith.constant 1 : index
    %1 = vector.load %arg4[%c0_1, %c1] : memref<464x2xf32, #tpu.memory_space<vmem>>, vector<464x1xf32>
    %cst = arith.constant 0.000000e+00 : f32
    %2 = vector.broadcast %cst : f32 to vector<464x128xf32>
    %cst_2 = arith.constant 0.000000e+00 : f32
    %3 = vector.broadcast %cst_2 : f32 to vector<464x128xf32>
    %c0_3 = arith.constant 0 : index
    %c1_4 = arith.constant 1 : index
    %c0_5 = arith.constant 0 : index
    %4 = vector.load %arg1[%c0_3, %c1_4, %c0_5] : memref<1x496x3xbf16, #tpu.memory_space<vmem>>, vector<1x464x3xbf16>
    %5 = vector.shape_cast %4 : vector<1x464x3xbf16> to vector<464x3xbf16>
    %c0_6 = arith.constant 0 : index
    %c0_7 = arith.constant 0 : index
    %c0_8 = arith.constant 0 : index
    %c0_9 = arith.constant 0 : index
    %6 = vector.load %arg2[%c0_6, %c0_7, %c0_8, %c0_9] : memref<1x9x3x128xbf16, #tpu.memory_space<vmem>>, vector<1x1x3x128xbf16>
    %7 = vector.shape_cast %6 : vector<1x1x3x128xbf16> to vector<3x128xbf16>
    %cst_10 = arith.constant dense<0.000000e+00> : vector<464x128xf32>
    %8 = tpu.matmul %5, %7, %cst_10 {dimension_numbers = #tpu.dot_dimension_numbers<[1], [0], [0], [1], [0, 0, 1, 1], [], []>} : vector<464x3xbf16>, vector<3x128xbf16>, vector<464x128xf32> -> vector<464x128xf32>
    %9 = arith.addf %3, %8 : vector<464x128xf32>
    %c0_11 = arith.constant 0 : index
    %c15 = arith.constant 15 : index
    %c0_12 = arith.constant 0 : index
    %10 = vector.load %arg1[%c0_11, %c15, %c0_12] : memref<1x496x3xbf16, #tpu.memory_space<vmem>>, vector<1x464x3xbf16>
    %11 = vector.shape_cast %10 : vector<1x464x3xbf16> to vector<464x3xbf16>
    %c0_13 = arith.constant 0 : index
    %c3 = arith.constant 3 : index
    %c0_14 = arith.constant 0 : index
    %c0_15 = arith.constant 0 : index
    %12 = vector.load %arg2[%c0_13, %c3, %c0_14, %c0_15] : memref<1x9x3x128xbf16, #tpu.memory_space<vmem>>, vector<1x1x3x128xbf16>
    %13 = vector.shape_cast %12 : vector<1x1x3x128xbf16> to vector<3x128xbf16>
    %cst_16 = arith.constant dense<0.000000e+00> : vector<464x128xf32>
    %14 = tpu.matmul %11, %13, %cst_16 {dimension_numbers = #tpu.dot_dimension_numbers<[1], [0], [0], [1], [0, 0, 1, 1], [], []>} : vector<464x3xbf16>, vector<3x128xbf16>, vector<464x128xf32> -> vector<464x128xf32>
    %15 = arith.addf %9, %14 : vector<464x128xf32>
    %c0_17 = arith.constant 0 : index
    %c29 = arith.constant 29 : index
    %c0_18 = arith.constant 0 : index
    %16 = vector.load %arg1[%c0_17, %c29, %c0_18] : memref<1x496x3xbf16, #tpu.memory_space<vmem>>, vector<1x464x3xbf16>
    %17 = vector.shape_cast %16 : vector<1x464x3xbf16> to vector<464x3xbf16>
    %c0_19 = arith.constant 0 : index
    %c6 = arith.constant 6 : index
    %c0_20 = arith.constant 0 : index
    %c0_21 = arith.constant 0 : index
    %18 = vector.load %arg2[%c0_19, %c6, %c0_20, %c0_21] : memref<1x9x3x128xbf16, #tpu.memory_space<vmem>>, vector<1x1x3x128xbf16>
    %19 = vector.shape_cast %18 : vector<1x1x3x128xbf16> to vector<3x128xbf16>
    %cst_22 = arith.constant dense<0.000000e+00> : vector<464x128xf32>
    %20 = tpu.matmul %17, %19, %cst_22 {dimension_numbers = #tpu.dot_dimension_numbers<[1], [0], [0], [1], [0, 0, 1, 1], [], []>} : vector<464x3xbf16>, vector<3x128xbf16>, vector<464x128xf32> -> vector<464x128xf32>
    %21 = arith.addf %15, %20 : vector<464x128xf32>
    %22 = vector.broadcast %0 : vector<464x1xf32> to vector<464x128xf32>
    %23 = arith.mulf %21, %22 : vector<464x128xf32>
    %24 = arith.addf %2, %23 : vector<464x128xf32>
    %cst_23 = arith.constant 0.000000e+00 : f32
    %25 = vector.broadcast %cst_23 : f32 to vector<464x128xf32>
    %c0_24 = arith.constant 0 : index
    %c2 = arith.constant 2 : index
    %c0_25 = arith.constant 0 : index
    %26 = vector.load %arg1[%c0_24, %c2, %c0_25] : memref<1x496x3xbf16, #tpu.memory_space<vmem>>, vector<1x464x3xbf16>
    %27 = vector.shape_cast %26 : vector<1x464x3xbf16> to vector<464x3xbf16>
    %c0_26 = arith.constant 0 : index
    %c1_27 = arith.constant 1 : index
    %c0_28 = arith.constant 0 : index
    %c0_29 = arith.constant 0 : index
    %28 = vector.load %arg2[%c0_26, %c1_27, %c0_28, %c0_29] : memref<1x9x3x128xbf16, #tpu.memory_space<vmem>>, vector<1x1x3x128xbf16>
    %29 = vector.shape_cast %28 : vector<1x1x3x128xbf16> to vector<3x128xbf16>
    %cst_30 = arith.constant dense<0.000000e+00> : vector<464x128xf32>
    %30 = tpu.matmul %27, %29, %cst_30 {dimension_numbers = #tpu.dot_dimension_numbers<[1], [0], [0], [1], [0, 0, 1, 1], [], []>} : vector<464x3xbf16>, vector<3x128xbf16>, vector<464x128xf32> -> vector<464x128xf32>
    %31 = arith.addf %25, %30 : vector<464x128xf32>
    %c0_31 = arith.constant 0 : index
    %c16 = arith.constant 16 : index
    %c0_32 = arith.constant 0 : index
    %32 = vector.load %arg1[%c0_31, %c16, %c0_32] : memref<1x496x3xbf16, #tpu.memory_space<vmem>>, vector<1x464x3xbf16>
    %33 = vector.shape_cast %32 : vector<1x464x3xbf16> to vector<464x3xbf16>
    %c0_33 = arith.constant 0 : index
    %c4 = arith.constant 4 : index
    %c0_34 = arith.constant 0 : index
    %c0_35 = arith.constant 0 : index
    %34 = vector.load %arg2[%c0_33, %c4, %c0_34, %c0_35] : memref<1x9x3x128xbf16, #tpu.memory_space<vmem>>, vector<1x1x3x128xbf16>
    %35 = vector.shape_cast %34 : vector<1x1x3x128xbf16> to vector<3x128xbf16>
    %cst_36 = arith.constant dense<0.000000e+00> : vector<464x128xf32>
    %36 = tpu.matmul %33, %35, %cst_36 {dimension_numbers = #tpu.dot_dimension_numbers<[1], [0], [0], [1], [0, 0, 1, 1], [], []>} : vector<464x3xbf16>, vector<3x128xbf16>, vector<464x128xf32> -> vector<464x128xf32>
    %37 = arith.addf %31, %36 : vector<464x128xf32>
    %c0_37 = arith.constant 0 : index
    %c30 = arith.constant 30 : index
    %c0_38 = arith.constant 0 : index
    %38 = vector.load %arg1[%c0_37, %c30, %c0_38] : memref<1x496x3xbf16, #tpu.memory_space<vmem>>, vector<1x464x3xbf16>
    %39 = vector.shape_cast %38 : vector<1x464x3xbf16> to vector<464x3xbf16>
    %c0_39 = arith.constant 0 : index
    %c7 = arith.constant 7 : index
    %c0_40 = arith.constant 0 : index
    %c0_41 = arith.constant 0 : index
    %40 = vector.load %arg2[%c0_39, %c7, %c0_40, %c0_41] : memref<1x9x3x128xbf16, #tpu.memory_space<vmem>>, vector<1x1x3x128xbf16>
    %41 = vector.shape_cast %40 : vector<1x1x3x128xbf16> to vector<3x128xbf16>
    %cst_42 = arith.constant dense<0.000000e+00> : vector<464x128xf32>
    %42 = tpu.matmul %39, %41, %cst_42 {dimension_numbers = #tpu.dot_dimension_numbers<[1], [0], [0], [1], [0, 0, 1, 1], [], []>} : vector<464x3xbf16>, vector<3x128xbf16>, vector<464x128xf32> -> vector<464x128xf32>
    %43 = arith.addf %37, %42 : vector<464x128xf32>
    %44 = arith.addf %24, %43 : vector<464x128xf32>
    %cst_43 = arith.constant 0.000000e+00 : f32
    %45 = vector.broadcast %cst_43 : f32 to vector<464x128xf32>
    %c0_44 = arith.constant 0 : index
    %c3_45 = arith.constant 3 : index
    %c0_46 = arith.constant 0 : index
    %46 = vector.load %arg1[%c0_44, %c3_45, %c0_46] : memref<1x496x3xbf16, #tpu.memory_space<vmem>>, vector<1x464x3xbf16>
    %47 = vector.shape_cast %46 : vector<1x464x3xbf16> to vector<464x3xbf16>
    %c0_47 = arith.constant 0 : index
    %c2_48 = arith.constant 2 : index
    %c0_49 = arith.constant 0 : index
    %c0_50 = arith.constant 0 : index
    %48 = vector.load %arg2[%c0_47, %c2_48, %c0_49, %c0_50] : memref<1x9x3x128xbf16, #tpu.memory_space<vmem>>, vector<1x1x3x128xbf16>
    %49 = vector.shape_cast %48 : vector<1x1x3x128xbf16> to vector<3x128xbf16>
    %cst_51 = arith.constant dense<0.000000e+00> : vector<464x128xf32>
    %50 = tpu.matmul %47, %49, %cst_51 {dimension_numbers = #tpu.dot_dimension_numbers<[1], [0], [0], [1], [0, 0, 1, 1], [], []>} : vector<464x3xbf16>, vector<3x128xbf16>, vector<464x128xf32> -> vector<464x128xf32>
    %51 = arith.addf %45, %50 : vector<464x128xf32>
    %c0_52 = arith.constant 0 : index
    %c17 = arith.constant 17 : index
    %c0_53 = arith.constant 0 : index
    %52 = vector.load %arg1[%c0_52, %c17, %c0_53] : memref<1x496x3xbf16, #tpu.memory_space<vmem>>, vector<1x464x3xbf16>
    %53 = vector.shape_cast %52 : vector<1x464x3xbf16> to vector<464x3xbf16>
    %c0_54 = arith.constant 0 : index
    %c5 = arith.constant 5 : index
    %c0_55 = arith.constant 0 : index
    %c0_56 = arith.constant 0 : index
    %54 = vector.load %arg2[%c0_54, %c5, %c0_55, %c0_56] : memref<1x9x3x128xbf16, #tpu.memory_space<vmem>>, vector<1x1x3x128xbf16>
    %55 = vector.shape_cast %54 : vector<1x1x3x128xbf16> to vector<3x128xbf16>
    %cst_57 = arith.constant dense<0.000000e+00> : vector<464x128xf32>
    %56 = tpu.matmul %53, %55, %cst_57 {dimension_numbers = #tpu.dot_dimension_numbers<[1], [0], [0], [1], [0, 0, 1, 1], [], []>} : vector<464x3xbf16>, vector<3x128xbf16>, vector<464x128xf32> -> vector<464x128xf32>
    %57 = arith.addf %51, %56 : vector<464x128xf32>
    %c0_58 = arith.constant 0 : index
    %c31 = arith.constant 31 : index
    %c0_59 = arith.constant 0 : index
    %58 = vector.load %arg1[%c0_58, %c31, %c0_59] : memref<1x496x3xbf16, #tpu.memory_space<vmem>>, vector<1x464x3xbf16>
    %59 = vector.shape_cast %58 : vector<1x464x3xbf16> to vector<464x3xbf16>
    %c0_60 = arith.constant 0 : index
    %c8 = arith.constant 8 : index
    %c0_61 = arith.constant 0 : index
    %c0_62 = arith.constant 0 : index
    %60 = vector.load %arg2[%c0_60, %c8, %c0_61, %c0_62] : memref<1x9x3x128xbf16, #tpu.memory_space<vmem>>, vector<1x1x3x128xbf16>
    %61 = vector.shape_cast %60 : vector<1x1x3x128xbf16> to vector<3x128xbf16>
    %cst_63 = arith.constant dense<0.000000e+00> : vector<464x128xf32>
    %62 = tpu.matmul %59, %61, %cst_63 {dimension_numbers = #tpu.dot_dimension_numbers<[1], [0], [0], [1], [0, 0, 1, 1], [], []>} : vector<464x3xbf16>, vector<3x128xbf16>, vector<464x128xf32> -> vector<464x128xf32>
    %63 = arith.addf %57, %62 : vector<464x128xf32>
    %64 = vector.broadcast %1 : vector<464x1xf32> to vector<464x128xf32>
    %65 = arith.mulf %63, %64 : vector<464x128xf32>
    %66 = arith.addf %44, %65 : vector<464x128xf32>
    %c0_64 = arith.constant 0 : index
    %c0_65 = arith.constant 0 : index
    %c0_66 = arith.constant 0 : index
    %67 = vector.load %arg3[%c0_64, %c0_65, %c0_66] : memref<1x1x128xf32, #tpu.memory_space<vmem>>, vector<1x1x128xf32>
    %68 = vector.shape_cast %67 : vector<1x1x128xf32> to vector<1x128xf32>
    %69 = vector.broadcast %68 : vector<1x128xf32> to vector<464x128xf32>
    %70 = arith.addf %66, %69 : vector<464x128xf32>
    %cst_67 = arith.constant 0.000000e+00 : f32
    %71 = vector.broadcast %cst_67 : f32 to vector<464x128xf32>
    %72 = arith.maximumf %70, %71 : vector<464x128xf32>
    %c0_68 = arith.constant 0 : index
    %c0_69 = arith.constant 0 : index
    %73 = vector.load %arg6[%c0_68, %c0_69] : memref<464x128xf32, #tpu.memory_space<vmem>>, vector<464x128xf32>
    tpu.vector_store %arg6[%c0_68, %c0_69], %72 {strides = array<i32>} : memref<464x128xf32, #tpu.memory_space<vmem>>, vector<464x128xf32>,
    %c0_70 = arith.constant 0 : index
    %c0_71 = arith.constant 0 : index
    %74 = vector.load %arg6[%c0_70, %c0_71] : memref<464x128xf32, #tpu.memory_space<vmem>>, vector<448x128xf32>
    %c1_72 = arith.constant 1 : index
    %c0_73 = arith.constant 0 : index
    %75 = vector.load %arg6[%c1_72, %c0_73] : memref<464x128xf32, #tpu.memory_space<vmem>>, vector<448x128xf32>
    %76 = arith.maximumf %74, %75 : vector<448x128xf32>
    %c14 = arith.constant 14 : index
    %c0_74 = arith.constant 0 : index
    %77 = vector.load %arg6[%c14, %c0_74] : memref<464x128xf32, #tpu.memory_space<vmem>>, vector<448x128xf32>
    %c15_75 = arith.constant 15 : index
    %c0_76 = arith.constant 0 : index
    %78 = vector.load %arg6[%c15_75, %c0_76] : memref<464x128xf32, #tpu.memory_space<vmem>>, vector<448x128xf32>
    %79 = arith.maximumf %77, %78 : vector<448x128xf32>
    %80 = arith.maximumf %76, %79 : vector<448x128xf32>
    %81 = arith.truncf %80 : vector<448x128xf32> to vector<448x128xbf16>
    %c0_77 = arith.constant 0 : index
    %c0_78 = arith.constant 0 : index
    %c0_79 = arith.constant 0 : index
    %82 = vector.load %arg5[%c0_77, %c0_78, %c0_79] : memref<1x448x128xbf16, #tpu.memory_space<vmem>>, vector<1x448x128xbf16>
    %83 = vector.shape_cast %82 : vector<1x448x128xbf16> to vector<448x128xbf16>
    %84 = vector.shape_cast %81 : vector<448x128xbf16> to vector<1x448x128xbf16>
    tpu.vector_store %arg5[%c0_77, %c0_78, %c0_79], %84 {strides = array<i32>} : memref<1x448x128xbf16, #tpu.memory_space<vmem>>, vector<1x448x128xbf16>,
    return
  }
  func.func @transform_0(%arg0: i32) -> (i32, i32, i32) {
    %c0_i32 = arith.constant 0 : i32
    %c0_i32_0 = arith.constant 0 : i32
    %c0_i32_1 = arith.constant 0 : i32
    return %arg0, %c0_i32, %c0_i32_0 : i32, i32, i32
  }
  func.func @transform_1(%arg0: i32) -> (i32, i32, i32, i32) {
    %c0_i32 = arith.constant 0 : i32
    %c0_i32_0 = arith.constant 0 : i32
    %c0_i32_1 = arith.constant 0 : i32
    %c0_i32_2 = arith.constant 0 : i32
    return %arg0, %c0_i32, %c0_i32_0, %c0_i32_1 : i32, i32, i32, i32
  }
  func.func @transform_2(%arg0: i32) -> (i32, i32, i32) {
    %c0_i32 = arith.constant 0 : i32
    %c0_i32_0 = arith.constant 0 : i32
    %c0_i32_1 = arith.constant 0 : i32
    return %arg0, %c0_i32, %c0_i32_0 : i32, i32, i32
  }
  func.func @transform_3(%arg0: i32) -> (i32, i32) {
    %c0_i32 = arith.constant 0 : i32
    %c0_i32_0 = arith.constant 0 : i32
    %c0_i32_1 = arith.constant 0 : i32
    return %c0_i32, %c0_i32_0 : i32, i32
  }
  func.func @transform_4(%arg0: i32) -> (i32, i32, i32) {
    %c0_i32 = arith.constant 0 : i32
    %c0_i32_0 = arith.constant 0 : i32
    %c0_i32_1 = arith.constant 0 : i32
    return %arg0, %c0_i32, %c0_i32_0 : i32, i32, i32
  }
}

module attributes {stable_mosaic.version = 11 : i64} {
  func.func @_head_kernel(%arg0: i32, %arg1: memref<2x2x6272xbf16, #tpu.memory_space<vmem>>, %arg2: memref<2x6272x128xbf16, #tpu.memory_space<vmem>>, %arg3: memref<2x1x128xf32, #tpu.memory_space<vmem>>, %arg4: memref<2x128x128xbf16, #tpu.memory_space<vmem>>, %arg5: memref<1x128xf32, #tpu.memory_space<vmem>>, %arg6: memref<128x2xbf16, #tpu.memory_space<vmem>>, %arg7: memref<1x2xf32, #tpu.memory_space<vmem>>, %arg8: memref<2x2xf32, #tpu.memory_space<vmem>>) attributes {dimension_semantics = [#tpu.dimension_semantics<arbitrary>], iteration_bounds = array<i64: 1>, scalar_prefetch = 0 : i64, scratch_operands = 0 : i64, tpu.core_type = #tpu.core_type<tc>, window_params = [{pipeline_mode = #tpu.pipeline_mode<synchronous>, transform_indices = @transform_0, window_bounds = array<i64: 2, 2, 6272>}, {pipeline_mode = #tpu.pipeline_mode<synchronous>, transform_indices = @transform_1, window_bounds = array<i64: 2, 6272, 128>}, {pipeline_mode = #tpu.pipeline_mode<synchronous>, transform_indices = @transform_2, window_bounds = array<i64: 2, 1, 128>}, {pipeline_mode = #tpu.pipeline_mode<synchronous>, transform_indices = @transform_3, window_bounds = array<i64: 2, 128, 128>}, {pipeline_mode = #tpu.pipeline_mode<synchronous>, transform_indices = @transform_4, window_bounds = array<i64: 1, 128>}, {pipeline_mode = #tpu.pipeline_mode<synchronous>, transform_indices = @transform_5, window_bounds = array<i64: 128, 2>}, {pipeline_mode = #tpu.pipeline_mode<synchronous>, transform_indices = @transform_6, window_bounds = array<i64: 1, 2>}, {pipeline_mode = #tpu.pipeline_mode<synchronous>, transform_indices = @transform_7, window_bounds = array<i64: 2, 2>}]} {
    %c0 = arith.constant 0 : index
    %c0_0 = arith.constant 0 : index
    %c0_1 = arith.constant 0 : index
    %0 = vector.load %arg1[%c0, %c0_0, %c0_1] : memref<2x2x6272xbf16, #tpu.memory_space<vmem>>, vector<1x2x6272xbf16>
    %1 = vector.shape_cast %0 : vector<1x2x6272xbf16> to vector<2x6272xbf16>
    %c1 = arith.constant 1 : index
    %c0_2 = arith.constant 0 : index
    %c0_3 = arith.constant 0 : index
    %2 = vector.load %arg1[%c1, %c0_2, %c0_3] : memref<2x2x6272xbf16, #tpu.memory_space<vmem>>, vector<1x2x6272xbf16>
    %3 = vector.shape_cast %2 : vector<1x2x6272xbf16> to vector<2x6272xbf16>
    %c0_4 = arith.constant 0 : index
    %c0_5 = arith.constant 0 : index
    %c0_6 = arith.constant 0 : index
    %4 = vector.load %arg2[%c0_4, %c0_5, %c0_6] : memref<2x6272x128xbf16, #tpu.memory_space<vmem>>, vector<1x6272x128xbf16>
    %5 = vector.shape_cast %4 : vector<1x6272x128xbf16> to vector<6272x128xbf16>
    %cst = arith.constant dense<0.000000e+00> : vector<2x128xf32>
    %6 = tpu.matmul %1, %5, %cst {dimension_numbers = #tpu.dot_dimension_numbers<[1], [0], [0], [1], [0, 0, 1, 1], [], []>} : vector<2x6272xbf16>, vector<6272x128xbf16>, vector<2x128xf32> -> vector<2x128xf32>
    %c0_7 = arith.constant 0 : index
    %c0_8 = arith.constant 0 : index
    %c0_9 = arith.constant 0 : index
    %7 = vector.load %arg3[%c0_7, %c0_8, %c0_9] : memref<2x1x128xf32, #tpu.memory_space<vmem>>, vector<1x1x128xf32>
    %8 = vector.shape_cast %7 : vector<1x1x128xf32> to vector<1x128xf32>
    %9 = vector.broadcast %8 : vector<1x128xf32> to vector<2x128xf32>
    %10 = arith.addf %6, %9 : vector<2x128xf32>
    %cst_10 = arith.constant 0.000000e+00 : f32
    %11 = vector.broadcast %cst_10 : f32 to vector<2x128xf32>
    %12 = arith.maximumf %10, %11 : vector<2x128xf32>
    %c1_11 = arith.constant 1 : index
    %c0_12 = arith.constant 0 : index
    %c0_13 = arith.constant 0 : index
    %13 = vector.load %arg2[%c1_11, %c0_12, %c0_13] : memref<2x6272x128xbf16, #tpu.memory_space<vmem>>, vector<1x6272x128xbf16>
    %14 = vector.shape_cast %13 : vector<1x6272x128xbf16> to vector<6272x128xbf16>
    %cst_14 = arith.constant dense<0.000000e+00> : vector<2x128xf32>
    %15 = tpu.matmul %3, %14, %cst_14 {dimension_numbers = #tpu.dot_dimension_numbers<[1], [0], [0], [1], [0, 0, 1, 1], [], []>} : vector<2x6272xbf16>, vector<6272x128xbf16>, vector<2x128xf32> -> vector<2x128xf32>
    %c1_15 = arith.constant 1 : index
    %c0_16 = arith.constant 0 : index
    %c0_17 = arith.constant 0 : index
    %16 = vector.load %arg3[%c1_15, %c0_16, %c0_17] : memref<2x1x128xf32, #tpu.memory_space<vmem>>, vector<1x1x128xf32>
    %17 = vector.shape_cast %16 : vector<1x1x128xf32> to vector<1x128xf32>
    %18 = vector.broadcast %17 : vector<1x128xf32> to vector<2x128xf32>
    %19 = arith.addf %15, %18 : vector<2x128xf32>
    %cst_18 = arith.constant 0.000000e+00 : f32
    %20 = vector.broadcast %cst_18 : f32 to vector<2x128xf32>
    %21 = arith.maximumf %19, %20 : vector<2x128xf32>
    %22 = arith.truncf %12 : vector<2x128xf32> to vector<2x128xbf16>
    %c0_19 = arith.constant 0 : index
    %c0_20 = arith.constant 0 : index
    %c0_21 = arith.constant 0 : index
    %23 = vector.load %arg4[%c0_19, %c0_20, %c0_21] : memref<2x128x128xbf16, #tpu.memory_space<vmem>>, vector<1x128x128xbf16>
    %24 = vector.shape_cast %23 : vector<1x128x128xbf16> to vector<128x128xbf16>
    %cst_22 = arith.constant dense<0.000000e+00> : vector<2x128xf32>
    %25 = tpu.matmul %22, %24, %cst_22 {dimension_numbers = #tpu.dot_dimension_numbers<[1], [0], [0], [1], [0, 0, 1, 1], [], []>} : vector<2x128xbf16>, vector<128x128xbf16>, vector<2x128xf32> -> vector<2x128xf32>
    %26 = arith.truncf %21 : vector<2x128xf32> to vector<2x128xbf16>
    %c1_23 = arith.constant 1 : index
    %c0_24 = arith.constant 0 : index
    %c0_25 = arith.constant 0 : index
    %27 = vector.load %arg4[%c1_23, %c0_24, %c0_25] : memref<2x128x128xbf16, #tpu.memory_space<vmem>>, vector<1x128x128xbf16>
    %28 = vector.shape_cast %27 : vector<1x128x128xbf16> to vector<128x128xbf16>
    %cst_26 = arith.constant dense<0.000000e+00> : vector<2x128xf32>
    %29 = tpu.matmul %26, %28, %cst_26 {dimension_numbers = #tpu.dot_dimension_numbers<[1], [0], [0], [1], [0, 0, 1, 1], [], []>} : vector<2x128xbf16>, vector<128x128xbf16>, vector<2x128xf32> -> vector<2x128xf32>
    %30 = arith.addf %25, %29 : vector<2x128xf32>
    %c0_27 = arith.constant 0 : index
    %c0_28 = arith.constant 0 : index
    %31 = vector.load %arg5[%c0_27, %c0_28] : memref<1x128xf32, #tpu.memory_space<vmem>>, vector<1x128xf32>
    %32 = vector.broadcast %31 : vector<1x128xf32> to vector<2x128xf32>
    %33 = arith.addf %30, %32 : vector<2x128xf32>
    %cst_29 = arith.constant 0.000000e+00 : f32
    %34 = vector.broadcast %cst_29 : f32 to vector<2x128xf32>
    %35 = arith.maximumf %33, %34 : vector<2x128xf32>
    %36 = arith.truncf %35 : vector<2x128xf32> to vector<2x128xbf16>
    %c0_30 = arith.constant 0 : index
    %c0_31 = arith.constant 0 : index
    %37 = vector.load %arg6[%c0_30, %c0_31] : memref<128x2xbf16, #tpu.memory_space<vmem>>, vector<128x2xbf16>
    %cst_32 = arith.constant dense<0.000000e+00> : vector<2x2xf32>
    %38 = tpu.matmul %36, %37, %cst_32 {dimension_numbers = #tpu.dot_dimension_numbers<[1], [0], [0], [1], [0, 0, 1, 1], [], []>} : vector<2x128xbf16>, vector<128x2xbf16>, vector<2x2xf32> -> vector<2x2xf32>
    %c0_33 = arith.constant 0 : index
    %c0_34 = arith.constant 0 : index
    %39 = vector.load %arg7[%c0_33, %c0_34] : memref<1x2xf32, #tpu.memory_space<vmem>>, vector<1x2xf32>
    %40 = vector.broadcast %39 : vector<1x2xf32> to vector<2x2xf32>
    %41 = arith.addf %38, %40 : vector<2x2xf32>
    %c0_35 = arith.constant 0 : index
    %c0_36 = arith.constant 0 : index
    %42 = vector.load %arg8[%c0_35, %c0_36] : memref<2x2xf32, #tpu.memory_space<vmem>>, vector<2x2xf32>
    tpu.vector_store %arg8[%c0_35, %c0_36], %41 {strides = array<i32>} : memref<2x2xf32, #tpu.memory_space<vmem>>, vector<2x2xf32>,
    return
  }
  func.func @transform_0(%arg0: i32) -> (i32, i32, i32) {
    %c0_i32 = arith.constant 0 : i32
    %c0_i32_0 = arith.constant 0 : i32
    %c0_i32_1 = arith.constant 0 : i32
    %c0_i32_2 = arith.constant 0 : i32
    return %c0_i32, %c0_i32_0, %c0_i32_1 : i32, i32, i32
  }
  func.func @transform_1(%arg0: i32) -> (i32, i32, i32) {
    %c0_i32 = arith.constant 0 : i32
    %c0_i32_0 = arith.constant 0 : i32
    %c0_i32_1 = arith.constant 0 : i32
    %c0_i32_2 = arith.constant 0 : i32
    return %c0_i32, %c0_i32_0, %c0_i32_1 : i32, i32, i32
  }
  func.func @transform_2(%arg0: i32) -> (i32, i32, i32) {
    %c0_i32 = arith.constant 0 : i32
    %c0_i32_0 = arith.constant 0 : i32
    %c0_i32_1 = arith.constant 0 : i32
    %c0_i32_2 = arith.constant 0 : i32
    return %c0_i32, %c0_i32_0, %c0_i32_1 : i32, i32, i32
  }
  func.func @transform_3(%arg0: i32) -> (i32, i32, i32) {
    %c0_i32 = arith.constant 0 : i32
    %c0_i32_0 = arith.constant 0 : i32
    %c0_i32_1 = arith.constant 0 : i32
    %c0_i32_2 = arith.constant 0 : i32
    return %c0_i32, %c0_i32_0, %c0_i32_1 : i32, i32, i32
  }
  func.func @transform_4(%arg0: i32) -> (i32, i32) {
    %c0_i32 = arith.constant 0 : i32
    %c0_i32_0 = arith.constant 0 : i32
    %c0_i32_1 = arith.constant 0 : i32
    return %c0_i32, %c0_i32_0 : i32, i32
  }
  func.func @transform_5(%arg0: i32) -> (i32, i32) {
    %c0_i32 = arith.constant 0 : i32
    %c0_i32_0 = arith.constant 0 : i32
    %c0_i32_1 = arith.constant 0 : i32
    return %c0_i32, %c0_i32_0 : i32, i32
  }
  func.func @transform_6(%arg0: i32) -> (i32, i32) {
    %c0_i32 = arith.constant 0 : i32
    %c0_i32_0 = arith.constant 0 : i32
    %c0_i32_1 = arith.constant 0 : i32
    return %c0_i32, %c0_i32_0 : i32, i32
  }
  func.func @transform_7(%arg0: i32) -> (i32, i32) {
    %c0_i32 = arith.constant 0 : i32
    %c0_i32_0 = arith.constant 0 : i32
    %c0_i32_1 = arith.constant 0 : i32
    return %c0_i32, %c0_i32_0 : i32, i32
  }
}

</mosaic_0001>

<bundles_post_ra>
// kernel: vgg_fc6_forward.2
= control target key start
LH: loop header
LB: loop body
LE: loop exit
PB: predicated region body
PF: predicated region fallthrough
CT: control target
= control target key end

     0   :  { %9 = vsyncpa [#allocation4], 0  ;;  %s11399_s0 = inlined_call_operand.vmem [shape: bf16[2,496,3], index: 0, kind: input, shape index: {}]   ;;  %s11400_s1 = inlined_call_operand.vmem [shape: bf16[2,9,3,128], index: 1, kind: input, shape index: {}]   ;;  %s11401_s2 = inlined_call_operand.hbm [shape: f32[2,1,128], index: 2, kind: input, shape index: {}]   ;;  %s11402_s3 = inlined_call_operand.vmem [shape: f32[464,2], index: 3, kind: input, shape index: {}]   ;;  %s11403_s4 = inlined_call_operand.vmem [shape: bf16[2,448,128], index: 4, kind: output, shape index: {}]  }
   0x1   :  { %11 = vsyncpa [#allocation4 + $0x1], 0  ;;  %s7644_s15 = smov 0   ;;  %s7646_s16 = smov 0  }
   0x2   :  { %s7648_s17 = smov 0   ;;  %s7650_s18 = smov 0  }
   0x3 LB: > { %s7663_s19 = sadd.s32 4294967295, %s7614_s18   ;;  %s7666_s20 = sadd.s32 1, %s7614_s18   ;;  %s7614_s18 = sphi %s7650_s18, %s12074_s18   ;;  %s7610_s17 = sphi %s7648_s17, %s12073_s17   ;;  %s7606_s16 = sphi %s7646_s16, %s12072_s16   ;;  %s7602_s15 = sphi %s7644_s15, %s12071_s15  }
   0x4   : > { %s73_s21 = ssub.s32 %s7614_s18, %s7666_s20  ;;  %s76_s22 = sadd.s32 1, %s7610_s17 }
   0x5   : > { %p74_p0 = scmp.eq.s32.totalorder %s73_s21, 0  ;;  %p83_p1 = scmp.ne.s32.totalorder %s7610_s17, %s7606_s16 }
   0x6   : > { %p84_p2 = scmp.eq.s32.totalorder %s7614_s18, 0  ;;  %p89_p3 = scmp.ne.s32.totalorder %s7606_s16, %s7602_s15 }
   0x7   : > { %s7676_s23 = scalar_select %p74_p0, %s7610_s17, %s76_s22  }
   0x8   : > { %p85_p4 = por %p84_p2, %p83_p1  ;;  %p90_p5 = scmp.eq.s32.totalorder %s7663_s19, 0 }
   0x9   : > { %p7421_p6 = scmp.lt.s32.totalorder %s7614_s18, 2  ;;  %s179_s25 = sand.u32 1, %s7610_s17  }
   0xa   : > { %p7680_p7 = por %p90_p5, %p89_p3  ;;  %s185_s28 = scalar_lea.hbm %s11401_s2, %s7614_s18 }
   0xb   : > { %s182_s29 = scalar_lea.vmem [#allocation3], %s179_s25  ;;  %s187_s5 = sshll.u32 %s185_s28, 4  ;;  %s188_s5 = int_to_ptr.hbm [resolvable:$true] %s187_s5 }
   0xc   : > { %s189_s30 = sshll.u32 %s182_s29, 4  ;;  %p7689_p8 = pnand %p7421_p6, %p85_p4  ;;  %s190_s30 = int_to_ptr.vmem [resolvable:$true] %s189_s30 }
   0xd   : > { %p6329_p9 = scmp.ge.s32.totalorder %s7614_s18, 1  ;;  %p194_p10 = scmp.lt.s32.totalorder %s7614_s18, 3 }
   0xe   : > { %s180_s7 = scalar_lea.sflag [#allocation4], %s179_s25  ;;  %s7550_s8 = sshra.s32 %s188_s5, 4  ;;  %s7551_s8 = int_to_ptr.hbm [resolvable:$true] %s7550_s8 }
   0xf   : > { %s7552_s9 = scalar_lea.hbm %s7551_s8, 1  ;;  %p7554_p12 = pneg %p7689_p8 }
  0x10   : > { %p7553_p11 = scmp.ne.s32.totalorder %s7551_s8, %s7552_s9  ;;  %s7557_s12 = scalar_lea.hbm %s11401_s2, 2 }
  0x11   : > { %p7558_p1 = scmp.lt.s32.totalorder %s7551_s8, %s11401_s2  ;;  %p7559_p2 = scmp.lt.s32.totalorder %s7557_s12, %s7552_s9 }
  0x12   : > { %p7555_p13 = pnand %p7554_p12, %p7553_p11 }
  0x13   : > { %p7560_p3 = por %p7559_p2, %p7558_p1 }
  0x14   : > { %p7556_p0 = pneg %p7555_p13 }
  0x16   : > { %p7561_p4 = pnand %p7560_p3, %p7556_p0 }
  0x18   : > { %7564 = shalt.err (!%p7561_p4)
}
  0x19   : > { %7420 = dma.hbm_to_vmem [thread:$0]  (!%p7689_p8), %s188_s5, 16, %s190_s30, %s180_s7  }
  0x1a   : > { %p195_p5 = pnand %p6329_p9, %p194_p10 }
  0x1c   : > { %198 = sbr.rel (%p195_p5) target bundleno = 1264 (0x4f0), region = 36 }
  0x21   : > { %s200_s15 = sand.u32 1, %s7606_s16  }
  0x22   : > { %s201_s21 = scalar_lea.sflag [#allocation4], %s200_s15  ;;  %s7710_s22 = scalar_lea.vmem [#allocation3], %s200_s15 }
  0x23   : > { %7597 = dma.done.wait (%p7680_p7), %s201_s21, 16  }
  0x24   : > { %7599 = vsyncadd (%p7680_p7), %s201_s21, 4294967280  ;;  %p238_p6 = scmp.lt.s32.totalorder %s7663_s19, 1  ;;  %vm883_vm0 = vcmask 1040384   ;;  %vm884_vm1 = vcmask 1041408   ;;  %v7616_v0 = vmov 65535   ;;  %vm795_vm2 = vcmask 23552  }
  0x25   : > { %v885_v1 = vsel %vm883_vm0, 4294967295, %v7616_v0  ;;  %vm525_vm3 = vsmask.f32 4352  ;;  %vm2973_vm4 = vcmask 1046528   ;;  %vm1080_vm5 = vsmask.f32 7424 }
  0x26   : > { %s12076_s19 = smov (!%p238_p6, %s7663_s19), 1  ;;  %v7727_v2 = vsel %vm884_vm1, %v885_v1, 0  ;;  %vm1770_vm6 = vsmask.f32 5376  ;;  %vm4398_vm7 = vsmask.f32 6400 }
  0x27   : > { %s7412_s18 = smul.u32 248, %s12076_s19  ;;  %vm3283_vm8 = vcmask 1044480  }
  0x28   : > { %s7413_s25 = smul.u32 18, %s12076_s19 }
  0x29   : > { %s7725_s28 = scalar_lea.vmem %s11399_s0, %s7412_s18  ;;  %s7414_s27 = smul.u32 224, %s12076_s19 }
  0x2a   : > { %s7732_s30 = scalar_lea.vmem %s11400_s1, %s7413_s25  ;;  %v7356_v3 = vld [vmem:[%s7725_s28 + $0x4] sm:$0xf0]   ;;  %v7358_v4 = vld [vmem:[%s7725_s28 + $0xc] sm:$0xff]   ;;  %v7210_v5 = vld [vmem:[%s7725_s28 + $0x4] sm:$0x8] }
  0x2b   : > { %v6333_v6 = vld [vmem:[%s7732_s30 + $0x6] sm:$0x3]  ;;  %v7211_v7 = vor.u32 %v7356_v3, %v7210_v5  ;;  %v7374_v9 = vld [vmem:[%s7725_s28 + $0x4c] sm:$0xff]   ;;  %v535_v11 = vshrl.u32 %v7358_v4, 16  ;;  %v538_v12 = vshll.u32 %v7358_v4, 16  ;;  %v7360_v38 = vld [vmem:[%s7725_s28 + $0x14] sm:$0xff]   ;;  %s10091_s29 = scalar_lea.vmem %s11403_s4, %s7414_s27 }
  0x2c   : > { %v7372_v8 = vld [vmem:[%s7725_s28 + $0x44] sm:$0xff]   ;;  %v888_v10 = vand.u32 %v6333_v6, %v7727_v2  ;;  %v7390_v18 = vld [vmem:[%s7725_s28 + $0x8c] sm:$0xff]   ;;  %v607_v21 = vshrl.u32 %v7374_v9, 16  ;;  %v610_v22 = vshll.u32 %v7374_v9, 16  ;;  %v371_v28 = vld [vmem:[%s7732_s30] sm:$0x3] }
  0x2d   : > { %v7388_v13 = vld [vmem:[%s7725_s28 + $0x84] sm:$0xff]   ;;  %v527_v14 = vshrl.u32 %v7211_v7, 16  ;;  %v530_v15 = vshll.u32 %v7211_v7, 16  ;;  %v598_v16 = vshrl.u32 %v7372_v8, 16  ;;  %v601_v17 = vshll.u32 %v7372_v8, 16  ;;  %v7376_v43 = vld [vmem:[%s7725_s28 + $0x54] sm:$0xff]  }
  0x2e   : > { %897 = vmatpush.bf16.msra.mxu0 %v888_v10  ;;  %7352 = vmatpush.bf16.msra.mxu1 %v888_v10  ;;  %v537_v19 = vrot.slane %v535_v11, 3  ;;  %v540_v20 = vrot.slane %v538_v12, 4  ;;  %v6392_v23 = vld [vmem:[%s7732_s30 + $0xc] sm:$0x3]  ;;  %v609_v30 = vrot.slane %v607_v21, 3  ;;  %v612_v31 = vrot.slane %v610_v22, 4 }
  0x2f   : > { %7353 = vmatpush.bf16.msra.mxu2 %v888_v10  ;;  %v529_v24 = vrot.slane %v527_v14, 3  ;;  %v532_v25 = vrot.slane %v530_v15, 4  ;;  %v600_v26 = vrot.slane %v598_v16, 3  ;;  %v603_v27 = vrot.slane %v601_v17, 4  ;;  %7354 = vmatpush.bf16.msra.mxu3 %v888_v10  ;;  %v6534_v33 = vld [vmem:[%s7732_s30 + $0x2] sm:$0x3] }
  0x30   : > { %v541_v29 = vor.u32 %v540_v20, %v537_v19  ;;  %v670_v32 = vshrl.u32 %v7388_v13, 16  ;;  %v673_v36 = vshll.u32 %v7388_v13, 16  ;;  %v679_v37 = vshrl.u32 %v7390_v18, 16  ;;  %v7392_v57 = vld [vmem:[%s7725_s28 + $0x94] sm:$0xff]   ;;  %v7404_v61 = vld [vmem:[%s7725_s28 + $0xc4] sm:$0xff]   ;;  %v7406_v62 = vld [vmem:[%s7725_s28 + $0xcc] sm:$0xff]  }
  0x31   : > { %v533_v34 = vor.u32 %v532_v25, %v529_v24  ;;  %v7746_v35 = vor.u32 %v603_v27, %v600_v26  ;;  %v613_v39 = vor.u32 %v612_v31, %v609_v30  ;;  %v682_v41 = vshll.u32 %v7390_v18, 16  ;;  %v7362_v15 = vld [vmem:[%s7725_s28 + $0x1c] sm:$0xff]   ;;  %v7408_v31 = vld [vmem:[%s7725_s28 + $0xd4] sm:$0xff]  }
  0x32   : > { %v672_v40 = vrot.slane %v670_v32, 3  ;;  %v2128_v42 = vand.u32 %v6392_v23, %v7727_v2  ;;  %v675_v45 = vrot.slane %v673_v36, 4  ;;  %v681_v46 = vrot.slane %v679_v37, 3  ;;  %v7378_v18 = vld [vmem:[%s7725_s28 + $0x5c] sm:$0xff]   ;;  %v6535_v37 = vld [vmem:[%s7732_s30 + $0x8] sm:$0x3] }
  0x33   : > { %v542_v44 = vsel %vm525_vm3, %v533_v34, %v541_v29  ;;  %v1405_v47 = vand.u32 %v7727_v2, %v371_v28  ;;  %v614_v48 = vsel %vm525_vm3, %v7746_v35, %v613_v39  ;;  %v684_v49 = vrot.slane %v682_v41, 4  ;;  %v7394_v27 = vld [vmem:[%s7725_s28 + $0x9c] sm:$0xff]  }
  0x34   : > { %6334 = vmatmul.msk.bf16.vlgmr.msra.gmra.mxu0 %vm795_vm2, %v542_v44  ;;  %2137 = vmatpush.bf16.msrb.mxu2 %v2128_v42  ;;  %v3121_v50 = vand.u32 %v6534_v33, %v7727_v2  ;;  %v7758_v51 = vor.u32 %v675_v45, %v672_v40  ;;  %v544_v52 = vshrl.u32 %v7360_v38, 16  ;;  %v547_v53 = vshll.u32 %v7360_v38, 16 }
  0x35   : > { %6342 = vmatmul.msk.bf16.vlgmr.msra.gmra.mxu1 %vm795_vm2, %v614_v48  ;;  %v685_v54 = vor.u32 %v684_v49, %v681_v46  ;;  %v616_v55 = vshrl.u32 %v7376_v43, 16  ;;  %v619_v56 = vshll.u32 %v7376_v43, 16  ;;  %v688_v1 = vshrl.u32 %v7392_v57, 16 }
  0x36   : > { %1414 = vmatpush.bf16.msrb.mxu1 %v1405_v47  ;;  %3130 = vmatpush.bf16.msrb.mxu0 %v3121_v50  ;;  %v546_v59 = vrot.slane %v544_v52, 3  ;;  %v549_v60 = vrot.slane %v547_v53, 4  ;;  %v691_v3 = vshll.u32 %v7392_v57, 16  ;;  %v742_v5 = vshrl.u32 %v7404_v61, 16  ;;  %v7364_v50 = vld [vmem:[%s7725_s28 + $0x24] sm:$0xff]  }
  0x37   : > { %v686_v58 = vsel %vm525_vm3, %v7758_v51, %v685_v54  ;;  %v618_v63 = vrot.slane %v616_v55, 3  ;;  %v621_v0 = vrot.slane %v619_v56, 4  ;;  %v745_v6 = vshll.u32 %v7404_v61, 16 }
  0x38   : > { %6350 = vmatmul.msk.bf16.vlgmr.msra.gmra.mxu2 %vm795_vm2, %v686_v58  ;;  %v550_v4 = vor.u32 %v549_v60, %v546_v59  ;;  %v751_v7 = vshrl.u32 %v7406_v62, 16  ;;  %v690_v9 = vrot.slane %v688_v1, 3  ;;  %v693_v10 = vrot.slane %v691_v3, 4  ;;  %v7396_v58 = vld [vmem:[%s7725_s28 + $0xa4] sm:$0xff]  }
  0x39   : > { %v622_v8 = vor.u32 %v621_v0, %v618_v63  ;;  %v754_v11 = vshll.u32 %v7406_v62, 16  ;;  %v744_v12 = vrot.slane %v742_v5, 3  ;;  %v747_v13 = vrot.slane %v745_v6, 4  ;;  %v7410_v62 = vld [vmem:[%s7725_s28 + $0xdc] sm:$0xff]  }
  0x3a   : > { %v753_v14 = vrot.slane %v751_v7, 3  ;;  %v551_v17 = vsel %vm525_vm3, %v541_v29, %v550_v4  ;;  %v694_v21 = vor.u32 %v693_v10, %v690_v9  ;;  %v553_v23 = vshrl.u32 %v7362_v15, 16 }
  0x3b   : > { %v756_v16 = vrot.slane %v754_v11, 4  ;;  %v7769_v19 = vor.u32 %v747_v13, %v744_v12  ;;  %v623_v20 = vsel %vm525_vm3, %v613_v39, %v622_v8  ;;  %v556_v25 = vshll.u32 %v7362_v15, 16 }
  0x3c   : > { %v625_v26 = vshrl.u32 %v7378_v18, 16  ;;  %v695_v28 = vsel %vm525_vm3, %v685_v54, %v694_v21  ;;  %v628_v29 = vshll.u32 %v7378_v18, 16  ;;  %v555_v30 = vrot.slane %v553_v23, 3  ;;  %v7380_v54 = vld [vmem:[%s7725_s28 + $0x64] sm:$0xff]  }
  0x3d   : > { %v757_v22 = vor.u32 %v756_v16, %v753_v14  ;;  %v558_v32 = vrot.slane %v556_v25, 4  ;;  %v697_v34 = vshrl.u32 %v7394_v27, 16  ;;  %v700_v36 = vshll.u32 %v7394_v27, 16  ;;  %v7366_v16 = vld [vmem:[%s7725_s28 + $0x2c] sm:$0xff]  }
  0x3e   : > { %v627_v33 = vrot.slane %v625_v26, 3  ;;  %v630_v38 = vrot.slane %v628_v29, 4  ;;  %v2814_v39 = vand.u32 %v6535_v37, %v7727_v2  ;;  %v760_v40 = vshrl.u32 %v7408_v31, 16 }
  0x3f   : > { %v758_v24 = vsel %vm525_vm3, %v7769_v19, %v757_v22  ;;  %v763_v41 = vshll.u32 %v7408_v31, 16  ;;  %v559_v44 = vor.u32 %v558_v32, %v555_v30  ;;  %v699_v46 = vrot.slane %v697_v34, 3 }
  0x40   : > { %6358 = vmatmul.msk.bf16.vlgmr.msra.gmra.mxu3 %vm795_vm2, %v758_v24  ;;  %v762_v42 = vrot.slane %v760_v40, 3  ;;  %v631_v45 = vor.u32 %v630_v38, %v627_v33  ;;  %v702_v47 = vrot.slane %v700_v36, 4  ;;  %v562_v56 = vshrl.u32 %v7364_v50, 16  ;;  %v7398_v24 = vld [vmem:[%s7725_s28 + $0xac] sm:$0xff]  }
  0x41   : > { %2823 = vmatpush.bf16.msrb.mxu3 %v2814_v39  ;;  %v765_v43 = vrot.slane %v763_v41, 4  ;;  %v560_v49 = vsel %vm525_vm3, %v550_v4, %v559_v44  ;;  %v565_v57 = vshll.u32 %v7364_v50, 16  ;;  %v634_v60 = vshrl.u32 %v7380_v54, 16 }
  0x42   : > { %v632_v52 = vsel %vm525_vm3, %v622_v8, %v631_v45  ;;  %v703_v53 = vor.u32 %v702_v47, %v699_v46  ;;  %v637_v61 = vshll.u32 %v7380_v54, 16  ;;  %v564_v63 = vrot.slane %v562_v56, 3  ;;  %v7368_v46 = vld [vmem:[%s7725_s28 + $0x34] sm:$0xff]  }
  0x43   : > { %v766_v48 = vor.u32 %v765_v43, %v762_v42  ;;  %v567_v0 = vrot.slane %v565_v57, 4  ;;  %v706_v1 = vshrl.u32 %v7396_v58, 16  ;;  %v709_v3 = vshll.u32 %v7396_v58, 16  ;;  %v7400_v54 = vld [vmem:[%s7725_s28 + $0xb4] sm:$0xff]  }
  0x44   : > { %6335 = vmatmul.msk.bf16.gmra.mxu0 %vm795_vm2, %v551_v17  ;;  %v704_v59 = vsel %vm525_vm3, %v694_v21, %v703_v53  ;;  %v636_v4 = vrot.slane %v634_v60, 3  ;;  %v639_v5 = vrot.slane %v637_v61, 4  ;;  %v769_v6 = vshrl.u32 %v7410_v62, 16 }
  0x45   : > { %6343 = vmatmul.msk.bf16.gmra.mxu1 %vm795_vm2, %v623_v20  ;;  %v767_v55 = vsel %vm525_vm3, %v757_v22, %v766_v48  ;;  %v772_v7 = vshll.u32 %v7410_v62, 16  ;;  %v568_v10 = vor.u32 %v567_v0, %v564_v63  ;;  %v708_v12 = vrot.slane %v706_v1, 3  ;;  %v7382_v20 = vld [vmem:[%s7725_s28 + $0x6c] sm:$0xff]  }
  0x46   : > { %v771_v8 = vrot.slane %v769_v6, 3  ;;  %v640_v11 = vor.u32 %v639_v5, %v636_v4  ;;  %v711_v13 = vrot.slane %v709_v3, 4  ;;  %v571_v22 = vshrl.u32 %v7366_v16, 16 }
  0x47   : > { %v774_v9 = vrot.slane %v772_v7, 4  ;;  %v569_v15 = vsel %vm525_vm3, %v559_v44, %v568_v10  ;;  %v574_v23 = vshll.u32 %v7366_v16, 16  ;;  %v643_v26 = vshrl.u32 %v7382_v20, 16 }
  0x48   : > { %6351 = vmatmul.msk.bf16.gmra.mxu2 %vm795_vm2, %v695_v28  ;;  %v641_v17 = vsel %vm525_vm3, %v631_v45, %v640_v11  ;;  %v712_v18 = vor.u32 %v711_v13, %v708_v12  ;;  %v646_v27 = vshll.u32 %v7382_v20, 16  ;;  %v7411_v28 = vld [vmem:[%s7725_s28 + $0xe4] sm:$0xff]   ;;  %v573_v29 = vrot.slane %v571_v22, 3  ;;  %v7402_v22 = vld [vmem:[%s7725_s28 + $0xbc] sm:$0xff]  }
  0x49   : > { %v775_v14 = vor.u32 %v774_v9, %v771_v8  ;;  %v576_v30 = vrot.slane %v574_v23, 4  ;;  %v715_v31 = vshrl.u32 %v7398_v24, 16  ;;  %v718_v32 = vshll.u32 %v7398_v24, 16 }
  0x4a   : > { %v713_v25 = vsel %vm525_vm3, %v703_v53, %v712_v18  ;;  %v645_v33 = vrot.slane %v643_v26, 3  ;;  %v648_v34 = vrot.slane %v646_v27, 4  ;;  %v778_v36 = vshrl.u32 %v7411_v28, 16 }
  0x4b   : > { %v776_v21 = vsel %vm525_vm3, %v766_v48, %v775_v14  ;;  %v781_v37 = vshll.u32 %v7411_v28, 16  ;;  %v577_v40 = vor.u32 %v576_v30, %v573_v29  ;;  %v717_v42 = vrot.slane %v715_v31, 3  ;;  %v7831_v30 = vld [vmem:[%s7725_s28 + $0x8] sm:$0xff]  }
  0x4c   : > { %v780_v38 = vrot.slane %v778_v36, 3  ;;  %v649_v41 = vor.u32 %v648_v34, %v645_v33  ;;  %v720_v43 = vrot.slane %v718_v32, 4  ;;  %v583_v53 = vshll.u32 %v7368_v46, 16 }
  0x4d   : > { %v783_v39 = vrot.slane %v781_v37, 4  ;;  %v578_v45 = vsel %vm525_vm3, %v568_v10, %v577_v40  ;;  %v724_v63 = vshrl.u32 %v7400_v54, 16  ;;  %v727_v0 = vshll.u32 %v7400_v54, 16 }
  0x4e   : > { %v650_v47 = vsel %vm525_vm3, %v640_v11, %v649_v41  ;;  %v721_v48 = vor.u32 %v720_v43, %v717_v42  ;;  %v585_v62 = vrot.slane %v583_v53, 4  ;;  %v733_v28 = vshrl.u32 %v7402_v22, 16  ;;  %v6800_v53 = vld [vmem:[%s7732_s30 + $0x10] sm:$0x3] }
  0x4f   : > { %v784_v44 = vor.u32 %v783_v39, %v780_v38  ;;  %v726_v10 = vrot.slane %v724_v63, 3  ;;  %v729_v11 = vrot.slane %v727_v0, 4  ;;  %v736_v29 = vshll.u32 %v7402_v22, 16 }
  0x50   : > { %6359 = vmatmul.msk.bf16.gmra.mxu3 %vm795_vm2, %v767_v55  ;;  %v7177_v55 = vld [vmem:[%s7725_s28 + $0xe8] sm:$0xff]   ;;  %v722_v56 = vsel %vm525_vm3, %v712_v18, %v721_v48  ;;  %v1089_v33 = vshll.u32 %v7831_v30, 16  ;;  %v1093_v34 = vshrl.u32 %v7831_v30, 16 }
  0x51   : > { %v785_v50 = vsel %vm525_vm3, %v775_v14, %v784_v44  ;;  %v7370_v14 = vld [vmem:[%s7725_s28 + $0x3c] sm:$0xff]   ;;  %v730_v16 = vor.u32 %v729_v11, %v726_v10  ;;  %v7617_v11 = vmov 0  }
  0x52   : > { %v589_v20 = vshrl.u32 %v7370_v14, 16  ;;  %v4407_v36 = vrot.slane %v1093_v34, 1  ;;  %v4408_v37 = vrot.slane %v1089_v33, 2  ;;  %7457 = vset.pattern.permute.xlu0 %v7617_v11  ;;  %7458 = vset.pattern.permute.xlu1 %v7617_v11 }
  0x53   : > { %v731_v23 = vsel %vm525_vm3, %v721_v48, %v730_v16  ;;  %7459 = vset.pattern.permute.xlu2 %v7617_v11 }
  0x54   : > { %6336 = vmatmul.msk.bf16.gmra.mxu0 %vm795_vm2, %v560_v49  ;;  %v7384_v49 = vld [vmem:[%s7725_s28 + $0x74] sm:$0xff]   ;;  %v591_v26 = vrot.slane %v589_v20, 3  ;;  %v7837_v42 = vor.u32 %v4408_v37, %v4407_v36 }
  0x55   : > { %6344 = vmatmul.msk.bf16.gmra.mxu1 %vm795_vm2, %v632_v52  ;;  %v580_v52 = vshrl.u32 %v7368_v46, 16  ;;  %v652_v57 = vshrl.u32 %v7384_v49, 16  ;;  %v655_v58 = vshll.u32 %v7384_v49, 16  ;;  %v6624_v49 = vld [vmem:[%s7732_s30 + $0x4] sm:$0x3] }
  0x56   : > { %11571 = vst [vmem:[#allocation6_spill] sm:$0xff] %v7837_v42 }
  0x57   : > { %v582_v61 = vrot.slane %v580_v52, 3  ;;  %v654_v1 = vrot.slane %v652_v57, 3  ;;  %v657_v3 = vrot.slane %v655_v58, 4  ;;  %v6594_v52 = vld [vmem:[%s7732_s30 + $0xe] sm:$0x3] }
  0x58   : > { %6352 = vmatmul.msk.bf16.gmra.mxu2 %vm795_vm2, %v704_v59  ;;  %v7008_v59 = vunpack.c.h.b16 %v7177_v55  ;;  %v3431_v54 = vand.u32 %v6594_v52, %v7727_v2  ;;  %v4995_v55 = vand.u32 %v6800_v53, %v7727_v2  ;;  %v7857_v57 = vld [vmem:[%s7725_s28 + $0x10] sm:$0xf]  ;;  %v257_v52 = vld [vmem:[%s11402_s3 + $0x18] sm:$0xff] }
  0x59   : > { %v586_v8 = vor.u32 %v585_v62, %v582_v61  ;;  %v658_v9 = vor.u32 %v657_v3, %v654_v1  ;;  %11572 = vst [vmem:[#allocation7_spill] sm:$0xff] %v7857_v57  ;;  %v7865_v62 = vld [vmem:[%s7725_s28 + $0x10] sm:$0xff]   ;;  %v7179_v3 = vld [vmem:[%s7725_s28] sm:$0xe] }
  0x5a   : > { %v524_v60 = vpack.c.b16 %v7008_v59, %v7008_v59  ;;  %3440 = vmatpush.bf16.msra.mxu1 %v3431_v54  ;;  %5004 = vmatpush.bf16.msra.mxu0 %v4995_v55  ;;  %11573 = vst [vmem:[#allocation8_spill] sm:$0xff] %v7865_v62  ;;  %v7877_v1 = vld [vmem:[%s7725_s28 + $0x14] sm:$0xff]  ;;  %v11417_v36 = vshll.u32 %v7865_v62, 16  ;;  %v7957_v55 = vld [vmem:[%s7725_s28 + $0x24] sm:$0xff] }
  0x5b   : > { %v587_v13 = vsel %vm525_vm3, %v577_v40, %v586_v8  ;;  %v735_v40 = vrot.slane %v733_v28, 3  ;;  %11574 = vst [vmem:[#allocation9_spill] sm:$0xff] %v7877_v1  ;;  %v11419_v10 = vshll.u32 %v7877_v1, 16  ;;  %v255_v28 = vld [vmem:[%s11402_s3 + $0x8] sm:$0xff] }
  0x5c   : > { %v787_v4 = vshrl.u32 %v524_v60, 16  ;;  %v790_v5 = vshll.u32 %v524_v60, 16  ;;  %v11421_v60 = vunpack.c.l.b16 %v7857_v57  ;;  %11578 = vst [vmem:[#allocation13_spill] sm:$0xff] %v7957_v55 }
  0x5d   : > { %v1785_v20 = vrot.slane %v11419_v10, 3 }
  0x5e   : > { %v789_v6 = vrot.slane %v787_v4, 3  ;;  %v792_v7 = vrot.slane %v790_v5, 4 }
  0x60   : > { %6360 = vmatmul.msk.bf16.gmra.mxu3 %vm795_vm2, %v776_v21  ;;  %v793_v12 = vor.u32 %v792_v7, %v789_v6  ;;  %v592_v21 = vshll.u32 %v7370_v14, 16 }
  0x62   : > { %v794_v18 = vsel %vm525_vm3, %v784_v44, %v793_v12  ;;  %v594_v27 = vrot.slane %v592_v21, 4  ;;  %v2975_v12 = vrot.slane %v7831_v30, 1 }
  0x64   : > { %6337 = vmatmul.msk.bf16.gmra.mxu0 %vm795_vm2, %v569_v15  ;;  %v659_v15 = vsel %vm525_vm3, %v649_v41, %v658_v9  ;;  %v595_v38 = vor.u32 %v594_v27, %v591_v26  ;;  %v738_v41 = vrot.slane %v736_v29, 4  ;;  %v7902_v27 = vld [vmem:[%s7725_s28 + $0x18] sm:$0xff]  }
  0x65   : > { %6345 = vmatmul.msk.bf16.gmra.mxu1 %vm795_vm2, %v641_v17  ;;  %v7386_v17 = vld [vmem:[%s7725_s28 + $0x7c] sm:$0xff]   ;;  %11575 = vst [vmem:[#allocation10_spill] sm:$0xff] %v7902_v27 }
  0x66   : > { %v661_v24 = vshrl.u32 %v7386_v17, 16  ;;  %v596_v43 = vsel %vm525_vm3, %v586_v8, %v595_v38  ;;  %v605_v58 = vsel %vm525_vm3, %v595_v38, %v7746_v35 }
  0x68   : > { %6353 = vmatmul.msk.bf16.gmra.mxu2 %vm795_vm2, %v713_v25  ;;  %v664_v25 = vshll.u32 %v7386_v17, 16  ;;  %v663_v31 = vrot.slane %v661_v24, 3 }
  0x6a   : > { %v666_v32 = vrot.slane %v664_v25, 4 }
  0x6c   : > { %v667_v39 = vor.u32 %v666_v32, %v663_v31  ;;  %v7913_v31 = vld [vmem:[%s7725_s28 + $0x1c] sm:$0xff] }
  0x6d   : > { %11576 = vst [vmem:[#allocation11_spill] sm:$0xff] %v7913_v31  ;;  %v11410_v37 = vshrl.u32 %v7913_v31, 16  ;;  %v11409_v38 = vshll.u32 %v7913_v31, 16 }
  0x6e   : > { %v668_v44 = vsel %vm525_vm3, %v658_v9, %v667_v39  ;;  %v677_v61 = vsel %vm525_vm3, %v667_v39, %v7758_v51  ;;  %v7178_v51 = vld [vmem:[%s7725_s28] sm:$0xf0]  ;;  %v11420_v9 = vshrl.u32 %v7877_v1, 16  ;;  %v256_v39 = vld [vmem:[%s11402_s3 + $0x10] sm:$0xff] }
  0x6f   : > { %v7882_v6 = vor.u32 %v7179_v3, %v7178_v51  ;;  %2354 = vperm.xlu1 %7458, %v256_v39   ;;  %v2979_v51 = vrot.slane %v7902_v27, 1  ;;  %v260_v39 = vld [vmem:[%s11402_s3 + $0x30] sm:$0xff] }
  0x70   : > { %6361 = vmatmul.msk.bf16.gmra.mxu3 %vm795_vm2, %v785_v50  ;;  %v4616_v50 = vand.u32 %v6624_v49, %v7727_v2 }
  0x72   : > { %4625 = vmatpush.bf16.msra.mxu3 %v4616_v50 }
  0x74   : > { %6338 = vmatmul.msk.bf16.gmra.mxu0 %vm795_vm2, %v578_v45  ;;  %v739_v45 = vor.u32 %v738_v41, %v735_v40  ;;  %v2977_v41 = vrot.slane %v7865_v62, 1 }
  0x75   : > { %6346 = vmatmul.msk.bf16.gmra.mxu1 %vm795_vm2, %v650_v47  ;;  %v6625_v47 = vld [vmem:[%s7732_s30 + $0xa] sm:$0x3] }
  0x76   : > { %v740_v46 = vsel %vm525_vm3, %v730_v16, %v739_v45  ;;  %v4239_v48 = vand.u32 %v6625_v47, %v7727_v2  ;;  %v6890_v2 = vld [vmem:[%s7725_s28] sm:$0xff]   ;;  %v749_v35 = vsel %vm525_vm3, %v739_v45, %v7769_v19  ;;  %v2974_v16 = vrot.slane %v7882_v6, 1 }
  0x77   : > { %v1084_v0 = vshll.u32 %v6890_v2, 16  ;;  %v1082_v7 = vshrl.u32 %v6890_v2, 16  ;;  %v254_v19 = vld [vmem:[%s11402_s3] sm:$0xff]  ;;  %v1791_v45 = vrot.slane %v11410_v37, 2  ;;  %2359 = vperm.xlu1 %7458, %v257_v52   ;;  %v11412_v2 = vshll.u32 %v7902_v27, 16 }
  0x78   : > { %6354 = vmatmul.msk.bf16.gmra.mxu2 %vm795_vm2, %v722_v56  ;;  %v1561_v56 = vld [vmem:[%s7725_s28 + $0xc] sm:$0xc]  ;;  %2344 = vperm.xlu0 %7457, %v254_v19   ;;  %v2976_v22 = vsel %vm2973_vm4, %v2974_v16, %v2975_v12  ;;  %v2980_v19 = vsel %vm2973_vm4, %v2977_v41, %v2979_v51 }
  0x79   : > { %4248 = vmatpush.bf16.msra.mxu2 %v4239_v48  ;;  %v1681_v59 = vunpack.c.l.b16 %v1561_v56  ;;  %v1086_v8 = vrot.slane %v1084_v0, 1  ;;  %v2978_v48 = vsel %vm2973_vm4, %v2975_v12, %v2977_v41 }
  0x7b   : > { %v1740_v63 = vpack.c.b16 %v11421_v60, %v1681_v59  ;;  %v1087_v17 = vor.u32 %v1086_v8, %v1082_v7  ;;  %v11418_v59 = vshrl.u32 %v7865_v62, 16 }
  0x7d   : > { %v1772_v4 = vshrl.u32 %v1740_v63, 16  ;;  %v1775_v5 = vshll.u32 %v1740_v63, 16  ;;  %v11407_v63 = vshrl.u32 %v7957_v55, 16 }
  0x7f   : > { %v1774_v14 = vrot.slane %v1772_v4, 2  ;;  %v1107_v4 = vrot.slane %v11412_v2, 1  ;;  %v8088_v2 = vld [vmem:[%s7725_s28 + $0x38] sm:$0xff]  }
  0x80   : > { %6362 = vmatmul.msk.bf16.gmra.mxu3 %vm795_vm2, %v794_v18  ;;  %v1782_v18 = vrot.slane %v11420_v9, 2  ;;  %2349 = vperm.xlu0 %7457, %v255_v28   ;;  %11591 = vst [vmem:[#allocation26_spill] sm:$0xff] %v8088_v2 }
  0x82   : > { %v1786_v26 = vor.u32 %v1785_v20, %v1782_v18  ;;  %v8000_v18 = vld [vmem:[%s7725_s28 + $0x2c] sm:$0xff] }
  0x83   : > { %11582 = vst [vmem:[#allocation17_spill] sm:$0xff] %v8000_v18  ;;  %v11405_v28 = vshrl.u32 %v8000_v18, 16 }
  0x84   : > { %6339 = vmatmul.msk.bf16.gmra.mxu0 %vm795_vm2, %v587_v13  ;;  %v1091_v13 = vrot.slane %v1089_v33, 1 }
  0x85   : > { %6347 = vmatmul.msk.bf16.gmra.mxu1 %vm795_vm2, %v659_v15  ;;  %v1777_v15 = vrot.slane %v1775_v5, 3  ;;  %v1800_v5 = vrot.slane %v11407_v63, 2 }
  0x86   : > { %v1092_v24 = vsel %vm1080_vm5, %v1087_v17, %v1091_v13 }
  0x87   : > { %v1778_v25 = vor.u32 %v1777_v15, %v1774_v14  ;;  %v7990_v15 = vld [vmem:[%s7725_s28 + $0x28] sm:$0xff]  }
  0x88   : > { %6355 = vmatmul.msk.bf16.gmra.mxu2 %vm795_vm2, %v731_v23  ;;  %11581 = vst [vmem:[#allocation16_spill] sm:$0xff] %v7990_v15  ;;  %2374 = vperm.xlu0 %7457, %v260_v39  }
  0x89   : > { %v1787_v29 = vsel %vm1770_vm6, %v1778_v25, %v1786_v26 }
  0x90   : > { %6536 = vmatmul.msk.bf16.vlgmr.msrb.gmra.mxu3 %vm795_vm2, %v7831_v30 }
  0x94   : > { %6340 = vmatmul.msk.bf16.gmra.mxu0 %vm795_vm2, %v596_v43  ;;  %v1095_v43 = vor.u32 %v1093_v34, %v1091_v13  ;;  %v7944_v34 = vld [vmem:[%s7725_s28 + $0x20] sm:$0xff]  }
  0x95   : > { %6348 = vmatmul.msk.bf16.gmra.mxu1 %vm795_vm2, %v668_v44  ;;  %v1099_v44 = vrot.slane %v11417_v36, 1  ;;  %11577 = vst [vmem:[#allocation12_spill] sm:$0xff] %v7944_v34 }
  0x97   : > { %v1100_v50 = vsel %vm1080_vm5, %v1095_v43, %v1099_v44  ;;  %v1103_v3 = vor.u32 %v11418_v59, %v1099_v44  ;;  %v2981_v43 = vrot.slane %v7944_v34, 1 }
  0x98   : > { %6356 = vmatmul.msk.bf16.gmra.mxu2 %vm795_vm2, %v740_v46  ;;  %v1794_v46 = vrot.slane %v11409_v38, 3 }
  0x99   : > { %v1108_v13 = vsel %vm1080_vm5, %v1103_v3, %v1107_v4  ;;  %v2982_v52 = vsel %vm2973_vm4, %v2979_v51, %v2981_v43 }
  0x9a   : > { %v1795_v30 = vor.u32 %v1794_v46, %v1791_v45  ;;  %v1809_v46 = vrot.slane %v11405_v28, 2 }
  0x9c   : > { %v1796_v54 = vsel %vm1770_vm6, %v1786_v26, %v1795_v30  ;;  %v11408_v26 = vshll.u32 %v7944_v34, 16 }
  0x9e   : > { %v1115_v45 = vrot.slane %v11408_v26, 1 }
  0xa0   : > { %6537 = vmatmul.msk.bf16.gmra.mxu3 %vm795_vm2, %v7865_v62 }
  0xa4   : > { %6341 = vmatmul.msk.bf16.gmra.mxu0 %vm795_vm2, %v605_v58 }
  0xa5   : > { %6349 = vmatmul.msk.bf16.gmra.mxu1 %vm795_vm2, %v677_v61 }
  0xa8   : > { %6357 = vmatmul.msk.bf16.gmra.mxu2 %vm795_vm2, %v749_v35  ;;  %v11406_v35 = vshll.u32 %v7957_v55, 16 }
  0xaa   : > { %v1803_v7 = vrot.slane %v11406_v35, 3 }
  0xac   : > { %v1804_v14 = vor.u32 %v1803_v7, %v1800_v5  ;;  %v8036_v5 = vld [vmem:[%s7725_s28 + $0x30] sm:$0xff]   ;;  %v258_v7 = vld [vmem:[%s11402_s3 + $0x20] sm:$0xff] }
  0xad   : > { %11585 = vst [vmem:[#allocation20_spill] sm:$0xff] %v8036_v5  ;;  %2364 = vperm.xlu2 %7459, %v258_v7   ;;  %v259_v7 = vld [vmem:[%s11402_s3 + $0x28] sm:$0xff] }
  0xae   : > { %v1805_v17 = vsel %vm1770_vm6, %v1795_v30, %v1804_v14 }
  0xb0   : > { %6538 = vmatmul.msk.bf16.gmra.mxu3 %vm795_vm2, %v7902_v27 }
  0xb1   : > { %v7895_v21 = vpop.f32.mrf.mxu0 }
  0xb2   : > { %v7898_v23 = vpop.f32.mrf.mxu1 }
  0xb4   : > { %6565 = vmatmul.msk.bf16.vlgmr.msrb.gmra.mxu0 %vm795_vm2, %v2976_v22 }
  0xb5   : > { %6363 = vmatmul.msk.bf16.vlgmr.msrb.gmra.mxu1 %vm795_vm2, %v1092_v24  ;;  %v11416_v24 = vshrl.u32 %v7902_v27, 16  ;;  %2369 = vperm.xlu2 %7459, %v259_v7  }
  0xb7   : > { %v1111_v44 = vor.u32 %v11416_v24, %v1107_v4 }
  0xb8   : > { %6505 = vmatmul.msk.bf16.vlgmr.msrb.gmra.mxu2 %vm795_vm2, %v1787_v29  ;;  %v11404_v29 = vshll.u32 %v8000_v18, 16 }
  0xb9   : > { %v7916_v32 = vpop.f32.mrf.mxu0  ;;  %v1116_v3 = vsel %vm1080_vm5, %v1111_v44, %v1115_v45 }
  0xba   : > { %v7918_v33 = vpop.f32.mrf.mxu1 }
  0xbb   : > { %v7926_v40 = vpop.f32.mrf.mxu2 }
  0xc0   : > { %6539 = vmatmul.msk.bf16.gmra.mxu3 %vm795_vm2, %v7944_v34 }
  0xc1   : > { %v7937_v47 = vpop.f32.mrf.mxu0 }
  0xc2   : > { %v7940_v49 = vpop.f32.mrf.mxu1 }
  0xc3   : > { %v7949_v53 = vpop.f32.mrf.mxu2  ;;  %v7959_v56 = vpop.f32.mrf.mxu3 }
  0xc4   : > { %6566 = vmatmul.msk.bf16.gmra.mxu0 %vm795_vm2, %v2978_v48  ;;  %11579 = vst [vmem:[#allocation14_spill] sm:$0xff] %v7959_v56  ;;  %v1812_v48 = vrot.slane %v11404_v29, 3 }
  0xc5   : > { %6364 = vmatmul.msk.bf16.gmra.mxu1 %vm795_vm2, %v1100_v50 }
  0xc6   : > { %v1813_v4 = vor.u32 %v1812_v48, %v1809_v46  ;;  %v11411_v46 = vshrl.u32 %v7944_v34, 16 }
  0xc8   : > { %6506 = vmatmul.msk.bf16.gmra.mxu2 %vm795_vm2, %v1796_v54  ;;  %v1814_v51 = vsel %vm1770_vm6, %v1804_v14, %v1813_v4  ;;  %v1119_v29 = vor.u32 %v11411_v46, %v1115_v45 }
  0xc9   : > { %v7962_v58 = vpop.f32.mrf.mxu0 }
  0xca   : > { %v7965_v61 = vpop.f32.mrf.mxu1 }
  0xcb   : > { %v7970_v0 = vpop.f32.mrf.mxu2  ;;  %v7981_v8 = vpop.f32.mrf.mxu3 }
  0xcc   : > { %11580 = vst [vmem:[#allocation15_spill] sm:$0xff] %v7981_v8 }
  0xd0   : > { %6540 = vmatmul.msk.bf16.gmra.mxu3 %vm795_vm2, %v7990_v15 }
  0xd1   : > { %v7983_v11 = vpop.f32.mrf.mxu0 }
  0xd2   : > { %v7986_v12 = vpop.f32.mrf.mxu1 }
  0xd3   : > { %v7992_v16 = vpop.f32.mrf.mxu2  ;;  %v8002_v20 = vpop.f32.mrf.mxu3 }
  0xd4   : > { %6567 = vmatmul.msk.bf16.gmra.mxu0 %vm795_vm2, %v2980_v19  ;;  %11583 = vst [vmem:[#allocation18_spill] sm:$0xff] %v8002_v20  ;;  %v261_v19 = vld [vmem:[%s11402_s3 + $0x38] sm:$0xff] }
  0xd5   : > { %6365 = vmatmul.msk.bf16.gmra.mxu1 %vm795_vm2, %v1108_v13  ;;  %2379 = vperm.xlu1 %7458, %v261_v19  }
  0xd8   : > { %6507 = vmatmul.msk.bf16.gmra.mxu2 %vm795_vm2, %v1805_v17  ;;  %v8052_v17 = vld [vmem:[%s7725_s28 + $0x34] sm:$0xff] }
  0xd9   : > { %v8005_v22 = vpop.f32.mrf.mxu0  ;;  %11587 = vst [vmem:[#allocation22_spill] sm:$0xff] %v8052_v17  ;;  %v11415_v14 = vshll.u32 %v8052_v17, 16 }
  0xda   : > { %v8008_v25 = vpop.f32.mrf.mxu1 }
  0xdb   : > { %v8016_v41 = vpop.f32.mrf.mxu2  ;;  %v8027_v50 = vpop.f32.mrf.mxu3  ;;  %v1821_v63 = vrot.slane %v11415_v14, 3  ;;  %v11422_v14 = vshrl.u32 %v7990_v15, 16 }
  0xdc   : > { %11584 = vst [vmem:[#allocation19_spill] sm:$0xff] %v8027_v50  ;;  %v8137_v50 = vld [vmem:[%s7725_s28 + $0x40] sm:$0xff]  }
  0xdd   : > { %11597 = vst [vmem:[#allocation32_spill] sm:$0xff] %v8137_v50 }
  0xe0   : > { %6541 = vmatmul.msk.bf16.gmra.mxu3 %vm795_vm2, %v8036_v5 }
  0xe1   : > { %v8029_v30 = vpop.f32.mrf.mxu0 }
  0xe2   : > { %v8032_v54 = vpop.f32.mrf.mxu1 }
  0xe3   : > { %v8044_v13 = vpop.f32.mrf.mxu2  ;;  %v8054_v39 = vpop.f32.mrf.mxu3 }
  0xe4   : > { %11586 = vst [vmem:[#allocation21_spill] sm:$0xff] %v8044_v13  ;;  %6568 = vmatmul.msk.bf16.gmra.mxu0 %vm795_vm2, %v2982_v52  ;;  %v11414_v52 = vshll.u32 %v7990_v15, 16 }
  0xe5   : > { %6366 = vmatmul.msk.bf16.gmra.mxu1 %vm795_vm2, %v1116_v3  ;;  %11588 = vst [vmem:[#allocation23_spill] sm:$0xff] %v8054_v39  ;;  %v11413_v3 = vshrl.u32 %v8052_v17, 16 }
  0xe6   : > { %v1123_v28 = vrot.slane %v11414_v52, 1 }
  0xe7   : > { %v1818_v35 = vrot.slane %v11413_v3, 2  ;;  %v263_v3 = vld [vmem:[%s11402_s3 + $0x48] sm:$0xff] }
  0xe8   : > { %6508 = vmatmul.msk.bf16.gmra.mxu2 %vm795_vm2, %v1814_v51  ;;  %v2983_v51 = vrot.slane %v7990_v15, 1  ;;  %v1124_v45 = vsel %vm1080_vm5, %v1119_v29, %v1123_v28  ;;  %2389 = vperm.xlu0 %7457, %v263_v3   ;;  %v8101_v29 = vld [vmem:[%s7725_s28 + $0x3c] sm:$0xff]  ;;  %v11424_v3 = vshll.u32 %v8036_v5, 16  ;;  %v1127_v59 = vor.u32 %v11422_v14, %v1123_v28 }
  0xe9   : > { %v8057_v44 = vpop.f32.mrf.mxu0  ;;  %v1822_v46 = vor.u32 %v1821_v63, %v1818_v35  ;;  %11593 = vst [vmem:[#allocation28_spill] sm:$0xff] %v8101_v29 }
  0xea   : > { %v8060_v48 = vpop.f32.mrf.mxu1  ;;  %v2984_v7 = vsel %vm2973_vm4, %v2981_v43, %v2983_v51  ;;  %v1131_v10 = vrot.slane %v11424_v3, 1 }
  0xeb   : > { %v8068_v19 = vpop.f32.mrf.mxu2  ;;  %v8079_v26 = vpop.f32.mrf.mxu3  ;;  %v1823_v43 = vsel %vm1770_vm6, %v1813_v4, %v1822_v46  ;;  %v264_v4 = vld [vmem:[%s11402_s3 + $0x50] sm:$0xff] }
  0xec   : > { %11589 = vst [vmem:[#allocation24_spill] sm:$0xff] %v8068_v19  ;;  %2394 = vperm.xlu1 %7458, %v264_v4   ;;  %v1132_v28 = vsel %vm1080_vm5, %v1127_v59, %v1131_v10  ;;  %v8150_v59 = vld [vmem:[%s7725_s28 + $0x44] sm:$0xff] }
  0xed   : > { %11590 = vst [vmem:[#allocation25_spill] sm:$0xff] %v8079_v26 }
  0xee   : > { %11599 = vst [vmem:[#allocation34_spill] sm:$0xff] %v8150_v59 }
  0xf0   : > { %6542 = vmatmul.msk.bf16.gmra.mxu3 %vm795_vm2, %v8088_v2 }
  0xf1   : > { %v8081_v38 = vpop.f32.mrf.mxu0 }
  0xf2   : > { %v8084_v37 = vpop.f32.mrf.mxu1 }
  0xf3   : > { %v8093_v52 = vpop.f32.mrf.mxu2  ;;  %v8103_v63 = vpop.f32.mrf.mxu3 }
  0xf4   : > { %11592 = vst [vmem:[#allocation27_spill] sm:$0xff] %v8093_v52  ;;  %6569 = vmatmul.msk.bf16.gmra.mxu0 %vm795_vm2, %v2984_v7  ;;  %v11423_v7 = vshrl.u32 %v8101_v29, 16 }
  0xf5   : > { %6367 = vmatmul.msk.bf16.gmra.mxu1 %vm795_vm2, %v1124_v45  ;;  %11594 = vst [vmem:[#allocation29_spill] sm:$0xff] %v8103_v63  ;;  %v11425_v45 = vshll.u32 %v8101_v29, 16 }
  0xf6   : > { %v1827_v9 = vrot.slane %v11423_v7, 2  ;;  %v262_v7 = vld [vmem:[%s11402_s3 + $0x40] sm:$0xff] }
  0xf7   : > { %v1830_v60 = vrot.slane %v11425_v45, 3  ;;  %2384 = vperm.xlu2 %7459, %v262_v7   ;;  %v11434_v45 = vshrl.u32 %v8036_v5, 16  ;;  %v11438_v7 = vshll.u32 %v8088_v2, 16 }
  0xf8   : > { %6509 = vmatmul.msk.bf16.gmra.mxu2 %vm795_vm2, %v1823_v43  ;;  %v2985_v43 = vrot.slane %v8036_v5, 1  ;;  %v8186_v5 = vld [vmem:[%s7725_s28 + $0x48] sm:$0xff]  }
  0xf9   : > { %v8106_v35 = vpop.f32.mrf.mxu0  ;;  %v1831_v14 = vor.u32 %v1830_v60, %v1827_v9  ;;  %v1135_v20 = vor.u32 %v11434_v45, %v1131_v10  ;;  %v1139_v29 = vrot.slane %v11438_v7, 1  ;;  %11603 = vst [vmem:[#allocation38_spill] sm:$0xff] %v8186_v5 }
  0xfa   : > { %v8109_v24 = vpop.f32.mrf.mxu1  ;;  %v2986_v4 = vsel %vm2973_vm4, %v2983_v51, %v2985_v43 }
  0xfb   : > { %v8117_v36 = vpop.f32.mrf.mxu2  ;;  %v8128_v63 = vpop.f32.mrf.mxu3  ;;  %v1832_v51 = vsel %vm1770_vm6, %v1822_v46, %v1831_v14  ;;  %v266_v46 = vld [vmem:[%s11402_s3 + $0x60] sm:$0xff]  ;;  %v1140_v10 = vsel %vm1080_vm5, %v1135_v20, %v1139_v29  ;;  %v8199_v20 = vld [vmem:[%s7725_s28 + $0x4c] sm:$0xff] }
  0xfc   : > { %11595 = vst [vmem:[#allocation30_spill] sm:$0xff] %v8117_v36  ;;  %2404 = vperm.xlu0 %7457, %v266_v46  }
  0xfd   : > { %11596 = vst [vmem:[#allocation31_spill] sm:$0xff] %v8128_v63 }
  0xfe   : > { %11605 = vst [vmem:[#allocation40_spill] sm:$0xff] %v8199_v20 }
 0x100   : > { %6543 = vmatmul.msk.bf16.gmra.mxu3 %vm795_vm2, %v8137_v50 }
 0x101   : > { %v8130_v26 = vpop.f32.mrf.mxu0 }
 0x102   : > { %v8133_v39 = vpop.f32.mrf.mxu1 }
 0x103   : > { %v8142_v3 = vpop.f32.mrf.mxu2  ;;  %v8152_v60 = vpop.f32.mrf.mxu3 }
 0x104   : > { %11598 = vst [vmem:[#allocation33_spill] sm:$0xff] %v8142_v3  ;;  %6570 = vmatmul.msk.bf16.gmra.mxu0 %vm795_vm2, %v2986_v4  ;;  %v11437_v4 = vshrl.u32 %v8150_v59, 16 }
 0x105   : > { %6368 = vmatmul.msk.bf16.gmra.mxu1 %vm795_vm2, %v1132_v28  ;;  %11600 = vst [vmem:[#allocation35_spill] sm:$0xff] %v8152_v60  ;;  %v11439_v28 = vshll.u32 %v8150_v59, 16 }
 0x106   : > { %v1836_v8 = vrot.slane %v11437_v4, 2  ;;  %v267_v4 = vld [vmem:[%s11402_s3 + $0x68] sm:$0xff] }
 0x107   : > { %v1839_v56 = vrot.slane %v11439_v28, 3  ;;  %2409 = vperm.xlu1 %7458, %v267_v4   ;;  %v11450_v28 = vshrl.u32 %v8088_v2, 16  ;;  %v11452_v4 = vshll.u32 %v8137_v50, 16 }
 0x108   : > { %6510 = vmatmul.msk.bf16.gmra.mxu2 %vm795_vm2, %v1832_v51  ;;  %v2987_v51 = vrot.slane %v8088_v2, 1 }
 0x109   : > { %v8155_v9 = vpop.f32.mrf.mxu0  ;;  %v1840_v45 = vor.u32 %v1839_v56, %v1836_v8  ;;  %v1143_v55 = vor.u32 %v11450_v28, %v1139_v29  ;;  %v8231_v28 = vld [vmem:[%s7725_s28 + $0x50] sm:$0xff]  }
 0x10a   : > { %v8158_v63 = vpop.f32.mrf.mxu1  ;;  %v2988_v46 = vsel %vm2973_vm4, %v2985_v43, %v2987_v51 }
 0x10b   : > { %v8166_v60 = vpop.f32.mrf.mxu2  ;;  %v8177_v17 = vpop.f32.mrf.mxu3  ;;  %v1841_v43 = vsel %vm1770_vm6, %v1831_v14, %v1840_v45  ;;  %v265_v14 = vld [vmem:[%s11402_s3 + $0x58] sm:$0xff] }
 0x10c   : > { %11601 = vst [vmem:[#allocation36_spill] sm:$0xff] %v8166_v60  ;;  %2399 = vperm.xlu2 %7459, %v265_v14  }
 0x10d   : > { %11602 = vst [vmem:[#allocation37_spill] sm:$0xff] %v8177_v17 }
 0x110   : > { %6544 = vmatmul.msk.bf16.gmra.mxu3 %vm795_vm2, %v8186_v5 }
 0x111   : > { %v8179_v18 = vpop.f32.mrf.mxu0 }
 0x112   : > { %v8182_v15 = vpop.f32.mrf.mxu1 }
 0x113   : > { %v8191_v7 = vpop.f32.mrf.mxu2  ;;  %v2825_v56 = vpop.f32.mrf.mxu3 }
 0x114   : > { %11604 = vst [vmem:[#allocation39_spill] sm:$0xff] %v8191_v7  ;;  %6571 = vmatmul.msk.bf16.gmra.mxu0 %vm795_vm2, %v2988_v46  ;;  %v11451_v46 = vshrl.u32 %v8199_v20, 16  ;;  %v1147_v7 = vrot.slane %v11452_v4, 1 }
 0x115   : > { %6369 = vmatmul.msk.bf16.gmra.mxu1 %vm795_vm2, %v1140_v10  ;;  %v11453_v10 = vshll.u32 %v8199_v20, 16 }
 0x116   : > { %v1845_v60 = vrot.slane %v11451_v46, 2  ;;  %v1148_v2 = vsel %vm1080_vm5, %v1143_v55, %v1147_v7  ;;  %v269_v46 = vld [vmem:[%s11402_s3 + $0x78] sm:$0xff] }
 0x117   : > { %v1848_v34 = vrot.slane %v11453_v10, 3  ;;  %2419 = vperm.xlu0 %7457, %v269_v46   ;;  %v8244_v55 = vld [vmem:[%s7725_s28 + $0x54] sm:$0xff]  ;;  %v11463_v10 = vshrl.u32 %v8137_v50, 16  ;;  %v11465_v46 = vshll.u32 %v8186_v5, 16 }
 0x118   : > { %6511 = vmatmul.msk.bf16.gmra.mxu2 %vm795_vm2, %v1841_v43  ;;  %v2989_v43 = vrot.slane %v8137_v50, 1  ;;  %11608 = vst [vmem:[#allocation43_spill] sm:$0xff] %v8244_v55 }
 0x119   : > { %v8202_v8 = vpop.f32.mrf.mxu0  ;;  %v1849_v29 = vor.u32 %v1848_v34, %v1845_v60  ;;  %v1151_v36 = vor.u32 %v11463_v10, %v1147_v7  ;;  %v1155_v27 = vrot.slane %v11465_v46, 1  ;;  %v8274_v10 = vld [vmem:[%s7725_s28 + $0x58] sm:$0xff]  }
 0x11a   : > { %v8205_v17 = vpop.f32.mrf.mxu1  ;;  %v2990_v14 = vsel %vm2973_vm4, %v2987_v51, %v2989_v43 }
 0x11b   : > { %v8213_v59 = vpop.f32.mrf.mxu2  ;;  %v2827_v31 = vpop.f32.mrf.mxu3  ;;  %v1850_v51 = vsel %vm1770_vm6, %v1840_v45, %v1849_v29  ;;  %v270_v45 = vld [vmem:[%s11402_s3 + $0x80] sm:$0xff]  ;;  %v1156_v50 = vsel %vm1080_vm5, %v1151_v36, %v1155_v27 }
 0x11c   : > { %11606 = vst [vmem:[#allocation41_spill] sm:$0xff] %v8213_v59  ;;  %2424 = vperm.xlu1 %7458, %v270_v45   ;;  %v8287_v36 = vld [vmem:[%s7725_s28 + $0x5c] sm:$0xff] }
 0x11d   : > { %11612 = vst [vmem:[#allocation47_spill] sm:$0xff] %v8287_v36 }
 0x120   : > { %6545 = vmatmul.msk.bf16.gmra.mxu3 %vm795_vm2, %v8231_v28 }
 0x121   : > { %v8224_v3 = vpop.f32.mrf.mxu0 }
 0x122   : > { %v8227_v59 = vpop.f32.mrf.mxu1 }
 0x123   : > { %v8236_v4 = vpop.f32.mrf.mxu2  ;;  %v2830_v34 = vpop.f32.mrf.mxu3 }
 0x124   : > { %11607 = vst [vmem:[#allocation42_spill] sm:$0xff] %v8236_v4  ;;  %6572 = vmatmul.msk.bf16.gmra.mxu0 %vm795_vm2, %v2990_v14  ;;  %v11466_v14 = vshll.u32 %v8244_v55, 16 }
 0x125   : > { %6370 = vmatmul.msk.bf16.gmra.mxu1 %vm795_vm2, %v1148_v2  ;;  %v11464_v2 = vshrl.u32 %v8244_v55, 16  ;;  %v272_v55 = vld [vmem:[%s11402_s3 + $0x90] sm:$0xff] }
 0x126   : > { %v1857_v19 = vrot.slane %v11466_v14, 3  ;;  %2434 = vperm.xlu0 %7457, %v272_v55  }
 0x127   : > { %v1854_v52 = vrot.slane %v11464_v2, 2  ;;  %v268_v2 = vld [vmem:[%s11402_s3 + $0x70] sm:$0xff] }
 0x128   : > { %6512 = vmatmul.msk.bf16.gmra.mxu2 %vm795_vm2, %v1850_v51  ;;  %v2991_v51 = vrot.slane %v8186_v5, 1  ;;  %2414 = vperm.xlu2 %7459, %v268_v2  }
 0x129   : > { %v8247_v60 = vpop.f32.mrf.mxu0  ;;  %v1858_v7 = vor.u32 %v1857_v19, %v1854_v52 }
 0x12a   : > { %v8250_v20 = vpop.f32.mrf.mxu1 }
 0x12b   : > { %v8258_v4 = vpop.f32.mrf.mxu2  ;;  %v2832_v62 = vpop.f32.mrf.mxu3 }
 0x12c   : > { %11609 = vst [vmem:[#allocation44_spill] sm:$0xff] %v8258_v4  ;;  %v2992_v4 = vsel %vm2973_vm4, %v2989_v43, %v2991_v51 }
 0x130   : > { %6546 = vmatmul.msk.bf16.gmra.mxu3 %vm795_vm2, %v8274_v10 }
 0x131   : > { %v3132_v13 = vpop.f32.mrf.mxu0 }
 0x132   : > { %v1416_v45 = vpop.f32.mrf.mxu1  ;;  %v8270_v42 = vadd.f32 %v3132_v13, %v2825_v56  ;;  %v1859_v13 = vsel %vm1770_vm6, %v1849_v29, %v1858_v7 }
 0x133   : > { %v8279_v46 = vpop.f32.mrf.mxu2  ;;  %v8289_v52 = vpop.f32.mrf.mxu3  ;;  %v1417_v29 = vadd.f32 %v1416_v45, %v7895_v21  ;;  %v11616_v21 = vshll.u32 %v8287_v36, 16 }
 0x134   : > { %11610 = vst [vmem:[#allocation45_spill] sm:$0xff] %v8270_v42  ;;  %6573 = vmatmul.msk.bf16.gmra.mxu0 %vm795_vm2, %v2992_v4  ;;  %v2345_v4 = vpop.permute.xlu0 %2344  ;;  %v11615_v42 = vshrl.u32 %v8287_v36, 16  ;;  %v8368_v36 = vld [vmem:[%s7725_s28 + $0x68] sm:$0xff]  }
 0x135   : > { %11611 = vst [vmem:[#allocation46_spill] sm:$0xff] %v8279_v46  ;;  %6371 = vmatmul.msk.bf16.gmra.mxu1 %vm795_vm2, %v1156_v50  ;;  %v11474_v50 = vshll.u32 %v8231_v28, 16  ;;  %v1866_v45 = vrot.slane %v11616_v21, 3 }
 0x136   : > { %v1863_v46 = vrot.slane %v11615_v42, 2 }
 0x137   : > { %v1163_v2 = vrot.slane %v11474_v50, 1  ;;  %v8320_v50 = vld [vmem:[%s7725_s28 + $0x60] sm:$0xff]  }
 0x138   : > { %6513 = vmatmul.msk.bf16.gmra.mxu2 %vm795_vm2, %v1859_v13 }
 0x139   : > { %v3134_v56 = vpop.f32.mrf.mxu0 }
 0x13a   : > { %v1418_v43 = vpop.f32.mrf.mxu1  ;;  %v8293_v14 = vadd.f32 %v3134_v56, %v2827_v31  ;;  %v2993_v31 = vrot.slane %v8231_v28, 1  ;;  %v11614_v56 = vshrl.u32 %v8186_v5, 16 }
 0x13b   : > { %v2139_v19 = vpop.f32.mrf.mxu2  ;;  %v8313_v57 = vpop.f32.mrf.mxu3  ;;  %v1419_v42 = vadd.f32 %v1418_v43, %v7916_v32  ;;  %v11476_v43 = vshrl.u32 %v8231_v28, 16 }
 0x13c   : > { %11613 = vst [vmem:[#allocation48_spill] sm:$0xff] %v8293_v14  ;;  %v2284_v13 = vadd.f32 %v2139_v19, %v1417_v29  ;;  %v1159_v14 = vor.u32 %v11614_v56, %v1155_v27  ;;  %v2994_v19 = vsel %vm2973_vm4, %v2991_v51, %v2993_v31  ;;  %v1867_v56 = vor.u32 %v1866_v45, %v1863_v46  ;;  %v2350_v21 = vpop.permute.xlu0 %2349  ;;  %v8332_v46 = vld [vmem:[%s7725_s28 + $0x64] sm:$0xff] }
 0x13d   : > { %11618 = vst [vmem:[#allocation50_spill] sm:$0xff] %v8332_v46 }
 0x13e   : > { %v8311_v1 = vmul.f32 %v2345_v4, %v2284_v13  ;;  %v1164_v27 = vsel %vm1080_vm5, %v1159_v14, %v1163_v2  ;;  %v273_v4 = vld [vmem:[%s11402_s3 + $0x98] sm:$0xff] }
 0x13f   : > { %2439 = vperm.xlu1 %7458, %v273_v4  }
 0x140   : > { %6547 = vmatmul.msk.bf16.gmra.mxu3 %vm795_vm2, %v8320_v50 }
 0x141   : > { %v3137_v55 = vpop.f32.mrf.mxu0 }
 0x142   : > { %v1421_v29 = vpop.f32.mrf.mxu1  ;;  %v8316_v5 = vadd.f32 %v3137_v55, %v2830_v34  ;;  %v1868_v34 = vsel %vm1770_vm6, %v1858_v7, %v1867_v56  ;;  %v11621_v7 = vshrl.u32 %v8332_v46, 16 }
 0x143   : > { %v2141_v13 = vpop.f32.mrf.mxu2  ;;  %v8336_v14 = vpop.f32.mrf.mxu3 }
 0x144   : > { %11617 = vst [vmem:[#allocation49_spill] sm:$0xff] %v8316_v5  ;;  %6574 = vmatmul.msk.bf16.gmra.mxu0 %vm795_vm2, %v2994_v19  ;;  %v2285_v51 = vadd.f32 %v2141_v13, %v1419_v42  ;;  %v11475_v42 = vshll.u32 %v8274_v10, 16  ;;  %v1422_v13 = vadd.f32 %v1421_v29, %v7937_v47  ;;  %v11622_v47 = vshll.u32 %v8332_v46, 16  ;;  %v8417_v46 = vld [vmem:[%s7725_s28 + $0x70] sm:$0xff]  }
 0x145   : > { %6372 = vmatmul.msk.bf16.gmra.mxu1 %vm795_vm2, %v1164_v27  ;;  %v2355_v27 = vpop.permute.xlu1 %2354 }
 0x146   : > { %v8334_v32 = vmul.f32 %v2350_v21, %v2285_v51  ;;  %v271_v21 = vld [vmem:[%s11402_s3 + $0x88] sm:$0xff]  ;;  %v1171_v4 = vrot.slane %v11475_v42, 1  ;;  %v1875_v29 = vrot.slane %v11622_v47, 3 }
 0x147   : > { %2429 = vperm.xlu2 %7459, %v271_v21  }
 0x148   : > { %11619 = vst [vmem:[#allocation51_spill] sm:$0xff] %v8334_v32  ;;  %6514 = vmatmul.msk.bf16.gmra.mxu2 %vm795_vm2, %v1868_v34 }
 0x149   : > { %v3139_v45 = vpop.f32.mrf.mxu0 }
 0x14a   : > { %v1423_v55 = vpop.f32.mrf.mxu1  ;;  %v8340_v19 = vadd.f32 %v3139_v45, %v2832_v62  ;;  %v2995_v62 = vrot.slane %v8274_v10, 1  ;;  %v1167_v45 = vor.u32 %v11476_v43, %v1163_v2 }
 0x14b   : > { %v2144_v51 = vpop.f32.mrf.mxu2  ;;  %v8360_v32 = vpop.f32.mrf.mxu3 }
 0x14c   : > { %11620 = vst [vmem:[#allocation52_spill] sm:$0xff] %v8340_v19  ;;  %v2286_v34 = vadd.f32 %v2144_v51, %v1422_v13  ;;  %v1872_v19 = vrot.slane %v11621_v7, 2  ;;  %v2996_v13 = vsel %vm2973_vm4, %v2993_v31, %v2995_v62  ;;  %v1172_v42 = vsel %vm1080_vm5, %v1167_v45, %v1171_v4 }
 0x14d   : > { %v1424_v7 = vadd.f32 %v1423_v55, %v7962_v58  ;;  %v2360_v47 = vpop.permute.xlu1 %2359  ;;  %v11480_v45 = vshrl.u32 %v8274_v10, 16 }
 0x14e   : > { %v8358_v5 = vmul.f32 %v2355_v27, %v2286_v34  ;;  %v1876_v43 = vor.u32 %v1875_v29, %v1872_v19  ;;  %v275_v27 = vld [vmem:[%s11402_s3 + $0xa8] sm:$0xff] }
 0x14f   : > { %2449 = vperm.xlu0 %7457, %v275_v27   ;;  %v8380_v19 = vld [vmem:[%s7725_s28 + $0x6c] sm:$0xff] }
 0x150   : > { %6548 = vmatmul.msk.bf16.gmra.mxu3 %vm795_vm2, %v8368_v36  ;;  %11624 = vst [vmem:[#allocation54_spill] sm:$0xff] %v8380_v19  ;;  %v11627_v27 = vshrl.u32 %v8380_v19, 16 }
 0x151   : > { %v3142_v21 = vpop.f32.mrf.mxu0 }
 0x152   : > { %v1426_v51 = vpop.f32.mrf.mxu1  ;;  %v8364_v2 = vadd.f32 %v3142_v21, %v8289_v52  ;;  %v1877_v52 = vsel %vm1770_vm6, %v1867_v56, %v1876_v43 }
 0x153   : > { %v2146_v34 = vpop.f32.mrf.mxu2  ;;  %v8384_v55 = vpop.f32.mrf.mxu3 }
 0x154   : > { %11623 = vst [vmem:[#allocation53_spill] sm:$0xff] %v8364_v2  ;;  %6575 = vmatmul.msk.bf16.gmra.mxu0 %vm795_vm2, %v2996_v13  ;;  %v2287_v31 = vadd.f32 %v2146_v34, %v1424_v7  ;;  %v11479_v7 = vshll.u32 %v8320_v50, 16  ;;  %v1427_v34 = vadd.f32 %v1426_v51, %v7983_v11  ;;  %v11628_v11 = vshll.u32 %v8380_v19, 16  ;;  %v8466_v19 = vld [vmem:[%s7725_s28 + $0x78] sm:$0xff]  }
 0x155   : > { %6373 = vmatmul.msk.bf16.gmra.mxu1 %vm795_vm2, %v1172_v42  ;;  %v2365_v42 = vpop.permute.xlu2 %2364 }
 0x156   : > { %v8382_v58 = vmul.f32 %v2360_v47, %v2287_v31  ;;  %v276_v47 = vld [vmem:[%s11402_s3 + $0xb0] sm:$0xff]  ;;  %v1179_v56 = vrot.slane %v11479_v7, 1  ;;  %v1884_v51 = vrot.slane %v11628_v11, 3 }
 0x157   : > { %2454 = vperm.xlu1 %7458, %v276_v47  }
 0x158   : > { %11625 = vst [vmem:[#allocation55_spill] sm:$0xff] %v8382_v58  ;;  %6515 = vmatmul.msk.bf16.gmra.mxu2 %vm795_vm2, %v1877_v52 }
 0x159   : > { %v3144_v29 = vpop.f32.mrf.mxu0 }
 0x15a   : > { %v1428_v21 = vpop.f32.mrf.mxu1  ;;  %v8389_v13 = vadd.f32 %v3144_v29, %v8313_v57  ;;  %v2997_v57 = vrot.slane %v8320_v50, 1  ;;  %v1175_v29 = vor.u32 %v11480_v45, %v1171_v4 }
 0x15b   : > { %v2149_v31 = vpop.f32.mrf.mxu2  ;;  %v8409_v58 = vpop.f32.mrf.mxu3 }
 0x15c   : > { %11626 = vst [vmem:[#allocation56_spill] sm:$0xff] %v8389_v13  ;;  %v2288_v52 = vadd.f32 %v2149_v31, %v1427_v34  ;;  %v1881_v13 = vrot.slane %v11627_v27, 2  ;;  %v2998_v34 = vsel %vm2973_vm4, %v2995_v62, %v2997_v57  ;;  %v1180_v7 = vsel %vm1080_vm5, %v1175_v29, %v1179_v56 }
 0x15d   : > { %v1429_v27 = vadd.f32 %v1428_v21, %v8005_v22  ;;  %v2370_v11 = vpop.permute.xlu2 %2369  ;;  %v11484_v29 = vshrl.u32 %v8320_v50, 16 }
 0x15e   : > { %v8407_v2 = vmul.f32 %v2365_v42, %v2288_v52  ;;  %v1885_v45 = vor.u32 %v1884_v51, %v1881_v13  ;;  %v274_v42 = vld [vmem:[%s11402_s3 + $0xa0] sm:$0xff]  ;;  %v8429_v13 = vld [vmem:[%s7725_s28 + $0x74] sm:$0xff] }
 0x15f   : > { %2444 = vperm.xlu2 %7459, %v274_v42   ;;  %11630 = vst [vmem:[#allocation58_spill] sm:$0xff] %v8429_v13 }
 0x160   : > { %6549 = vmatmul.msk.bf16.gmra.mxu3 %vm795_vm2, %v8417_v46 }
 0x161   : > { %v3147_v47 = vpop.f32.mrf.mxu0 }
 0x162   : > { %v1431_v31 = vpop.f32.mrf.mxu1  ;;  %v8413_v4 = vadd.f32 %v3147_v47, %v8336_v14  ;;  %v1886_v14 = vsel %vm1770_vm6, %v1876_v43, %v1885_v45  ;;  %v11633_v43 = vshrl.u32 %v8429_v13, 16 }
 0x163   : > { %v2151_v52 = vpop.f32.mrf.mxu2  ;;  %v8433_v21 = vpop.f32.mrf.mxu3  ;;  %v1432_v42 = vadd.f32 %v1431_v31, %v8029_v30  ;;  %v11634_v31 = vshll.u32 %v8429_v13, 16  ;;  %v8515_v13 = vld [vmem:[%s7725_s28 + $0x80] sm:$0xff]  }
 0x164   : > { %11629 = vst [vmem:[#allocation57_spill] sm:$0xff] %v8413_v4  ;;  %6576 = vmatmul.msk.bf16.gmra.mxu0 %vm795_vm2, %v2998_v34  ;;  %v2289_v62 = vadd.f32 %v2151_v52, %v1429_v27  ;;  %v278_v52 = vld [vmem:[%s11402_s3 + $0xc0] sm:$0xff]  ;;  %v1890_v30 = vrot.slane %v11633_v43, 2 }
 0x165   : > { %6374 = vmatmul.msk.bf16.gmra.mxu1 %vm795_vm2, %v1180_v7  ;;  %v11483_v7 = vshll.u32 %v8368_v36, 16  ;;  %2464 = vperm.xlu0 %7457, %v278_v52  }
 0x166   : > { %v8431_v22 = vmul.f32 %v2370_v11, %v2289_v62  ;;  %v2375_v62 = vpop.permute.xlu0 %2374 }
 0x167   : > { %v1187_v27 = vrot.slane %v11483_v7, 1 }
 0x168   : > { %11631 = vst [vmem:[#allocation59_spill] sm:$0xff] %v8431_v22  ;;  %6516 = vmatmul.msk.bf16.gmra.mxu2 %vm795_vm2, %v1886_v14 }
 0x169   : > { %v3149_v51 = vpop.f32.mrf.mxu0 }
 0x16a   : > { %v1433_v47 = vpop.f32.mrf.mxu1  ;;  %v8438_v34 = vadd.f32 %v3149_v51, %v8360_v32  ;;  %v2999_v32 = vrot.slane %v8368_v36, 1  ;;  %v1183_v51 = vor.u32 %v11484_v29, %v1179_v56 }
 0x16b   : > { %v2154_v11 = vpop.f32.mrf.mxu2  ;;  %v8458_v22 = vpop.f32.mrf.mxu3  ;;  %v1434_v43 = vadd.f32 %v1433_v47, %v8057_v44 }
 0x16c   : > { %11632 = vst [vmem:[#allocation60_spill] sm:$0xff] %v8438_v34  ;;  %v2290_v14 = vadd.f32 %v2154_v11, %v1432_v42  ;;  %v1893_v34 = vrot.slane %v11634_v31, 3  ;;  %v3000_v42 = vsel %vm2973_vm4, %v2997_v57, %v2999_v32  ;;  %v1188_v7 = vsel %vm1080_vm5, %v1183_v51, %v1187_v27  ;;  %v2380_v31 = vpop.permute.xlu1 %2379 }
 0x16d   : > { %v11488_v51 = vshrl.u32 %v8368_v36, 16 }
 0x16e   : > { %v8456_v4 = vmul.f32 %v2375_v62, %v2290_v14  ;;  %v1894_v29 = vor.u32 %v1893_v34, %v1890_v30  ;;  %v279_v62 = vld [vmem:[%s11402_s3 + $0xc8] sm:$0xff]  ;;  %v8478_v34 = vld [vmem:[%s7725_s28 + $0x7c] sm:$0xff] }
 0x16f   : > { %2469 = vperm.xlu1 %7458, %v279_v62   ;;  %11636 = vst [vmem:[#allocation62_spill] sm:$0xff] %v8478_v34 }
 0x170   : > { %6550 = vmatmul.msk.bf16.gmra.mxu3 %vm795_vm2, %v8466_v19 }
 0x171   : > { %v3152_v52 = vpop.f32.mrf.mxu0 }
 0x172   : > { %v1436_v11 = vpop.f32.mrf.mxu1  ;;  %v8462_v56 = vadd.f32 %v3152_v52, %v8384_v55  ;;  %v1895_v55 = vsel %vm1770_vm6, %v1885_v45, %v1894_v29  ;;  %v11639_v45 = vshrl.u32 %v8478_v34, 16 }
 0x173   : > { %v2156_v14 = vpop.f32.mrf.mxu2  ;;  %v8482_v47 = vpop.f32.mrf.mxu3  ;;  %v1437_v62 = vadd.f32 %v1436_v11, %v8081_v38  ;;  %v11640_v11 = vshll.u32 %v8478_v34, 16  ;;  %v8564_v34 = vld [vmem:[%s7725_s28 + $0x88] sm:$0xff]  }
 0x174   : > { %11635 = vst [vmem:[#allocation61_spill] sm:$0xff] %v8462_v56  ;;  %6577 = vmatmul.msk.bf16.gmra.mxu0 %vm795_vm2, %v3000_v42  ;;  %v2291_v57 = vadd.f32 %v2156_v14, %v1434_v43  ;;  %v277_v14 = vld [vmem:[%s11402_s3 + $0xb8] sm:$0xff]  ;;  %v1899_v38 = vrot.slane %v11639_v45, 2 }
 0x175   : > { %6375 = vmatmul.msk.bf16.gmra.mxu1 %vm795_vm2, %v1188_v7  ;;  %v11487_v7 = vshll.u32 %v8417_v46, 16  ;;  %2459 = vperm.xlu2 %7459, %v277_v14  }
 0x176   : > { %v8480_v44 = vmul.f32 %v2380_v31, %v2291_v57  ;;  %v2385_v57 = vpop.permute.xlu2 %2384 }
 0x177   : > { %v1195_v43 = vrot.slane %v11487_v7, 1 }
 0x178   : > { %11637 = vst [vmem:[#allocation63_spill] sm:$0xff] %v8480_v44  ;;  %6517 = vmatmul.msk.bf16.gmra.mxu2 %vm795_vm2, %v1895_v55 }
 0x179   : > { %v3154_v30 = vpop.f32.mrf.mxu0 }
 0x17a   : > { %v1438_v52 = vpop.f32.mrf.mxu1  ;;  %v8487_v42 = vadd.f32 %v3154_v30, %v8409_v58  ;;  %v3001_v58 = vrot.slane %v8417_v46, 1  ;;  %v1191_v30 = vor.u32 %v11488_v51, %v1187_v27 }
 0x17b   : > { %v2159_v31 = vpop.f32.mrf.mxu2  ;;  %v8507_v44 = vpop.f32.mrf.mxu3  ;;  %v1439_v45 = vadd.f32 %v1438_v52, %v8106_v35 }
 0x17c   : > { %11638 = vst [vmem:[#allocation64_spill] sm:$0xff] %v8487_v42  ;;  %v2292_v55 = vadd.f32 %v2159_v31, %v1437_v62  ;;  %v1902_v42 = vrot.slane %v11640_v11, 3  ;;  %v3002_v62 = vsel %vm2973_vm4, %v2999_v32, %v3001_v58  ;;  %v1196_v7 = vsel %vm1080_vm5, %v1191_v30, %v1195_v43  ;;  %v2390_v11 = vpop.permute.xlu0 %2389 }
 0x17d   : > { %v11492_v30 = vshrl.u32 %v8417_v46, 16 }
 0x17e   : > { %v8505_v56 = vmul.f32 %v2385_v57, %v2292_v55  ;;  %v1903_v51 = vor.u32 %v1902_v42, %v1899_v38  ;;  %v281_v57 = vld [vmem:[%s11402_s3 + $0xd8] sm:$0xff]  ;;  %v8527_v42 = vld [vmem:[%s7725_s28 + $0x84] sm:$0xff] }
 0x17f   : > { %2479 = vperm.xlu0 %7457, %v281_v57   ;;  %11642 = vst [vmem:[#allocation66_spill] sm:$0xff] %v8527_v42 }
 0x180   : > { %6551 = vmatmul.msk.bf16.gmra.mxu3 %vm795_vm2, %v8515_v13 }
 0x181   : > { %v3157_v14 = vpop.f32.mrf.mxu0 }
 0x182   : > { %v1441_v31 = vpop.f32.mrf.mxu1  ;;  %v8511_v27 = vadd.f32 %v3157_v14, %v8433_v21  ;;  %v1904_v21 = vsel %vm1770_vm6, %v1894_v29, %v1903_v51  ;;  %v11645_v29 = vshrl.u32 %v8527_v42, 16 }
 0x183   : > { %v2161_v55 = vpop.f32.mrf.mxu2  ;;  %v8531_v52 = vpop.f32.mrf.mxu3  ;;  %v1442_v57 = vadd.f32 %v1441_v31, %v8130_v26  ;;  %v11646_v31 = vshll.u32 %v8527_v42, 16  ;;  %v8613_v42 = vld [vmem:[%s7725_s28 + $0x90] sm:$0xff]  }
 0x184   : > { %11641 = vst [vmem:[#allocation65_spill] sm:$0xff] %v8511_v27  ;;  %6578 = vmatmul.msk.bf16.gmra.mxu0 %vm795_vm2, %v3002_v62  ;;  %v2293_v32 = vadd.f32 %v2161_v55, %v1439_v45  ;;  %v282_v55 = vld [vmem:[%s11402_s3 + $0xe0] sm:$0xff]  ;;  %v1908_v26 = vrot.slane %v11645_v29, 2 }
 0x185   : > { %6376 = vmatmul.msk.bf16.gmra.mxu1 %vm795_vm2, %v1196_v7  ;;  %v11491_v7 = vshll.u32 %v8466_v19, 16  ;;  %2484 = vperm.xlu1 %7458, %v282_v55  }
 0x186   : > { %v8529_v35 = vmul.f32 %v2390_v11, %v2293_v32  ;;  %v2395_v32 = vpop.permute.xlu1 %2394 }
 0x187   : > { %v1203_v45 = vrot.slane %v11491_v7, 1 }
 0x188   : > { %11643 = vst [vmem:[#allocation67_spill] sm:$0xff] %v8529_v35  ;;  %6518 = vmatmul.msk.bf16.gmra.mxu2 %vm795_vm2, %v1904_v21 }
 0x189   : > { %v3159_v38 = vpop.f32.mrf.mxu0 }
 0x18a   : > { %v1443_v14 = vpop.f32.mrf.mxu1  ;;  %v8536_v62 = vadd.f32 %v3159_v38, %v8458_v22  ;;  %v3003_v22 = vrot.slane %v8466_v19, 1  ;;  %v1199_v38 = vor.u32 %v11492_v30, %v1195_v43 }
 0x18b   : > { %v2164_v11 = vpop.f32.mrf.mxu2  ;;  %v8556_v35 = vpop.f32.mrf.mxu3  ;;  %v1444_v29 = vadd.f32 %v1443_v14, %v8155_v9 }
 0x18c   : > { %11644 = vst [vmem:[#allocation68_spill] sm:$0xff] %v8536_v62  ;;  %v2294_v21 = vadd.f32 %v2164_v11, %v1442_v57  ;;  %v1911_v62 = vrot.slane %v11646_v31, 3  ;;  %v3004_v57 = vsel %vm2973_vm4, %v3001_v58, %v3003_v22  ;;  %v1204_v7 = vsel %vm1080_vm5, %v1199_v38, %v1203_v45  ;;  %v2400_v31 = vpop.permute.xlu2 %2399 }
 0x18d   : > { %v11496_v38 = vshrl.u32 %v8466_v19, 16 }
 0x18e   : > { %v8554_v27 = vmul.f32 %v2395_v32, %v2294_v21  ;;  %v1912_v30 = vor.u32 %v1911_v62, %v1908_v26  ;;  %v280_v32 = vld [vmem:[%s11402_s3 + $0xd0] sm:$0xff] }
 0x18f   : > { %2474 = vperm.xlu2 %7459, %v280_v32   ;;  %v8576_v62 = vld [vmem:[%s7725_s28 + $0x8c] sm:$0xff] }
 0x190   : > { %6552 = vmatmul.msk.bf16.gmra.mxu3 %vm795_vm2, %v8564_v34  ;;  %11648 = vst [vmem:[#allocation70_spill] sm:$0xff] %v8576_v62 }
 0x191   : > { %v3162_v55 = vpop.f32.mrf.mxu0 }
 0x192   : > { %v1446_v11 = vpop.f32.mrf.mxu1  ;;  %v8560_v43 = vadd.f32 %v3162_v55, %v8482_v47  ;;  %v1913_v47 = vsel %vm1770_vm6, %v1903_v51, %v1912_v30  ;;  %v11651_v51 = vshrl.u32 %v8576_v62, 16 }
 0x193   : > { %v2166_v21 = vpop.f32.mrf.mxu2  ;;  %v8580_v14 = vpop.f32.mrf.mxu3  ;;  %v1447_v32 = vadd.f32 %v1446_v11, %v8179_v18  ;;  %v11652_v11 = vshll.u32 %v8576_v62, 16  ;;  %v8662_v62 = vld [vmem:[%s7725_s28 + $0x98] sm:$0xff]  }
 0x194   : > { %11647 = vst [vmem:[#allocation69_spill] sm:$0xff] %v8560_v43  ;;  %6579 = vmatmul.msk.bf16.gmra.mxu0 %vm795_vm2, %v3004_v57  ;;  %v2295_v58 = vadd.f32 %v2166_v21, %v1444_v29  ;;  %v284_v21 = vld [vmem:[%s11402_s3 + $0xf0] sm:$0xff]  ;;  %v1917_v18 = vrot.slane %v11651_v51, 2 }
 0x195   : > { %6377 = vmatmul.msk.bf16.gmra.mxu1 %vm795_vm2, %v1204_v7  ;;  %v11495_v7 = vshll.u32 %v8515_v13, 16  ;;  %2494 = vperm.xlu0 %7457, %v284_v21  }
 0x196   : > { %v8578_v9 = vmul.f32 %v2400_v31, %v2295_v58  ;;  %v2405_v58 = vpop.permute.xlu0 %2404 }
 0x197   : > { %v1211_v29 = vrot.slane %v11495_v7, 1 }
 0x198   : > { %11649 = vst [vmem:[#allocation71_spill] sm:$0xff] %v8578_v9  ;;  %6519 = vmatmul.msk.bf16.gmra.mxu2 %vm795_vm2, %v1913_v47 }
 0x199   : > { %v3164_v26 = vpop.f32.mrf.mxu0 }
 0x19a   : > { %v1448_v55 = vpop.f32.mrf.mxu1  ;;  %v8585_v57 = vadd.f32 %v3164_v26, %v8507_v44  ;;  %v3005_v44 = vrot.slane %v8515_v13, 1  ;;  %v1207_v26 = vor.u32 %v11496_v38, %v1203_v45 }
 0x19b   : > { %v2169_v31 = vpop.f32.mrf.mxu2  ;;  %v8605_v9 = vpop.f32.mrf.mxu3  ;;  %v1449_v51 = vadd.f32 %v1448_v55, %v8202_v8 }
 0x19c   : > { %11650 = vst [vmem:[#allocation72_spill] sm:$0xff] %v8585_v57  ;;  %v2296_v47 = vadd.f32 %v2169_v31, %v1447_v32  ;;  %v1920_v57 = vrot.slane %v11652_v11, 3  ;;  %v3006_v32 = vsel %vm2973_vm4, %v3003_v22, %v3005_v44  ;;  %v1212_v7 = vsel %vm1080_vm5, %v1207_v26, %v1211_v29  ;;  %v2410_v11 = vpop.permute.xlu1 %2409 }
 0x19d   : > { %v11500_v26 = vshrl.u32 %v8515_v13, 16 }
 0x19e   : > { %v8603_v43 = vmul.f32 %v2405_v58, %v2296_v47  ;;  %v1921_v38 = vor.u32 %v1920_v57, %v1917_v18  ;;  %v285_v58 = vld [vmem:[%s11402_s3 + $0xf8] sm:$0xff] }
 0x19f   : > { %2499 = vperm.xlu1 %7458, %v285_v58   ;;  %v8625_v57 = vld [vmem:[%s7725_s28 + $0x94] sm:$0xff] }
 0x1a0   : > { %6553 = vmatmul.msk.bf16.gmra.mxu3 %vm795_vm2, %v8613_v42  ;;  %11654 = vst [vmem:[#allocation74_spill] sm:$0xff] %v8625_v57 }
 0x1a1   : > { %v3167_v21 = vpop.f32.mrf.mxu0 }
 0x1a2   : > { %v1451_v31 = vpop.f32.mrf.mxu1  ;;  %v8609_v45 = vadd.f32 %v3167_v21, %v8531_v52  ;;  %v1922_v52 = vsel %vm1770_vm6, %v1912_v30, %v1921_v38  ;;  %v11657_v30 = vshrl.u32 %v8625_v57, 16 }
 0x1a3   : > { %v2171_v47 = vpop.f32.mrf.mxu2  ;;  %v8629_v55 = vpop.f32.mrf.mxu3  ;;  %v1452_v58 = vadd.f32 %v1451_v31, %v8224_v3  ;;  %v11658_v31 = vshll.u32 %v8625_v57, 16  ;;  %v8711_v57 = vld [vmem:[%s7725_s28 + $0xa0] sm:$0xff]  }
 0x1a4   : > { %11653 = vst [vmem:[#allocation73_spill] sm:$0xff] %v8609_v45  ;;  %6580 = vmatmul.msk.bf16.gmra.mxu0 %vm795_vm2, %v3006_v32  ;;  %v2297_v22 = vadd.f32 %v2171_v47, %v1449_v51  ;;  %v283_v47 = vld [vmem:[%s11402_s3 + $0xe8] sm:$0xff]  ;;  %v1926_v3 = vrot.slane %v11657_v30, 2 }
 0x1a5   : > { %6378 = vmatmul.msk.bf16.gmra.mxu1 %vm795_vm2, %v1212_v7  ;;  %v11499_v7 = vshll.u32 %v8564_v34, 16  ;;  %2489 = vperm.xlu2 %7459, %v283_v47  }
 0x1a6   : > { %v8627_v8 = vmul.f32 %v2410_v11, %v2297_v22  ;;  %v2415_v22 = vpop.permute.xlu2 %2414 }
 0x1a7   : > { %v1219_v51 = vrot.slane %v11499_v7, 1 }
 0x1a8   : > { %11655 = vst [vmem:[#allocation75_spill] sm:$0xff] %v8627_v8  ;;  %6520 = vmatmul.msk.bf16.gmra.mxu2 %vm795_vm2, %v1922_v52 }
 0x1a9   : > { %v3169_v18 = vpop.f32.mrf.mxu0 }
 0x1aa   : > { %v1453_v21 = vpop.f32.mrf.mxu1  ;;  %v8634_v32 = vadd.f32 %v3169_v18, %v8556_v35  ;;  %v3007_v35 = vrot.slane %v8564_v34, 1  ;;  %v1215_v18 = vor.u32 %v11500_v26, %v1211_v29 }
 0x1ab   : > { %v2174_v11 = vpop.f32.mrf.mxu2  ;;  %v8654_v8 = vpop.f32.mrf.mxu3  ;;  %v1454_v30 = vadd.f32 %v1453_v21, %v8247_v60 }
 0x1ac   : > { %11656 = vst [vmem:[#allocation76_spill] sm:$0xff] %v8634_v32  ;;  %v2298_v52 = vadd.f32 %v2174_v11, %v1452_v58  ;;  %v1929_v32 = vrot.slane %v11658_v31, 3  ;;  %v3008_v58 = vsel %vm2973_vm4, %v3005_v44, %v3007_v35  ;;  %v1220_v7 = vsel %vm1080_vm5, %v1215_v18, %v1219_v51  ;;  %v2420_v31 = vpop.permute.xlu0 %2419 }
 0x1ad   : > { %v11504_v18 = vshrl.u32 %v8564_v34, 16 }
 0x1ae   : > { %v8652_v45 = vmul.f32 %v2415_v22, %v2298_v52  ;;  %v1930_v26 = vor.u32 %v1929_v32, %v1926_v3  ;;  %v287_v22 = vld [vmem:[%s11402_s3 + $0x108] sm:$0xff]  ;;  %v8674_v32 = vld [vmem:[%s7725_s28 + $0x9c] sm:$0xff] }
 0x1af   : > { %2509 = vperm.xlu0 %7457, %v287_v22   ;;  %11660 = vst [vmem:[#allocation78_spill] sm:$0xff] %v8674_v32 }
 0x1b0   : > { %6554 = vmatmul.msk.bf16.gmra.mxu3 %vm795_vm2, %v8662_v62 }
 0x1b1   : > { %v3172_v47 = vpop.f32.mrf.mxu0 }
 0x1b2   : > { %v1456_v11 = vpop.f32.mrf.mxu1  ;;  %v8658_v29 = vadd.f32 %v3172_v47, %v8580_v14  ;;  %v1931_v14 = vsel %vm1770_vm6, %v1921_v38, %v1930_v26  ;;  %v11663_v38 = vshrl.u32 %v8674_v32, 16 }
 0x1b3   : > { %v2176_v52 = vpop.f32.mrf.mxu2  ;;  %v8678_v21 = vpop.f32.mrf.mxu3  ;;  %v1457_v22 = vadd.f32 %v1456_v11, %v7898_v23  ;;  %v11664_v11 = vshll.u32 %v8674_v32, 16  ;;  %v8760_v32 = vld [vmem:[%s7725_s28 + $0xa8] sm:$0xff]  }
 0x1b4   : > { %11659 = vst [vmem:[#allocation77_spill] sm:$0xff] %v8658_v29  ;;  %6581 = vmatmul.msk.bf16.gmra.mxu0 %vm795_vm2, %v3008_v58  ;;  %v2299_v44 = vadd.f32 %v2176_v52, %v1454_v30  ;;  %v288_v52 = vld [vmem:[%s11402_s3 + $0x110] sm:$0xff]  ;;  %v1935_v23 = vrot.slane %v11663_v38, 2 }
 0x1b5   : > { %6379 = vmatmul.msk.bf16.gmra.mxu1 %vm795_vm2, %v1220_v7  ;;  %v11503_v7 = vshll.u32 %v8613_v42, 16  ;;  %2514 = vperm.xlu1 %7458, %v288_v52  }
 0x1b6   : > { %v8676_v60 = vmul.f32 %v2420_v31, %v2299_v44  ;;  %v2425_v44 = vpop.permute.xlu1 %2424 }
 0x1b7   : > { %v1227_v30 = vrot.slane %v11503_v7, 1 }
 0x1b8   : > { %11661 = vst [vmem:[#allocation79_spill] sm:$0xff] %v8676_v60  ;;  %6521 = vmatmul.msk.bf16.gmra.mxu2 %vm795_vm2, %v1931_v14 }
 0x1b9   : > { %v3174_v3 = vpop.f32.mrf.mxu0 }
 0x1ba   : > { %v1458_v47 = vpop.f32.mrf.mxu1  ;;  %v8683_v58 = vadd.f32 %v3174_v3, %v8605_v9  ;;  %v3009_v9 = vrot.slane %v8613_v42, 1  ;;  %v1223_v3 = vor.u32 %v11504_v18, %v1219_v51 }
 0x1bb   : > { %v2179_v31 = vpop.f32.mrf.mxu2  ;;  %v8703_v60 = vpop.f32.mrf.mxu3  ;;  %v1459_v38 = vadd.f32 %v1458_v47, %v7918_v33 }
 0x1bc   : > { %11662 = vst [vmem:[#allocation80_spill] sm:$0xff] %v8683_v58  ;;  %v2300_v14 = vadd.f32 %v2179_v31, %v1457_v22  ;;  %v1938_v58 = vrot.slane %v11664_v11, 3  ;;  %v3010_v22 = vsel %vm2973_vm4, %v3007_v35, %v3009_v9  ;;  %v1228_v7 = vsel %vm1080_vm5, %v1223_v3, %v1227_v30  ;;  %v2430_v11 = vpop.permute.xlu2 %2429 }
 0x1bd   : > { %v11508_v3 = vshrl.u32 %v8613_v42, 16 }
 0x1be   : > { %v8701_v29 = vmul.f32 %v2425_v44, %v2300_v14  ;;  %v1939_v18 = vor.u32 %v1938_v58, %v1935_v23  ;;  %v286_v44 = vld [vmem:[%s11402_s3 + $0x100] sm:$0xff] }
 0x1bf   : > { %2504 = vperm.xlu2 %7459, %v286_v44   ;;  %v8723_v58 = vld [vmem:[%s7725_s28 + $0xa4] sm:$0xff] }
 0x1c0   : > { %6555 = vmatmul.msk.bf16.gmra.mxu3 %vm795_vm2, %v8711_v57  ;;  %11666 = vst [vmem:[#allocation82_spill] sm:$0xff] %v8723_v58 }
 0x1c1   : > { %v3177_v52 = vpop.f32.mrf.mxu0 }
 0x1c2   : > { %v1461_v31 = vpop.f32.mrf.mxu1  ;;  %v8707_v51 = vadd.f32 %v3177_v52, %v8629_v55  ;;  %v1940_v55 = vsel %vm1770_vm6, %v1930_v26, %v1939_v18  ;;  %v11669_v26 = vshrl.u32 %v8723_v58, 16 }
 0x1c3   : > { %v2181_v14 = vpop.f32.mrf.mxu2  ;;  %v8727_v47 = vpop.f32.mrf.mxu3  ;;  %v1462_v44 = vadd.f32 %v1461_v31, %v7940_v49  ;;  %v11670_v31 = vshll.u32 %v8723_v58, 16  ;;  %v8809_v58 = vld [vmem:[%s7725_s28 + $0xb0] sm:$0xff]  }
 0x1c4   : > { %11665 = vst [vmem:[#allocation81_spill] sm:$0xff] %v8707_v51  ;;  %6582 = vmatmul.msk.bf16.gmra.mxu0 %vm795_vm2, %v3010_v22  ;;  %v2301_v35 = vadd.f32 %v2181_v14, %v1459_v38  ;;  %v290_v14 = vld [vmem:[%s11402_s3 + $0x120] sm:$0xff]  ;;  %v1944_v49 = vrot.slane %v11669_v26, 2 }
 0x1c5   : > { %6380 = vmatmul.msk.bf16.gmra.mxu1 %vm795_vm2, %v1228_v7  ;;  %v11507_v7 = vshll.u32 %v8662_v62, 16  ;;  %2524 = vperm.xlu0 %7457, %v290_v14  }
 0x1c6   : > { %v8725_v33 = vmul.f32 %v2430_v11, %v2301_v35  ;;  %v2435_v35 = vpop.permute.xlu0 %2434 }
 0x1c7   : > { %v1235_v38 = vrot.slane %v11507_v7, 1 }
 0x1c8   : > { %11667 = vst [vmem:[#allocation83_spill] sm:$0xff] %v8725_v33  ;;  %6522 = vmatmul.msk.bf16.gmra.mxu2 %vm795_vm2, %v1940_v55 }
 0x1c9   : > { %v3179_v23 = vpop.f32.mrf.mxu0 }
 0x1ca   : > { %v1463_v52 = vpop.f32.mrf.mxu1  ;;  %v8732_v22 = vadd.f32 %v3179_v23, %v8654_v8  ;;  %v3011_v8 = vrot.slane %v8662_v62, 1  ;;  %v1231_v23 = vor.u32 %v11508_v3, %v1227_v30 }
 0x1cb   : > { %v2184_v11 = vpop.f32.mrf.mxu2  ;;  %v8752_v33 = vpop.f32.mrf.mxu3  ;;  %v1464_v26 = vadd.f32 %v1463_v52, %v7965_v61 }
 0x1cc   : > { %11668 = vst [vmem:[#allocation84_spill] sm:$0xff] %v8732_v22  ;;  %v2302_v55 = vadd.f32 %v2184_v11, %v1462_v44  ;;  %v1947_v22 = vrot.slane %v11670_v31, 3  ;;  %v3012_v44 = vsel %vm2973_vm4, %v3009_v9, %v3011_v8  ;;  %v1236_v7 = vsel %vm1080_vm5, %v1231_v23, %v1235_v38  ;;  %v2440_v31 = vpop.permute.xlu1 %2439 }
 0x1cd   : > { %v11512_v23 = vshrl.u32 %v8662_v62, 16 }
 0x1ce   : > { %v8750_v51 = vmul.f32 %v2435_v35, %v2302_v55  ;;  %v1948_v3 = vor.u32 %v1947_v22, %v1944_v49  ;;  %v291_v35 = vld [vmem:[%s11402_s3 + $0x128] sm:$0xff] }
 0x1cf   : > { %2529 = vperm.xlu1 %7458, %v291_v35   ;;  %v8772_v22 = vld [vmem:[%s7725_s28 + $0xac] sm:$0xff] }
 0x1d0   : > { %6556 = vmatmul.msk.bf16.gmra.mxu3 %vm795_vm2, %v8760_v32  ;;  %11672 = vst [vmem:[#allocation86_spill] sm:$0xff] %v8772_v22 }
 0x1d1   : > { %v3182_v14 = vpop.f32.mrf.mxu0 }
 0x1d2   : > { %v1466_v11 = vpop.f32.mrf.mxu1  ;;  %v8756_v30 = vadd.f32 %v3182_v14, %v8678_v21  ;;  %v1949_v21 = vsel %vm1770_vm6, %v1939_v18, %v1948_v3  ;;  %v11675_v18 = vshrl.u32 %v8772_v22, 16 }
 0x1d3   : > { %v2186_v55 = vpop.f32.mrf.mxu2  ;;  %v8776_v52 = vpop.f32.mrf.mxu3  ;;  %v1467_v35 = vadd.f32 %v1466_v11, %v7986_v12  ;;  %v11676_v11 = vshll.u32 %v8772_v22, 16  ;;  %v8858_v22 = vld [vmem:[%s7725_s28 + $0xb8] sm:$0xff]  }
 0x1d4   : > { %11671 = vst [vmem:[#allocation85_spill] sm:$0xff] %v8756_v30  ;;  %6583 = vmatmul.msk.bf16.gmra.mxu0 %vm795_vm2, %v3012_v44  ;;  %v2303_v9 = vadd.f32 %v2186_v55, %v1464_v26  ;;  %v289_v55 = vld [vmem:[%s11402_s3 + $0x118] sm:$0xff]  ;;  %v1953_v12 = vrot.slane %v11675_v18, 2 }
 0x1d5   : > { %6381 = vmatmul.msk.bf16.gmra.mxu1 %vm795_vm2, %v1236_v7  ;;  %v11511_v7 = vshll.u32 %v8711_v57, 16  ;;  %2519 = vperm.xlu2 %7459, %v289_v55  }
 0x1d6   : > { %v8774_v61 = vmul.f32 %v2440_v31, %v2303_v9  ;;  %v2445_v9 = vpop.permute.xlu2 %2444 }
 0x1d7   : > { %v1243_v26 = vrot.slane %v11511_v7, 1 }
 0x1d8   : > { %11673 = vst [vmem:[#allocation87_spill] sm:$0xff] %v8774_v61  ;;  %6523 = vmatmul.msk.bf16.gmra.mxu2 %vm795_vm2, %v1949_v21 }
 0x1d9   : > { %v3184_v49 = vpop.f32.mrf.mxu0 }
 0x1da   : > { %v1468_v14 = vpop.f32.mrf.mxu1  ;;  %v8781_v44 = vadd.f32 %v3184_v49, %v8703_v60  ;;  %v3013_v60 = vrot.slane %v8711_v57, 1  ;;  %v1239_v49 = vor.u32 %v11512_v23, %v1235_v38 }
 0x1db   : > { %v2189_v31 = vpop.f32.mrf.mxu2  ;;  %v8801_v61 = vpop.f32.mrf.mxu3  ;;  %v1469_v18 = vadd.f32 %v1468_v14, %v8008_v25 }
 0x1dc   : > { %11674 = vst [vmem:[#allocation88_spill] sm:$0xff] %v8781_v44  ;;  %v2304_v21 = vadd.f32 %v2189_v31, %v1467_v35  ;;  %v1956_v44 = vrot.slane %v11676_v11, 3  ;;  %v3014_v35 = vsel %vm2973_vm4, %v3011_v8, %v3013_v60  ;;  %v1244_v7 = vsel %vm1080_vm5, %v1239_v49, %v1243_v26  ;;  %v2450_v11 = vpop.permute.xlu0 %2449 }
 0x1dd   : > { %v11516_v49 = vshrl.u32 %v8711_v57, 16 }
 0x1de   : > { %v8799_v30 = vmul.f32 %v2445_v9, %v2304_v21  ;;  %v1957_v23 = vor.u32 %v1956_v44, %v1953_v12  ;;  %v293_v9 = vld [vmem:[%s11402_s3 + $0x138] sm:$0xff] }
 0x1df   : > { %2539 = vperm.xlu0 %7457, %v293_v9   ;;  %v8821_v44 = vld [vmem:[%s7725_s28 + $0xb4] sm:$0xff] }
 0x1e0   : > { %6557 = vmatmul.msk.bf16.gmra.mxu3 %vm795_vm2, %v8809_v58  ;;  %11678 = vst [vmem:[#allocation90_spill] sm:$0xff] %v8821_v44 }
 0x1e1   : > { %v3187_v55 = vpop.f32.mrf.mxu0 }
 0x1e2   : > { %v1471_v31 = vpop.f32.mrf.mxu1  ;;  %v8805_v38 = vadd.f32 %v3187_v55, %v8727_v47  ;;  %v1958_v47 = vsel %vm1770_vm6, %v1948_v3, %v1957_v23  ;;  %v11681_v3 = vshrl.u32 %v8821_v44, 16 }
 0x1e3   : > { %v2191_v21 = vpop.f32.mrf.mxu2  ;;  %v8825_v14 = vpop.f32.mrf.mxu3  ;;  %v1472_v9 = vadd.f32 %v1471_v31, %v8032_v54  ;;  %v11682_v31 = vshll.u32 %v8821_v44, 16  ;;  %v8907_v44 = vld [vmem:[%s7725_s28 + $0xc0] sm:$0xff]  }
 0x1e4   : > { %11677 = vst [vmem:[#allocation89_spill] sm:$0xff] %v8805_v38  ;;  %6584 = vmatmul.msk.bf16.gmra.mxu0 %vm795_vm2, %v3014_v35  ;;  %v2305_v8 = vadd.f32 %v2191_v21, %v1469_v18  ;;  %v294_v21 = vld [vmem:[%s11402_s3 + $0x140] sm:$0xff]  ;;  %v1962_v54 = vrot.slane %v11681_v3, 2 }
 0x1e5   : > { %6382 = vmatmul.msk.bf16.gmra.mxu1 %vm795_vm2, %v1244_v7  ;;  %v11515_v7 = vshll.u32 %v8760_v32, 16  ;;  %2544 = vperm.xlu1 %7458, %v294_v21  }
 0x1e6   : > { %v8823_v25 = vmul.f32 %v2450_v11, %v2305_v8  ;;  %v2455_v8 = vpop.permute.xlu1 %2454 }
 0x1e7   : > { %v1251_v18 = vrot.slane %v11515_v7, 1 }
 0x1e8   : > { %11679 = vst [vmem:[#allocation91_spill] sm:$0xff] %v8823_v25  ;;  %6524 = vmatmul.msk.bf16.gmra.mxu2 %vm795_vm2, %v1958_v47 }
 0x1e9   : > { %v3189_v12 = vpop.f32.mrf.mxu0 }
 0x1ea   : > { %v1473_v55 = vpop.f32.mrf.mxu1  ;;  %v8830_v35 = vadd.f32 %v3189_v12, %v8752_v33  ;;  %v3015_v33 = vrot.slane %v8760_v32, 1  ;;  %v1247_v12 = vor.u32 %v11516_v49, %v1243_v26 }
 0x1eb   : > { %v2194_v11 = vpop.f32.mrf.mxu2  ;;  %v8850_v25 = vpop.f32.mrf.mxu3  ;;  %v1474_v3 = vadd.f32 %v1473_v55, %v8060_v48 }
 0x1ec   : > { %11680 = vst [vmem:[#allocation92_spill] sm:$0xff] %v8830_v35  ;;  %v2306_v47 = vadd.f32 %v2194_v11, %v1472_v9  ;;  %v1965_v35 = vrot.slane %v11682_v31, 3  ;;  %v3016_v9 = vsel %vm2973_vm4, %v3013_v60, %v3015_v33  ;;  %v1252_v7 = vsel %vm1080_vm5, %v1247_v12, %v1251_v18  ;;  %v2460_v31 = vpop.permute.xlu2 %2459 }
 0x1ed   : > { %v11520_v12 = vshrl.u32 %v8760_v32, 16 }
 0x1ee   : > { %v8848_v38 = vmul.f32 %v2455_v8, %v2306_v47  ;;  %v1966_v49 = vor.u32 %v1965_v35, %v1962_v54  ;;  %v292_v8 = vld [vmem:[%s11402_s3 + $0x130] sm:$0xff]  ;;  %v8870_v35 = vld [vmem:[%s7725_s28 + $0xbc] sm:$0xff] }
 0x1ef   : > { %2534 = vperm.xlu2 %7459, %v292_v8   ;;  %11684 = vst [vmem:[#allocation94_spill] sm:$0xff] %v8870_v35 }
 0x1f0   : > { %6558 = vmatmul.msk.bf16.gmra.mxu3 %vm795_vm2, %v8858_v22 }
 0x1f1   : > { %v3192_v21 = vpop.f32.mrf.mxu0 }
 0x1f2   : > { %v1476_v11 = vpop.f32.mrf.mxu1  ;;  %v8854_v26 = vadd.f32 %v3192_v21, %v8776_v52  ;;  %v1967_v52 = vsel %vm1770_vm6, %v1957_v23, %v1966_v49  ;;  %v11687_v23 = vshrl.u32 %v8870_v35, 16 }
 0x1f3   : > { %v2196_v47 = vpop.f32.mrf.mxu2  ;;  %v8874_v55 = vpop.f32.mrf.mxu3  ;;  %v1477_v8 = vadd.f32 %v1476_v11, %v8084_v37  ;;  %v11688_v11 = vshll.u32 %v8870_v35, 16  ;;  %v8956_v35 = vld [vmem:[%s7725_s28 + $0xc8] sm:$0xff]  }
 0x1f4   : > { %11683 = vst [vmem:[#allocation93_spill] sm:$0xff] %v8854_v26  ;;  %6585 = vmatmul.msk.bf16.gmra.mxu0 %vm795_vm2, %v3016_v9  ;;  %v2307_v60 = vadd.f32 %v2196_v47, %v1474_v3  ;;  %v296_v47 = vld [vmem:[%s11402_s3 + $0x150] sm:$0xff]  ;;  %v1971_v37 = vrot.slane %v11687_v23, 2 }
 0x1f5   : > { %6383 = vmatmul.msk.bf16.gmra.mxu1 %vm795_vm2, %v1252_v7  ;;  %v11519_v7 = vshll.u32 %v8809_v58, 16  ;;  %2554 = vperm.xlu0 %7457, %v296_v47   ;;  %11696 = vst [vmem:[#allocation102_spill] sm:$0xff] %v8956_v35 }
 0x1f6   : > { %v8872_v48 = vmul.f32 %v2460_v31, %v2307_v60  ;;  %v2465_v60 = vpop.permute.xlu0 %2464 }
 0x1f7   : > { %v1259_v3 = vrot.slane %v11519_v7, 1 }
 0x1f8   : > { %11685 = vst [vmem:[#allocation95_spill] sm:$0xff] %v8872_v48  ;;  %6525 = vmatmul.msk.bf16.gmra.mxu2 %vm795_vm2, %v1967_v52 }
 0x1f9   : > { %v3194_v54 = vpop.f32.mrf.mxu0 }
 0x1fa   : > { %v1478_v21 = vpop.f32.mrf.mxu1  ;;  %v8879_v9 = vadd.f32 %v3194_v54, %v8801_v61  ;;  %v3017_v61 = vrot.slane %v8809_v58, 1  ;;  %v1255_v54 = vor.u32 %v11520_v12, %v1251_v18 }
 0x1fb   : > { %v2199_v31 = vpop.f32.mrf.mxu2  ;;  %v8899_v48 = vpop.f32.mrf.mxu3  ;;  %v1479_v23 = vadd.f32 %v1478_v21, %v8109_v24 }
 0x1fc   : > { %11686 = vst [vmem:[#allocation96_spill] sm:$0xff] %v8879_v9  ;;  %v2308_v52 = vadd.f32 %v2199_v31, %v1477_v8  ;;  %v1974_v9 = vrot.slane %v11688_v11, 3  ;;  %v3018_v8 = vsel %vm2973_vm4, %v3015_v33, %v3017_v61  ;;  %v1260_v7 = vsel %vm1080_vm5, %v1255_v54, %v1259_v3  ;;  %v2470_v11 = vpop.permute.xlu1 %2469 }
 0x1fd   : > { %v11524_v54 = vshrl.u32 %v8809_v58, 16 }
 0x1fe   : > { %v8897_v26 = vmul.f32 %v2465_v60, %v2308_v52  ;;  %v1975_v12 = vor.u32 %v1974_v9, %v1971_v37  ;;  %v297_v60 = vld [vmem:[%s11402_s3 + $0x158] sm:$0xff]  ;;  %v8919_v9 = vld [vmem:[%s7725_s28 + $0xc4] sm:$0xff] }
 0x1ff   : > { %2559 = vperm.xlu1 %7458, %v297_v60   ;;  %11690 = vst [vmem:[#allocation98_spill] sm:$0xff] %v8919_v9 }
 0x200   : > { %6559 = vmatmul.msk.bf16.gmra.mxu3 %vm795_vm2, %v8907_v44 }
 0x201   : > { %v3197_v47 = vpop.f32.mrf.mxu0 }
 0x202   : > { %v1481_v31 = vpop.f32.mrf.mxu1  ;;  %v8903_v18 = vadd.f32 %v3197_v47, %v8825_v14  ;;  %v1976_v14 = vsel %vm1770_vm6, %v1966_v49, %v1975_v12  ;;  %v11693_v49 = vshrl.u32 %v8919_v9, 16 }
 0x203   : > { %v2201_v52 = vpop.f32.mrf.mxu2  ;;  %v8923_v21 = vpop.f32.mrf.mxu3  ;;  %v1482_v60 = vadd.f32 %v1481_v31, %v8133_v39  ;;  %v11694_v31 = vshll.u32 %v8919_v9, 16  ;;  %v9005_v9 = vld [vmem:[%s7725_s28 + $0xd0] sm:$0xff]  }
 0x204   : > { %11689 = vst [vmem:[#allocation97_spill] sm:$0xff] %v8903_v18  ;;  %6586 = vmatmul.msk.bf16.gmra.mxu0 %vm795_vm2, %v3018_v8  ;;  %v2309_v33 = vadd.f32 %v2201_v52, %v1479_v23  ;;  %v295_v52 = vld [vmem:[%s11402_s3 + $0x148] sm:$0xff]  ;;  %v1980_v39 = vrot.slane %v11693_v49, 2 }
 0x205   : > { %6384 = vmatmul.msk.bf16.gmra.mxu1 %vm795_vm2, %v1260_v7  ;;  %v11523_v7 = vshll.u32 %v8858_v22, 16  ;;  %2549 = vperm.xlu2 %7459, %v295_v52   ;;  %11704 = vst [vmem:[#allocation108_spill] sm:$0xff] %v9005_v9 }
 0x206   : > { %v8921_v24 = vmul.f32 %v2470_v11, %v2309_v33  ;;  %v2475_v33 = vpop.permute.xlu2 %2474 }
 0x207   : > { %v1267_v23 = vrot.slane %v11523_v7, 1 }
 0x208   : > { %11691 = vst [vmem:[#allocation99_spill] sm:$0xff] %v8921_v24  ;;  %6526 = vmatmul.msk.bf16.gmra.mxu2 %vm795_vm2, %v1976_v14 }
 0x209   : > { %v3199_v37 = vpop.f32.mrf.mxu0 }
 0x20a   : > { %v1483_v47 = vpop.f32.mrf.mxu1  ;;  %v8928_v8 = vadd.f32 %v3199_v37, %v8850_v25  ;;  %v3019_v25 = vrot.slane %v8858_v22, 1  ;;  %v1263_v37 = vor.u32 %v11524_v54, %v1259_v3 }
 0x20b   : > { %v2204_v11 = vpop.f32.mrf.mxu2  ;;  %v8948_v24 = vpop.f32.mrf.mxu3  ;;  %v1484_v49 = vadd.f32 %v1483_v47, %v8158_v63 }
 0x20c   : > { %11692 = vst [vmem:[#allocation100_spill] sm:$0xff] %v8928_v8  ;;  %v2310_v14 = vadd.f32 %v2204_v11, %v1482_v60  ;;  %v1983_v8 = vrot.slane %v11694_v31, 3  ;;  %v3020_v60 = vsel %vm2973_vm4, %v3017_v61, %v3019_v25  ;;  %v1268_v7 = vsel %vm1080_vm5, %v1263_v37, %v1267_v23  ;;  %v2480_v31 = vpop.permute.xlu0 %2479 }
 0x20d   : > { %v11528_v37 = vshrl.u32 %v8858_v22, 16 }
 0x20e   : > { %v8946_v18 = vmul.f32 %v2475_v33, %v2310_v14  ;;  %v1984_v54 = vor.u32 %v1983_v8, %v1980_v39  ;;  %v299_v33 = vld [vmem:[%s11402_s3 + $0x168] sm:$0xff] }
 0x20f   : > { %2569 = vperm.xlu0 %7457, %v299_v33   ;;  %v8968_v8 = vld [vmem:[%s7725_s28 + $0xcc] sm:$0xff] }
 0x210   : > { %6560 = vmatmul.msk.bf16.gmra.mxu3 %vm795_vm2, %v8956_v35  ;;  %11697 = vst [vmem:[#allocation103_spill] sm:$0xff] %v8968_v8 }
 0x211   : > { %v3202_v52 = vpop.f32.mrf.mxu0 }
 0x212   : > { %v1486_v11 = vpop.f32.mrf.mxu1  ;;  %v8952_v3 = vadd.f32 %v3202_v52, %v8874_v55  ;;  %v1985_v55 = vsel %vm1770_vm6, %v1975_v12, %v1984_v54  ;;  %v11700_v12 = vshrl.u32 %v8968_v8, 16 }
 0x213   : > { %v2206_v14 = vpop.f32.mrf.mxu2  ;;  %v8972_v47 = vpop.f32.mrf.mxu3  ;;  %v1487_v33 = vadd.f32 %v1486_v11, %v8182_v15  ;;  %v11701_v11 = vshll.u32 %v8968_v8, 16  ;;  %v9054_v8 = vld [vmem:[%s7725_s28 + $0xd8] sm:$0xff]  }
 0x214   : > { %11695 = vst [vmem:[#allocation101_spill] sm:$0xff] %v8952_v3  ;;  %6587 = vmatmul.msk.bf16.gmra.mxu0 %vm795_vm2, %v3020_v60  ;;  %v2311_v61 = vadd.f32 %v2206_v14, %v1484_v49  ;;  %v300_v14 = vld [vmem:[%s11402_s3 + $0x170] sm:$0xff]  ;;  %v1989_v15 = vrot.slane %v11700_v12, 2 }
 0x215   : > { %6385 = vmatmul.msk.bf16.gmra.mxu1 %vm795_vm2, %v1268_v7  ;;  %v11527_v7 = vshll.u32 %v8907_v44, 16  ;;  %2574 = vperm.xlu1 %7458, %v300_v14   ;;  %11712 = vst [vmem:[#allocation114_spill] sm:$0xff] %v9054_v8 }
 0x216   : > { %v8970_v63 = vmul.f32 %v2480_v31, %v2311_v61  ;;  %v2485_v61 = vpop.permute.xlu1 %2484 }
 0x217   : > { %v1275_v49 = vrot.slane %v11527_v7, 1 }
 0x218   : > { %11698 = vst [vmem:[#allocation104_spill] sm:$0xff] %v8970_v63  ;;  %6527 = vmatmul.msk.bf16.gmra.mxu2 %vm795_vm2, %v1985_v55 }
 0x219   : > { %v3204_v39 = vpop.f32.mrf.mxu0 }
 0x21a   : > { %v1488_v52 = vpop.f32.mrf.mxu1  ;;  %v8977_v60 = vadd.f32 %v3204_v39, %v8899_v48  ;;  %v3021_v48 = vrot.slane %v8907_v44, 1  ;;  %v1271_v39 = vor.u32 %v11528_v37, %v1267_v23 }
 0x21b   : > { %v2209_v31 = vpop.f32.mrf.mxu2  ;;  %v8997_v63 = vpop.f32.mrf.mxu3  ;;  %v1489_v12 = vadd.f32 %v1488_v52, %v8205_v17 }
 0x21c   : > { %11699 = vst [vmem:[#allocation105_spill] sm:$0xff] %v8977_v60  ;;  %v2312_v55 = vadd.f32 %v2209_v31, %v1487_v33  ;;  %v1992_v60 = vrot.slane %v11701_v11, 3  ;;  %v3022_v33 = vsel %vm2973_vm4, %v3019_v25, %v3021_v48  ;;  %v1276_v7 = vsel %vm1080_vm5, %v1271_v39, %v1275_v49  ;;  %v2490_v11 = vpop.permute.xlu2 %2489 }
 0x21d   : > { %v11532_v39 = vshrl.u32 %v8907_v44, 16 }
 0x21e   : > { %v8995_v3 = vmul.f32 %v2485_v61, %v2312_v55  ;;  %v1993_v37 = vor.u32 %v1992_v60, %v1989_v15  ;;  %v298_v61 = vld [vmem:[%s11402_s3 + $0x160] sm:$0xff]  ;;  %v9017_v60 = vld [vmem:[%s7725_s28 + $0xd4] sm:$0xff] }
 0x21f   : > { %2564 = vperm.xlu2 %7459, %v298_v61   ;;  %11705 = vst [vmem:[#allocation109_spill] sm:$0xff] %v9017_v60 }
 0x220   : > { %11702 = vst [vmem:[#allocation106_spill] sm:$0xff] %v8995_v3  ;;  %6561 = vmatmul.msk.bf16.gmra.mxu3 %vm795_vm2, %v9005_v9 }
 0x221   : > { %v3207_v14 = vpop.f32.mrf.mxu0 }
 0x222   : > { %v1491_v31 = vpop.f32.mrf.mxu1  ;;  %v9001_v23 = vadd.f32 %v3207_v14, %v8923_v21  ;;  %v1994_v21 = vsel %vm1770_vm6, %v1984_v54, %v1993_v37  ;;  %v11708_v54 = vshrl.u32 %v9017_v60, 16 }
 0x223   : > { %v2211_v55 = vpop.f32.mrf.mxu2  ;;  %v9021_v52 = vpop.f32.mrf.mxu3  ;;  %v1492_v61 = vadd.f32 %v1491_v31, %v8227_v59  ;;  %v11709_v31 = vshll.u32 %v9017_v60, 16  ;;  %v9103_v60 = vld [vmem:[%s7725_s28 + $0xe0] sm:$0xff]  }
 0x224   : > { %11703 = vst [vmem:[#allocation107_spill] sm:$0xff] %v9001_v23  ;;  %6588 = vmatmul.msk.bf16.gmra.mxu0 %vm795_vm2, %v3022_v33  ;;  %v2313_v25 = vadd.f32 %v2211_v55, %v1489_v12  ;;  %v302_v55 = vld [vmem:[%s11402_s3 + $0x180] sm:$0xff]  ;;  %v1998_v59 = vrot.slane %v11708_v54, 2 }
 0x225   : > { %6386 = vmatmul.msk.bf16.gmra.mxu1 %vm795_vm2, %v1276_v7  ;;  %v11531_v7 = vshll.u32 %v8956_v35, 16  ;;  %2584 = vperm.xlu0 %7457, %v302_v55  }
 0x226   : > { %v9019_v17 = vmul.f32 %v2490_v11, %v2313_v25  ;;  %v2495_v25 = vpop.permute.xlu0 %2494 }
 0x227   : > { %v1283_v12 = vrot.slane %v11531_v7, 1 }
 0x228   : > { %11706 = vst [vmem:[#allocation110_spill] sm:$0xff] %v9019_v17  ;;  %6528 = vmatmul.msk.bf16.gmra.mxu2 %vm795_vm2, %v1994_v21 }
 0x229   : > { %v3209_v15 = vpop.f32.mrf.mxu0 }
 0x22a   : > { %v1493_v14 = vpop.f32.mrf.mxu1  ;;  %v9026_v33 = vadd.f32 %v3209_v15, %v8948_v24  ;;  %v3023_v24 = vrot.slane %v8956_v35, 1  ;;  %v1279_v15 = vor.u32 %v11532_v39, %v1275_v49 }
 0x22b   : > { %v2214_v11 = vpop.f32.mrf.mxu2  ;;  %v9046_v17 = vpop.f32.mrf.mxu3  ;;  %v1494_v54 = vadd.f32 %v1493_v14, %v8250_v20 }
 0x22c   : > { %11707 = vst [vmem:[#allocation111_spill] sm:$0xff] %v9026_v33  ;;  %v2314_v21 = vadd.f32 %v2214_v11, %v1492_v61  ;;  %v2001_v33 = vrot.slane %v11709_v31, 3  ;;  %v3024_v61 = vsel %vm2973_vm4, %v3021_v48, %v3023_v24  ;;  %v1284_v7 = vsel %vm1080_vm5, %v1279_v15, %v1283_v12  ;;  %v2500_v31 = vpop.permute.xlu1 %2499 }
 0x22d   : > { %v11536_v15 = vshrl.u32 %v8956_v35, 16  ;;  %v11754_v35 = vrot.slane %v9103_v60, 1 }
 0x22e   : > { %v9044_v23 = vmul.f32 %v2495_v25, %v2314_v21  ;;  %v2002_v39 = vor.u32 %v2001_v33, %v1998_v59  ;;  %v303_v25 = vld [vmem:[%s11402_s3 + $0x188] sm:$0xff]  ;;  %v9066_v33 = vld [vmem:[%s7725_s28 + $0xdc] sm:$0xff] }
 0x22f   : > { %2589 = vperm.xlu1 %7458, %v303_v25   ;;  %11713 = vst [vmem:[#allocation115_spill] sm:$0xff] %v9066_v33 }
 0x230   : > { %11710 = vst [vmem:[#allocation112_spill] sm:$0xff] %v9044_v23  ;;  %6562 = vmatmul.msk.bf16.gmra.mxu3 %vm795_vm2, %v9054_v8 }
 0x231   : > { %v3212_v55 = vpop.f32.mrf.mxu0 }
 0x232   : > { %v1496_v11 = vpop.f32.mrf.mxu1  ;;  %v9050_v49 = vadd.f32 %v3212_v55, %v8972_v47  ;;  %v2003_v47 = vsel %vm1770_vm6, %v1993_v37, %v2002_v39  ;;  %v11716_v37 = vshrl.u32 %v9066_v33, 16 }
 0x233   : > { %v2216_v21 = vpop.f32.mrf.mxu2  ;;  %v9070_v14 = vpop.f32.mrf.mxu3  ;;  %v1497_v25 = vadd.f32 %v1496_v11, %v7926_v40  ;;  %v11717_v11 = vshll.u32 %v9066_v33, 16 }
 0x234   : > { %11711 = vst [vmem:[#allocation113_spill] sm:$0xff] %v9050_v49  ;;  %6589 = vmatmul.msk.bf16.gmra.mxu0 %vm795_vm2, %v3024_v61  ;;  %v2315_v48 = vadd.f32 %v2216_v21, %v1494_v54  ;;  %v301_v21 = vld [vmem:[%s11402_s3 + $0x178] sm:$0xff]  ;;  %v2007_v40 = vrot.slane %v11716_v37, 2 }
 0x235   : > { %6387 = vmatmul.msk.bf16.gmra.mxu1 %vm795_vm2, %v1284_v7  ;;  %v11535_v7 = vshll.u32 %v9005_v9, 16  ;;  %2579 = vperm.xlu2 %7459, %v301_v21  }
 0x236   : > { %v9068_v20 = vmul.f32 %v2500_v31, %v2315_v48  ;;  %v2505_v48 = vpop.permute.xlu2 %2504 }
 0x237   : > { %v1291_v54 = vrot.slane %v11535_v7, 1 }
 0x238   : > { %11714 = vst [vmem:[#allocation116_spill] sm:$0xff] %v9068_v20  ;;  %6529 = vmatmul.msk.bf16.gmra.mxu2 %vm795_vm2, %v2003_v47 }
 0x239   : > { %v3214_v59 = vpop.f32.mrf.mxu0 }
 0x23a   : > { %v1498_v55 = vpop.f32.mrf.mxu1  ;;  %v9075_v61 = vadd.f32 %v3214_v59, %v8997_v63  ;;  %v3025_v63 = vrot.slane %v9005_v9, 1  ;;  %v1287_v59 = vor.u32 %v11536_v15, %v1283_v12 }
 0x23b   : > { %v2219_v31 = vpop.f32.mrf.mxu2  ;;  %v9095_v20 = vpop.f32.mrf.mxu3  ;;  %v1499_v37 = vadd.f32 %v1498_v55, %v7949_v53 }
 0x23c   : > { %11715 = vst [vmem:[#allocation117_spill] sm:$0xff] %v9075_v61  ;;  %v2316_v47 = vadd.f32 %v2219_v31, %v1497_v25  ;;  %v2010_v61 = vrot.slane %v11717_v11, 3  ;;  %v3026_v25 = vsel %vm2973_vm4, %v3023_v24, %v3025_v63  ;;  %v1292_v7 = vsel %vm1080_vm5, %v1287_v59, %v1291_v54  ;;  %v2510_v11 = vpop.permute.xlu0 %2509 }
 0x23d   : > { %v11540_v59 = vrot.slane %v9054_v8, 1 }
 0x23e   : > { %v9093_v49 = vmul.f32 %v2505_v48, %v2316_v47  ;;  %v2011_v15 = vor.u32 %v2010_v61, %v2007_v40  ;;  %v305_v48 = vld [vmem:[%s11402_s3 + $0x198] sm:$0xff]  ;;  %v9115_v61 = vld [vmem:[%s7725_s28 + $0xe4] sm:$0xff] }
 0x23f   : > { %2599 = vperm.xlu0 %7457, %v305_v48   ;;  %11720 = vst [vmem:[#allocation120_spill] sm:$0xff] %v9115_v61 }
 0x240   : > { %11718 = vst [vmem:[#allocation118_spill] sm:$0xff] %v9093_v49  ;;  %6563 = vmatmul.msk.bf16.gmra.mxu3 %vm795_vm2, %v9103_v60 }
 0x241   : > { %v3217_v21 = vpop.f32.mrf.mxu0 }
 0x242   : > { %v1501_v31 = vpop.f32.mrf.mxu1  ;;  %v9099_v12 = vadd.f32 %v3217_v21, %v9021_v52  ;;  %v2012_v52 = vsel %vm1770_vm6, %v2002_v39, %v2011_v15  ;;  %v11724_v39 = vshrl.u32 %v9115_v61, 16 }
 0x243   : > { %v2221_v47 = vpop.f32.mrf.mxu2  ;;  %v9119_v55 = vpop.f32.mrf.mxu3  ;;  %v1502_v48 = vadd.f32 %v1501_v31, %v7970_v0  ;;  %v11725_v0 = vshll.u32 %v9115_v61, 16 }
 0x244   : > { %11719 = vst [vmem:[#allocation119_spill] sm:$0xff] %v9099_v12  ;;  %6590 = vmatmul.msk.bf16.gmra.mxu0 %vm795_vm2, %v3026_v25  ;;  %v2317_v24 = vadd.f32 %v2221_v47, %v1499_v37  ;;  %v306_v47 = vld [vmem:[%s11402_s3 + $0x1a0] sm:$0xff] }
 0x245   : > { %6388 = vmatmul.msk.bf16.gmra.mxu1 %vm795_vm2, %v1292_v7  ;;  %v11539_v7 = vshll.u32 %v9054_v8, 16  ;;  %2604 = vperm.xlu1 %7458, %v306_v47   ;;  %v2019_v31 = vrot.slane %v11725_v0, 3 }
 0x246   : > { %v9117_v53 = vmul.f32 %v2510_v11, %v2317_v24  ;;  %v2515_v24 = vpop.permute.xlu1 %2514 }
 0x247   : > { %v1299_v37 = vrot.slane %v11539_v7, 1  ;;  %v2520_v7 = vpop.permute.xlu2 %2519 }
 0x248   : > { %11721 = vst [vmem:[#allocation121_spill] sm:$0xff] %v9117_v53  ;;  %6530 = vmatmul.msk.bf16.gmra.mxu2 %vm795_vm2, %v2012_v52 }
 0x249   : > { %v3219_v40 = vpop.f32.mrf.mxu0 }
 0x24a   : > { %v1503_v21 = vpop.f32.mrf.mxu1  ;;  %v9124_v25 = vadd.f32 %v3219_v40, %v9046_v17  ;;  %v11723_v17 = vshrl.u32 %v9005_v9, 16 }
 0x24b   : > { %v2224_v11 = vpop.f32.mrf.mxu2  ;;  %v9144_v53 = vpop.f32.mrf.mxu3 }
 0x24c   : > { %11722 = vst [vmem:[#allocation122_spill] sm:$0xff] %v9124_v25  ;;  %v2318_v52 = vadd.f32 %v2224_v11, %v1502_v48  ;;  %v1295_v40 = vor.u32 %v11723_v17, %v1291_v54  ;;  %v2016_v25 = vrot.slane %v11724_v39, 2  ;;  %v3028_v54 = vsel %vm2973_vm4, %v3025_v63, %v11540_v59 }
 0x24e   : > { %v9142_v12 = vmul.f32 %v2515_v24, %v2318_v52  ;;  %v1300_v39 = vsel %vm1080_vm5, %v1295_v40, %v1299_v37  ;;  %v9153_v17 = vor.u32 %v2019_v31, %v2016_v25  ;;  %v1504_v24 = vadd.f32 %v1503_v21, %v7992_v16  ;;  %v304_v52 = vld [vmem:[%s11402_s3 + $0x190] sm:$0xff]  ;;  %v3277_v25 = vld [vmem:[%s7725_s28 + $0xc] sm:$0x8] }
 0x24f   : > { %2594 = vperm.xlu2 %7459, %v304_v52  }
 0x250   : > { %11726 = vst [vmem:[#allocation123_spill] sm:$0xff] %v9142_v12  ;;  %v2021_v16 = vsel %vm1770_vm6, %v2011_v15, %v9153_v17  ;;  %v1619_v12 = vld [vmem:[%s7725_s28 + $0xf4] sm:$0x7]  ;;  %v11738_v15 = vld [vmem:[#allocation9_spill] sm:$0xff] }
 0x251   : > { %v3222_v48 = vpop.f32.mrf.mxu0 }
 0x252   : > { %v1506_v47 = vpop.f32.mrf.mxu1  ;;  %v9150_v11 = vadd.f32 %v3222_v48, %v9070_v14  ;;  %v9162_v14 = vld [vmem:[%s7725_s28 + $0xec] sm:$0xff] }
 0x253   : > { %v2226_v0 = vpop.f32.mrf.mxu2  ;;  %11728 = vst [vmem:[#allocation125_spill] sm:$0xff] %v9162_v14  ;;  %v7464_v48 = vld [vmem:[%s7725_s28 + $0xe8] sm:$0xff]   ;;  %v9171_v40 = vpop.f32.mrf.mxu3  ;;  %v1507_v59 = vadd.f32 %v1506_v47, %v8016_v41  ;;  %v11733_v41 = vshrl.u32 %v9054_v8, 16 }
 0x254   : > { %11727 = vst [vmem:[#allocation124_spill] sm:$0xff] %v9150_v11  ;;  %6591 = vmatmul.msk.bf16.gmra.mxu0 %vm795_vm2, %v3028_v54  ;;  %v2319_v63 = vadd.f32 %v2226_v0, %v1504_v24  ;;  %6564 = vmatmul.msk.bf16.gmra.mxu3 %vm795_vm2, %v7464_v48  ;;  %v3281_v48 = vunpack.c.l.b16 %v3277_v25  ;;  %v2525_v24 = vpop.permute.xlu0 %2524 }
 0x255   : > { %6389 = vmatmul.msk.bf16.gmra.mxu1 %vm795_vm2, %v1300_v39  ;;  %v1303_v47 = vor.u32 %v11733_v41, %v1299_v37 }
 0x256   : > { %v9168_v21 = vmul.f32 %v2520_v7, %v2319_v63  ;;  %v4400_v7 = vshrl.u32 %v7882_v6, 16  ;;  %v4403_v63 = vshll.u32 %v7882_v6, 16  ;;  %v11732_v6 = vshll.u32 %v9162_v14, 16 }
 0x258   : > { %11729 = vst [vmem:[#allocation126_spill] sm:$0xff] %v9168_v21  ;;  %6531 = vmatmul.msk.bf16.gmra.mxu2 %vm795_vm2, %v2021_v16  ;;  %v308_v16 = vld [vmem:[%s11402_s3 + $0x1b0] sm:$0xff]  ;;  %v2028_v25 = vrot.slane %v11732_v6, 3  ;;  %v11734_v21 = vshll.u32 %v9103_v60, 16  ;;  %v11739_v6 = vshrl.u32 %v11738_v15, 16 }
 0x259   : > { %v3224_v54 = vpop.f32.mrf.mxu0  ;;  %2614 = vperm.xlu0 %7457, %v308_v16   ;;  %v11735_v16 = vld [vmem:[#allocation7_spill] sm:$0xff] }
 0x25a   : > { %v1508_v52 = vpop.f32.mrf.mxu1  ;;  %v9178_v0 = vadd.f32 %v3224_v54, %v9095_v20  ;;  %v4402_v20 = vrot.slane %v4400_v7, 1  ;;  %v4405_v54 = vrot.slane %v4403_v63, 2  ;;  %v1307_v61 = vrot.slane %v11734_v21, 1 }
 0x25b   : > { %v2229_v31 = vpop.f32.mrf.mxu2  ;;  %v11736_v7 = vunpack.c.l.b16 %v11735_v16  ;;  %v11740_v21 = vrot.slane %v9103_v60, 1 }
 0x25c   : > { %11730 = vst [vmem:[#allocation127_spill] sm:$0xff] %v9178_v0  ;;  %v2320_v39 = vadd.f32 %v2229_v31, %v1507_v59  ;;  %v11731_v0 = vshrl.u32 %v9162_v14, 16  ;;  %v4406_v33 = vor.u32 %v4405_v54, %v4402_v20  ;;  %v370_v31 = vld [vmem:[%s7725_s28 + $0xe8] sm:$0x1]  ;;  %v4786_v14 = vrot.slane %v11739_v6, 3 }
 0x25d   : > { %v9199_v63 = vpack.c.b16 %v11736_v7, %v3281_v48  ;;  %v11741_v20 = vrot.slane %v9054_v8, 1  ;;  %v1739_v48 = vunpack.c.l.b16 %v1619_v12  ;;  %v1049_v16 = vunpack.c.l.b16 %v370_v31  ;;  %v11743_v7 = vld [vmem:[#allocation6_spill] sm:$0xff] }
 0x25e   : > { %v2025_v11 = vrot.slane %v11731_v0, 2  ;;  %v9201_v59 = vmul.f32 %v2525_v24, %v2320_v39  ;;  %v9204_v0 = vpop.f32.mrf.mxu3  ;;  %v1308_v24 = vsel %vm1080_vm5, %v1303_v47, %v1307_v61  ;;  %v4410_v6 = vsel %vm4398_vm7, %v4406_v33, %v11743_v7  ;;  %v2530_v47 = vpop.permute.xlu1 %2529 }
 0x25f   : > { %v3030_v54 = vsel %vm2973_vm4, %v11741_v20, %v11740_v21  ;;  %v9227_v21 = vld [vmem:[%s11402_s3 + $0x1b8] sm:$0xff]  ;;  %v4779_v12 = vshrl.u32 %v9199_v63, 16  ;;  %v1079_v20 = vpack.c.b16 %v1049_v16, %v1049_v16 }
 0x260   : > { %11737 = vst [vmem:[#allocation7_spill] sm:$0xff] %v9201_v59  ;;  %v9208_v37 = vor.u32 %v2028_v25, %v2025_v11  ;;  %v11744_v11 = vshll.u32 %v11738_v15, 16  ;;  %v11745_v59 = vld [vmem:[#allocation21_spill] sm:$0xff]  ;;  %2619 = vperm.xlu1 %7458, %v9227_v21   ;;  %v9234_v15 = vpack.c.b16 %v1739_v48, %v1739_v48 }
 0x261   : > { %v3227_v49 = vpop.f32.mrf.mxu0  ;;  %v1509_v23 = vadd.f32 %v1508_v52, %v11745_v59  ;;  %v4781_v52 = vrot.slane %v4779_v12, 3 }
 0x262   : > { %v1511_v41 = vpop.f32.mrf.mxu1  ;;  %v9216_v39 = vadd.f32 %v3227_v49, %v9119_v55  ;;  %v4787_v25 = vrot.slane %v11744_v11, 4  ;;  %v4782_v49 = vshll.u32 %v9199_v63, 16  ;;  %11746 = vst [vmem:[#allocation6_spill] sm:$0xff] %v9234_v15  ;;  %v2030_v31 = vsel %vm1770_vm6, %v9153_v17, %v9208_v37 }
 0x263   : > { %v2231_v55 = vpop.f32.mrf.mxu2 }
 0x264   : > { %11742 = vst [vmem:[#allocation9_spill] sm:$0xff] %v9216_v39  ;;  %6592 = vmatmul.msk.bf16.gmra.mxu0 %vm795_vm2, %v3030_v54  ;;  %v2321_v33 = vadd.f32 %v2231_v55, %v1509_v23  ;;  %6771 = vmatmul.msk.bf16.vlgmr.msra.gmra.mxu3 %vm795_vm2, %v4410_v6  ;;  %v4784_v59 = vrot.slane %v4782_v49, 4  ;;  %v9242_v54 = vor.u32 %v4787_v25, %v4786_v14  ;;  %v11748_v23 = vld [vmem:[#allocation8_spill] sm:$0xff]  ;;  %v2032_v49 = vshrl.u32 %v9234_v15, 16 }
 0x265   : > { %6390 = vmatmul.msk.bf16.gmra.mxu1 %vm795_vm2, %v1308_v24  ;;  %v11749_v24 = vshrl.u32 %v11748_v23, 16  ;;  %v11750_v55 = vshll.u32 %v11748_v23, 16  ;;  %v3031_v14 = vrot.slane %v1079_v20, 1 }
 0x266   : > { %v9240_v11 = vmul.f32 %v2530_v47, %v2321_v33  ;;  %v4785_v39 = vor.u32 %v4784_v59, %v4781_v52  ;;  %v9244_v8 = vpop.f32.mrf.mxu3  ;;  %v1313_v47 = vshll.u32 %v1079_v20, 16  ;;  %v2035_v33 = vshll.u32 %v9234_v15, 16  ;;  %v11752_v52 = vld [vmem:[#allocation24_spill] sm:$0xff] }
 0x267   : > { %v4411_v48 = vrot.slane %v11749_v24, 1  ;;  %v4412_v6 = vrot.slane %v11750_v55, 2  ;;  %v1512_v59 = vadd.f32 %v1511_v41, %v11752_v52  ;;  %v2535_v24 = vpop.permute.xlu2 %2534  ;;  %v2034_v55 = vrot.slane %v2032_v49, 2 }
 0x268   : > { %11747 = vst [vmem:[#allocation21_spill] sm:$0xff] %v9240_v11  ;;  %6532 = vmatmul.msk.bf16.gmra.mxu2 %vm795_vm2, %v2030_v31  ;;  %v9254_v17 = vsel %vm525_vm3, %v4785_v39, %v9242_v54  ;;  %v9265_v31 = vld [vmem:[%s11402_s3 + $0x1a8] sm:$0xff]  ;;  %v2037_v11 = vrot.slane %v2035_v33, 3  ;;  %v3032_v49 = vsel %vm2973_vm4, %v11754_v35, %v3031_v14 }
 0x269   : > { %v3229_v12 = vpop.f32.mrf.mxu0  ;;  %2609 = vperm.xlu2 %7459, %v9265_v31   ;;  %v4413_v15 = vor.u32 %v4412_v6, %v4411_v48  ;;  %v11756_v6 = vld [vmem:[#allocation27_spill] sm:$0xff]  ;;  %v9287_v33 = vld [vmem:[%s11402_s3 + $0x1c8] sm:$0xff] }
 0x26a   : > { %v1513_v16 = vpop.f32.mrf.mxu1  ;;  %v9258_v25 = vadd.f32 %v3229_v12, %v9144_v53  ;;  %v11753_v53 = vshrl.u32 %v9103_v60, 16  ;;  %v2038_v48 = vor.u32 %v2037_v11, %v2034_v55  ;;  %2629 = vperm.xlu0 %7457, %v9287_v33  }
 0x26b   : > { %v2234_v23 = vpop.f32.mrf.mxu2  ;;  %v4414_v52 = vsel %vm4398_vm7, %v11743_v7, %v4413_v15 }
 0x26c   : > { %11751 = vst [vmem:[#allocation8_spill] sm:$0xff] %v9258_v25  ;;  %v2322_v39 = vadd.f32 %v2234_v23, %v1512_v59  ;;  %v1311_v12 = vor.u32 %v11753_v53, %v1307_v61  ;;  %v1315_v25 = vrot.slane %v1313_v47, 1  ;;  %v1514_v47 = vadd.f32 %v1513_v16, %v11756_v6  ;;  %v2540_v23 = vpop.permute.xlu0 %2539 }
 0x26e   : > { %v9270_v9 = vmul.f32 %v2535_v24, %v2322_v39  ;;  %v9272_v41 = vpop.f32.mrf.mxu3  ;;  %v1316_v61 = vsel %vm1080_vm5, %v1311_v12, %v1315_v25  ;;  %v11758_v24 = vld [vmem:[#allocation10_spill] sm:$0xff] }
 0x26f   : > { %v11759_v39 = vshrl.u32 %v11758_v24, 16  ;;  %v11760_v53 = vshll.u32 %v11758_v24, 16  ;;  %v9314_v24 = vld [vmem:[%s7725_s28 + $0x14] sm:$0xff] }
 0x271   : > { %v3232_v3 = vpop.f32.mrf.mxu0  ;;  %v4415_v55 = vrot.slane %v11759_v39, 1  ;;  %v4416_v12 = vrot.slane %v11760_v53, 2  ;;  %v3284_v39 = vrot.slane %v9199_v63, 3 }
 0x272   : > { %v1516_v20 = vpop.f32.mrf.mxu1  ;;  %v9280_v59 = vadd.f32 %v3232_v3, %v9171_v40  ;;  %v6860_v3 = vld [vmem:[%s7725_s28 + $0x8] sm:$0xff]  ;;  %v2039_v40 = vsel %vm1770_vm6, %v9208_v37, %v2038_v48  ;;  %v9309_v37 = vld [vmem:[%s7725_s28 + $0x10] sm:$0xff] }
 0x273   : > { %v2236_v7 = vpop.f32.mrf.mxu2  ;;  %v3918_v25 = vshll.u32 %v6860_v3, 16 }
 0x274   : > { %11755 = vst [vmem:[#allocation24_spill] sm:$0xff] %v9280_v59  ;;  %6593 = vmatmul.msk.bf16.gmra.mxu0 %vm795_vm2, %v3032_v49  ;;  %v2323_v35 = vadd.f32 %v2236_v7, %v1514_v47  ;;  %6772 = vmatmul.msk.bf16.gmra.mxu3 %vm795_vm2, %v4414_v52  ;;  %v2545_v47 = vpop.permute.xlu1 %2544  ;;  %v11766_v59 = vld [vmem:[#allocation33_spill] sm:$0xff] }
 0x275   : > { %6391 = vmatmul.msk.bf16.gmra.mxu1 %vm795_vm2, %v1316_v61  ;;  %v11762_v61 = vld [vmem:[#allocation30_spill] sm:$0xff] }
 0x276   : > { %v9296_v11 = vmul.f32 %v2540_v23, %v2323_v35  ;;  %v9298_v14 = vpop.f32.mrf.mxu3  ;;  %v1517_v48 = vadd.f32 %v1516_v20, %v11762_v61  ;;  %v3916_v23 = vshrl.u32 %v6860_v3, 16  ;;  %v3920_v35 = vrot.slane %v3918_v25, 1  ;;  %v7466_v20 = vld [vmem:[%s11402_s3] sm:$0xff]  ;;  %v7467_v3 = vld [vmem:[%s11402_s3 + $0x10] sm:$0xff] }
 0x278   : > { %11757 = vst [vmem:[#allocation27_spill] sm:$0xff] %v9296_v11  ;;  %6533 = vmatmul.msk.bf16.gmra.mxu2 %vm795_vm2, %v2039_v40  ;;  %v7618_v40 = vmov 1   ;;  %v2555_v11 = vpop.permute.xlu0 %2554 }
 0x279   : > { %v3234_v16 = vpop.f32.mrf.mxu0  ;;  %7460 = vset.pattern.permute.xlu1 %v7618_v40  ;;  %7462 = vset.pattern.permute.xlu0 %v7618_v40 }
 0x27a   : > { %v1518_v49 = vpop.f32.mrf.mxu1  ;;  %v9306_v52 = vadd.f32 %v3234_v16, %v9204_v0  ;;  %v3923_v0 = vshll.u32 %v9309_v37, 16  ;;  %5210 = vperm.xlu1 %7460, %v7466_v20   ;;  %v4417_v16 = vor.u32 %v4416_v12, %v4415_v55  ;;  %5218 = vperm.xlu0 %7462, %v7467_v3   ;;  %v11765_v20 = vrot.slane %v9314_v24, 3 }
 0x27b   : > { %v2239_v6 = vpop.f32.mrf.mxu2  ;;  %v3921_v12 = vor.u32 %v3920_v35, %v3916_v23  ;;  %v1519_v3 = vadd.f32 %v1518_v49, %v11766_v59  ;;  %v7468_v49 = vld [vmem:[%s11402_s3 + $0x18] sm:$0xff] }
 0x27c   : > { %11761 = vst [vmem:[#allocation10_spill] sm:$0xff] %v9306_v52  ;;  %v2324_v7 = vadd.f32 %v2239_v6, %v1517_v48  ;;  %v4418_v61 = vsel %vm4398_vm7, %v4413_v15, %v4417_v16  ;;  %v3286_v55 = vsel %vm3283_vm8, %v3284_v39, %v11765_v20  ;;  %v3925_v52 = vrot.slane %v3923_v0, 1  ;;  %v2550_v15 = vpop.permute.xlu2 %2549  ;;  %v7469_v23 = vld [vmem:[%s11402_s3 + $0x38] sm:$0xff] }
 0x27d   : > { %v11768_v0 = vld [vmem:[#allocation11_spill] sm:$0xff] }
 0x27e   : > { %v9324_v25 = vmul.f32 %v2545_v47, %v2324_v7  ;;  %v9326_v63 = vpop.f32.mrf.mxu3  ;;  %v9339_v47 = vld [vmem:[%s11402_s3 + $0x1c0] sm:$0xff]  ;;  %v3926_v59 = vsel %vm1080_vm5, %v3921_v12, %v3925_v52  ;;  %v11770_v20 = vshll.u32 %v11768_v0, 16 }
 0x27f   : > { %2624 = vperm.xlu2 %7459, %v9339_v47   ;;  %v11771_v12 = vld [vmem:[#allocation12_spill] sm:$0xff] }
 0x280   : > { %11763 = vst [vmem:[#allocation30_spill] sm:$0xff] %v9324_v25 }
 0x281   : > { %v3237_v48 = vpop.f32.mrf.mxu0 }
 0x282   : > { %v1521_v6 = vpop.f32.mrf.mxu1  ;;  %v9330_v53 = vadd.f32 %v3237_v48, %v9244_v8  ;;  %5222 = vperm.xlu1 %7460, %v7468_v49   ;;  %5238 = vperm.xlu0 %7462, %v7469_v23   ;;  %v11773_v49 = vshll.u32 %v11771_v12, 16 }
 0x283   : > { %v2241_v7 = vpop.f32.mrf.mxu2 }
 0x284   : > { %11764 = vst [vmem:[#allocation128_spill] sm:$0xff] %v9330_v53  ;;  %6801 = vmatmul.msk.bf16.vlgmr.msra.gmra.mxu0 %vm795_vm2, %v9254_v17  ;;  %v2325_v8 = vadd.f32 %v2241_v7, %v1519_v3  ;;  %6773 = vmatmul.msk.bf16.gmra.mxu3 %vm795_vm2, %v4418_v61  ;;  %v11769_v61 = vshrl.u32 %v11768_v0, 16  ;;  %v11772_v3 = vshrl.u32 %v11771_v12, 16  ;;  %v4420_v23 = vrot.slane %v11773_v49, 2  ;;  %v9370_v53 = vld [vmem:[%s7725_s28 + $0x18] sm:$0xff] }
 0x285   : > { %6595 = vmatmul.msk.bf16.vlgmr.msra.gmra.mxu1 %vm795_vm2, %v3286_v55  ;;  %v4791_v55 = vrot.slane %v11770_v20, 4  ;;  %v7470_v20 = vld [vmem:[%s11402_s3 + $0x8] sm:$0xff]  ;;  %v9379_v12 = vld [vmem:[%s7725_s28 + $0x1c] sm:$0xff] }
 0x286   : > { %v9353_v17 = vmul.f32 %v2550_v15, %v2325_v8  ;;  %v9355_v35 = vpop.f32.mrf.mxu3  ;;  %v4790_v48 = vrot.slane %v11769_v61, 3  ;;  %v4419_v7 = vrot.slane %v11772_v3, 1  ;;  %v3931_v3 = vshll.u32 %v9370_v53, 16 }
 0x287   : > { %7461 = vset.pattern.permute.xlu2 %v7618_v40  ;;  %v7472_v40 = vld [vmem:[%s11402_s3 + $0x28] sm:$0xff] }
 0x288   : > { %11767 = vst [vmem:[#allocation33_spill] sm:$0xff] %v9353_v17  ;;  %6742 = vmatmul.msk.bf16.vlgmr.msra.gmra.mxu2 %vm795_vm2, %v3926_v59  ;;  %v11775_v59 = vld [vmem:[#allocation36_spill] sm:$0xff]  ;;  %v9373_v0 = vor.u32 %v4791_v55, %v4790_v48  ;;  %5214 = vperm.xlu2 %7461, %v7470_v20   ;;  %v3933_v20 = vrot.slane %v3931_v3, 1 }
 0x289   : > { %v3239_v39 = vpop.f32.mrf.mxu0  ;;  %v1522_v17 = vadd.f32 %v1521_v6, %v11775_v59  ;;  %v4421_v6 = vor.u32 %v4420_v23, %v4419_v7  ;;  %v11778_v59 = vrot.slane %v9314_v24, 3 }
 0x28a   : > { %v1523_v15 = vpop.f32.mrf.mxu1  ;;  %v9367_v8 = vadd.f32 %v3239_v39, %v9272_v41  ;;  %v11554_v41 = vrot.slane %v9379_v12, 3  ;;  %v3927_v39 = vshrl.u32 %v9309_v37, 16  ;;  %5230 = vperm.xlu1 %7460, %v7472_v40   ;;  %v4793_v7 = vsel %vm525_vm3, %v9242_v54, %v9373_v0  ;;  %v11779_v40 = vld [vmem:[#allocation39_spill] sm:$0xff] }
 0x28b   : > { %v2244_v25 = vpop.f32.mrf.mxu2  ;;  %v4422_v55 = vsel %vm4398_vm7, %v4417_v16, %v4421_v6 }
 0x28c   : > { %11774 = vst [vmem:[#allocation11_spill] sm:$0xff] %v9367_v8  ;;  %v2326_v61 = vadd.f32 %v2244_v25, %v1522_v17  ;;  %v7473_v25 = vld [vmem:[%s11402_s3 + $0x50] sm:$0xff]  ;;  %v2560_v8 = vpop.permute.xlu1 %2559 }
 0x28d   : > { %5250 = vperm.xlu0 %7462, %v7473_v25   ;;  %v1524_v25 = vadd.f32 %v1523_v15, %v11779_v40  ;;  %v7476_v15 = vld [vmem:[%s11402_s3 + $0x68] sm:$0xff] }
 0x28e   : > { %v9390_v17 = vmul.f32 %v2555_v11, %v2326_v61  ;;  %v9392_v48 = vpop.f32.mrf.mxu3  ;;  %v3288_v11 = vsel %vm3283_vm8, %v11778_v59, %v11554_v41  ;;  %v3929_v61 = vor.u32 %v3927_v39, %v3925_v52  ;;  %v7475_v52 = vld [vmem:[%s11402_s3 + $0x40] sm:$0xff] }
 0x290   : > { %11776 = vst [vmem:[#allocation12_spill] sm:$0xff] %v9390_v17  ;;  %v3934_v54 = vsel %vm1080_vm5, %v3929_v61, %v3933_v20  ;;  %v11784_v61 = vld [vmem:[#allocation16_spill] sm:$0xff] }
 0x291   : > { %v3242_v37 = vpop.f32.mrf.mxu0  ;;  %v11786_v40 = vshll.u32 %v11784_v61, 16 }
 0x292   : > { %v1526_v49 = vpop.f32.mrf.mxu1  ;;  %v9399_v23 = vadd.f32 %v3242_v37, %v9298_v14  ;;  %v7474_v14 = vld [vmem:[%s11402_s3 + $0x20] sm:$0xff]  ;;  %5242 = vperm.xlu1 %7460, %v7475_v52  }
 0x293   : > { %v2246_v16 = vpop.f32.mrf.mxu2  ;;  %5226 = vperm.xlu2 %7461, %v7474_v14   ;;  %v9437_v52 = vld [vmem:[%s7725_s28 + $0x20] sm:$0xff] }
 0x294   : > { %11777 = vst [vmem:[#allocation36_spill] sm:$0xff] %v9399_v23  ;;  %6802 = vmatmul.msk.bf16.gmra.mxu0 %vm795_vm2, %v4793_v7  ;;  %v2327_v17 = vadd.f32 %v2246_v16, %v1524_v25  ;;  %6774 = vmatmul.msk.bf16.gmra.mxu3 %vm795_vm2, %v4422_v55  ;;  %v11781_v55 = vld [vmem:[#allocation13_spill] sm:$0xff]  ;;  %v4424_v25 = vrot.slane %v11786_v40, 2  ;;  %v2565_v23 = vpop.permute.xlu2 %2564 }
 0x295   : > { %6596 = vmatmul.msk.bf16.gmra.mxu1 %vm795_vm2, %v3288_v11  ;;  %5262 = vperm.xlu0 %7462, %v7476_v15   ;;  %v11782_v37 = vshrl.u32 %v11781_v55, 16  ;;  %v11783_v59 = vshll.u32 %v11781_v55, 16  ;;  %v9443_v55 = vld [vmem:[%s7725_s28 + $0x24] sm:$0xff] }
 0x296   : > { %v9417_v24 = vmul.f32 %v2560_v8, %v2327_v17  ;;  %v9422_v39 = vpop.f32.mrf.mxu3  ;;  %v11785_v8 = vshrl.u32 %v11784_v61, 16  ;;  %v3935_v61 = vshrl.u32 %v9370_v53, 16 }
 0x297   : > { %v4794_v7 = vrot.slane %v11782_v37, 3  ;;  %v4795_v11 = vrot.slane %v11783_v59, 4  ;;  %v11555_v59 = vrot.slane %v9443_v55, 3 }
 0x298   : > { %11780 = vst [vmem:[#allocation39_spill] sm:$0xff] %v9417_v24  ;;  %6743 = vmatmul.msk.bf16.gmra.mxu2 %vm795_vm2, %v3934_v54  ;;  %v4423_v17 = vrot.slane %v11785_v8, 1  ;;  %v11788_v54 = vld [vmem:[#allocation41_spill] sm:$0xff]  ;;  %v3939_v8 = vshll.u32 %v9437_v52, 16 }
 0x299   : > { %v3244_v3 = vpop.f32.mrf.mxu0  ;;  %v1527_v15 = vadd.f32 %v1526_v49, %v11788_v54  ;;  %v9440_v24 = vor.u32 %v4795_v11, %v4794_v7 }
 0x29a   : > { %v1528_v16 = vpop.f32.mrf.mxu1  ;;  %v9434_v14 = vadd.f32 %v3244_v3, %v9326_v63  ;;  %v4425_v40 = vor.u32 %v4424_v25, %v4423_v17  ;;  %v7478_v63 = vld [vmem:[%s11402_s3 + $0x30] sm:$0xff]  ;;  %v7480_v3 = vld [vmem:[%s11402_s3 + $0x80] sm:$0xff] }
 0x29b   : > { %v2249_v41 = vpop.f32.mrf.mxu2  ;;  %5234 = vperm.xlu2 %7461, %v7478_v63   ;;  %v4797_v17 = vsel %vm525_vm3, %v9373_v0, %v9440_v24  ;;  %v3941_v63 = vrot.slane %v3939_v8, 1  ;;  %v7481_v0 = vld [vmem:[%s11402_s3 + $0x48] sm:$0xff] }
 0x29c   : > { %11787 = vst [vmem:[#allocation13_spill] sm:$0xff] %v9434_v14  ;;  %v2328_v37 = vadd.f32 %v2249_v41, %v1527_v15  ;;  %v7479_v41 = vld [vmem:[%s11402_s3 + $0x58] sm:$0xff]  ;;  %v4426_v7 = vsel %vm4398_vm7, %v4421_v6, %v4425_v40  ;;  %v2570_v14 = vpop.permute.xlu0 %2569 }
 0x29d   : > { %5254 = vperm.xlu1 %7460, %v7479_v41   ;;  %5274 = vperm.xlu0 %7462, %v7480_v3   ;;  %v11792_v41 = vld [vmem:[#allocation42_spill] sm:$0xff] }
 0x29e   : > { %v9454_v49 = vmul.f32 %v2565_v23, %v2328_v37  ;;  %v9459_v53 = vpop.f32.mrf.mxu3  ;;  %v11791_v23 = vrot.slane %v9379_v12, 3  ;;  %v3937_v37 = vor.u32 %v3935_v61, %v3933_v20  ;;  %v1529_v3 = vadd.f32 %v1528_v16, %v11792_v41  ;;  %v7482_v12 = vld [vmem:[%s11402_s3 + $0x70] sm:$0xff]  ;;  %v7483_v16 = vld [vmem:[%s11402_s3 + $0x98] sm:$0xff] }
 0x2a0   : > { %11789 = vst [vmem:[#allocation16_spill] sm:$0xff] %v9454_v49  ;;  %v3290_v15 = vsel %vm3283_vm8, %v11791_v23, %v11555_v59 }
 0x2a1   : > { %v3247_v11 = vpop.f32.mrf.mxu0 }
 0x2a2   : > { %v1531_v25 = vpop.f32.mrf.mxu1  ;;  %v9466_v54 = vadd.f32 %v3247_v11, %v9355_v35  ;;  %v3942_v35 = vsel %vm1080_vm5, %v3937_v37, %v3941_v63  ;;  %v11797_v37 = vld [vmem:[#allocation20_spill] sm:$0xff] }
 0x2a3   : > { %v2251_v6 = vpop.f32.mrf.mxu2  ;;  %5246 = vperm.xlu2 %7461, %v7481_v0   ;;  %v11799_v41 = vshll.u32 %v11797_v37, 16 }
 0x2a4   : > { %11790 = vst [vmem:[#allocation41_spill] sm:$0xff] %v9466_v54  ;;  %6803 = vmatmul.msk.bf16.gmra.mxu0 %vm795_vm2, %v4797_v17  ;;  %v2329_v49 = vadd.f32 %v2251_v6, %v1529_v3  ;;  %6775 = vmatmul.msk.bf16.gmra.mxu3 %vm795_vm2, %v4426_v7  ;;  %v11794_v7 = vld [vmem:[#allocation17_spill] sm:$0xff]  ;;  %v2575_v54 = vpop.permute.xlu1 %2574 }
 0x2a5   : > { %6597 = vmatmul.msk.bf16.gmra.mxu1 %vm795_vm2, %v3290_v15  ;;  %5266 = vperm.xlu1 %7460, %v7482_v12   ;;  %v11795_v11 = vshrl.u32 %v11794_v7, 16  ;;  %v11796_v23 = vshll.u32 %v11794_v7, 16  ;;  %v4428_v3 = vrot.slane %v11799_v41, 2  ;;  %v9504_v12 = vld [vmem:[%s7725_s28 + $0x28] sm:$0xff] }
 0x2a6   : > { %v9484_v20 = vmul.f32 %v2570_v14, %v2329_v49  ;;  %5286 = vperm.xlu0 %7462, %v7483_v16   ;;  %v9489_v61 = vpop.f32.mrf.mxu3  ;;  %v11798_v14 = vshrl.u32 %v11797_v37, 16  ;;  %v9510_v7 = vld [vmem:[%s7725_s28 + $0x2c] sm:$0xff]  ;;  %v3943_v37 = vshrl.u32 %v9437_v52, 16 }
 0x2a7   : > { %v4798_v17 = vrot.slane %v11795_v11, 3  ;;  %v4799_v15 = vrot.slane %v11796_v23, 4  ;;  %v11556_v23 = vrot.slane %v9510_v7, 3 }
 0x2a8   : > { %11793 = vst [vmem:[#allocation42_spill] sm:$0xff] %v9484_v20  ;;  %6744 = vmatmul.msk.bf16.gmra.mxu2 %vm795_vm2, %v3942_v35  ;;  %v4427_v49 = vrot.slane %v11798_v14, 1  ;;  %v11801_v35 = vld [vmem:[#allocation44_spill] sm:$0xff]  ;;  %v3947_v14 = vshll.u32 %v9504_v12, 16 }
 0x2a9   : > { %v3249_v8 = vpop.f32.mrf.mxu0  ;;  %v1532_v16 = vadd.f32 %v1531_v25, %v11801_v35  ;;  %v9507_v20 = vor.u32 %v4799_v15, %v4798_v17 }
 0x2aa   : > { %v1533_v6 = vpop.f32.mrf.mxu1  ;;  %v9501_v0 = vadd.f32 %v3249_v8, %v9392_v48  ;;  %v4429_v41 = vor.u32 %v4428_v3, %v4427_v49  ;;  %v7485_v48 = vld [vmem:[%s11402_s3 + $0x60] sm:$0xff]  ;;  %v7487_v8 = vld [vmem:[%s11402_s3 + $0xb0] sm:$0xff] }
 0x2ab   : > { %v2254_v59 = vpop.f32.mrf.mxu2  ;;  %5258 = vperm.xlu2 %7461, %v7485_v48   ;;  %v4801_v49 = vsel %vm525_vm3, %v9440_v24, %v9507_v20  ;;  %v3949_v48 = vrot.slane %v3947_v14, 1 }
 0x2ac   : > { %11800 = vst [vmem:[#allocation17_spill] sm:$0xff] %v9501_v0  ;;  %v2330_v11 = vadd.f32 %v2254_v59, %v1532_v16  ;;  %v7486_v59 = vld [vmem:[%s11402_s3 + $0x88] sm:$0xff]  ;;  %v4430_v17 = vsel %vm4398_vm7, %v4425_v40, %v4429_v41  ;;  %v2580_v0 = vpop.permute.xlu2 %2579 }
 0x2ad   : > { %5278 = vperm.xlu1 %7460, %v7486_v59   ;;  %v11805_v59 = vld [vmem:[#allocation46_spill] sm:$0xff] }
 0x2ae   : > { %v9521_v25 = vmul.f32 %v2575_v54, %v2330_v11  ;;  %5298 = vperm.xlu0 %7462, %v7487_v8   ;;  %v9526_v52 = vpop.f32.mrf.mxu3  ;;  %v11804_v54 = vrot.slane %v9443_v55, 3  ;;  %v3945_v11 = vor.u32 %v3943_v37, %v3941_v63  ;;  %v1534_v8 = vadd.f32 %v1533_v6, %v11805_v59  ;;  %v7489_v55 = vld [vmem:[%s11402_s3 + $0xa0] sm:$0xff]  ;;  %v7490_v6 = vld [vmem:[%s11402_s3 + $0xc8] sm:$0xff] }
 0x2b0   : > { %11802 = vst [vmem:[#allocation20_spill] sm:$0xff] %v9521_v25  ;;  %v3292_v16 = vsel %vm3283_vm8, %v11804_v54, %v11556_v23  ;;  %v3950_v24 = vsel %vm1080_vm5, %v3945_v11, %v3949_v48  ;;  %v11810_v11 = vld [vmem:[#allocation26_spill] sm:$0xff] }
 0x2b1   : > { %v3252_v15 = vpop.f32.mrf.mxu0  ;;  %v11812_v59 = vshll.u32 %v11810_v11, 16 }
 0x2b2   : > { %v1536_v3 = vpop.f32.mrf.mxu1  ;;  %v9533_v35 = vadd.f32 %v3252_v15, %v9422_v39  ;;  %v7488_v39 = vld [vmem:[%s11402_s3 + $0x78] sm:$0xff] }
 0x2b3   : > { %v2256_v40 = vpop.f32.mrf.mxu2  ;;  %5270 = vperm.xlu2 %7461, %v7488_v39  }
 0x2b4   : > { %11803 = vst [vmem:[#allocation44_spill] sm:$0xff] %v9533_v35  ;;  %6804 = vmatmul.msk.bf16.gmra.mxu0 %vm795_vm2, %v4801_v49  ;;  %v2331_v25 = vadd.f32 %v2256_v40, %v1534_v8  ;;  %6776 = vmatmul.msk.bf16.gmra.mxu3 %vm795_vm2, %v4430_v17  ;;  %v11807_v17 = vld [vmem:[#allocation22_spill] sm:$0xff]  ;;  %v4432_v8 = vrot.slane %v11812_v59, 2  ;;  %v2585_v35 = vpop.permute.xlu0 %2584 }
 0x2b5   : > { %6598 = vmatmul.msk.bf16.gmra.mxu1 %vm795_vm2, %v3292_v16  ;;  %5290 = vperm.xlu1 %7460, %v7489_v55   ;;  %v11808_v15 = vshrl.u32 %v11807_v17, 16  ;;  %v11809_v54 = vshll.u32 %v11807_v17, 16  ;;  %v9571_v55 = vld [vmem:[%s7725_s28 + $0x30] sm:$0xff] }
 0x2b6   : > { %v9551_v63 = vmul.f32 %v2580_v0, %v2331_v25  ;;  %5310 = vperm.xlu0 %7462, %v7490_v6   ;;  %v9556_v37 = vpop.f32.mrf.mxu3  ;;  %v11811_v0 = vshrl.u32 %v11810_v11, 16  ;;  %v9577_v17 = vld [vmem:[%s7725_s28 + $0x34] sm:$0xff]  ;;  %v3951_v11 = vshrl.u32 %v9504_v12, 16 }
 0x2b7   : > { %v4802_v49 = vrot.slane %v11808_v15, 3  ;;  %v4803_v16 = vrot.slane %v11809_v54, 4  ;;  %v11557_v54 = vrot.slane %v9577_v17, 3 }
 0x2b8   : > { %11806 = vst [vmem:[#allocation46_spill] sm:$0xff] %v9551_v63  ;;  %6745 = vmatmul.msk.bf16.gmra.mxu2 %vm795_vm2, %v3950_v24  ;;  %v4431_v25 = vrot.slane %v11811_v0, 1  ;;  %v11814_v24 = vld [vmem:[#allocation14_spill] sm:$0xff]  ;;  %v3955_v0 = vshll.u32 %v9571_v55, 16 }
 0x2b9   : > { %v3254_v14 = vpop.f32.mrf.mxu0  ;;  %v1537_v6 = vadd.f32 %v1536_v3, %v11814_v24  ;;  %v9574_v63 = vor.u32 %v4803_v16, %v4802_v49 }
 0x2ba   : > { %v1538_v40 = vpop.f32.mrf.mxu1  ;;  %v9568_v39 = vadd.f32 %v3254_v14, %v9459_v53  ;;  %v4433_v59 = vor.u32 %v4432_v8, %v4431_v25  ;;  %v7492_v53 = vld [vmem:[%s11402_s3 + $0x90] sm:$0xff]  ;;  %v7494_v14 = vld [vmem:[%s11402_s3 + $0xe0] sm:$0xff] }
 0x2bb   : > { %v2259_v23 = vpop.f32.mrf.mxu2  ;;  %5282 = vperm.xlu2 %7461, %v7492_v53   ;;  %v4805_v25 = vsel %vm525_vm3, %v9507_v20, %v9574_v63  ;;  %v3957_v53 = vrot.slane %v3955_v0, 1 }
 0x2bc   : > { %11813 = vst [vmem:[#allocation22_spill] sm:$0xff] %v9568_v39  ;;  %v2332_v15 = vadd.f32 %v2259_v23, %v1537_v6  ;;  %v7493_v23 = vld [vmem:[%s11402_s3 + $0xb8] sm:$0xff]  ;;  %v4434_v49 = vsel %vm4398_vm7, %v4429_v41, %v4433_v59  ;;  %v2590_v39 = vpop.permute.xlu1 %2589 }
 0x2bd   : > { %5302 = vperm.xlu1 %7460, %v7493_v23   ;;  %v11818_v23 = vld [vmem:[#allocation15_spill] sm:$0xff] }
 0x2be   : > { %v9588_v3 = vmul.f32 %v2585_v35, %v2332_v15  ;;  %5322 = vperm.xlu0 %7462, %v7494_v14   ;;  %v9593_v12 = vpop.f32.mrf.mxu3  ;;  %v11817_v35 = vrot.slane %v9510_v7, 3  ;;  %v3953_v15 = vor.u32 %v3951_v11, %v3949_v48  ;;  %v1539_v14 = vadd.f32 %v1538_v40, %v11818_v23  ;;  %v7496_v7 = vld [vmem:[%s11402_s3 + $0xd0] sm:$0xff]  ;;  %v7497_v40 = vld [vmem:[%s11402_s3 + $0xf8] sm:$0xff] }
 0x2c0   : > { %11815 = vst [vmem:[#allocation26_spill] sm:$0xff] %v9588_v3  ;;  %v3294_v6 = vsel %vm3283_vm8, %v11817_v35, %v11557_v54  ;;  %v3958_v20 = vsel %vm1080_vm5, %v3953_v15, %v3957_v53  ;;  %v11823_v15 = vld [vmem:[#allocation32_spill] sm:$0xff] }
 0x2c1   : > { %v3257_v16 = vpop.f32.mrf.mxu0  ;;  %v11825_v23 = vshll.u32 %v11823_v15, 16 }
 0x2c2   : > { %v1541_v8 = vpop.f32.mrf.mxu1  ;;  %v9600_v24 = vadd.f32 %v3257_v16, %v9489_v61  ;;  %v7495_v61 = vld [vmem:[%s11402_s3 + $0xa8] sm:$0xff] }
 0x2c3   : > { %v2261_v41 = vpop.f32.mrf.mxu2  ;;  %5294 = vperm.xlu2 %7461, %v7495_v61  }
 0x2c4   : > { %11816 = vst [vmem:[#allocation14_spill] sm:$0xff] %v9600_v24  ;;  %6805 = vmatmul.msk.bf16.gmra.mxu0 %vm795_vm2, %v4805_v25  ;;  %v2333_v3 = vadd.f32 %v2261_v41, %v1539_v14  ;;  %6777 = vmatmul.msk.bf16.gmra.mxu3 %vm795_vm2, %v4434_v49  ;;  %v11820_v49 = vld [vmem:[#allocation28_spill] sm:$0xff]  ;;  %v4436_v14 = vrot.slane %v11825_v23, 2  ;;  %v2595_v24 = vpop.permute.xlu2 %2594 }
 0x2c5   : > { %6599 = vmatmul.msk.bf16.gmra.mxu1 %vm795_vm2, %v3294_v6  ;;  %5314 = vperm.xlu1 %7460, %v7496_v7   ;;  %v11821_v16 = vshrl.u32 %v11820_v49, 16  ;;  %v11822_v35 = vshll.u32 %v11820_v49, 16  ;;  %v9638_v7 = vld [vmem:[%s7725_s28 + $0x38] sm:$0xff] }
 0x2c6   : > { %v9618_v48 = vmul.f32 %v2590_v39, %v2333_v3  ;;  %5334 = vperm.xlu0 %7462, %v7497_v40   ;;  %v9623_v11 = vpop.f32.mrf.mxu3  ;;  %v11824_v39 = vshrl.u32 %v11823_v15, 16  ;;  %v9644_v49 = vld [vmem:[%s7725_s28 + $0x3c] sm:$0xff]  ;;  %v3959_v15 = vshrl.u32 %v9571_v55, 16 }
 0x2c7   : > { %v4806_v25 = vrot.slane %v11821_v16, 3  ;;  %v4807_v6 = vrot.slane %v11822_v35, 4  ;;  %v11558_v35 = vrot.slane %v9644_v49, 3 }
 0x2c8   : > { %11819 = vst [vmem:[#allocation15_spill] sm:$0xff] %v9618_v48  ;;  %6746 = vmatmul.msk.bf16.gmra.mxu2 %vm795_vm2, %v3958_v20  ;;  %v4435_v3 = vrot.slane %v11824_v39, 1  ;;  %v11827_v20 = vld [vmem:[#allocation18_spill] sm:$0xff]  ;;  %v3963_v39 = vshll.u32 %v9638_v7, 16 }
 0x2c9   : > { %v3259_v0 = vpop.f32.mrf.mxu0  ;;  %v1542_v40 = vadd.f32 %v1541_v8, %v11827_v20  ;;  %v9641_v48 = vor.u32 %v4807_v6, %v4806_v25 }
 0x2ca   : > { %v1543_v41 = vpop.f32.mrf.mxu1  ;;  %v9635_v61 = vadd.f32 %v3259_v0, %v9526_v52  ;;  %v4437_v23 = vor.u32 %v4436_v14, %v4435_v3  ;;  %v7499_v52 = vld [vmem:[%s11402_s3 + $0xc0] sm:$0xff]  ;;  %v7501_v0 = vld [vmem:[%s11402_s3 + $0x110] sm:$0xff] }
 0x2cb   : > { %v2264_v54 = vpop.f32.mrf.mxu2  ;;  %5306 = vperm.xlu2 %7461, %v7499_v52   ;;  %v4809_v3 = vsel %vm525_vm3, %v9574_v63, %v9641_v48  ;;  %v3965_v52 = vrot.slane %v3963_v39, 1 }
 0x2cc   : > { %11826 = vst [vmem:[#allocation28_spill] sm:$0xff] %v9635_v61  ;;  %v2334_v16 = vadd.f32 %v2264_v54, %v1542_v40  ;;  %v7500_v54 = vld [vmem:[%s11402_s3 + $0xe8] sm:$0xff]  ;;  %v4438_v25 = vsel %vm4398_vm7, %v4433_v59, %v4437_v23  ;;  %v2600_v61 = vpop.permute.xlu0 %2599 }
 0x2cd   : > { %5326 = vperm.xlu1 %7460, %v7500_v54   ;;  %v11831_v54 = vld [vmem:[#allocation19_spill] sm:$0xff] }
 0x2ce   : > { %v9655_v8 = vmul.f32 %v2595_v24, %v2334_v16  ;;  %5346 = vperm.xlu0 %7462, %v7501_v0   ;;  %v9660_v55 = vpop.f32.mrf.mxu3  ;;  %v11830_v24 = vrot.slane %v9577_v17, 3  ;;  %v3961_v16 = vor.u32 %v3959_v15, %v3957_v53  ;;  %v1544_v0 = vadd.f32 %v1543_v41, %v11831_v54  ;;  %v7503_v17 = vld [vmem:[%s11402_s3 + $0x100] sm:$0xff]  ;;  %v7504_v41 = vld [vmem:[%s11402_s3 + $0x128] sm:$0xff] }
 0x2d0   : > { %11828 = vst [vmem:[#allocation32_spill] sm:$0xff] %v9655_v8  ;;  %v3296_v40 = vsel %vm3283_vm8, %v11830_v24, %v11558_v35  ;;  %v3966_v63 = vsel %vm1080_vm5, %v3961_v16, %v3965_v52  ;;  %v11836_v16 = vld [vmem:[#allocation38_spill] sm:$0xff] }
 0x2d1   : > { %v3262_v6 = vpop.f32.mrf.mxu0  ;;  %v11838_v54 = vshll.u32 %v11836_v16, 16 }
 0x2d2   : > { %v1546_v14 = vpop.f32.mrf.mxu1  ;;  %v9667_v20 = vadd.f32 %v3262_v6, %v9556_v37  ;;  %v7502_v37 = vld [vmem:[%s11402_s3 + $0xd8] sm:$0xff] }
 0x2d3   : > { %v2266_v59 = vpop.f32.mrf.mxu2  ;;  %5318 = vperm.xlu2 %7461, %v7502_v37  }
 0x2d4   : > { %11829 = vst [vmem:[#allocation18_spill] sm:$0xff] %v9667_v20  ;;  %6806 = vmatmul.msk.bf16.gmra.mxu0 %vm795_vm2, %v4809_v3  ;;  %v2335_v8 = vadd.f32 %v2266_v59, %v1544_v0  ;;  %6778 = vmatmul.msk.bf16.gmra.mxu3 %vm795_vm2, %v4438_v25  ;;  %v11833_v25 = vld [vmem:[#allocation34_spill] sm:$0xff]  ;;  %v4440_v0 = vrot.slane %v11838_v54, 2  ;;  %v2605_v20 = vpop.permute.xlu1 %2604 }
 0x2d5   : > { %6600 = vmatmul.msk.bf16.gmra.mxu1 %vm795_vm2, %v3296_v40  ;;  %5338 = vperm.xlu1 %7460, %v7503_v17   ;;  %v11834_v6 = vshrl.u32 %v11833_v25, 16  ;;  %v11835_v24 = vshll.u32 %v11833_v25, 16  ;;  %v9705_v17 = vld [vmem:[%s7725_s28 + $0x40] sm:$0xff] }
 0x2d6   : > { %v9685_v53 = vmul.f32 %v2600_v61, %v2335_v8  ;;  %5358 = vperm.xlu0 %7462, %v7504_v41   ;;  %v11837_v61 = vshrl.u32 %v11836_v16, 16  ;;  %v9711_v25 = vld [vmem:[%s7725_s28 + $0x44] sm:$0xff]  ;;  %v3967_v16 = vshrl.u32 %v9638_v7, 16 }
 0x2d7   : > { %v9690_v15 = vpop.f32.mrf.mxu3  ;;  %v4810_v3 = vrot.slane %v11834_v6, 3  ;;  %v4811_v40 = vrot.slane %v11835_v24, 4  ;;  %v11559_v24 = vrot.slane %v9711_v25, 3 }
 0x2d8   : > { %11832 = vst [vmem:[#allocation19_spill] sm:$0xff] %v9685_v53  ;;  %6747 = vmatmul.msk.bf16.gmra.mxu2 %vm795_vm2, %v3966_v63  ;;  %v4439_v8 = vrot.slane %v11837_v61, 1  ;;  %v11840_v63 = vld [vmem:[#allocation23_spill] sm:$0xff]  ;;  %v3971_v61 = vshll.u32 %v9705_v17, 16 }
 0x2d9   : > { %v3264_v39 = vpop.f32.mrf.mxu0  ;;  %v1547_v41 = vadd.f32 %v1546_v14, %v11840_v63  ;;  %v9708_v53 = vor.u32 %v4811_v40, %v4810_v3 }
 0x2da   : > { %v1548_v59 = vpop.f32.mrf.mxu1  ;;  %v9702_v37 = vadd.f32 %v3264_v39, %v9593_v12  ;;  %v4441_v54 = vor.u32 %v4440_v0, %v4439_v8  ;;  %v7506_v12 = vld [vmem:[%s11402_s3 + $0x118] sm:$0xff]  ;;  %v7508_v39 = vld [vmem:[%s11402_s3 + $0x140] sm:$0xff] }
 0x2db   : > { %v2269_v35 = vpop.f32.mrf.mxu2  ;;  %v4813_v8 = vsel %vm525_vm3, %v9641_v48, %v9708_v53 }
 0x2dc   : > { %11839 = vst [vmem:[#allocation34_spill] sm:$0xff] %v9702_v37  ;;  %v2336_v6 = vadd.f32 %v2269_v35, %v1547_v41  ;;  %v7507_v35 = vld [vmem:[%s11402_s3 + $0xf0] sm:$0xff]  ;;  %v4442_v3 = vsel %vm4398_vm7, %v4437_v23, %v4441_v54  ;;  %v2610_v37 = vpop.permute.xlu2 %2609 }
 0x2dd   : > { %5350 = vperm.xlu1 %7460, %v7506_v12   ;;  %5330 = vperm.xlu2 %7461, %v7507_v35   ;;  %v3973_v12 = vrot.slane %v3971_v61, 1  ;;  %v11844_v35 = vld [vmem:[#allocation25_spill] sm:$0xff] }
 0x2de   : > { %v9722_v14 = vmul.f32 %v2605_v20, %v2336_v6  ;;  %5370 = vperm.xlu0 %7462, %v7508_v39   ;;  %v11843_v20 = vrot.slane %v9644_v49, 3  ;;  %v3969_v6 = vor.u32 %v3967_v16, %v3965_v52  ;;  %v1549_v39 = vadd.f32 %v1548_v59, %v11844_v35  ;;  %v7510_v49 = vld [vmem:[%s11402_s3 + $0x108] sm:$0xff]  ;;  %v7511_v59 = vld [vmem:[%s11402_s3 + $0x158] sm:$0xff] }
 0x2df   : > { %v9727_v7 = vpop.f32.mrf.mxu3 }
 0x2e0   : > { %11841 = vst [vmem:[#allocation38_spill] sm:$0xff] %v9722_v14  ;;  %v3298_v41 = vsel %vm3283_vm8, %v11843_v20, %v11559_v24  ;;  %v3974_v48 = vsel %vm1080_vm5, %v3969_v6, %v3973_v12  ;;  %v11849_v6 = vshll.u32 %v8231_v28, 16  ;;  %v2615_v24 = vpop.permute.xlu0 %2614 }
 0x2e1   : > { %v3267_v40 = vpop.f32.mrf.mxu0 }
 0x2e2   : > { %v1551_v0 = vpop.f32.mrf.mxu1  ;;  %v9734_v63 = vadd.f32 %v3267_v40, %v9623_v11  ;;  %v7509_v11 = vld [vmem:[%s11402_s3 + $0x130] sm:$0xff]  ;;  %v4444_v35 = vrot.slane %v11849_v6, 2 }
 0x2e3   : > { %v2271_v23 = vpop.f32.mrf.mxu2 }
 0x2e4   : > { %11842 = vst [vmem:[#allocation23_spill] sm:$0xff] %v9734_v63  ;;  %6807 = vmatmul.msk.bf16.gmra.mxu0 %vm795_vm2, %v4813_v8  ;;  %v2337_v14 = vadd.f32 %v2271_v23, %v1549_v39  ;;  %6779 = vmatmul.msk.bf16.gmra.mxu3 %vm795_vm2, %v4442_v3  ;;  %v11845_v3 = vld [vmem:[#allocation40_spill] sm:$0xff] }
 0x2e5   : > { %6601 = vmatmul.msk.bf16.gmra.mxu1 %vm795_vm2, %v3298_v41  ;;  %5362 = vperm.xlu1 %7460, %v7509_v11   ;;  %v11846_v40 = vshrl.u32 %v11845_v3, 16  ;;  %v11847_v20 = vshll.u32 %v11845_v3, 16  ;;  %v9772_v11 = vld [vmem:[%s7725_s28 + $0x48] sm:$0xff] }
 0x2e6   : > { %5342 = vperm.xlu2 %7461, %v7510_v49   ;;  %v9752_v52 = vmul.f32 %v2610_v37, %v2337_v14  ;;  %5382 = vperm.xlu0 %7462, %v7511_v59   ;;  %v11848_v37 = vshrl.u32 %v8231_v28, 16  ;;  %v9778_v3 = vld [vmem:[%s7725_s28 + $0x4c] sm:$0xff]  ;;  %v3975_v28 = vshrl.u32 %v9705_v17, 16 }
 0x2e7   : > { %v9757_v16 = vpop.f32.mrf.mxu3  ;;  %v4814_v8 = vrot.slane %v11846_v40, 3  ;;  %v4815_v41 = vrot.slane %v11847_v20, 4  ;;  %v11560_v20 = vrot.slane %v9778_v3, 3 }
 0x2e8   : > { %6748 = vmatmul.msk.bf16.gmra.mxu2 %vm795_vm2, %v3974_v48  ;;  %v4443_v14 = vrot.slane %v11848_v37, 1  ;;  %v11851_v48 = vld [vmem:[#allocation29_spill] sm:$0xff]  ;;  %v3979_v37 = vshll.u32 %v9772_v11, 16 }
 0x2e9   : > { %v3269_v61 = vpop.f32.mrf.mxu0  ;;  %v1552_v49 = vadd.f32 %v1551_v0, %v11851_v48  ;;  %v9775_v63 = vor.u32 %v4815_v41, %v4814_v8  ;;  %v7514_v0 = vld [vmem:[%s11402_s3 + $0x120] sm:$0xff]  ;;  %v7515_v8 = vld [vmem:[%s11402_s3 + $0x170] sm:$0xff] }
 0x2ea   : > { %v1553_v39 = vpop.f32.mrf.mxu1  ;;  %v9769_v23 = vadd.f32 %v3269_v61, %v9660_v55  ;;  %v4445_v6 = vor.u32 %v4444_v35, %v4443_v14  ;;  %v7513_v55 = vld [vmem:[%s11402_s3 + $0x148] sm:$0xff] }
 0x2eb   : > { %v2274_v59 = vpop.f32.mrf.mxu2  ;;  %v4817_v35 = vsel %vm525_vm3, %v9708_v53, %v9775_v63 }
 0x2ec   : > { %11850 = vst [vmem:[#allocation25_spill] sm:$0xff] %v9769_v23  ;;  %v2338_v40 = vadd.f32 %v2274_v59, %v1552_v49  ;;  %v4446_v41 = vsel %vm4398_vm7, %v4441_v54, %v4445_v6  ;;  %v2620_v23 = vpop.permute.xlu1 %2619 }
 0x2ed   : > { %5374 = vperm.xlu1 %7460, %v7513_v55   ;;  %v3981_v55 = vrot.slane %v3979_v37, 1 }
 0x2ee   : > { %5354 = vperm.xlu2 %7461, %v7514_v0   ;;  %v9789_v61 = vmul.f32 %v2615_v24, %v2338_v40  ;;  %5394 = vperm.xlu0 %7462, %v7515_v8   ;;  %v11854_v24 = vrot.slane %v9711_v25, 3  ;;  %v3977_v40 = vor.u32 %v3975_v28, %v3973_v12  ;;  %v11855_v0 = vld [vmem:[#allocation31_spill] sm:$0xff] }
 0x2ef   : > { %v9794_v17 = vpop.f32.mrf.mxu3  ;;  %v1554_v8 = vadd.f32 %v1553_v39, %v11855_v0  ;;  %v7517_v25 = vld [vmem:[%s11402_s3 + $0x138] sm:$0xff]  ;;  %v7518_v39 = vld [vmem:[%s11402_s3 + $0x188] sm:$0xff] }
 0x2f0   : > { %11852 = vst [vmem:[#allocation40_spill] sm:$0xff] %v9789_v61  ;;  %v3300_v59 = vsel %vm3283_vm8, %v11854_v24, %v11560_v20  ;;  %v3982_v53 = vsel %vm1080_vm5, %v3977_v40, %v3981_v55  ;;  %v11861_v40 = vshll.u32 %v8274_v10, 16  ;;  %v2625_v20 = vpop.permute.xlu2 %2624 }
 0x2f1   : > { %v3272_v14 = vpop.f32.mrf.mxu0 }
 0x2f2   : > { %v1556_v48 = vpop.f32.mrf.mxu1  ;;  %v9801_v49 = vadd.f32 %v3272_v14, %v9690_v15  ;;  %v7516_v15 = vld [vmem:[%s11402_s3 + $0x160] sm:$0xff]  ;;  %v4448_v0 = vrot.slane %v11861_v40, 2 }
 0x2f3   : > { %v2276_v54 = vpop.f32.mrf.mxu2 }
 0x2f4   : > { %11853 = vst [vmem:[#allocation29_spill] sm:$0xff] %v9801_v49  ;;  %6808 = vmatmul.msk.bf16.gmra.mxu0 %vm795_vm2, %v4817_v35  ;;  %v2339_v61 = vadd.f32 %v2276_v54, %v1554_v8  ;;  %6780 = vmatmul.msk.bf16.gmra.mxu3 %vm795_vm2, %v4446_v41  ;;  %v11857_v41 = vld [vmem:[#allocation43_spill] sm:$0xff] }
 0x2f5   : > { %6602 = vmatmul.msk.bf16.gmra.mxu1 %vm795_vm2, %v3300_v59  ;;  %5386 = vperm.xlu1 %7460, %v7516_v15   ;;  %v11858_v14 = vshrl.u32 %v11857_v41, 16  ;;  %v11859_v24 = vshll.u32 %v11857_v41, 16  ;;  %v9839_v15 = vld [vmem:[%s7725_s28 + $0x50] sm:$0xff] }
 0x2f6   : > { %5366 = vperm.xlu2 %7461, %v7517_v25   ;;  %v9819_v12 = vmul.f32 %v2620_v23, %v2339_v61  ;;  %5406 = vperm.xlu0 %7462, %v7518_v39   ;;  %v11860_v23 = vshrl.u32 %v8274_v10, 16  ;;  %v9845_v41 = vld [vmem:[%s7725_s28 + $0x54] sm:$0xff]  ;;  %v3983_v10 = vshrl.u32 %v9772_v11, 16 }
 0x2f7   : > { %v9824_v28 = vpop.f32.mrf.mxu3  ;;  %v4818_v35 = vrot.slane %v11858_v14, 3  ;;  %v4819_v59 = vrot.slane %v11859_v24, 4  ;;  %v11561_v24 = vrot.slane %v9845_v41, 3 }
 0x2f8   : > { %11856 = vst [vmem:[#allocation31_spill] sm:$0xff] %v9819_v12  ;;  %6749 = vmatmul.msk.bf16.gmra.mxu2 %vm795_vm2, %v3982_v53  ;;  %v4447_v61 = vrot.slane %v11860_v23, 1  ;;  %v11863_v53 = vld [vmem:[#allocation35_spill] sm:$0xff]  ;;  %v3987_v23 = vshll.u32 %v9839_v15, 16 }
 0x2f9   : > { %v3274_v37 = vpop.f32.mrf.mxu0  ;;  %v1557_v25 = vadd.f32 %v1556_v48, %v11863_v53  ;;  %v9842_v49 = vor.u32 %v4819_v59, %v4818_v35  ;;  %v7521_v48 = vld [vmem:[%s11402_s3 + $0x150] sm:$0xff]  ;;  %v7522_v35 = vld [vmem:[%s11402_s3 + $0x1a0] sm:$0xff] }
 0x2fa   : > { %v1558_v8 = vpop.f32.mrf.mxu1  ;;  %v9836_v54 = vadd.f32 %v3274_v37, %v9727_v7  ;;  %v4449_v40 = vor.u32 %v4448_v0, %v4447_v61  ;;  %v7520_v7 = vld [vmem:[%s11402_s3 + $0x178] sm:$0xff] }
 0x2fb   : > { %v2279_v39 = vpop.f32.mrf.mxu2  ;;  %v4821_v0 = vsel %vm525_vm3, %v9775_v63, %v9842_v49 }
 0x2fc   : > { %11862 = vst [vmem:[#allocation43_spill] sm:$0xff] %v9836_v54  ;;  %v2340_v14 = vadd.f32 %v2279_v39, %v1557_v25  ;;  %v4450_v59 = vsel %vm4398_vm7, %v4445_v6, %v4449_v40  ;;  %v3985_v39 = vor.u32 %v3983_v10, %v3981_v55  ;;  %v2630_v6 = vpop.permute.xlu0 %2629  ;;  %v7523_v55 = vld [vmem:[%s11402_s3 + $0x190] sm:$0xff] }
 0x2fd   : > { %5398 = vperm.xlu1 %7460, %v7520_v7   ;;  %v11866_v7 = vld [vmem:[#allocation37_spill] sm:$0xff] }
 0x2fe   : > { %5378 = vperm.xlu2 %7461, %v7521_v48   ;;  %v9856_v37 = vmul.f32 %v2625_v20, %v2340_v14  ;;  %5418 = vperm.xlu0 %7462, %v7522_v35   ;;  %v11865_v20 = vrot.slane %v9778_v3, 3  ;;  %v3989_v14 = vrot.slane %v3987_v23, 1  ;;  %v1559_v48 = vadd.f32 %v1558_v8, %v11866_v7  ;;  %v11867_v35 = vld [vmem:[#allocation45_spill] sm:$0xff]  ;;  %v11869_v23 = vld [vmem:[#allocation47_spill] sm:$0xff] }
 0x2ff   : > { %v9861_v11 = vpop.f32.mrf.mxu3  ;;  %v7524_v8 = vld [vmem:[%s11402_s3 + $0x168] sm:$0xff] }
 0x300   : > { %11864 = vst [vmem:[#allocation35_spill] sm:$0xff] %v9856_v37  ;;  %v3302_v25 = vsel %vm3283_vm8, %v11865_v20, %v11561_v24  ;;  %v3990_v3 = vsel %vm1080_vm5, %v3985_v39, %v3989_v14  ;;  %v11872_v20 = vshrl.u32 %v8320_v50, 16 }
 0x301   : > { %v5006_v61 = vpop.f32.mrf.mxu0 }
 0x302   : > { %v3442_v53 = vpop.f32.mrf.mxu1 }
 0x303   : > { %v3587_v54 = vadd.f32 %v3442_v53, %v11867_v35  ;;  %v2281_v37 = vpop.f32.mrf.mxu2 }
 0x304   : > { %6809 = vmatmul.msk.bf16.gmra.mxu0 %vm795_vm2, %v4821_v0  ;;  %v2341_v12 = vadd.f32 %v2281_v37, %v1559_v48  ;;  %6781 = vmatmul.msk.bf16.gmra.mxu3 %vm795_vm2, %v4450_v59  ;;  %v11870_v37 = vshrl.u32 %v11869_v23, 16  ;;  %v11871_v0 = vshll.u32 %v11869_v23, 16  ;;  %v11874_v48 = vld [vmem:[#allocation48_spill] sm:$0xff]  ;;  %v5211_v23 = vpop.permute.xlu1 %5210 }
 0x305   : > { %v3645_v63 = vadd.f32 %v3587_v54, %v8311_v1  ;;  %6603 = vmatmul.msk.bf16.gmra.mxu1 %vm795_vm2, %v3302_v25  ;;  %5410 = vperm.xlu1 %7460, %v7523_v55   ;;  %v4451_v25 = vrot.slane %v11872_v20, 1  ;;  %v11875_v55 = vld [vmem:[#allocation51_spill] sm:$0xff] }
 0x306   : > { %5390 = vperm.xlu2 %7461, %v7524_v8   ;;  %v9885_v10 = vmul.f32 %v2630_v6, %v2341_v12  ;;  %5430 = vperm.xlu0 %7462, %v9227_v21   ;;  %v4822_v59 = vrot.slane %v11870_v37, 3  ;;  %v4823_v53 = vrot.slane %v11871_v0, 4  ;;  %v11873_v12 = vshll.u32 %v8320_v50, 16  ;;  %v9900_v21 = vld [vmem:[%s7725_s28 + $0x58] sm:$0xff] }
 0x307   : > { %v9888_v1 = vpop.f32.mrf.mxu3  ;;  %v9908_v0 = vld [vmem:[%s7725_s28 + $0x5c] sm:$0xff]  ;;  %v3991_v50 = vshrl.u32 %v9839_v15, 16 }
 0x308   : > { %11868 = vst [vmem:[#allocation37_spill] sm:$0xff] %v9885_v10  ;;  %6750 = vmatmul.msk.bf16.gmra.mxu2 %vm795_vm2, %v3990_v3  ;;  %v4452_v39 = vrot.slane %v11873_v12, 2  ;;  %v9905_v37 = vor.u32 %v4823_v53, %v4822_v59  ;;  %v3303_v20 = vrot.slane %v9908_v0, 3  ;;  %v3995_v12 = vshll.u32 %v9900_v21, 16 }
 0x309   : > { %v5008_v54 = vpop.f32.mrf.mxu0 }
 0x30a   : > { %v3444_v7 = vpop.f32.mrf.mxu1  ;;  %v4453_v24 = vor.u32 %v4452_v39, %v4451_v25  ;;  %v4825_v15 = vsel %vm525_vm3, %v9842_v49, %v9905_v37 }
 0x30b   : > { %v3588_v35 = vadd.f32 %v3444_v7, %v11874_v48  ;;  %v4250_v6 = vpop.f32.mrf.mxu2  ;;  %v9921_v48 = vld [vmem:[%s7710_s22] ss:$0 sm:$0xff] }
 0x30c   : > { %v4628_v3 = vadd.f32 %v9757_v16, %v4250_v6  ;;  %v7526_v16 = vld [vmem:[%s11402_s3 + $0x180] sm:$0xff]  ;;  %v4454_v53 = vsel %vm4398_vm7, %v4449_v40, %v4453_v24  ;;  %v5223_v0 = vpop.permute.xlu1 %5222 }
 0x30d   : > { %v3646_v8 = vadd.f32 %v3588_v35, %v11875_v55  ;;  %5422 = vperm.xlu1 %7460, %v9265_v31   ;;  %v11876_v31 = vrot.slane %v9845_v41, 3  ;;  %v5215_v41 = vpop.permute.xlu2 %5214 }
 0x30e   : > { %5402 = vperm.xlu2 %7461, %v7526_v16   ;;  %v5151_v7 = vadd.f32 %v5006_v61, %v4628_v3  ;;  %v3993_v61 = vor.u32 %v3991_v50, %v3989_v14  ;;  %v3997_v3 = vrot.slane %v3995_v12, 1  ;;  %v11877_v16 = vld [vmem:[#allocation49_spill] sm:$0xff] }
 0x30f   : > { %v9917_v59 = vpop.f32.mrf.mxu3  ;;  %v3304_v39 = vsel %vm3283_vm8, %v11876_v31, %v3303_v20  ;;  %v11881_v31 = vshrl.u32 %v8368_v36, 16 }
 0x310   : > { %v5441_v35 = vmul.f32 %v5211_v23, %v5151_v7  ;;  %v3998_v14 = vsel %vm1080_vm5, %v3993_v61, %v3997_v3 }
 0x311   : > { %v5011_v6 = vpop.f32.mrf.mxu0 }
 0x312   : > { %v3447_v25 = vpop.f32.mrf.mxu1  ;;  %v5499_v55 = vadd.f32 %v5441_v35, %v3645_v63  ;;  %v7527_v63 = vld [vmem:[%s11402_s3 + $0x198] sm:$0xff] }
 0x313   : > { %v3589_v40 = vadd.f32 %v3447_v25, %v11877_v16  ;;  %v4252_v10 = vpop.f32.mrf.mxu2  ;;  %v9960_v16 = vld [vmem:[%s7725_s28 + $0x60] sm:$0xff] }
 0x314   : > { %6810 = vmatmul.msk.bf16.gmra.mxu0 %vm795_vm2, %v4825_v15  ;;  %v9934_v23 = vadd.f32 %v9921_v48, %v5499_v55  ;;  %v4630_v49 = vadd.f32 %v9794_v17, %v4252_v10  ;;  %6782 = vmatmul.msk.bf16.gmra.mxu3 %vm795_vm2, %v4454_v53  ;;  %v11878_v53 = vld [vmem:[#allocation50_spill] sm:$0xff] }
 0x315   : > { %v3647_v7 = vadd.f32 %v3589_v40, %v8358_v5  ;;  %6604 = vmatmul.msk.bf16.gmra.mxu1 %vm795_vm2, %v3304_v39  ;;  %5434 = vperm.xlu1 %7460, %v9339_v47   ;;  %v11879_v47 = vshrl.u32 %v11878_v53, 16  ;;  %v11880_v15 = vshll.u32 %v11878_v53, 16  ;;  %v4455_v39 = vrot.slane %v11881_v31, 1  ;;  %v11884_v53 = vld [vmem:[#allocation55_spill] sm:$0xff]  ;;  %v5219_v31 = vpop.permute.xlu0 %5218 }
 0x316   : > { %5414 = vperm.xlu2 %7461, %v7527_v63   ;;  %v11562_v50 = vmax.f32 %v9934_v23, 0.0  ;;  %v5152_v17 = vadd.f32 %v5008_v54, %v4630_v49  ;;  %v11882_v54 = vshll.u32 %v8368_v36, 16  ;;  %v11883_v49 = vld [vmem:[#allocation52_spill] sm:$0xff] }
 0x317   : > { %v9946_v10 = vpop.f32.mrf.mxu3  ;;  %v4826_v35 = vrot.slane %v11879_v47, 3  ;;  %v4827_v25 = vrot.slane %v11880_v15, 4 }
 0x318   : > { %5677 = vst [vmem:[#allocation2] sm:$0xff] %v11562_v50  ;;  %v5442_v5 = vmul.f32 %v5215_v41, %v5152_v17  ;;  %6751 = vmatmul.msk.bf16.gmra.mxu2 %vm795_vm2, %v3998_v14  ;;  %v4456_v61 = vrot.slane %v11882_v54, 2  ;;  %v9971_v50 = vld [vmem:[%s7725_s28 + $0x64] sm:$0xff]  ;;  %v3999_v54 = vshrl.u32 %v9900_v21, 16 }
 0x319   : > { %v5013_v12 = vpop.f32.mrf.mxu0  ;;  %v9968_v15 = vor.u32 %v4827_v25, %v4826_v35  ;;  %v3305_v36 = vrot.slane %v9971_v50, 3 }
 0x31a   : > { %v3449_v55 = vpop.f32.mrf.mxu1  ;;  %v5500_v40 = vadd.f32 %v5442_v5, %v3646_v8  ;;  %v4003_v8 = vshll.u32 %v9960_v16, 16  ;;  %v4457_v5 = vor.u32 %v4456_v61, %v4455_v39 }
 0x31b   : > { %v3590_v41 = vadd.f32 %v3449_v55, %v11883_v49  ;;  %v4255_v14 = vpop.f32.mrf.mxu2  ;;  %v7529_v55 = vld [vmem:[%s11402_s3 + $0x1b0] sm:$0xff]  ;;  %v4829_v39 = vsel %vm525_vm3, %v9905_v37, %v9968_v15 }
 0x31c   : > { %v9964_v63 = vadd.f32 %v9921_v48, %v5500_v40  ;;  %v4633_v17 = vadd.f32 %v9824_v28, %v4255_v14  ;;  %v4458_v25 = vsel %vm4398_vm7, %v4453_v24, %v4457_v5  ;;  %v4005_v14 = vrot.slane %v4003_v8, 1  ;;  %v11885_v24 = vld [vmem:[#allocation53_spill] sm:$0xff]  ;;  %v11886_v8 = vld [vmem:[#allocation54_spill] sm:$0xff] }
 0x31d   : > { %v3648_v47 = vadd.f32 %v3590_v41, %v11884_v53  ;;  %v4001_v41 = vor.u32 %v3999_v54, %v3997_v3 }
 0x31e   : > { %5426 = vperm.xlu2 %7461, %v7529_v55   ;;  %v5620_v28 = vmax.f32 %v9964_v63, 0.0  ;;  %v5153_v40 = vadd.f32 %v5011_v6, %v4633_v17  ;;  %v3306_v6 = vsel %vm3283_vm8, %v3303_v20, %v3305_v36 }
 0x31f   : > { %v9980_v35 = vpop.f32.mrf.mxu3  ;;  %v4006_v20 = vsel %vm1080_vm5, %v4001_v41, %v4005_v14 }
 0x320   : > { %5678 = vst [vmem:[#allocation2 + $0x8] sm:$0xff] %v5620_v28  ;;  %v5443_v49 = vmul.f32 %v5219_v31, %v5153_v40 }
 0x321   : > { %v5016_v21 = vpop.f32.mrf.mxu0 }
 0x322   : > { %v3452_v61 = vpop.f32.mrf.mxu1  ;;  %v5501_v17 = vadd.f32 %v5443_v49, %v3647_v7 }
 0x323   : > { %v3591_v53 = vadd.f32 %v3452_v61, %v11885_v24  ;;  %v4257_v55 = vpop.f32.mrf.mxu2  ;;  %v10019_v24 = vld [vmem:[%s7725_s28 + $0x68] sm:$0xff] }
 0x324   : > { %6811 = vmatmul.msk.bf16.gmra.mxu0 %vm795_vm2, %v4829_v39  ;;  %v9996_v31 = vadd.f32 %v9921_v48, %v5501_v17  ;;  %v4635_v37 = vadd.f32 %v9861_v11, %v4257_v55  ;;  %6783 = vmatmul.msk.bf16.gmra.mxu3 %vm795_vm2, %v4458_v25  ;;  %v11887_v25 = vshrl.u32 %v11886_v8, 16  ;;  %v11888_v39 = vshll.u32 %v11886_v8, 16  ;;  %v11891_v55 = vld [vmem:[#allocation56_spill] sm:$0xff]  ;;  %v11892_v8 = vld [vmem:[#allocation59_spill] sm:$0xff] }
 0x325   : > { %v3649_v40 = vadd.f32 %v3591_v53, %v8407_v2  ;;  %6605 = vmatmul.msk.bf16.gmra.mxu1 %vm795_vm2, %v3306_v6 }
 0x326   : > { %5438 = vperm.xlu2 %7461, %v9287_v33   ;;  %v11563_v3 = vmax.f32 %v9996_v31, 0.0  ;;  %v5154_v7 = vadd.f32 %v5013_v12, %v4635_v37  ;;  %v4830_v49 = vrot.slane %v11887_v25, 3  ;;  %v4831_v61 = vrot.slane %v11888_v39, 4 }
 0x327   : > { %v10005_v54 = vpop.f32.mrf.mxu3  ;;  %v11889_v33 = vshrl.u32 %v8417_v46, 16  ;;  %v11890_v12 = vshll.u32 %v8417_v46, 16 }
 0x328   : > { %5679 = vst [vmem:[#allocation2 + $0x10] sm:$0xff] %v11563_v3  ;;  %v5444_v11 = vmul.f32 %v5223_v0, %v5154_v7  ;;  %6752 = vmatmul.msk.bf16.gmra.mxu2 %vm795_vm2, %v4006_v20  ;;  %v10027_v39 = vor.u32 %v4831_v61, %v4830_v49  ;;  %v10030_v3 = vld [vmem:[%s7725_s28 + $0x6c] sm:$0xff] }
 0x329   : > { %v5018_v2 = vpop.f32.mrf.mxu0  ;;  %v4459_v6 = vrot.slane %v11889_v33, 1  ;;  %v4460_v41 = vrot.slane %v11890_v12, 2  ;;  %v5227_v33 = vpop.permute.xlu2 %5226  ;;  %v11565_v46 = vrot.slane %v10030_v3, 3  ;;  %v4007_v12 = vshrl.u32 %v9960_v16, 16 }
 0x32a   : > { %v3454_v17 = vpop.f32.mrf.mxu1  ;;  %v5502_v53 = vadd.f32 %v5444_v11, %v3648_v47  ;;  %v4011_v47 = vshll.u32 %v10019_v24, 16  ;;  %v4833_v16 = vsel %vm525_vm3, %v9968_v15, %v10027_v39  ;;  %v5791_v15 = vld [vmem:[#allocation2 + $0x1] sm:$0xff] }
 0x32b   : > { %v3592_v37 = vadd.f32 %v3454_v17, %v11891_v55  ;;  %v4260_v0 = vpop.f32.mrf.mxu2  ;;  %v10035_v11 = vor.u32 %v4460_v41, %v4459_v6  ;;  %v4009_v6 = vor.u32 %v4007_v12, %v4005_v14 }
 0x32c   : > { %v10023_v20 = vadd.f32 %v9921_v48, %v5502_v53  ;;  %v4638_v7 = vadd.f32 %v9888_v1, %v4260_v0  ;;  %v10052_v41 = vrot.slane %v4011_v47, 1  ;;  %v11893_v0 = vld [vmem:[#allocation57_spill] sm:$0xff] }
 0x32d   : > { %v3650_v25 = vadd.f32 %v3592_v37, %v11892_v8  ;;  %v4462_v1 = vsel %vm4398_vm7, %v4457_v5, %v10035_v11 }
 0x32e   : > { %v11564_v17 = vmax.f32 %v10023_v20, 0.0  ;;  %v5155_v53 = vadd.f32 %v5016_v21, %v4638_v7  ;;  %v3308_v21 = vsel %vm3283_vm8, %v3305_v36, %v11565_v46  ;;  %v4014_v12 = vsel %vm1080_vm5, %v4009_v6, %v10052_v41 }
 0x32f   : > { %v10038_v55 = vpop.f32.mrf.mxu3  ;;  %v5903_v8 = vld [vmem:[#allocation2 + $0xe] sm:$0xff] }
 0x330   : > { %5680 = vst [vmem:[#allocation2 + $0x18] sm:$0xff] %v11564_v17  ;;  %v5445_v49 = vmul.f32 %v5227_v33, %v5155_v53  ;;  %v5959_v33 = vld [vmem:[#allocation2 + $0xf] sm:$0xff] }
 0x331   : > { %v5021_v61 = vpop.f32.mrf.mxu0  ;;  %v5792_v14 = vld [vmem:[#allocation2 + $0x9] sm:$0xff]  ;;  %v6015_v47 = vmax.f32 %v5903_v8, %v5959_v33  ;;  %v11898_v33 = vshrl.u32 %v8466_v19, 16 }
 0x332   : > { %v3457_v37 = vpop.f32.mrf.mxu1  ;;  %v5503_v5 = vadd.f32 %v5445_v49, %v3649_v40  ;;  %v5231_v40 = vpop.permute.xlu1 %5230  ;;  %v5848_v6 = vmax.f32 %v5620_v28, %v5792_v14 }
 0x333   : > { %v3593_v7 = vadd.f32 %v3457_v37, %v11893_v0  ;;  %v4262_v53 = vpop.f32.mrf.mxu2  ;;  %v11894_v37 = vmax.f32 %v9934_v23, 0.0  ;;  %v11895_v0 = vld [vmem:[#allocation58_spill] sm:$0xff] }
 0x334   : > { %6812 = vmatmul.msk.bf16.gmra.mxu0 %vm795_vm2, %v4833_v16  ;;  %v10057_v17 = vadd.f32 %v9921_v48, %v5503_v5  ;;  %v4640_v50 = vadd.f32 %v9917_v59, %v4262_v53  ;;  %6784 = vmatmul.msk.bf16.gmra.mxu3 %vm795_vm2, %v4462_v1  ;;  %v11897_v1 = vshll.u32 %v11895_v0, 16 }
 0x335   : > { %v3651_v36 = vadd.f32 %v3593_v7, %v8456_v4  ;;  %6606 = vmatmul.msk.bf16.gmra.mxu1 %vm795_vm2, %v3308_v21  ;;  %v5847_v59 = vmax.f32 %v11894_v37, %v5791_v15  ;;  %v11896_v21 = vshrl.u32 %v11895_v0, 16  ;;  %v4463_v15 = vrot.slane %v11898_v33, 1 }
 0x336   : > { %v11568_v49 = vmax.f32 %v10057_v17, 0.0  ;;  %v5156_v16 = vadd.f32 %v5018_v2, %v4640_v50  ;;  %v4835_v53 = vrot.slane %v11897_v1, 4  ;;  %v11899_v50 = vshll.u32 %v8466_v19, 16 }
 0x337   : > { %v5904_v5 = vld [vmem:[#allocation2 + $0x16] sm:$0xff]  ;;  %v4834_v7 = vrot.slane %v11896_v21, 3  ;;  %v10073_v46 = vpop.f32.mrf.mxu3  ;;  %v6071_v63 = vmax.f32 %v5847_v59, %v6015_v47 }
 0x338   : > { %v5960_v4 = vld [vmem:[#allocation2 + $0x17] sm:$0xff]  ;;  %5681 = vst [vmem:[#allocation2 + $0x20] sm:$0xff] %v11568_v49  ;;  %v5446_v23 = vmul.f32 %v5231_v40, %v5156_v16  ;;  %6753 = vmatmul.msk.bf16.gmra.mxu2 %vm795_vm2, %v4014_v12  ;;  %v4464_v37 = vrot.slane %v11899_v50, 2 }
 0x339   : > { %v6016_v8 = vmax.f32 %v5904_v5, %v5960_v4  ;;  %v5023_v2 = vpop.f32.mrf.mxu0  ;;  %v10085_v21 = vld [vmem:[%s7725_s28 + $0x70] sm:$0xff]  ;;  %v11900_v5 = vld [vmem:[#allocation60_spill] sm:$0xff]  ;;  %v10093_v12 = vor.u32 %v4835_v53, %v4834_v7  ;;  %v11901_v47 = vld [vmem:[#allocation63_spill] sm:$0xff] }
 0x33a   : > { %v3459_v0 = vpop.f32.mrf.mxu1  ;;  %v5504_v14 = vadd.f32 %v5446_v23, %v3650_v25  ;;  %v5235_v25 = vpop.permute.xlu2 %5234  ;;  %v4015_v23 = vshrl.u32 %v10019_v24, 16  ;;  %v4019_v33 = vshll.u32 %v10085_v21, 16  ;;  %v10106_v50 = vor.u32 %v4464_v37, %v4463_v15  ;;  %v10169_v49 = vld [vmem:[%s7725_s28 + $0x7c] sm:$0xff] }
 0x33b   : > { %v6072_v28 = vmax.f32 %v5848_v6, %v6016_v8  ;;  %v3594_v4 = vadd.f32 %v3459_v0, %v11900_v5  ;;  %v4265_v40 = vpop.f32.mrf.mxu2  ;;  %v10101_v6 = vld [vmem:[%s7725_s28 + $0x74] sm:$0xff]  ;;  %v4837_v24 = vsel %vm525_vm3, %v10027_v39, %v10093_v12 }
 0x33c   : > { %v10096_v16 = vadd.f32 %v9921_v48, %v5504_v14  ;;  %v4643_v1 = vadd.f32 %v9946_v10, %v4265_v40  ;;  %v3309_v8 = vrot.slane %v10101_v6, 3  ;;  %v4466_v10 = vsel %vm4398_vm7, %v10035_v11, %v10106_v50  ;;  %v5793_v39 = vld [vmem:[#allocation2 + $0x11] sm:$0xff] }
 0x33d   : > { %v7012_v19 = vpack.c.bf16 %v6072_v28, %v6071_v63  ;;  %v3652_v59 = vadd.f32 %v3594_v4, %v11901_v47  ;;  %v4017_v14 = vor.u32 %v4015_v23, %v10052_v41  ;;  %v10126_v5 = vrot.slane %v4019_v33, 1  ;;  %v11903_v4 = vld [vmem:[#allocation61_spill] sm:$0xff] }
 0x33e   : > { %v11567_v7 = vmax.f32 %v10096_v16, 0.0  ;;  %v5157_v53 = vadd.f32 %v5021_v61, %v4643_v1  ;;  %v11902_v61 = vrot.slane %v10030_v3, 3 }
 0x33f   : > { %7013 = vst [vmem:[%s10091_s29] sm:$0xff] %v7012_v19   ;;  %v10110_v0 = vpop.f32.mrf.mxu3  ;;  %v5905_v19 = vld [vmem:[#allocation2 + $0x1e] sm:$0xff]  ;;  %v4022_v23 = vsel %vm1080_vm5, %v4017_v14, %v10126_v5  ;;  %v11908_v14 = vmax.f32 %v10023_v20, 0.0 }
 0x340   : > { %5682 = vst [vmem:[#allocation2 + $0x28] sm:$0xff] %v11567_v7  ;;  %v5447_v63 = vmul.f32 %v5235_v25, %v5157_v53  ;;  %v3310_v37 = vsel %vm3283_vm8, %v11902_v61, %v3309_v8  ;;  %v5961_v1 = vld [vmem:[#allocation2 + $0x1f] sm:$0xff]  ;;  %v5243_v7 = vpop.permute.xlu1 %5242 }
 0x341   : > { %v5026_v28 = vpop.f32.mrf.mxu0  ;;  %v5794_v41 = vld [vmem:[#allocation2 + $0x19] sm:$0xff]  ;;  %v6017_v33 = vmax.f32 %v5905_v19, %v5961_v1 }
 0x342   : > { %v3462_v15 = vpop.f32.mrf.mxu1  ;;  %v5505_v11 = vadd.f32 %v5447_v63, %v3651_v36  ;;  %v5239_v36 = vpop.permute.xlu0 %5238  ;;  %v5850_v19 = vmax.f32 %v11908_v14, %v5794_v41 }
 0x343   : > { %v3595_v40 = vadd.f32 %v3462_v15, %v11903_v4  ;;  %v4267_v47 = vpop.f32.mrf.mxu2  ;;  %v11904_v15 = vmax.f32 %v9996_v31, 0.0 }
 0x344   : > { %6813 = vmatmul.msk.bf16.gmra.mxu0 %vm795_vm2, %v4837_v24  ;;  %v10131_v25 = vadd.f32 %v9921_v48, %v5505_v11  ;;  %v4645_v3 = vadd.f32 %v9980_v35, %v4267_v47  ;;  %6785 = vmatmul.msk.bf16.gmra.mxu3 %vm795_vm2, %v4466_v10 }
 0x345   : > { %v3653_v53 = vadd.f32 %v3595_v40, %v8505_v56  ;;  %6607 = vmatmul.msk.bf16.gmra.mxu1 %vm795_vm2, %v3310_v37  ;;  %v5849_v61 = vmax.f32 %v11904_v15, %v5793_v39  ;;  %v11905_v56 = vld [vmem:[#allocation62_spill] sm:$0xff]  ;;  %v11909_v39 = vshrl.u32 %v8515_v13, 16  ;;  %v11910_v15 = vshll.u32 %v8515_v13, 16  ;;  %v11912_v13 = vld [vmem:[#allocation67_spill] sm:$0xff] }
 0x346   : > { %v11566_v63 = vmax.f32 %v10131_v25, 0.0  ;;  %v5158_v24 = vadd.f32 %v5023_v2, %v4645_v3  ;;  %v11906_v4 = vshrl.u32 %v11905_v56, 16  ;;  %v11907_v10 = vshll.u32 %v11905_v56, 16 }
 0x347   : > { %v5906_v35 = vld [vmem:[#allocation2 + $0x26] sm:$0xff]  ;;  %v10146_v47 = vpop.f32.mrf.mxu3  ;;  %v4467_v3 = vrot.slane %v11909_v39, 1  ;;  %v4468_v56 = vrot.slane %v11910_v15, 2  ;;  %v6073_v20 = vmax.f32 %v5849_v61, %v6017_v33  ;;  %v3311_v33 = vrot.slane %v10169_v49, 3 }
 0x348   : > { %v5962_v11 = vld [vmem:[#allocation2 + $0x27] sm:$0xff]  ;;  %v4838_v37 = vrot.slane %v11906_v4, 3  ;;  %v4839_v40 = vrot.slane %v11907_v10, 4  ;;  %5683 = vst [vmem:[#allocation2 + $0x30] sm:$0xff] %v11566_v63  ;;  %v5448_v31 = vmul.f32 %v5239_v36, %v5158_v24  ;;  %6754 = vmatmul.msk.bf16.gmra.mxu2 %vm795_vm2, %v4022_v23  ;;  %v10158_v10 = vld [vmem:[%s7725_s28 + $0x78] sm:$0xff] }
 0x349   : > { %v6018_v1 = vmax.f32 %v5906_v35, %v5962_v11  ;;  %v5028_v2 = vpop.f32.mrf.mxu0  ;;  %v11911_v11 = vld [vmem:[#allocation64_spill] sm:$0xff]  ;;  %v4027_v61 = vshll.u32 %v10158_v10, 16 }
 0x34a   : > { %v3464_v4 = vpop.f32.mrf.mxu1  ;;  %v5506_v35 = vadd.f32 %v5448_v31, %v3652_v59  ;;  %v10161_v24 = vor.u32 %v4839_v40, %v4838_v37  ;;  %v4023_v59 = vshrl.u32 %v10085_v21, 16 }
 0x34b   : > { %v6074_v41 = vmax.f32 %v5850_v19, %v6018_v1  ;;  %v3596_v14 = vadd.f32 %v3464_v4, %v11911_v11  ;;  %v4270_v36 = vpop.f32.mrf.mxu2  ;;  %v10174_v19 = vor.u32 %v4468_v56, %v4467_v3 }
 0x34c   : > { %v10164_v63 = vadd.f32 %v9921_v48, %v5506_v35  ;;  %v4648_v39 = vadd.f32 %v10005_v54, %v4270_v36  ;;  %v4841_v21 = vsel %vm525_vm3, %v10093_v12, %v10161_v24  ;;  %v4025_v56 = vor.u32 %v4023_v59, %v10126_v5  ;;  %v5795_v12 = vld [vmem:[#allocation2 + $0x21] sm:$0xff] }
 0x34d   : > { %v7017_v23 = vpack.c.bf16 %v6074_v41, %v6073_v20  ;;  %v3654_v15 = vadd.f32 %v3596_v14, %v11912_v13  ;;  %v4470_v54 = vsel %vm4398_vm7, %v10106_v50, %v10174_v19  ;;  %v10194_v20 = vrot.slane %v4027_v61, 1  ;;  %v11913_v41 = vld [vmem:[#allocation65_spill] sm:$0xff] }
 0x34e   : > { %v5626_v37 = vmax.f32 %v10164_v63, 0.0  ;;  %v5159_v40 = vadd.f32 %v5026_v28, %v4648_v39  ;;  %v3312_v28 = vsel %vm3283_vm8, %v3309_v8, %v3311_v33  ;;  %v11914_v61 = vmax.f32 %v10057_v17, 0.0 }
 0x34f   : > { %7181 = vst [vmem:[%s10091_s29 + $0x8] sm:$0xff] %v7017_v23   ;;  %v10178_v1 = vpop.f32.mrf.mxu3  ;;  %v5963_v11 = vld [vmem:[#allocation2 + $0x2f] sm:$0xff]  ;;  %v4030_v23 = vsel %vm1080_vm5, %v4025_v56, %v10194_v20  ;;  %v11918_v56 = vmax.f32 %v10096_v16, 0.0 }
 0x350   : > { %5684 = vst [vmem:[#allocation2 + $0x38] sm:$0xff] %v5626_v37  ;;  %v5449_v31 = vmul.f32 %v5243_v7, %v5159_v40  ;;  %v5907_v7 = vld [vmem:[#allocation2 + $0x2e] sm:$0xff]  ;;  %v5851_v40 = vmax.f32 %v11914_v61, %v5795_v12  ;;  %v10226_v61 = vld [vmem:[%s7725_s28 + $0x80] sm:$0xff] }
 0x351   : > { %v5031_v4 = vpop.f32.mrf.mxu0  ;;  %v5796_v5 = vld [vmem:[#allocation2 + $0x29] sm:$0xff]  ;;  %v6019_v39 = vmax.f32 %v5907_v7, %v5963_v11  ;;  %v11919_v7 = vshrl.u32 %v8564_v34, 16 }
 0x352   : > { %v3467_v3 = vpop.f32.mrf.mxu1  ;;  %v5507_v50 = vadd.f32 %v5449_v31, %v3653_v53  ;;  %v5247_v53 = vpop.permute.xlu2 %5246 }
 0x353   : > { %v3597_v35 = vadd.f32 %v3467_v3, %v11913_v41  ;;  %v4272_v14 = vpop.f32.mrf.mxu2  ;;  %v5852_v41 = vmax.f32 %v11918_v56, %v5796_v5  ;;  %v4471_v11 = vrot.slane %v11919_v7, 1  ;;  %v6075_v16 = vmax.f32 %v5851_v40, %v6019_v39  ;;  %v5251_v7 = vpop.permute.xlu0 %5250 }
 0x354   : > { %6814 = vmatmul.msk.bf16.gmra.mxu0 %vm795_vm2, %v4841_v21  ;;  %v10199_v36 = vadd.f32 %v9921_v48, %v5507_v50  ;;  %v4650_v6 = vadd.f32 %v10038_v55, %v4272_v14  ;;  %6786 = vmatmul.msk.bf16.gmra.mxu3 %vm795_vm2, %v4470_v54  ;;  %v11920_v14 = vshll.u32 %v8564_v34, 16  ;;  %v11922_v34 = vld [vmem:[#allocation71_spill] sm:$0xff]  ;;  %v4035_v40 = vshll.u32 %v10226_v61, 16 }
 0x355   : > { %v3655_v8 = vadd.f32 %v3597_v35, %v8554_v27  ;;  %6608 = vmatmul.msk.bf16.gmra.mxu1 %vm795_vm2, %v3312_v28  ;;  %v11915_v27 = vld [vmem:[#allocation66_spill] sm:$0xff] }
 0x356   : > { %v5627_v13 = vmax.f32 %v10199_v36, 0.0  ;;  %v5160_v59 = vadd.f32 %v5028_v2, %v4650_v6  ;;  %v11916_v21 = vshrl.u32 %v11915_v27, 16  ;;  %v11917_v54 = vshll.u32 %v11915_v27, 16 }
 0x357   : > { %v5908_v55 = vld [vmem:[#allocation2 + $0x36] sm:$0xff]  ;;  %v10214_v50 = vpop.f32.mrf.mxu3  ;;  %v4472_v12 = vrot.slane %v11920_v14, 2  ;;  %v10237_v14 = vld [vmem:[%s7725_s28 + $0x84] sm:$0xff] }
 0x358   : > { %v5964_v31 = vld [vmem:[#allocation2 + $0x37] sm:$0xff]  ;;  %v4842_v3 = vrot.slane %v11916_v21, 3  ;;  %v4843_v28 = vrot.slane %v11917_v54, 4  ;;  %5685 = vst [vmem:[#allocation2 + $0x40] sm:$0xff] %v5627_v13  ;;  %v5450_v17 = vmul.f32 %v5247_v53, %v5160_v59  ;;  %6755 = vmatmul.msk.bf16.gmra.mxu2 %vm795_vm2, %v4030_v23  ;;  %v3313_v39 = vrot.slane %v10237_v14, 3 }
 0x359   : > { %v6020_v35 = vmax.f32 %v5908_v55, %v5964_v31  ;;  %v5033_v2 = vpop.f32.mrf.mxu0  ;;  %v11921_v31 = vld [vmem:[#allocation68_spill] sm:$0xff] }
 0x35a   : > { %v3469_v6 = vpop.f32.mrf.mxu1  ;;  %v5508_v55 = vadd.f32 %v5450_v17, %v3654_v15  ;;  %v10229_v59 = vor.u32 %v4843_v28, %v4842_v3  ;;  %v4031_v15 = vshrl.u32 %v10158_v10, 16 }
 0x35b   : > { %v6076_v5 = vmax.f32 %v5852_v41, %v6020_v35  ;;  %v3598_v27 = vadd.f32 %v3469_v6, %v11921_v31  ;;  %v4275_v53 = vpop.f32.mrf.mxu2  ;;  %v10242_v41 = vor.u32 %v4472_v12, %v4471_v11 }
 0x35c   : > { %v10232_v21 = vadd.f32 %v9921_v48, %v5508_v55  ;;  %v4653_v54 = vadd.f32 %v10073_v46, %v4275_v53  ;;  %v4845_v10 = vsel %vm525_vm3, %v10161_v24, %v10229_v59  ;;  %v4033_v12 = vor.u32 %v4031_v15, %v10194_v20  ;;  %v5797_v24 = vld [vmem:[#allocation2 + $0x31] sm:$0xff] }
 0x35d   : > { %v7022_v23 = vpack.c.bf16 %v6076_v5, %v6075_v16  ;;  %v3656_v56 = vadd.f32 %v3598_v27, %v11922_v34  ;;  %v4474_v46 = vsel %vm4398_vm7, %v10174_v19, %v10242_v41  ;;  %v10262_v16 = vrot.slane %v4035_v40, 1  ;;  %v11923_v5 = vld [vmem:[#allocation69_spill] sm:$0xff] }
 0x35e   : > { %v5628_v3 = vmax.f32 %v10232_v21, 0.0  ;;  %v5161_v28 = vadd.f32 %v5031_v4, %v4653_v54  ;;  %v3314_v4 = vsel %vm3283_vm8, %v3311_v33, %v3313_v39  ;;  %v11924_v40 = vmax.f32 %v10131_v25, 0.0 }
 0x35f   : > { %7182 = vst [vmem:[%s10091_s29 + $0x10] sm:$0xff] %v7022_v23   ;;  %v10246_v35 = vpop.f32.mrf.mxu3  ;;  %v5909_v31 = vld [vmem:[#allocation2 + $0x3e] sm:$0xff]  ;;  %v4038_v54 = vsel %vm1080_vm5, %v4033_v12, %v10262_v16 }
 0x360   : > { %5686 = vst [vmem:[#allocation2 + $0x48] sm:$0xff] %v5628_v3  ;;  %v5451_v17 = vmul.f32 %v5251_v7, %v5161_v28  ;;  %v5965_v27 = vld [vmem:[#allocation2 + $0x3f] sm:$0xff]  ;;  %v5853_v28 = vmax.f32 %v11924_v40, %v5797_v24 }
 0x361   : > { %v5036_v6 = vpop.f32.mrf.mxu0  ;;  %v5798_v20 = vld [vmem:[#allocation2 + $0x39] sm:$0xff]  ;;  %v6021_v34 = vmax.f32 %v5909_v31, %v5965_v27  ;;  %v11929_v27 = vshll.u32 %v8613_v42, 16  ;;  %v11930_v40 = vld [vmem:[#allocation72_spill] sm:$0xff] }
 0x362   : > { %v3472_v11 = vpop.f32.mrf.mxu1  ;;  %v5509_v19 = vadd.f32 %v5451_v17, %v3655_v8  ;;  %v5255_v8 = vpop.permute.xlu1 %5254  ;;  %v5854_v12 = vmax.f32 %v5626_v37, %v5798_v20 }
 0x363   : > { %v3599_v55 = vadd.f32 %v3472_v11, %v11923_v5  ;;  %v4277_v53 = vpop.f32.mrf.mxu2  ;;  %v6077_v63 = vmax.f32 %v5853_v28, %v6021_v34 }
 0x364   : > { %6815 = vmatmul.msk.bf16.gmra.mxu0 %vm795_vm2, %v4845_v10  ;;  %v10267_v23 = vadd.f32 %v9921_v48, %v5509_v19  ;;  %v4655_v49 = vadd.f32 %v10110_v0, %v4277_v53  ;;  %6787 = vmatmul.msk.bf16.gmra.mxu3 %vm795_vm2, %v4474_v46  ;;  %v4476_v53 = vrot.slane %v11929_v27, 2 }
 0x365   : > { %v3657_v33 = vadd.f32 %v3599_v55, %v8603_v43  ;;  %6609 = vmatmul.msk.bf16.gmra.mxu1 %vm795_vm2, %v3314_v4  ;;  %v11925_v43 = vld [vmem:[#allocation70_spill] sm:$0xff]  ;;  %v11928_v55 = vshrl.u32 %v8613_v42, 16  ;;  %v11931_v42 = vld [vmem:[#allocation75_spill] sm:$0xff] }
 0x366   : > { %v5629_v7 = vmax.f32 %v10267_v23, 0.0  ;;  %v5162_v15 = vadd.f32 %v5033_v2, %v4655_v49  ;;  %v11926_v10 = vshrl.u32 %v11925_v43, 16  ;;  %v11927_v46 = vshll.u32 %v11925_v43, 16  ;;  %v10294_v49 = vld [vmem:[%s7725_s28 + $0x88] sm:$0xff] }
 0x367   : > { %v5910_v0 = vld [vmem:[#allocation2 + $0x46] sm:$0xff]  ;;  %v10282_v19 = vpop.f32.mrf.mxu3  ;;  %v4475_v31 = vrot.slane %v11928_v55, 1  ;;  %v4043_v28 = vshll.u32 %v10294_v49, 16 }
 0x368   : > { %v5966_v17 = vld [vmem:[#allocation2 + $0x47] sm:$0xff]  ;;  %v4846_v11 = vrot.slane %v11926_v10, 3  ;;  %v4847_v4 = vrot.slane %v11927_v46, 4  ;;  %5687 = vst [vmem:[#allocation2 + $0x50] sm:$0xff] %v5629_v7  ;;  %v5452_v25 = vmul.f32 %v5255_v8, %v5162_v15  ;;  %6756 = vmatmul.msk.bf16.gmra.mxu2 %vm795_vm2, %v4038_v54  ;;  %v5259_v46 = vpop.permute.xlu2 %5258 }
 0x369   : > { %v6022_v5 = vmax.f32 %v5910_v0, %v5966_v17  ;;  %v5038_v2 = vpop.f32.mrf.mxu0  ;;  %v10305_v55 = vld [vmem:[%s7725_s28 + $0x8c] sm:$0xff] }
 0x36a   : > { %v3474_v24 = vpop.f32.mrf.mxu1  ;;  %v5510_v20 = vadd.f32 %v5452_v25, %v3656_v56  ;;  %v10297_v15 = vor.u32 %v4847_v4, %v4846_v11  ;;  %v3315_v34 = vrot.slane %v10305_v55, 3  ;;  %v4039_v56 = vshrl.u32 %v10226_v61, 16 }
 0x36b   : > { %v6078_v37 = vmax.f32 %v5854_v12, %v6022_v5  ;;  %v3600_v0 = vadd.f32 %v3474_v24, %v11930_v40  ;;  %v4280_v8 = vpop.f32.mrf.mxu2  ;;  %v10310_v12 = vor.u32 %v4476_v53, %v4475_v31  ;;  %v10330_v24 = vrot.slane %v4043_v28, 1 }
 0x36c   : > { %v10300_v17 = vadd.f32 %v9921_v48, %v5510_v20  ;;  %v4658_v43 = vadd.f32 %v10146_v47, %v4280_v8  ;;  %v4849_v61 = vsel %vm525_vm3, %v10229_v59, %v10297_v15  ;;  %v4041_v53 = vor.u32 %v4039_v56, %v10262_v16  ;;  %v5799_v59 = vld [vmem:[#allocation2 + $0x41] sm:$0xff] }
 0x36d   : > { %v7027_v54 = vpack.c.bf16 %v6078_v37, %v6077_v63  ;;  %v3658_v10 = vadd.f32 %v3600_v0, %v11931_v42  ;;  %v4478_v47 = vsel %vm4398_vm7, %v10242_v41, %v10310_v12  ;;  %v11932_v63 = vld [vmem:[#allocation73_spill] sm:$0xff]  ;;  %v5855_v56 = vmax.f32 %v5627_v13, %v5799_v59  ;;  %v11938_v59 = vld [vmem:[#allocation76_spill] sm:$0xff] }
 0x36e   : > { %v5630_v11 = vmax.f32 %v10300_v17, 0.0  ;;  %v5163_v4 = vadd.f32 %v5036_v6, %v4658_v43  ;;  %v3316_v6 = vsel %vm3283_vm8, %v3313_v39, %v3315_v34 }
 0x36f   : > { %7183 = vst [vmem:[%s10091_s29 + $0x18] sm:$0xff] %v7027_v54   ;;  %v10314_v5 = vpop.f32.mrf.mxu3  ;;  %v5911_v20 = vld [vmem:[#allocation2 + $0x4e] sm:$0xff]  ;;  %v4046_v54 = vsel %vm1080_vm5, %v4041_v53, %v10330_v24 }
 0x370   : > { %5688 = vst [vmem:[#allocation2 + $0x58] sm:$0xff] %v5630_v11  ;;  %v5453_v25 = vmul.f32 %v5259_v46, %v5163_v4  ;;  %v5967_v40 = vld [vmem:[#allocation2 + $0x4f] sm:$0xff] }
 0x371   : > { %v5041_v27 = vpop.f32.mrf.mxu0  ;;  %v5800_v16 = vld [vmem:[#allocation2 + $0x49] sm:$0xff]  ;;  %v6023_v43 = vmax.f32 %v5911_v20, %v5967_v40 }
 0x372   : > { %v3477_v31 = vpop.f32.mrf.mxu1  ;;  %v5511_v41 = vadd.f32 %v5453_v25, %v3657_v33  ;;  %v5263_v33 = vpop.permute.xlu0 %5262  ;;  %v10362_v40 = vld [vmem:[%s7725_s28 + $0x90] sm:$0xff] }
 0x373   : > { %v3601_v37 = vadd.f32 %v3477_v31, %v11932_v63  ;;  %v4282_v0 = vpop.f32.mrf.mxu2  ;;  %v11937_v63 = vshll.u32 %v8662_v62, 16  ;;  %v6079_v21 = vmax.f32 %v5855_v56, %v6023_v43  ;;  %v4051_v56 = vshll.u32 %v10362_v40, 16 }
 0x374   : > { %6816 = vmatmul.msk.bf16.gmra.mxu0 %vm795_vm2, %v4849_v61  ;;  %v10335_v8 = vadd.f32 %v9921_v48, %v5511_v41  ;;  %v4660_v14 = vadd.f32 %v10178_v1, %v4282_v0  ;;  %6788 = vmatmul.msk.bf16.gmra.mxu3 %vm795_vm2, %v4478_v47 }
 0x375   : > { %v3659_v39 = vadd.f32 %v3601_v37, %v8652_v45  ;;  %6610 = vmatmul.msk.bf16.gmra.mxu1 %vm795_vm2, %v3316_v6  ;;  %v11933_v45 = vld [vmem:[#allocation74_spill] sm:$0xff]  ;;  %v5856_v6 = vmax.f32 %v5628_v3, %v5800_v16  ;;  %v4480_v37 = vrot.slane %v11937_v63, 2  ;;  %v10398_v63 = vrot.slane %v4051_v56, 1 }
 0x376   : > { %v5631_v42 = vmax.f32 %v10335_v8, 0.0  ;;  %v5164_v46 = vadd.f32 %v5038_v2, %v4660_v14  ;;  %v11934_v4 = vshrl.u32 %v11933_v45, 16  ;;  %v11935_v47 = vshll.u32 %v11933_v45, 16  ;;  %v5267_v45 = vpop.permute.xlu1 %5266 }
 0x377   : > { %v5912_v1 = vld [vmem:[#allocation2 + $0x56] sm:$0xff]  ;;  %v10350_v31 = vpop.f32.mrf.mxu3  ;;  %v11936_v2 = vshrl.u32 %v8662_v62, 16 }
 0x378   : > { %v5968_v28 = vld [vmem:[#allocation2 + $0x57] sm:$0xff]  ;;  %v4850_v25 = vrot.slane %v11934_v4, 3  ;;  %v4851_v61 = vrot.slane %v11935_v47, 4  ;;  %5689 = vst [vmem:[#allocation2 + $0x60] sm:$0xff] %v5631_v42  ;;  %v5454_v36 = vmul.f32 %v5263_v33, %v5164_v46  ;;  %6757 = vmatmul.msk.bf16.gmra.mxu2 %vm795_vm2, %v4046_v54 }
 0x379   : > { %v6024_v53 = vmax.f32 %v5912_v1, %v5968_v28  ;;  %v5043_v13 = vpop.f32.mrf.mxu0  ;;  %v4479_v41 = vrot.slane %v11936_v2, 1  ;;  %v11939_v62 = vld [vmem:[#allocation79_spill] sm:$0xff] }
 0x37a   : > { %v3479_v20 = vpop.f32.mrf.mxu1  ;;  %v5512_v0 = vadd.f32 %v5454_v36, %v3658_v10  ;;  %v10365_v33 = vor.u32 %v4851_v61, %v4850_v25  ;;  %v10373_v4 = vld [vmem:[%s7725_s28 + $0x94] sm:$0xff]  ;;  %v4047_v10 = vshrl.u32 %v10294_v49, 16 }
 0x37b   : > { %v6080_v3 = vmax.f32 %v5856_v6, %v6024_v53  ;;  %v3602_v14 = vadd.f32 %v3479_v20, %v11938_v59  ;;  %v4285_v16 = vpop.f32.mrf.mxu2  ;;  %v3317_v43 = vrot.slane %v10373_v4, 3  ;;  %v10378_v47 = vor.u32 %v4480_v37, %v4479_v41  ;;  %v11940_v37 = vld [vmem:[#allocation77_spill] sm:$0xff] }
 0x37c   : > { %v10368_v46 = vadd.f32 %v9921_v48, %v5512_v0  ;;  %v4663_v1 = vadd.f32 %v10214_v50, %v4285_v16  ;;  %v4853_v49 = vsel %vm525_vm3, %v10297_v15, %v10365_v33  ;;  %v4049_v41 = vor.u32 %v4047_v10, %v10330_v24  ;;  %v5801_v15 = vld [vmem:[#allocation2 + $0x51] sm:$0xff] }
 0x37d   : > { %v7032_v54 = vpack.c.bf16 %v6080_v3, %v6079_v21  ;;  %v3660_v28 = vadd.f32 %v3602_v14, %v11939_v62  ;;  %v4482_v50 = vsel %vm4398_vm7, %v10310_v12, %v10378_v47  ;;  %v5857_v62 = vmax.f32 %v5629_v7, %v5801_v15 }
 0x37e   : > { %v5632_v25 = vmax.f32 %v10368_v46, 0.0  ;;  %v5165_v61 = vadd.f32 %v5041_v27, %v4663_v1  ;;  %v3318_v27 = vsel %vm3283_vm8, %v3315_v34, %v3317_v43  ;;  %v4054_v14 = vsel %vm1080_vm5, %v4049_v41, %v10398_v63 }
 0x37f   : > { %7184 = vst [vmem:[%s10091_s29 + $0x20] sm:$0xff] %v7032_v54   ;;  %v10382_v6 = vpop.f32.mrf.mxu3  ;;  %v5913_v21 = vld [vmem:[#allocation2 + $0x5e] sm:$0xff]  ;;  %v11945_v41 = vshll.u32 %v8711_v57, 16 }
 0x380   : > { %5690 = vst [vmem:[#allocation2 + $0x68] sm:$0xff] %v5632_v25  ;;  %v5455_v53 = vmul.f32 %v5267_v45, %v5165_v61  ;;  %v5969_v3 = vld [vmem:[#allocation2 + $0x5f] sm:$0xff] }
 0x381   : > { %v5046_v36 = vpop.f32.mrf.mxu0  ;;  %v5802_v24 = vld [vmem:[#allocation2 + $0x59] sm:$0xff]  ;;  %v6025_v16 = vmax.f32 %v5913_v21, %v5969_v3  ;;  %v11946_v3 = vld [vmem:[#allocation80_spill] sm:$0xff] }
 0x382   : > { %v3482_v2 = vpop.f32.mrf.mxu1  ;;  %v5513_v12 = vadd.f32 %v5455_v53, %v3659_v39  ;;  %v5271_v39 = vpop.permute.xlu2 %5270 }
 0x383   : > { %v3603_v20 = vadd.f32 %v3482_v2, %v11940_v37  ;;  %v4287_v0 = vpop.f32.mrf.mxu2  ;;  %v6081_v17 = vmax.f32 %v5857_v62, %v6025_v16 }
 0x384   : > { %6817 = vmatmul.msk.bf16.gmra.mxu0 %vm795_vm2, %v4853_v49  ;;  %v10403_v59 = vadd.f32 %v9921_v48, %v5513_v12  ;;  %v4665_v55 = vadd.f32 %v10246_v35, %v4287_v0  ;;  %6789 = vmatmul.msk.bf16.gmra.mxu3 %vm795_vm2, %v4482_v50  ;;  %v5858_v49 = vmax.f32 %v5630_v11, %v5802_v24  ;;  %v4484_v12 = vrot.slane %v11945_v41, 2 }
 0x385   : > { %v3661_v34 = vadd.f32 %v3603_v20, %v8701_v29  ;;  %6611 = vmatmul.msk.bf16.gmra.mxu1 %vm795_vm2, %v3318_v27  ;;  %v11941_v29 = vld [vmem:[#allocation78_spill] sm:$0xff] }
 0x386   : > { %v5633_v54 = vmax.f32 %v10403_v59, 0.0  ;;  %v5166_v1 = vadd.f32 %v5043_v13, %v4665_v55  ;;  %v11942_v10 = vshrl.u32 %v11941_v29, 16  ;;  %v11943_v61 = vshll.u32 %v11941_v29, 16  ;;  %v10430_v20 = vld [vmem:[%s7725_s28 + $0x98] sm:$0xff] }
 0x387   : > { %v5914_v35 = vld [vmem:[#allocation2 + $0x66] sm:$0xff]  ;;  %v10418_v53 = vpop.f32.mrf.mxu3  ;;  %v11944_v13 = vshrl.u32 %v8711_v57, 16  ;;  %v11947_v57 = vld [vmem:[#allocation83_spill] sm:$0xff]  ;;  %v4059_v62 = vshll.u32 %v10430_v20, 16 }
 0x388   : > { %v5970_v45 = vld [vmem:[#allocation2 + $0x67] sm:$0xff]  ;;  %v4854_v56 = vrot.slane %v11942_v10, 3  ;;  %v4855_v50 = vrot.slane %v11943_v61, 4  ;;  %5691 = vst [vmem:[#allocation2 + $0x70] sm:$0xff] %v5633_v54  ;;  %v5456_v23 = vmul.f32 %v5271_v39, %v5166_v1  ;;  %6758 = vmatmul.msk.bf16.gmra.mxu2 %vm795_vm2, %v4054_v14 }
 0x389   : > { %v6026_v2 = vmax.f32 %v5914_v35, %v5970_v45  ;;  %v5048_v7 = vpop.f32.mrf.mxu0  ;;  %v4483_v27 = vrot.slane %v11944_v13, 1  ;;  %v5275_v35 = vpop.permute.xlu0 %5274  ;;  %v10441_v45 = vld [vmem:[%s7725_s28 + $0x9c] sm:$0xff]  ;;  %v10466_v13 = vrot.slane %v4059_v62, 1 }
 0x38a   : > { %v3484_v37 = vpop.f32.mrf.mxu1  ;;  %v5514_v21 = vadd.f32 %v5456_v23, %v3660_v28  ;;  %v10433_v55 = vor.u32 %v4855_v50, %v4854_v56  ;;  %v3319_v16 = vrot.slane %v10441_v45, 3  ;;  %v4055_v28 = vshrl.u32 %v10362_v40, 16 }
 0x38b   : > { %v6082_v11 = vmax.f32 %v5858_v49, %v6026_v2  ;;  %v3604_v0 = vadd.f32 %v3484_v37, %v11946_v3  ;;  %v4290_v15 = vpop.f32.mrf.mxu2  ;;  %v10446_v29 = vor.u32 %v4484_v12, %v4483_v27  ;;  %v11948_v27 = vld [vmem:[#allocation81_spill] sm:$0xff] }
 0x38c   : > { %v10436_v39 = vadd.f32 %v9921_v48, %v5514_v21  ;;  %v4668_v14 = vadd.f32 %v10282_v19, %v4290_v15  ;;  %v4857_v40 = vsel %vm525_vm3, %v10365_v33, %v10433_v55  ;;  %v4057_v23 = vor.u32 %v4055_v28, %v10398_v63  ;;  %v5803_v33 = vld [vmem:[#allocation2 + $0x61] sm:$0xff] }
 0x38d   : > { %v7037_v24 = vpack.c.bf16 %v6082_v11, %v6081_v17  ;;  %v3662_v1 = vadd.f32 %v3604_v0, %v11947_v57  ;;  %v4486_v19 = vsel %vm4398_vm7, %v10378_v47, %v10446_v29 }
 0x38e   : > { %v5634_v10 = vmax.f32 %v10436_v39, 0.0  ;;  %v5167_v56 = vadd.f32 %v5046_v36, %v4668_v14  ;;  %v3320_v36 = vsel %vm3283_vm8, %v3317_v43, %v3319_v16  ;;  %v4062_v21 = vsel %vm1080_vm5, %v4057_v23, %v10466_v13  ;;  %v10498_v23 = vld [vmem:[%s7725_s28 + $0xa0] sm:$0xff] }
 0x38f   : > { %7185 = vst [vmem:[%s10091_s29 + $0x28] sm:$0xff] %v7037_v24   ;;  %v10450_v61 = vpop.f32.mrf.mxu3  ;;  %v5915_v12 = vld [vmem:[#allocation2 + $0x6e] sm:$0xff] }
 0x390   : > { %5692 = vst [vmem:[#allocation2 + $0x78] sm:$0xff] %v5634_v10  ;;  %v5457_v50 = vmul.f32 %v5275_v35, %v5167_v56  ;;  %v5971_v37 = vld [vmem:[#allocation2 + $0x6f] sm:$0xff] }
 0x391   : > { %v5051_v49 = vpop.f32.mrf.mxu0  ;;  %v5804_v63 = vld [vmem:[#allocation2 + $0x69] sm:$0xff]  ;;  %v6027_v3 = vmax.f32 %v5915_v12, %v5971_v37 }
 0x392   : > { %v3487_v2 = vpop.f32.mrf.mxu1  ;;  %v5515_v47 = vadd.f32 %v5457_v50, %v3661_v34  ;;  %v5279_v34 = vpop.permute.xlu1 %5278  ;;  %v5860_v56 = vmax.f32 %v5632_v25, %v5804_v63  ;;  %v11955_v63 = vld [vmem:[#allocation87_spill] sm:$0xff] }
 0x393   : > { %v3605_v41 = vadd.f32 %v3487_v2, %v11948_v27  ;;  %v4292_v17 = vpop.f32.mrf.mxu2  ;;  %v11954_v27 = vld [vmem:[#allocation84_spill] sm:$0xff] }
 0x394   : > { %6818 = vmatmul.msk.bf16.gmra.mxu0 %vm795_vm2, %v4857_v40  ;;  %v10471_v11 = vadd.f32 %v9921_v48, %v5515_v47  ;;  %v4670_v4 = vadd.f32 %v10314_v5, %v4292_v17  ;;  %6790 = vmatmul.msk.bf16.gmra.mxu3 %vm795_vm2, %v4486_v19  ;;  %v5859_v48 = vmax.f32 %v5631_v42, %v5803_v33  ;;  %v11953_v40 = vshll.u32 %v8760_v32, 16  ;;  %v10504_v33 = vld [vmem:[%s7710_s22] ss:$0 sm:$0xff] }
 0x395   : > { %v3663_v43 = vadd.f32 %v3605_v41, %v8750_v51  ;;  %6612 = vmatmul.msk.bf16.gmra.mxu1 %vm795_vm2, %v3320_v36  ;;  %v11949_v51 = vld [vmem:[#allocation82_spill] sm:$0xff] }
 0x396   : > { %v5635_v0 = vmax.f32 %v10471_v11, 0.0  ;;  %v5168_v15 = vadd.f32 %v5048_v7, %v4670_v4  ;;  %v11950_v14 = vshrl.u32 %v11949_v51, 16  ;;  %v11951_v35 = vshll.u32 %v11949_v51, 16 }
 0x397   : > { %v5916_v5 = vld [vmem:[#allocation2 + $0x76] sm:$0xff]  ;;  %v10486_v62 = vpop.f32.mrf.mxu3  ;;  %v11952_v7 = vshrl.u32 %v8760_v32, 16  ;;  %v4488_v2 = vrot.slane %v11953_v40, 2  ;;  %v6083_v46 = vmax.f32 %v5859_v48, %v6027_v3  ;;  %v10512_v3 = vld [vmem:[%s7725_s28 + $0xa4] sm:$0xff]  ;;  %v4067_v48 = vshll.u32 %v10498_v23, 16 }
 0x398   : > { %v5972_v24 = vld [vmem:[#allocation2 + $0x77] sm:$0xff]  ;;  %v4858_v57 = vrot.slane %v11950_v14, 3  ;;  %v4859_v28 = vrot.slane %v11951_v35, 4  ;;  %5693 = vst [vmem:[#allocation2 + $0x80] sm:$0xff] %v5635_v0  ;;  %v5458_v8 = vmul.f32 %v5279_v34, %v5168_v15  ;;  %6759 = vmatmul.msk.bf16.gmra.mxu2 %vm795_vm2, %v4062_v21  ;;  %v5283_v21 = vpop.permute.xlu2 %5282  ;;  %v4063_v15 = vshrl.u32 %v10430_v20, 16 }
 0x399   : > { %v6028_v19 = vmax.f32 %v5916_v5, %v5972_v24  ;;  %v5053_v42 = vpop.f32.mrf.mxu0  ;;  %v4487_v50 = vrot.slane %v11952_v7, 1 }
 0x39a   : > { %v3489_v36 = vpop.f32.mrf.mxu1  ;;  %v5516_v47 = vadd.f32 %v5458_v8, %v3662_v1  ;;  %v10501_v37 = vor.u32 %v4859_v28, %v4858_v57  ;;  %v3321_v1 = vrot.slane %v10512_v3, 3  ;;  %v11956_v8 = vld [vmem:[#allocation85_spill] sm:$0xff] }
 0x39b   : > { %v6084_v25 = vmax.f32 %v5860_v56, %v6028_v19  ;;  %v3606_v41 = vadd.f32 %v3489_v36, %v11954_v27  ;;  %v4295_v12 = vpop.f32.mrf.mxu2  ;;  %v10517_v5 = vor.u32 %v4488_v2, %v4487_v50  ;;  %v4065_v56 = vor.u32 %v4063_v15, %v10466_v13 }
 0x39c   : > { %v10507_v4 = vadd.f32 %v10504_v33, %v5516_v47  ;;  %v4673_v32 = vadd.f32 %v10350_v31, %v4295_v12  ;;  %v4861_v20 = vsel %vm525_vm3, %v10433_v55, %v10501_v37  ;;  %v10537_v19 = vrot.slane %v4067_v48, 1  ;;  %v5805_v55 = vld [vmem:[#allocation2 + $0x71] sm:$0xff] }
 0x39d   : > { %v7042_v17 = vpack.c.bf16 %v6084_v25, %v6083_v46  ;;  %v3664_v34 = vadd.f32 %v3606_v41, %v11955_v63  ;;  %v4490_v31 = vsel %vm4398_vm7, %v10446_v29, %v10517_v5  ;;  %v5861_v41 = vmax.f32 %v5633_v54, %v5805_v55 }
 0x39e   : > { %v5636_v24 = vmax.f32 %v10507_v4, 0.0  ;;  %v5169_v51 = vadd.f32 %v5051_v49, %v4673_v32  ;;  %v3322_v49 = vsel %vm3283_vm8, %v3319_v16, %v3321_v1  ;;  %v4070_v46 = vsel %vm1080_vm5, %v4065_v56, %v10537_v19 }
 0x39f   : > { %7186 = vst [vmem:[%s10091_s29 + $0x30] sm:$0xff] %v7042_v17   ;;  %v10521_v14 = vpop.f32.mrf.mxu3  ;;  %v5917_v50 = vld [vmem:[#allocation2 + $0x7e] sm:$0xff] }
 0x3a0   : > { %5694 = vst [vmem:[#allocation2 + $0x88] sm:$0xff] %v5636_v24  ;;  %v5459_v57 = vmul.f32 %v5283_v21, %v5169_v51  ;;  %v5973_v40 = vld [vmem:[#allocation2 + $0x7f] sm:$0xff] }
 0x3a1   : > { %v5056_v35 = vpop.f32.mrf.mxu0  ;;  %v5806_v13 = vld [vmem:[#allocation2 + $0x79] sm:$0xff]  ;;  %v6029_v25 = vmax.f32 %v5917_v50, %v5973_v40 }
 0x3a2   : > { %v3492_v28 = vpop.f32.mrf.mxu1  ;;  %v5517_v29 = vadd.f32 %v5459_v57, %v3663_v43  ;;  %v5287_v43 = vpop.permute.xlu0 %5286  ;;  %v5862_v48 = vmax.f32 %v5634_v10, %v5806_v13  ;;  %v11961_v57 = vshll.u32 %v8809_v58, 16 }
 0x3a3   : > { %v3607_v7 = vadd.f32 %v3492_v28, %v11956_v8  ;;  %v4297_v2 = vpop.f32.mrf.mxu2  ;;  %v6085_v39 = vmax.f32 %v5861_v41, %v6029_v25  ;;  %v5291_v13 = vpop.permute.xlu1 %5290 }
 0x3a4   : > { %6819 = vmatmul.msk.bf16.gmra.mxu0 %vm795_vm2, %v4861_v20  ;;  %v10542_v36 = vadd.f32 %v10504_v33, %v5517_v29  ;;  %v4675_v45 = vadd.f32 %v10382_v6, %v4297_v2  ;;  %6791 = vmatmul.msk.bf16.gmra.mxu3 %vm795_vm2, %v4490_v31  ;;  %v4492_v20 = vrot.slane %v11961_v57, 2  ;;  %v11962_v29 = vld [vmem:[#allocation88_spill] sm:$0xff] }
 0x3a5   : > { %v3665_v16 = vadd.f32 %v3607_v7, %v8799_v30  ;;  %6613 = vmatmul.msk.bf16.gmra.mxu1 %vm795_vm2, %v3322_v49  ;;  %v11957_v30 = vld [vmem:[#allocation86_spill] sm:$0xff]  ;;  %v10569_v49 = vld [vmem:[%s7725_s28 + $0xa8] sm:$0xff] }
 0x3a6   : > { %v5637_v47 = vmax.f32 %v10542_v36, 0.0  ;;  %v5170_v27 = vadd.f32 %v5053_v42, %v4675_v45  ;;  %v11958_v17 = vshrl.u32 %v11957_v30, 16  ;;  %v11959_v63 = vshll.u32 %v11957_v30, 16 }
 0x3a7   : > { %v5918_v6 = vld [vmem:[#allocation2 + $0x86] sm:$0xff]  ;;  %v10557_v15 = vpop.f32.mrf.mxu3  ;;  %v11960_v42 = vshrl.u32 %v8809_v58, 16  ;;  %v11963_v58 = vld [vmem:[#allocation91_spill] sm:$0xff]  ;;  %v4075_v25 = vshll.u32 %v10569_v49, 16 }
 0x3a8   : > { %v5974_v12 = vld [vmem:[#allocation2 + $0x87] sm:$0xff]  ;;  %v4862_v32 = vrot.slane %v11958_v17, 3  ;;  %v4863_v21 = vrot.slane %v11959_v63, 4  ;;  %5695 = vst [vmem:[#allocation2 + $0x90] sm:$0xff] %v5637_v47  ;;  %v5460_v59 = vmul.f32 %v5287_v43, %v5170_v27  ;;  %6760 = vmatmul.msk.bf16.gmra.mxu2 %vm795_vm2, %v4070_v46 }
 0x3a9   : > { %v6030_v51 = vmax.f32 %v5918_v6, %v5974_v12  ;;  %v5058_v54 = vpop.f32.mrf.mxu0  ;;  %v4491_v31 = vrot.slane %v11960_v42, 1  ;;  %v10580_v43 = vld [vmem:[%s7725_s28 + $0xac] sm:$0xff] }
 0x3aa   : > { %v3494_v28 = vpop.f32.mrf.mxu1  ;;  %v5518_v56 = vadd.f32 %v5460_v59, %v3664_v34  ;;  %v10572_v50 = vor.u32 %v4863_v21, %v4862_v32  ;;  %v3323_v46 = vrot.slane %v10580_v43, 3  ;;  %v4071_v34 = vshrl.u32 %v10498_v23, 16 }
 0x3ab   : > { %v6086_v10 = vmax.f32 %v5862_v48, %v6030_v51  ;;  %v3608_v8 = vadd.f32 %v3494_v28, %v11962_v29  ;;  %v4300_v7 = vpop.f32.mrf.mxu2  ;;  %v10585_v27 = vor.u32 %v4492_v20, %v4491_v31  ;;  %v10605_v21 = vrot.slane %v4075_v25, 1  ;;  %v11964_v48 = vld [vmem:[#allocation89_spill] sm:$0xff] }
 0x3ac   : > { %v10575_v2 = vadd.f32 %v10504_v33, %v5518_v56  ;;  %v4678_v55 = vadd.f32 %v10418_v53, %v4300_v7  ;;  %v4865_v23 = vsel %vm525_vm3, %v10501_v37, %v10572_v50  ;;  %v4073_v63 = vor.u32 %v4071_v34, %v10537_v19  ;;  %v5807_v37 = vld [vmem:[#allocation2 + $0x81] sm:$0xff] }
 0x3ad   : > { %v7047_v40 = vpack.c.bf16 %v6086_v10, %v6085_v39  ;;  %v3666_v45 = vadd.f32 %v3608_v8, %v11963_v58  ;;  %v4494_v53 = vsel %vm4398_vm7, %v10517_v5, %v10585_v27  ;;  %v5863_v56 = vmax.f32 %v5635_v0, %v5807_v37  ;;  %v5299_v37 = vpop.permute.xlu0 %5298 }
 0x3ae   : > { %v5638_v41 = vmax.f32 %v10575_v2, 0.0  ;;  %v5171_v6 = vadd.f32 %v5056_v35, %v4678_v55  ;;  %v3324_v35 = vsel %vm3283_vm8, %v3321_v1, %v3323_v46  ;;  %v4078_v20 = vsel %vm1080_vm5, %v4073_v63, %v10605_v21 }
 0x3af   : > { %7187 = vst [vmem:[%s10091_s29 + $0x38] sm:$0xff] %v7047_v40   ;;  %v10589_v12 = vpop.f32.mrf.mxu3  ;;  %v5919_v59 = vld [vmem:[#allocation2 + $0x8e] sm:$0xff] }
 0x3b0   : > { %5696 = vst [vmem:[#allocation2 + $0x98] sm:$0xff] %v5638_v41  ;;  %v5461_v30 = vmul.f32 %v5291_v13, %v5171_v6  ;;  %v5975_v42 = vld [vmem:[#allocation2 + $0x8f] sm:$0xff]  ;;  %v11969_v6 = vshll.u32 %v8858_v22, 16 }
 0x3b1   : > { %v5061_v17 = vpop.f32.mrf.mxu0  ;;  %v5808_v19 = vld [vmem:[#allocation2 + $0x89] sm:$0xff]  ;;  %v6031_v28 = vmax.f32 %v5919_v59, %v5975_v42 }
 0x3b2   : > { %v3497_v32 = vpop.f32.mrf.mxu1  ;;  %v5519_v5 = vadd.f32 %v5461_v30, %v3665_v16  ;;  %v5295_v16 = vpop.permute.xlu2 %5294  ;;  %v5864_v13 = vmax.f32 %v5636_v24, %v5808_v19 }
 0x3b3   : > { %v3609_v51 = vadd.f32 %v3497_v32, %v11964_v48  ;;  %v4302_v31 = vpop.f32.mrf.mxu2  ;;  %v6087_v4 = vmax.f32 %v5863_v56, %v6031_v28 }
 0x3b4   : > { %6820 = vmatmul.msk.bf16.gmra.mxu0 %vm795_vm2, %v4865_v23  ;;  %v10610_v57 = vadd.f32 %v10504_v33, %v5519_v5  ;;  %v4680_v3 = vadd.f32 %v10450_v61, %v4302_v31  ;;  %6792 = vmatmul.msk.bf16.gmra.mxu3 %vm795_vm2, %v4494_v53  ;;  %v4496_v53 = vrot.slane %v11969_v6, 2  ;;  %v10637_v23 = vld [vmem:[%s7725_s28 + $0xb0] sm:$0xff] }
 0x3b5   : > { %v3667_v1 = vadd.f32 %v3609_v51, %v8848_v38  ;;  %6614 = vmatmul.msk.bf16.gmra.mxu1 %vm795_vm2, %v3324_v35  ;;  %v11965_v38 = vld [vmem:[#allocation90_spill] sm:$0xff]  ;;  %v11970_v35 = vld [vmem:[#allocation92_spill] sm:$0xff] }
 0x3b6   : > { %v5639_v39 = vmax.f32 %v10610_v57, 0.0  ;;  %v5172_v10 = vadd.f32 %v5058_v54, %v4680_v3  ;;  %v11966_v8 = vshrl.u32 %v11965_v38, 16  ;;  %v11967_v40 = vshll.u32 %v11965_v38, 16  ;;  %v10648_v3 = vld [vmem:[%s7725_s28 + $0xb4] sm:$0xff] }
 0x3b7   : > { %v5920_v61 = vld [vmem:[#allocation2 + $0x96] sm:$0xff]  ;;  %v10625_v58 = vpop.f32.mrf.mxu3  ;;  %v11968_v54 = vshrl.u32 %v8858_v22, 16  ;;  %v3325_v19 = vrot.slane %v10648_v3, 3 }
 0x3b8   : > { %v5976_v29 = vld [vmem:[#allocation2 + $0x97] sm:$0xff]  ;;  %v4866_v7 = vrot.slane %v11966_v8, 3  ;;  %v4867_v55 = vrot.slane %v11967_v40, 4  ;;  %5697 = vst [vmem:[#allocation2 + $0xa0] sm:$0xff] %v5639_v39  ;;  %v5462_v11 = vmul.f32 %v5295_v16, %v5172_v10  ;;  %6761 = vmatmul.msk.bf16.gmra.mxu2 %vm795_vm2, %v4078_v20  ;;  %v4083_v16 = vshll.u32 %v10637_v23, 16  ;;  %v11972_v40 = vld [vmem:[#allocation93_spill] sm:$0xff] }
 0x3b9   : > { %v6032_v34 = vmax.f32 %v5920_v61, %v5976_v29  ;;  %v5063_v0 = vpop.f32.mrf.mxu0  ;;  %v4495_v25 = vrot.slane %v11968_v54, 1  ;;  %v11971_v22 = vld [vmem:[#allocation95_spill] sm:$0xff] }
 0x3ba   : > { %v3499_v30 = vpop.f32.mrf.mxu1  ;;  %v5520_v32 = vadd.f32 %v5462_v11, %v3666_v45  ;;  %v10640_v48 = vor.u32 %v4867_v55, %v4866_v7  ;;  %v4079_v45 = vshrl.u32 %v10569_v49, 16  ;;  %v10673_v7 = vrot.slane %v4083_v16, 1 }
 0x3bb   : > { %v6088_v24 = vmax.f32 %v5864_v13, %v6032_v34  ;;  %v3610_v63 = vadd.f32 %v3499_v30, %v11970_v35  ;;  %v4305_v5 = vpop.f32.mrf.mxu2  ;;  %v10653_v20 = vor.u32 %v4496_v53, %v4495_v25 }
 0x3bc   : > { %v10643_v59 = vadd.f32 %v10504_v33, %v5520_v32  ;;  %v4683_v42 = vadd.f32 %v10486_v62, %v4305_v5  ;;  %v4869_v49 = vsel %vm525_vm3, %v10572_v50, %v10640_v48  ;;  %v4081_v8 = vor.u32 %v4079_v45, %v10605_v21  ;;  %v5809_v50 = vld [vmem:[#allocation2 + $0x91] sm:$0xff] }
 0x3bd   : > { %v7052_v51 = vpack.c.bf16 %v6088_v24, %v6087_v4  ;;  %v3668_v31 = vadd.f32 %v3610_v63, %v11971_v22  ;;  %v4498_v62 = vsel %vm4398_vm7, %v10585_v27, %v10653_v20  ;;  %v5865_v4 = vmax.f32 %v5637_v47, %v5809_v50 }
 0x3be   : > { %v5640_v28 = vmax.f32 %v10643_v59, 0.0  ;;  %v5173_v10 = vadd.f32 %v5061_v17, %v4683_v42  ;;  %v3326_v17 = vsel %vm3283_vm8, %v3323_v46, %v3325_v19  ;;  %v4086_v25 = vsel %vm1080_vm5, %v4081_v8, %v10673_v7 }
 0x3bf   : > { %7188 = vst [vmem:[%s10091_s29 + $0x40] sm:$0xff] %v7052_v51   ;;  %v10657_v56 = vpop.f32.mrf.mxu3  ;;  %v5921_v13 = vld [vmem:[#allocation2 + $0x9e] sm:$0xff]  ;;  %v11977_v45 = vshll.u32 %v8907_v44, 16 }
 0x3c0   : > { %5698 = vst [vmem:[#allocation2 + $0xa8] sm:$0xff] %v5640_v28  ;;  %v5463_v61 = vmul.f32 %v5299_v37, %v5173_v10  ;;  %v5977_v34 = vld [vmem:[#allocation2 + $0x9f] sm:$0xff] }
 0x3c1   : > { %v5066_v29 = vpop.f32.mrf.mxu0  ;;  %v5810_v21 = vld [vmem:[#allocation2 + $0x99] sm:$0xff]  ;;  %v6033_v6 = vmax.f32 %v5921_v13, %v5977_v34  ;;  %v4500_v16 = vrot.slane %v11977_v45, 2  ;;  %v5307_v34 = vpop.permute.xlu2 %5306 }
 0x3c2   : > { %v3502_v38 = vpop.f32.mrf.mxu1  ;;  %v5521_v27 = vadd.f32 %v5463_v61, %v3667_v1  ;;  %v5303_v1 = vpop.permute.xlu1 %5302  ;;  %v5866_v42 = vmax.f32 %v5638_v41, %v5810_v21 }
 0x3c3   : > { %v3611_v55 = vadd.f32 %v3502_v38, %v11972_v40  ;;  %v4307_v11 = vpop.f32.mrf.mxu2  ;;  %v6089_v2 = vmax.f32 %v5865_v4, %v6033_v6 }
 0x3c4   : > { %6821 = vmatmul.msk.bf16.gmra.mxu0 %vm795_vm2, %v4869_v49  ;;  %v10678_v54 = vadd.f32 %v10504_v33, %v5521_v27  ;;  %v4685_v43 = vadd.f32 %v10521_v14, %v4307_v11  ;;  %6793 = vmatmul.msk.bf16.gmra.mxu3 %vm795_vm2, %v4498_v62  ;;  %v10705_v62 = vld [vmem:[%s7725_s28 + $0xb8] sm:$0xff]  ;;  %v11978_v49 = vld [vmem:[#allocation96_spill] sm:$0xff] }
 0x3c5   : > { %v3669_v46 = vadd.f32 %v3611_v55, %v8897_v26  ;;  %6615 = vmatmul.msk.bf16.gmra.mxu1 %vm795_vm2, %v3326_v17  ;;  %v11973_v26 = vld [vmem:[#allocation94_spill] sm:$0xff]  ;;  %v10716_v11 = vld [vmem:[%s7725_s28 + $0xbc] sm:$0xff] }
 0x3c6   : > { %v5641_v53 = vmax.f32 %v10678_v54, 0.0  ;;  %v5174_v30 = vadd.f32 %v5063_v0, %v4685_v43  ;;  %v11974_v32 = vshrl.u32 %v11973_v26, 16  ;;  %v11975_v63 = vshll.u32 %v11973_v26, 16 }
 0x3c7   : > { %v5922_v14 = vld [vmem:[#allocation2 + $0xa6] sm:$0xff]  ;;  %v10693_v51 = vpop.f32.mrf.mxu3  ;;  %v11976_v0 = vshrl.u32 %v8907_v44, 16  ;;  %v11979_v44 = vld [vmem:[#allocation99_spill] sm:$0xff]  ;;  %v3327_v50 = vrot.slane %v10716_v11, 3  ;;  %v4091_v43 = vshll.u32 %v10705_v62, 16 }
 0x3c8   : > { %v5978_v24 = vld [vmem:[#allocation2 + $0xa7] sm:$0xff]  ;;  %v4870_v35 = vrot.slane %v11974_v32, 3  ;;  %v4871_v5 = vrot.slane %v11975_v63, 4  ;;  %5699 = vst [vmem:[#allocation2 + $0xb0] sm:$0xff] %v5641_v53  ;;  %v5464_v36 = vmul.f32 %v5303_v1, %v5174_v30  ;;  %6762 = vmatmul.msk.bf16.gmra.mxu2 %vm795_vm2, %v4086_v25 }
 0x3c9   : > { %v6034_v22 = vmax.f32 %v5922_v14, %v5978_v24  ;;  %v5068_v47 = vpop.f32.mrf.mxu0  ;;  %v4499_v37 = vrot.slane %v11976_v0, 1  ;;  %v10741_v26 = vrot.slane %v4091_v43, 1  ;;  %v11980_v32 = vld [vmem:[#allocation97_spill] sm:$0xff] }
 0x3ca   : > { %v3504_v10 = vpop.f32.mrf.mxu1  ;;  %v5522_v61 = vadd.f32 %v5464_v36, %v3668_v31  ;;  %v10708_v8 = vor.u32 %v4871_v5, %v4870_v35  ;;  %v4087_v31 = vshrl.u32 %v10637_v23, 16 }
 0x3cb   : > { %v6090_v41 = vmax.f32 %v5866_v42, %v6034_v22  ;;  %v3612_v38 = vadd.f32 %v3504_v10, %v11978_v49  ;;  %v4310_v17 = vpop.f32.mrf.mxu2  ;;  %v10721_v21 = vor.u32 %v4500_v16, %v4499_v37 }
 0x3cc   : > { %v10711_v40 = vadd.f32 %v10504_v33, %v5522_v61  ;;  %v4688_v55 = vadd.f32 %v10557_v15, %v4310_v17  ;;  %v4873_v23 = vsel %vm525_vm3, %v10640_v48, %v10708_v8  ;;  %v4089_v24 = vor.u32 %v4087_v31, %v10673_v7  ;;  %v5811_v48 = vld [vmem:[#allocation2 + $0xa1] sm:$0xff] }
 0x3cd   : > { %v7057_v27 = vpack.c.bf16 %v6090_v41, %v6089_v2  ;;  %v3670_v13 = vadd.f32 %v3612_v38, %v11979_v44  ;;  %v4502_v15 = vsel %vm4398_vm7, %v10653_v20, %v10721_v21  ;;  %v5867_v16 = vmax.f32 %v5639_v39, %v5811_v48 }
 0x3ce   : > { %v5642_v1 = vmax.f32 %v10711_v40, 0.0  ;;  %v5175_v25 = vadd.f32 %v5066_v29, %v4688_v55  ;;  %v3328_v29 = vsel %vm3283_vm8, %v3325_v19, %v3327_v50  ;;  %v4094_v36 = vsel %vm1080_vm5, %v4089_v24, %v10741_v26 }
 0x3cf   : > { %7189 = vst [vmem:[%s10091_s29 + $0x48] sm:$0xff] %v7057_v27   ;;  %v10725_v6 = vpop.f32.mrf.mxu3  ;;  %v5923_v63 = vld [vmem:[#allocation2 + $0xae] sm:$0xff] }
 0x3d0   : > { %5700 = vst [vmem:[#allocation2 + $0xb8] sm:$0xff] %v5642_v1  ;;  %v5465_v30 = vmul.f32 %v5307_v34, %v5175_v25  ;;  %v5979_v5 = vld [vmem:[#allocation2 + $0xaf] sm:$0xff]  ;;  %v10773_v25 = vld [vmem:[%s7725_s28 + $0xc0] sm:$0xff] }
 0x3d1   : > { %v5071_v4 = vpop.f32.mrf.mxu0  ;;  %v5812_v7 = vld [vmem:[#allocation2 + $0xa9] sm:$0xff]  ;;  %v6035_v0 = vmax.f32 %v5923_v63, %v5979_v5  ;;  %v5315_v5 = vpop.permute.xlu1 %5314 }
 0x3d2   : > { %v3507_v14 = vpop.f32.mrf.mxu1  ;;  %v5523_v20 = vadd.f32 %v5465_v30, %v3669_v46  ;;  %v5311_v46 = vpop.permute.xlu0 %5310  ;;  %v5868_v17 = vmax.f32 %v5640_v28, %v5812_v7  ;;  %v11987_v30 = vld [vmem:[#allocation100_spill] sm:$0xff] }
 0x3d3   : > { %v3613_v35 = vadd.f32 %v3507_v14, %v11980_v32  ;;  %v4312_v42 = vpop.f32.mrf.mxu2  ;;  %v6091_v59 = vmax.f32 %v5867_v16, %v6035_v0 }
 0x3d4   : > { %6822 = vmatmul.msk.bf16.gmra.mxu0 %vm795_vm2, %v4873_v23  ;;  %v10746_v22 = vadd.f32 %v10504_v33, %v5523_v20  ;;  %v4690_v3 = vadd.f32 %v10589_v12, %v4312_v42  ;;  %6794 = vmatmul.msk.bf16.gmra.mxu3 %vm795_vm2, %v4502_v15  ;;  %v10784_v42 = vld [vmem:[%s7725_s28 + $0xc4] sm:$0xff] }
 0x3d5   : > { %v3671_v19 = vadd.f32 %v3613_v35, %v8946_v18  ;;  %6616 = vmatmul.msk.bf16.gmra.mxu1 %vm795_vm2, %v3328_v29  ;;  %v11981_v18 = vld [vmem:[#allocation98_spill] sm:$0xff]  ;;  %v11988_v35 = vld [vmem:[#allocation104_spill] sm:$0xff]  ;;  %v3329_v48 = vrot.slane %v10784_v42, 3 }
 0x3d6   : > { %v5643_v37 = vmax.f32 %v10746_v22, 0.0  ;;  %v5176_v45 = vadd.f32 %v5068_v47, %v4690_v3  ;;  %v11982_v2 = vshrl.u32 %v11981_v18, 16  ;;  %v11983_v61 = vshll.u32 %v11981_v18, 16  ;;  %v11984_v47 = vld [vmem:[#allocation102_spill] sm:$0xff] }
 0x3d7   : > { %v5924_v12 = vld [vmem:[#allocation2 + $0xb6] sm:$0xff]  ;;  %v10761_v38 = vpop.f32.mrf.mxu3  ;;  %v11985_v55 = vshrl.u32 %v11984_v47, 16  ;;  %v11986_v34 = vshll.u32 %v11984_v47, 16  ;;  %v4099_v3 = vshll.u32 %v10773_v25, 16 }
 0x3d8   : > { %v5980_v10 = vld [vmem:[#allocation2 + $0xb7] sm:$0xff]  ;;  %v4874_v41 = vrot.slane %v11982_v2, 3  ;;  %v4875_v49 = vrot.slane %v11983_v61, 4  ;;  %5701 = vst [vmem:[#allocation2 + $0xc0] sm:$0xff] %v5643_v37  ;;  %v5466_v57 = vmul.f32 %v5311_v46, %v5176_v45  ;;  %6763 = vmatmul.msk.bf16.gmra.mxu2 %vm795_vm2, %v4094_v36  ;;  %v11989_v2 = vld [vmem:[#allocation101_spill] sm:$0xff] }
 0x3d9   : > { %v6036_v27 = vmax.f32 %v5924_v12, %v5980_v10  ;;  %v5073_v39 = vpop.f32.mrf.mxu0  ;;  %v4503_v44 = vrot.slane %v11985_v55, 1  ;;  %v4504_v31 = vrot.slane %v11986_v34, 2  ;;  %v10809_v18 = vrot.slane %v4099_v3, 1 }
 0x3da   : > { %v3509_v43 = vpop.f32.mrf.mxu1  ;;  %v5524_v15 = vadd.f32 %v5466_v57, %v3670_v13  ;;  %v10776_v29 = vor.u32 %v4875_v49, %v4874_v41  ;;  %v4095_v13 = vshrl.u32 %v10705_v62, 16  ;;  %v11990_v57 = vld [vmem:[#allocation106_spill] sm:$0xff] }
 0x3db   : > { %v6092_v28 = vmax.f32 %v5868_v17, %v6036_v27  ;;  %v3614_v23 = vadd.f32 %v3509_v43, %v11987_v30  ;;  %v4315_v14 = vpop.f32.mrf.mxu2  ;;  %v10789_v7 = vor.u32 %v4504_v31, %v4503_v44 }
 0x3dc   : > { %v10779_v20 = vadd.f32 %v10504_v33, %v5524_v15  ;;  %v4693_v32 = vadd.f32 %v10625_v58, %v4315_v14  ;;  %v4877_v62 = vsel %vm525_vm3, %v10708_v8, %v10776_v29  ;;  %v4097_v10 = vor.u32 %v4095_v13, %v10741_v26  ;;  %v5813_v8 = vld [vmem:[#allocation2 + $0xb1] sm:$0xff] }
 0x3dd   : > { %v7062_v24 = vpack.c.bf16 %v6092_v28, %v6091_v59  ;;  %v3672_v63 = vadd.f32 %v3614_v23, %v11988_v35  ;;  %v4506_v58 = vsel %vm4398_vm7, %v10721_v21, %v10789_v7  ;;  %v5869_v31 = vmax.f32 %v5641_v53, %v5813_v8  ;;  %v11991_v59 = vld [vmem:[#allocation103_spill] sm:$0xff]  ;;  %v10852_v8 = vld [vmem:[%s7725_s28 + $0xcc] sm:$0xff] }
 0x3de   : > { %v5644_v46 = vmax.f32 %v10779_v20, 0.0  ;;  %v5177_v36 = vadd.f32 %v5071_v4, %v4693_v32  ;;  %v3330_v4 = vsel %vm3283_vm8, %v3327_v50, %v3329_v48  ;;  %v4102_v47 = vsel %vm1080_vm5, %v4097_v10, %v10809_v18 }
 0x3df   : > { %7190 = vst [vmem:[%s10091_s29 + $0x50] sm:$0xff] %v7062_v24   ;;  %v10793_v0 = vpop.f32.mrf.mxu3  ;;  %v5925_v61 = vld [vmem:[#allocation2 + $0xbe] sm:$0xff]  ;;  %v11992_v28 = vshrl.u32 %v11991_v59, 16  ;;  %v11993_v30 = vshll.u32 %v11991_v59, 16 }
 0x3e0   : > { %5702 = vst [vmem:[#allocation2 + $0xc8] sm:$0xff] %v5644_v46  ;;  %v5467_v45 = vmul.f32 %v5315_v5, %v5177_v36  ;;  %v5981_v49 = vld [vmem:[#allocation2 + $0xbf] sm:$0xff] }
 0x3e1   : > { %v5076_v16 = vpop.f32.mrf.mxu0  ;;  %v5814_v26 = vld [vmem:[#allocation2 + $0xb9] sm:$0xff]  ;;  %v6037_v55 = vmax.f32 %v5925_v61, %v5981_v49  ;;  %v4878_v15 = vrot.slane %v11992_v28, 3  ;;  %v4879_v23 = vrot.slane %v11993_v30, 4 }
 0x3e2   : > { %v3512_v12 = vpop.f32.mrf.mxu1  ;;  %v5525_v21 = vadd.f32 %v5467_v45, %v3671_v19  ;;  %v5319_v19 = vpop.permute.xlu2 %5318  ;;  %v5870_v24 = vmax.f32 %v5642_v1, %v5814_v26  ;;  %v11998_v61 = vld [vmem:[#allocation110_spill] sm:$0xff]  ;;  %v11999_v28 = vld [vmem:[#allocation107_spill] sm:$0xff] }
 0x3e3   : > { %v3615_v41 = vadd.f32 %v3512_v12, %v11989_v2  ;;  %v4317_v17 = vpop.f32.mrf.mxu2  ;;  %v6093_v40 = vmax.f32 %v5869_v31, %v6037_v55  ;;  %v10844_v10 = vor.u32 %v4879_v23, %v4878_v15 }
 0x3e4   : > { %6823 = vmatmul.msk.bf16.gmra.mxu0 %vm795_vm2, %v4877_v62  ;;  %v10814_v27 = vadd.f32 %v10504_v33, %v5525_v21  ;;  %v4695_v11 = vadd.f32 %v10657_v56, %v4317_v17  ;;  %6795 = vmatmul.msk.bf16.gmra.mxu3 %vm795_vm2, %v4506_v58  ;;  %v10841_v58 = vld [vmem:[%s7725_s28 + $0xc8] sm:$0xff]  ;;  %v5323_v17 = vpop.permute.xlu0 %5322 }
 0x3e5   : > { %v3673_v50 = vadd.f32 %v3615_v41, %v11990_v57  ;;  %6617 = vmatmul.msk.bf16.gmra.mxu1 %vm795_vm2, %v3330_v4  ;;  %v11997_v62 = vld [vmem:[#allocation105_spill] sm:$0xff]  ;;  %v4107_v57 = vshll.u32 %v10841_v58, 16 }
 0x3e6   : > { %v5645_v44 = vmax.f32 %v10814_v27, 0.0  ;;  %v5178_v34 = vadd.f32 %v5073_v39, %v4695_v11  ;;  %v11994_v39 = vld [vmem:[#allocation108_spill] sm:$0xff]  ;;  %v3331_v11 = vrot.slane %v10852_v8, 3 }
 0x3e7   : > { %v5926_v56 = vld [vmem:[#allocation2 + $0xc6] sm:$0xff]  ;;  %v10829_v14 = vpop.f32.mrf.mxu3  ;;  %v11995_v35 = vshrl.u32 %v11994_v39, 16  ;;  %v11996_v13 = vshll.u32 %v11994_v39, 16  ;;  %v10877_v59 = vrot.slane %v4107_v57, 1 }
 0x3e8   : > { %v5982_v43 = vld [vmem:[#allocation2 + $0xc7] sm:$0xff]  ;;  %5703 = vst [vmem:[#allocation2 + $0xd0] sm:$0xff] %v5645_v44  ;;  %v5468_v54 = vmul.f32 %v5319_v19, %v5178_v34  ;;  %6764 = vmatmul.msk.bf16.gmra.mxu2 %vm795_vm2, %v4102_v47 }
 0x3e9   : > { %v6038_v32 = vmax.f32 %v5926_v56, %v5982_v43  ;;  %v5078_v53 = vpop.f32.mrf.mxu0  ;;  %v4507_v5 = vrot.slane %v11995_v35, 1  ;;  %v4508_v3 = vrot.slane %v11996_v13, 2 }
 0x3ea   : > { %v3514_v36 = vpop.f32.mrf.mxu1  ;;  %v5526_v45 = vadd.f32 %v5468_v54, %v3672_v63  ;;  %v4103_v63 = vshrl.u32 %v10773_v25, 16  ;;  %v4881_v25 = vsel %vm525_vm3, %v10776_v29, %v10844_v10  ;;  %v5815_v29 = vld [vmem:[#allocation2 + $0xc1] sm:$0xff] }
 0x3eb   : > { %v6094_v1 = vmax.f32 %v5870_v24, %v6038_v32  ;;  %v3616_v12 = vadd.f32 %v3514_v36, %v11997_v62  ;;  %v4320_v4 = vpop.f32.mrf.mxu2  ;;  %v10857_v26 = vor.u32 %v4508_v3, %v4507_v5  ;;  %v12000_v54 = vld [vmem:[#allocation112_spill] sm:$0xff]  ;;  %v5871_v3 = vmax.f32 %v5643_v37, %v5815_v29 }
 0x3ec   : > { %v10847_v2 = vadd.f32 %v10504_v33, %v5526_v45  ;;  %v4698_v41 = vadd.f32 %v10693_v51, %v4320_v4  ;;  %v4105_v43 = vor.u32 %v4103_v63, %v10809_v18 }
 0x3ed   : > { %v7067_v21 = vpack.c.bf16 %v6094_v1, %v6093_v40  ;;  %v3674_v49 = vadd.f32 %v3616_v12, %v11998_v61  ;;  %v4510_v51 = vsel %vm4398_vm7, %v10789_v7, %v10857_v26  ;;  %v12001_v40 = vld [vmem:[#allocation109_spill] sm:$0xff] }
 0x3ee   : > { %v5646_v19 = vmax.f32 %v10847_v2, 0.0  ;;  %v5179_v47 = vadd.f32 %v5076_v16, %v4698_v41  ;;  %v3332_v16 = vsel %vm3283_vm8, %v3329_v48, %v3331_v11  ;;  %v4110_v39 = vsel %vm1080_vm5, %v4105_v43, %v10877_v59 }
 0x3ef   : > { %7191 = vst [vmem:[%s10091_s29 + $0x58] sm:$0xff] %v7067_v21   ;;  %v10861_v55 = vpop.f32.mrf.mxu3  ;;  %v5927_v30 = vld [vmem:[#allocation2 + $0xce] sm:$0xff]  ;;  %v12002_v1 = vshrl.u32 %v12001_v40, 16  ;;  %v12003_v62 = vshll.u32 %v12001_v40, 16 }
 0x3f0   : > { %5704 = vst [vmem:[#allocation2 + $0xd8] sm:$0xff] %v5646_v19  ;;  %v5469_v34 = vmul.f32 %v5323_v17, %v5179_v47  ;;  %v5983_v23 = vld [vmem:[#allocation2 + $0xcf] sm:$0xff] }
 0x3f1   : > { %v5081_v31 = vpop.f32.mrf.mxu0  ;;  %v5816_v18 = vld [vmem:[#allocation2 + $0xc9] sm:$0xff]  ;;  %v6039_v35 = vmax.f32 %v5927_v30, %v5983_v23  ;;  %v4882_v45 = vrot.slane %v12002_v1, 3  ;;  %v4883_v12 = vrot.slane %v12003_v62, 4 }
 0x3f2   : > { %v3517_v56 = vpop.f32.mrf.mxu1  ;;  %v5527_v7 = vadd.f32 %v5469_v34, %v3673_v50  ;;  %v5327_v50 = vpop.permute.xlu1 %5326  ;;  %v5872_v21 = vmax.f32 %v5644_v46, %v5816_v18  ;;  %v12008_v30 = vld [vmem:[#allocation116_spill] sm:$0xff]  ;;  %v12009_v1 = vld [vmem:[#allocation113_spill] sm:$0xff] }
 0x3f3   : > { %v3617_v15 = vadd.f32 %v3517_v56, %v11999_v28  ;;  %v4322_v24 = vpop.f32.mrf.mxu2  ;;  %v6095_v20 = vmax.f32 %v5871_v3, %v6039_v35  ;;  %v10912_v43 = vor.u32 %v4883_v12, %v4882_v45 }
 0x3f4   : > { %6824 = vmatmul.msk.bf16.gmra.mxu0 %vm795_vm2, %v4881_v25  ;;  %v10882_v32 = vadd.f32 %v10504_v33, %v5527_v7  ;;  %v4700_v42 = vadd.f32 %v10725_v6, %v4322_v24  ;;  %6796 = vmatmul.msk.bf16.gmra.mxu3 %vm795_vm2, %v4510_v51  ;;  %v10909_v51 = vld [vmem:[%s7725_s28 + $0xd0] sm:$0xff]  ;;  %v12007_v25 = vld [vmem:[#allocation111_spill] sm:$0xff] }
 0x3f5   : > { %v3675_v48 = vadd.f32 %v3617_v15, %v12000_v54  ;;  %6618 = vmatmul.msk.bf16.gmra.mxu1 %vm795_vm2, %v3332_v16  ;;  %v10920_v24 = vld [vmem:[%s7725_s28 + $0xd4] sm:$0xff]  ;;  %v4885_v3 = vsel %vm525_vm3, %v10844_v10, %v10912_v43 }
 0x3f6   : > { %v5647_v5 = vmax.f32 %v10882_v32, 0.0  ;;  %v5180_v13 = vadd.f32 %v5078_v53, %v4700_v42  ;;  %v12004_v53 = vld [vmem:[#allocation114_spill] sm:$0xff]  ;;  %v3333_v29 = vrot.slane %v10920_v24, 3  ;;  %v4111_v42 = vshrl.u32 %v10841_v58, 16 }
 0x3f7   : > { %v5928_v6 = vld [vmem:[#allocation2 + $0xd6] sm:$0xff]  ;;  %v10897_v4 = vpop.f32.mrf.mxu3  ;;  %v12005_v61 = vshrl.u32 %v12004_v53, 16  ;;  %v12006_v63 = vshll.u32 %v12004_v53, 16 }
 0x3f8   : > { %v5984_v36 = vld [vmem:[#allocation2 + $0xd7] sm:$0xff]  ;;  %5705 = vst [vmem:[#allocation2 + $0xe0] sm:$0xff] %v5647_v5  ;;  %v5470_v22 = vmul.f32 %v5327_v50, %v5180_v13  ;;  %6765 = vmatmul.msk.bf16.gmra.mxu2 %vm795_vm2, %v4110_v39  ;;  %v5331_v39 = vpop.permute.xlu2 %5330 }
 0x3f9   : > { %v6040_v41 = vmax.f32 %v5928_v6, %v5984_v36  ;;  %v5083_v37 = vpop.f32.mrf.mxu0  ;;  %v4511_v17 = vrot.slane %v12005_v61, 1  ;;  %v4512_v57 = vrot.slane %v12006_v63, 2  ;;  %v4113_v36 = vor.u32 %v4111_v42, %v10877_v59  ;;  %v5817_v10 = vld [vmem:[#allocation2 + $0xd1] sm:$0xff] }
 0x3fa   : > { %v3519_v47 = vpop.f32.mrf.mxu1  ;;  %v5528_v34 = vadd.f32 %v5470_v22, %v3674_v49  ;;  %v4115_v49 = vshll.u32 %v10909_v51, 16  ;;  %v12010_v22 = vld [vmem:[#allocation118_spill] sm:$0xff]  ;;  %v12015_v42 = vshll.u32 %v9103_v60, 16 }
 0x3fb   : > { %v6096_v46 = vmax.f32 %v5872_v21, %v6040_v41  ;;  %v3618_v56 = vadd.f32 %v3519_v47, %v12007_v25  ;;  %v4325_v16 = vpop.f32.mrf.mxu2  ;;  %v10925_v54 = vor.u32 %v4512_v57, %v4511_v17  ;;  %v5873_v57 = vmax.f32 %v5645_v44, %v5817_v10 }
 0x3fc   : > { %v10915_v28 = vadd.f32 %v10504_v33, %v5528_v34  ;;  %v4703_v15 = vadd.f32 %v10761_v38, %v4325_v16  ;;  %v10945_v40 = vrot.slane %v4115_v49, 1  ;;  %v4516_v49 = vrot.slane %v12015_v42, 2 }
 0x3fd   : > { %v7072_v7 = vpack.c.bf16 %v6096_v46, %v6095_v20  ;;  %v3676_v23 = vadd.f32 %v3618_v56, %v12008_v30  ;;  %v4514_v38 = vsel %vm4398_vm7, %v10857_v26, %v10925_v54  ;;  %v12011_v20 = vld [vmem:[#allocation115_spill] sm:$0xff] }
 0x3fe   : > { %v5648_v18 = vmax.f32 %v10915_v28, 0.0  ;;  %v5181_v50 = vadd.f32 %v5081_v31, %v4703_v15  ;;  %v3334_v31 = vsel %vm3283_vm8, %v3331_v11, %v3333_v29  ;;  %v4118_v53 = vsel %vm1080_vm5, %v4113_v36, %v10945_v40 }
 0x3ff   : > { %7192 = vst [vmem:[%s10091_s29 + $0x60] sm:$0xff] %v7072_v7   ;;  %v10929_v35 = vpop.f32.mrf.mxu3  ;;  %v5929_v62 = vld [vmem:[#allocation2 + $0xde] sm:$0xff]  ;;  %v12012_v46 = vshrl.u32 %v12011_v20, 16  ;;  %v12013_v25 = vshll.u32 %v12011_v20, 16 }
 0x400   : > { %5706 = vst [vmem:[#allocation2 + $0xe8] sm:$0xff] %v5648_v18  ;;  %v5471_v13 = vmul.f32 %v5331_v39, %v5181_v50  ;;  %v5985_v12 = vld [vmem:[#allocation2 + $0xdf] sm:$0xff] }
 0x401   : > { %v5086_v58 = vpop.f32.mrf.mxu0  ;;  %v5818_v59 = vld [vmem:[#allocation2 + $0xd9] sm:$0xff]  ;;  %v6041_v61 = vmax.f32 %v5929_v62, %v5985_v12  ;;  %v4886_v34 = vrot.slane %v12012_v46, 3  ;;  %v4887_v56 = vrot.slane %v12013_v25, 4 }
 0x402   : > { %v3522_v6 = vpop.f32.mrf.mxu1  ;;  %v5529_v26 = vadd.f32 %v5471_v13, %v3675_v48  ;;  %v5335_v48 = vpop.permute.xlu0 %5334  ;;  %v5874_v7 = vmax.f32 %v5646_v19, %v5818_v59  ;;  %v10977_v39 = vld [vmem:[%s7725_s28 + $0xd8] sm:$0xff]  ;;  %v12016_v13 = vld [vmem:[#allocation117_spill] sm:$0xff] }
 0x403   : > { %v3619_v45 = vadd.f32 %v3522_v6, %v12009_v1  ;;  %v4327_v21 = vpop.f32.mrf.mxu2  ;;  %v6097_v2 = vmax.f32 %v5873_v57, %v6041_v61  ;;  %v10988_v62 = vld [vmem:[%s7725_s28 + $0xdc] sm:$0xff]  ;;  %v5339_v59 = vpop.permute.xlu1 %5338 }
 0x404   : > { %6825 = vmatmul.msk.bf16.gmra.mxu0 %vm795_vm2, %v4885_v3  ;;  %v10950_v41 = vadd.f32 %v10504_v33, %v5529_v26  ;;  %v4705_v8 = vadd.f32 %v10793_v0, %v4327_v21  ;;  %6797 = vmatmul.msk.bf16.gmra.mxu3 %vm795_vm2, %v4514_v38  ;;  %v3335_v12 = vrot.slane %v10988_v62, 3  ;;  %v4119_v21 = vshrl.u32 %v10909_v51, 16 }
 0x405   : > { %v3677_v11 = vadd.f32 %v3619_v45, %v12010_v22  ;;  %6619 = vmatmul.msk.bf16.gmra.mxu1 %vm795_vm2, %v3334_v31  ;;  %v10980_v31 = vor.u32 %v4887_v56, %v4886_v34 }
 0x406   : > { %v5649_v17 = vmax.f32 %v10950_v41, 0.0  ;;  %v5182_v63 = vadd.f32 %v5083_v37, %v4705_v8  ;;  %v12014_v37 = vshrl.u32 %v9103_v60, 16  ;;  %v12017_v60 = vld [vmem:[#allocation121_spill] sm:$0xff]  ;;  %v4121_v57 = vor.u32 %v4119_v21, %v10945_v40  ;;  %v3703_v40 = vld [vmem:[%s7725_s28 + $0xe8] sm:$0x3]  ;;  %v11042_v21 = vld [vmem:[%s7725_s28 + $0xe0] sm:$0xff] }
 0x407   : > { %v5930_v0 = vld [vmem:[#allocation2 + $0xe6] sm:$0xff]  ;;  %v10965_v16 = vpop.f32.mrf.mxu3  ;;  %v4889_v61 = vsel %vm525_vm3, %v10912_v43, %v10980_v31  ;;  %v4396_v42 = vunpack.c.l.b16 %v3703_v40 }
 0x408   : > { %v5986_v47 = vld [vmem:[#allocation2 + $0xe7] sm:$0xff]  ;;  %5707 = vst [vmem:[#allocation2 + $0xf0] sm:$0xff] %v5649_v17  ;;  %v5472_v27 = vmul.f32 %v5335_v48, %v5182_v63  ;;  %6766 = vmatmul.msk.bf16.gmra.mxu2 %vm795_vm2, %v4118_v53  ;;  %v4515_v30 = vrot.slane %v12014_v37, 1 }
 0x409   : > { %v6042_v15 = vmax.f32 %v5930_v0, %v5986_v47  ;;  %v5088_v44 = vpop.f32.mrf.mxu0  ;;  %v12018_v47 = vld [vmem:[#allocation119_spill] sm:$0xff] }
 0x40a   : > { %v3524_v50 = vpop.f32.mrf.mxu1  ;;  %v5530_v38 = vadd.f32 %v5472_v27, %v3676_v23  ;;  %v4123_v23 = vshll.u32 %v10977_v39, 16  ;;  %v10993_v10 = vor.u32 %v4516_v49, %v4515_v30  ;;  %v5819_v43 = vld [vmem:[#allocation2 + $0xe1] sm:$0xff]  ;;  %v5343_v49 = vpop.permute.xlu2 %5342 }
 0x40b   : > { %v6098_v19 = vmax.f32 %v5874_v7, %v6042_v15  ;;  %v3620_v3 = vadd.f32 %v3524_v50, %v12016_v13  ;;  %v4330_v6 = vpop.f32.mrf.mxu2  ;;  %v12019_v7 = vld [vmem:[#allocation123_spill] sm:$0xff] }
 0x40c   : > { %v10983_v26 = vadd.f32 %v10504_v33, %v5530_v38  ;;  %v4708_v1 = vadd.f32 %v10829_v14, %v4330_v6  ;;  %v4518_v14 = vsel %vm4398_vm7, %v10925_v54, %v10993_v10  ;;  %v11013_v54 = vrot.slane %v4123_v23, 1 }
 0x40d   : > { %v7077_v36 = vpack.c.bf16 %v6098_v19, %v6097_v2  ;;  %v3678_v45 = vadd.f32 %v3620_v3, %v12017_v60  ;;  %v12020_v19 = vld [vmem:[#allocation120_spill] sm:$0xff]  ;;  %v4397_v23 = vpack.c.b16 %v4396_v42, %v4396_v42 }
 0x40e   : > { %v5650_v8 = vmax.f32 %v10983_v26, 0.0  ;;  %v5183_v22 = vadd.f32 %v5086_v58, %v4708_v1  ;;  %v3336_v58 = vsel %vm3283_vm8, %v3333_v29, %v3335_v12  ;;  %v4126_v15 = vsel %vm1080_vm5, %v4121_v57, %v11013_v54 }
 0x40f   : > { %7193 = vst [vmem:[%s10091_s29 + $0x68] sm:$0xff] %v7077_v36   ;;  %v10997_v48 = vpop.f32.mrf.mxu3  ;;  %v5931_v46 = vld [vmem:[#allocation2 + $0xee] sm:$0xff]  ;;  %v12021_v38 = vshrl.u32 %v12020_v19, 16  ;;  %v12022_v3 = vshll.u32 %v12020_v19, 16  ;;  %v4523_v57 = vshll.u32 %v4397_v23, 16  ;;  %v12025_v19 = vld [vmem:[#allocation124_spill] sm:$0xff] }
 0x410   : > { %5708 = vst [vmem:[#allocation2 + $0xf8] sm:$0xff] %v5650_v8  ;;  %v5473_v53 = vmul.f32 %v5339_v59, %v5183_v22  ;;  %v5987_v34 = vld [vmem:[#allocation2 + $0xef] sm:$0xff] }
 0x411   : > { %v5091_v51 = vpop.f32.mrf.mxu0  ;;  %v6043_v27 = vmax.f32 %v5931_v46, %v5987_v34  ;;  %v4890_v13 = vrot.slane %v12021_v38, 3  ;;  %v4891_v6 = vrot.slane %v12022_v3, 4  ;;  %v12024_v46 = vld [vmem:[#allocation126_spill] sm:$0xff] }
 0x412   : > { %v3527_v63 = vpop.f32.mrf.mxu1  ;;  %v5531_v0 = vadd.f32 %v5473_v53, %v3677_v11  ;;  %v5820_v11 = vld [vmem:[#allocation2 + $0xe9] sm:$0xff]  ;;  %v12023_v53 = vld [vmem:[#allocation122_spill] sm:$0xff] }
 0x413   : > { %v3621_v20 = vadd.f32 %v3527_v63, %v12018_v47  ;;  %v4332_v25 = vpop.f32.mrf.mxu2  ;;  %v5876_v1 = vmax.f32 %v5648_v18, %v5820_v11  ;;  %v11046_v63 = vor.u32 %v4891_v6, %v4890_v13  ;;  %v5347_v11 = vpop.permute.xlu0 %5346 }
 0x414   : > { %6826 = vmatmul.msk.bf16.gmra.mxu0 %vm795_vm2, %v4889_v61  ;;  %v11018_v56 = vadd.f32 %v10504_v33, %v5531_v0  ;;  %v4710_v24 = vadd.f32 %v10861_v55, %v4332_v25  ;;  %6798 = vmatmul.msk.bf16.gmra.mxu3 %vm795_vm2, %v4518_v14  ;;  %v5875_v55 = vmax.f32 %v5647_v5, %v5819_v43  ;;  %v4127_v61 = vshrl.u32 %v10977_v39, 16  ;;  %v11054_v25 = vld [vmem:[%s7725_s28 + $0xe4] sm:$0xff] }
 0x415   : > { %v3679_v29 = vadd.f32 %v3621_v20, %v12019_v7  ;;  %6620 = vmatmul.msk.bf16.gmra.mxu1 %vm795_vm2, %v3336_v58  ;;  %v4520_v58 = vshrl.u32 %v4397_v23, 16  ;;  %v4131_v43 = vshll.u32 %v11042_v21, 16  ;;  %v4525_v39 = vrot.slane %v4523_v57, 2 }
 0x416   : > { %v5651_v37 = vmax.f32 %v11018_v56, 0.0  ;;  %v5184_v30 = vadd.f32 %v5088_v44, %v4710_v24  ;;  %v6099_v22 = vmax.f32 %v5875_v55, %v6043_v27  ;;  %v4129_v55 = vor.u32 %v4127_v61, %v11013_v54  ;;  %v12026_v54 = vld [vmem:[#allocation7_spill] sm:$0xff] }
 0x417   : > { %v5932_v50 = vld [vmem:[#allocation2 + $0xf6] sm:$0xff]  ;;  %v11034_v36 = vpop.f32.mrf.mxu3  ;;  %v4522_v24 = vrot.slane %v4520_v58, 1 }
 0x418   : > { %v5988_v2 = vld [vmem:[#allocation2 + $0xf7] sm:$0xff]  ;;  %5709 = vst [vmem:[#allocation2 + $0x100] sm:$0xff] %v5651_v37  ;;  %v5474_v32 = vmul.f32 %v5343_v49, %v5184_v30  ;;  %6767 = vmatmul.msk.bf16.gmra.mxu2 %vm795_vm2, %v4126_v15  ;;  %v4893_v30 = vsel %vm525_vm3, %v10980_v31, %v11046_v63  ;;  %v11073_v49 = vrot.slane %v4131_v43, 1 }
 0x419   : > { %v6044_v44 = vmax.f32 %v5932_v50, %v5988_v2  ;;  %v5093_v5 = vpop.f32.mrf.mxu0  ;;  %v5821_v6 = vld [vmem:[#allocation2 + $0xf1] sm:$0xff] }
 0x41a   : > { %v3529_v60 = vpop.f32.mrf.mxu1  ;;  %v5532_v14 = vadd.f32 %v5474_v32, %v3678_v45  ;;  %v3337_v45 = vrot.slane %v11054_v25, 3 }
 0x41b   : > { %v6100_v59 = vmax.f32 %v5876_v1, %v6044_v44  ;;  %v3622_v28 = vadd.f32 %v3529_v60, %v12023_v53  ;;  %v4335_v18 = vpop.f32.mrf.mxu2  ;;  %v11080_v1 = vld [vmem:[%s7710_s22] ss:$0 sm:$0xff]  ;;  %v12027_v53 = vld [vmem:[#allocation125_spill] sm:$0xff] }
 0x41c   : > { %v11049_v47 = vadd.f32 %v10504_v33, %v5532_v14  ;;  %v4713_v20 = vadd.f32 %v10897_v4, %v4335_v18  ;;  %v4526_v33 = vor.u32 %v4525_v39, %v4522_v24  ;;  %v12029_v61 = vshll.u32 %v12027_v53, 16 }
 0x41d   : > { %v7082_v0 = vpack.c.bf16 %v6100_v59, %v6099_v22  ;;  %v3680_v34 = vadd.f32 %v3622_v28, %v12024_v46  ;;  %v5351_v22 = vpop.permute.xlu1 %5350  ;;  %v12028_v28 = vshrl.u32 %v12027_v53, 16  ;;  %v11105_v46 = vld [vmem:[%s7725_s28 + $0xe8] sm:$0xff] }
 0x41e   : > { %v5652_v7 = vmax.f32 %v11049_v47, 0.0  ;;  %v5185_v40 = vadd.f32 %v5091_v51, %v4713_v20  ;;  %v3338_v51 = vsel %vm3283_vm8, %v3335_v12, %v3337_v45  ;;  %v4527_v50 = vsel %vm4398_vm7, %v10993_v10, %v4526_v33 }
 0x41f   : > { %7194 = vst [vmem:[%s10091_s29 + $0x70] sm:$0xff] %v7082_v0   ;;  %v11060_v15 = vpop.f32.mrf.mxu3  ;;  %v5933_v13 = vld [vmem:[#allocation2 + $0xfe] sm:$0xff]  ;;  %v4894_v18 = vrot.slane %v12028_v28, 3  ;;  %v4895_v58 = vrot.slane %v12029_v61, 4 }
 0x420   : > { %5710 = vst [vmem:[#allocation2 + $0x108] sm:$0xff] %v5652_v7  ;;  %v5475_v4 = vmul.f32 %v5347_v11, %v5185_v40  ;;  %v5989_v3 = vld [vmem:[#allocation2 + $0xff] sm:$0xff] }
 0x421   : > { %v5096_v27 = vpop.f32.mrf.mxu0  ;;  %v5822_v10 = vld [vmem:[#allocation2 + $0xf9] sm:$0xff]  ;;  %v6045_v32 = vmax.f32 %v5933_v13, %v5989_v3  ;;  %v11110_v33 = vor.u32 %v4895_v58, %v4894_v18 }
 0x422   : > { %v3532_v42 = vpop.f32.mrf.mxu1  ;;  %v5533_v2 = vadd.f32 %v5475_v4, %v3679_v29  ;;  %v4134_v29 = vsel %vm1080_vm5, %v4129_v55, %v11073_v49  ;;  %v5878_v57 = vmax.f32 %v5650_v8, %v5822_v10  ;;  %v12030_v8 = vld [vmem:[#allocation127_spill] sm:$0xff]  ;;  %v12031_v55 = vld [vmem:[#allocation21_spill] sm:$0xff] }
 0x423   : > { %v3623_v38 = vadd.f32 %v3532_v42, %v12025_v19  ;;  %v4337_v31 = vpop.f32.mrf.mxu2 }
 0x424   : > { %6827 = vmatmul.msk.bf16.gmra.mxu0 %vm795_vm2, %v4893_v30  ;;  %v11083_v62 = vadd.f32 %v11080_v1, %v5533_v2  ;;  %v4715_v12 = vadd.f32 %v10929_v35, %v4337_v31  ;;  %6799 = vmatmul.msk.bf16.gmra.mxu3 %vm795_vm2, %v4527_v50  ;;  %v5877_v35 = vmax.f32 %v5649_v17, %v5821_v6  ;;  %v4772_v17 = vld [vmem:[%s7725_s28 + $0xf4] sm:$0xf]  ;;  %v11118_v2 = vld [vmem:[%s7725_s28 + $0xec] sm:$0xff]  ;;  %v5355_v31 = vpop.permute.xlu2 %5354 }
 0x425   : > { %v3681_v44 = vadd.f32 %v3623_v38, %v12026_v54  ;;  %6621 = vmatmul.msk.bf16.gmra.mxu1 %vm795_vm2, %v3338_v51  ;;  %v4776_v4 = vunpack.c.l.b16 %v4772_v17  ;;  %v3339_v19 = vrot.slane %v11118_v2, 3  ;;  %v4139_v38 = vshll.u32 %v11105_v46, 16 }
 0x426   : > { %v5653_v60 = vmax.f32 %v11083_v62, 0.0  ;;  %v5186_v23 = vadd.f32 %v5093_v5, %v4715_v12  ;;  %v6101_v24 = vmax.f32 %v5877_v35, %v6045_v32  ;;  %v4897_v54 = vsel %vm525_vm3, %v11046_v63, %v11110_v33  ;;  %v3764_v35 = vld [vmem:[%s7725_s28 + $0xf0] sm:$0x1] }
 0x427   : > { %v5934_v59 = vld [vmem:[#allocation2 + $0x106] sm:$0xff]  ;;  %v11107_v43 = vpop.f32.mrf.mxu3  ;;  %v4777_v6 = vpack.c.b16 %v4776_v4, %v4776_v4 }
 0x428   : > { %v5990_v14 = vld [vmem:[#allocation2 + $0x107] sm:$0xff]  ;;  %5711 = vst [vmem:[#allocation2 + $0x110] sm:$0xff] %v5653_v60  ;;  %v5476_v5 = vmul.f32 %v5351_v22, %v5186_v23  ;;  %6768 = vmatmul.msk.bf16.gmra.mxu2 %vm795_vm2, %v4134_v29  ;;  %v4141_v29 = vrot.slane %v4139_v38, 1 }
 0x429   : > { %v6046_v0 = vmax.f32 %v5934_v59, %v5990_v14  ;;  %v5098_v41 = vpop.f32.mrf.mxu0  ;;  %v12032_v23 = vld [vmem:[#allocation9_spill] sm:$0xff]  ;;  %v4899_v63 = vshrl.u32 %v4777_v6, 16  ;;  %v4902_v28 = vshll.u32 %v4777_v6, 16  ;;  %v5823_v61 = vld [vmem:[#allocation2 + $0x101] sm:$0xff] }
 0x42a   : > { %v3534_v20 = vpop.f32.mrf.mxu1  ;;  %v5534_v26 = vadd.f32 %v5476_v5, %v3680_v34  ;;  %v4135_v34 = vshrl.u32 %v11042_v21, 16  ;;  %v3340_v21 = vsel %vm3283_vm8, %v3337_v45, %v3339_v19  ;;  %v12034_v6 = vld [vmem:[#allocation27_spill] sm:$0xff] }
 0x42b   : > { %v6102_v39 = vmax.f32 %v5878_v57, %v6046_v0  ;;  %v3624_v40 = vadd.f32 %v3534_v20, %v12030_v8  ;;  %v4340_v11 = vpop.f32.mrf.mxu2  ;;  %v3884_v57 = vunpack.c.l.b16 %v3764_v35  ;;  %v5879_v20 = vmax.f32 %v5651_v37, %v5823_v61  ;;  %v12036_v61 = vld [vmem:[#allocation24_spill] sm:$0xff] }
 0x42c   : > { %v11113_v42 = vadd.f32 %v11080_v1, %v5534_v26  ;;  %v4718_v51 = vadd.f32 %v10965_v16, %v4340_v11  ;;  %v4901_v8 = vrot.slane %v4899_v63, 3 }
 0x42d   : > { %v7087_v30 = vpack.c.bf16 %v6102_v39, %v6101_v24  ;;  %v3682_v50 = vadd.f32 %v3624_v40, %v12031_v55  ;;  %v5359_v24 = vpop.permute.xlu0 %5358  ;;  %v3914_v56 = vpack.c.b16 %v3884_v57, %v3884_v57  ;;  %v12033_v55 = vld [vmem:[#allocation8_spill] sm:$0xff] }
 0x42e   : > { %v5654_v13 = vmax.f32 %v11113_v42, 0.0  ;;  %v5187_v3 = vadd.f32 %v5096_v27, %v4718_v51  ;;  %v4137_v27 = vor.u32 %v4135_v34, %v11073_v49 }
 0x42f   : > { %7195 = vst [vmem:[%s10091_s29 + $0x78] sm:$0xff] %v7087_v30   ;;  %v5935_v59 = vld [vmem:[#allocation2 + $0x10e] sm:$0xff]  ;;  %v11139_v18 = vpop.f32.mrf.mxu3 }
 0x430   : > { %5712 = vst [vmem:[#allocation2 + $0x118] sm:$0xff] %v5654_v13  ;;  %v5477_v16 = vmul.f32 %v5355_v31, %v5187_v3  ;;  %v5991_v14 = vld [vmem:[#allocation2 + $0x10f] sm:$0xff]  ;;  %v4142_v58 = vsel %vm1080_vm5, %v4137_v27, %v4141_v29  ;;  %v4147_v27 = vshll.u32 %v3914_v56, 16 }
 0x431   : > { %v5101_v12 = vpop.f32.mrf.mxu0  ;;  %v6047_v0 = vmax.f32 %v5935_v59, %v5991_v14 }
 0x432   : > { %v3537_v10 = vpop.f32.mrf.mxu1  ;;  %v5535_v32 = vadd.f32 %v5477_v16, %v3681_v44  ;;  %v5824_v44 = vld [vmem:[#allocation2 + $0x109] sm:$0xff]  ;;  %v4149_v63 = vrot.slane %v4147_v27, 1 }
 0x433   : > { %v3625_v22 = vadd.f32 %v3537_v10, %v12032_v23  ;;  %v4342_v53 = vpop.f32.mrf.mxu2  ;;  %v6103_v37 = vmax.f32 %v5879_v20, %v6047_v0  ;;  %v12040_v27 = vld [vmem:[#allocation128_spill] sm:$0xff] }
 0x434   : > { %6828 = vmatmul.msk.bf16.gmra.mxu0 %vm795_vm2, %v4897_v54  ;;  %v11142_v25 = vadd.f32 %v11080_v1, %v5535_v32  ;;  %v4720_v45 = vadd.f32 %v10997_v48, %v4342_v53  ;;  %v4904_v48 = vrot.slane %v4902_v28, 4  ;;  %v12035_v54 = vld [vmem:[#allocation6_spill] sm:$0xff] }
 0x435   : > { %v3683_v49 = vadd.f32 %v3625_v22, %v9270_v9  ;;  %6622 = vmatmul.msk.bf16.gmra.mxu1 %vm795_vm2, %v3340_v21  ;;  %v5880_v9 = vmax.f32 %v5652_v7, %v5824_v44  ;;  %v3341_v10 = vrot.slane %v12035_v54, 3  ;;  %v4143_v21 = vshrl.u32 %v11105_v46, 16  ;;  %v5363_v22 = vpop.permute.xlu1 %5362 }
 0x436   : > { %v5655_v5 = vmax.f32 %v11142_v25, 0.0  ;;  %v5188_v17 = vadd.f32 %v5098_v41, %v4720_v45  ;;  %v4905_v3 = vor.u32 %v4904_v48, %v4901_v8 }
 0x437   : > { %v5936_v39 = vld [vmem:[#allocation2 + $0x116] sm:$0xff]  ;;  %v11164_v32 = vpop.f32.mrf.mxu3  ;;  %v3342_v46 = vsel %vm3283_vm8, %v3339_v19, %v3341_v10  ;;  %v4145_v53 = vor.u32 %v4143_v21, %v4141_v29 }
 0x438   : > { %v5992_v26 = vld [vmem:[#allocation2 + $0x117] sm:$0xff]  ;;  %5713 = vst [vmem:[#allocation2 + $0x120] sm:$0xff] %v5655_v5  ;;  %v5478_v11 = vmul.f32 %v5359_v24, %v5188_v17  ;;  %6769 = vmatmul.msk.bf16.gmra.mxu2 %vm795_vm2, %v4142_v58 }
 0x439   : > { %v6048_v40 = vmax.f32 %v5936_v39, %v5992_v26  ;;  %v5103_v4 = vpop.f32.mrf.mxu0  ;;  %v5825_v57 = vld [vmem:[#allocation2 + $0x111] sm:$0xff]  ;;  %v4150_v29 = vsel %vm1080_vm5, %v4145_v53, %v4149_v63  ;;  %v5367_v39 = vpop.permute.xlu2 %5366 }
 0x43a   : > { %v3539_v41 = vpop.f32.mrf.mxu1  ;;  %v5536_v51 = vadd.f32 %v5478_v11, %v3682_v50  ;;  %v12037_v17 = vld [vmem:[#allocation30_spill] sm:$0xff]  ;;  %v5881_v26 = vmax.f32 %v5653_v60, %v5825_v57 }
 0x43b   : > { %v6104_v30 = vmax.f32 %v5880_v9, %v6048_v40  ;;  %v3626_v34 = vadd.f32 %v3539_v41, %v12033_v55  ;;  %v4345_v38 = vpop.f32.mrf.mxu2 }
 0x43c   : > { %v11158_v7 = vadd.f32 %v11080_v1, %v5536_v51  ;;  %v4723_v31 = vadd.f32 %v11034_v36, %v4345_v38  ;;  %v4906_v36 = vsel %vm525_vm3, %v11110_v33, %v4905_v3 }
 0x43d   : > { %v7092_v47 = vpack.c.bf16 %v6104_v30, %v6103_v37  ;;  %v3684_v16 = vadd.f32 %v3626_v34, %v12034_v6  ;;  %v12038_v37 = vld [vmem:[#allocation10_spill] sm:$0xff]  ;;  %v12039_v34 = vld [vmem:[#allocation33_spill] sm:$0xff] }
 0x43e   : > { %v5656_v50 = vmax.f32 %v11158_v7, 0.0  ;;  %v5189_v23 = vadd.f32 %v5101_v12, %v4723_v31  ;;  %v5371_v31 = vpop.permute.xlu0 %5370 }
 0x43f   : > { %7196 = vst [vmem:[%s10091_s29 + $0x80] sm:$0xff] %v7092_v47   ;;  %v5937_v12 = vld [vmem:[#allocation2 + $0x11e] sm:$0xff]  ;;  %v11187_v9 = vpop.f32.mrf.mxu3 }
 0x440   : > { %5714 = vst [vmem:[#allocation2 + $0x128] sm:$0xff] %v5656_v50  ;;  %v5479_v35 = vmul.f32 %v5363_v22, %v5189_v23  ;;  %v5993_v44 = vld [vmem:[#allocation2 + $0x11f] sm:$0xff] }
 0x441   : > { %v5106_v59 = vpop.f32.mrf.mxu0  ;;  %v5826_v19 = vld [vmem:[#allocation2 + $0x119] sm:$0xff] }
 0x442   : > { %v3542_v14 = vpop.f32.mrf.mxu1  ;;  %v5537_v28 = vadd.f32 %v5479_v35, %v3683_v49  ;;  %v6049_v49 = vmax.f32 %v5937_v12, %v5993_v44  ;;  %v5375_v12 = vpop.permute.xlu1 %5374 }
 0x443   : > { %v3627_v45 = vadd.f32 %v3542_v14, %v12036_v61  ;;  %v4347_v58 = vpop.f32.mrf.mxu2  ;;  %v12041_v14 = vld [vmem:[#allocation12_spill] sm:$0xff] }
 0x444   : > { %6829 = vmatmul.msk.bf16.gmra.mxu0 %vm795_vm2, %v4906_v36  ;;  %v11178_v0 = vadd.f32 %v11080_v1, %v5537_v28  ;;  %v4725_v33 = vadd.f32 %v11060_v15, %v4347_v58  ;;  %v5882_v15 = vmax.f32 %v5654_v13, %v5826_v19  ;;  %v6105_v56 = vmax.f32 %v5881_v26, %v6049_v49 }
 0x445   : > { %v3685_v2 = vadd.f32 %v3627_v45, %v12037_v17  ;;  %6623 = vmatmul.msk.bf16.gmra.mxu1 %vm795_vm2, %v3342_v46 }
 0x446   : > { %v5657_v20 = vmax.f32 %v11178_v0, 0.0  ;;  %v5190_v24 = vadd.f32 %v5103_v4, %v4725_v33 }
 0x447   : > { %v5938_v8 = vld [vmem:[#allocation2 + $0x126] sm:$0xff]  ;;  %v11204_v10 = vpop.f32.mrf.mxu3 }
 0x448   : > { %v5994_v48 = vld [vmem:[#allocation2 + $0x127] sm:$0xff]  ;;  %5715 = vst [vmem:[#allocation2 + $0x130] sm:$0xff] %v5657_v20  ;;  %v5480_v11 = vmul.f32 %v5367_v39, %v5190_v24  ;;  %6770 = vmatmul.msk.bf16.gmra.mxu2 %vm795_vm2, %v4150_v29  ;;  %v12042_v39 = vld [vmem:[#allocation11_spill] sm:$0xff] }
 0x449   : > { %v6050_v40 = vmax.f32 %v5938_v8, %v5994_v48  ;;  %v5108_v4 = vpop.f32.mrf.mxu0  ;;  %v5827_v53 = vld [vmem:[#allocation2 + $0x121] sm:$0xff] }
 0x44a   : > { %v3544_v41 = vpop.f32.mrf.mxu1  ;;  %v5538_v60 = vadd.f32 %v5480_v11, %v3684_v16  ;;  %v5883_v57 = vmax.f32 %v5655_v5, %v5827_v53 }
 0x44b   : > { %v6106_v62 = vmax.f32 %v5882_v15, %v6050_v40  ;;  %v3628_v30 = vadd.f32 %v3544_v41, %v12038_v37  ;;  %v4350_v51 = vpop.f32.mrf.mxu2  ;;  %v12044_v37 = vld [vmem:[#allocation36_spill] sm:$0xff] }
 0x44c   : > { %v11196_v42 = vadd.f32 %v11080_v1, %v5538_v60  ;;  %v4728_v13 = vadd.f32 %v11107_v43, %v4350_v51 }
 0x44d   : > { %v7097_v55 = vpack.c.bf16 %v6106_v62, %v6105_v56  ;;  %v3686_v38 = vadd.f32 %v3628_v30, %v12039_v34 }
 0x44e   : > { %v5658_v3 = vmax.f32 %v11196_v42, 0.0  ;;  %v5191_v47 = vadd.f32 %v5106_v59, %v4728_v13  ;;  %v12047_v42 = vld [vmem:[#allocation42_spill] sm:$0xff] }
 0x44f   : > { %7197 = vst [vmem:[%s10091_s29 + $0x88] sm:$0xff] %v7097_v55   ;;  %v5939_v22 = vld [vmem:[#allocation2 + $0x12e] sm:$0xff]  ;;  %v4739_v48 = vpop.f32.mrf.mxu3 }
 0x450   : > { %5716 = vst [vmem:[#allocation2 + $0x138] sm:$0xff] %v5658_v3  ;;  %v5481_v6 = vmul.f32 %v5371_v31, %v5191_v47  ;;  %v5995_v43 = vld [vmem:[#allocation2 + $0x12f] sm:$0xff] }
 0x451   : > { %v5111_v16 = vpop.f32.mrf.mxu0  ;;  %v5828_v63 = vld [vmem:[#allocation2 + $0x129] sm:$0xff]  ;;  %v6051_v28 = vmax.f32 %v5939_v22, %v5995_v43 }
 0x452   : > { %v3547_v54 = vpop.f32.mrf.mxu1  ;;  %v5539_v21 = vadd.f32 %v5481_v6, %v3685_v2  ;;  %v5884_v33 = vmax.f32 %v5656_v50, %v5828_v63  ;;  %v12043_v50 = vld [vmem:[#allocation39_spill] sm:$0xff] }
 0x453   : > { %v3629_v23 = vadd.f32 %v3547_v54, %v12040_v27  ;;  %v4352_v35 = vpop.f32.mrf.mxu2  ;;  %v6107_v29 = vmax.f32 %v5883_v57, %v6051_v28 }
 0x454   : > { %v11208_v36 = vadd.f32 %v11080_v1, %v5539_v21  ;;  %v4730_v59 = vadd.f32 %v11139_v18, %v4352_v35 }
 0x455   : > { %v3687_v46 = vadd.f32 %v3629_v23, %v12041_v14  ;;  %v5383_v23 = vpop.permute.xlu0 %5382 }
 0x456   : > { %v5659_v61 = vmax.f32 %v11208_v36, 0.0  ;;  %v5192_v45 = vadd.f32 %v5108_v4, %v4730_v59  ;;  %v5379_v4 = vpop.permute.xlu2 %5378 }
 0x457   : > { %v5940_v44 = vld [vmem:[#allocation2 + $0x136] sm:$0xff] }
 0x458   : > { %v5996_v58 = vld [vmem:[#allocation2 + $0x137] sm:$0xff]  ;;  %5717 = vst [vmem:[#allocation2 + $0x140] sm:$0xff] %v5659_v61  ;;  %v5482_v18 = vmul.f32 %v5375_v12, %v5192_v45  ;;  %v12046_v12 = vld [vmem:[#allocation13_spill] sm:$0xff] }
 0x459   : > { %v6052_v17 = vmax.f32 %v5940_v44, %v5996_v58  ;;  %v5113_v2 = vpop.f32.mrf.mxu0  ;;  %v5829_v31 = vld [vmem:[#allocation2 + $0x131] sm:$0xff] }
 0x45a   : > { %v3549_v19 = vpop.f32.mrf.mxu1  ;;  %v5540_v24 = vadd.f32 %v5482_v18, %v3686_v38  ;;  %v12045_v38 = vld [vmem:[#allocation16_spill] sm:$0xff]  ;;  %v5885_v35 = vmax.f32 %v5657_v20, %v5829_v31  ;;  %v5387_v18 = vpop.permute.xlu1 %5386 }
 0x45b   : > { %v6108_v49 = vmax.f32 %v5884_v33, %v6052_v17  ;;  %v3630_v26 = vadd.f32 %v3549_v19, %v12042_v39  ;;  %v4355_v8 = vpop.f32.mrf.mxu2  ;;  %v12048_v39 = vld [vmem:[#allocation41_spill] sm:$0xff] }
 0x45c   : > { %v11221_v5 = vadd.f32 %v11080_v1, %v5540_v24  ;;  %v4733_v7 = vadd.f32 %v11164_v32, %v4355_v8 }
 0x45d   : > { %v7102_v25 = vpack.c.bf16 %v6108_v49, %v6107_v29  ;;  %v3688_v15 = vadd.f32 %v3630_v26, %v12043_v50 }
 0x45e   : > { %v5660_v40 = vmax.f32 %v11221_v5, 0.0  ;;  %v5193_v11 = vadd.f32 %v5111_v16, %v4733_v7  ;;  %v11235_v16 = vpop.f32.mrf.mxu3 }
 0x45f   : > { %7198 = vst [vmem:[%s10091_s29 + $0x90] sm:$0xff] %v7102_v25   ;;  %v5941_v51 = vld [vmem:[#allocation2 + $0x13e] sm:$0xff] }
 0x460   : > { %5718 = vst [vmem:[#allocation2 + $0x148] sm:$0xff] %v5660_v40  ;;  %v5483_v41 = vmul.f32 %v5379_v4, %v5193_v11  ;;  %v5997_v55 = vld [vmem:[#allocation2 + $0x13f] sm:$0xff] }
 0x461   : > { %v5116_v56 = vpop.f32.mrf.mxu0  ;;  %v5830_v6 = vld [vmem:[#allocation2 + $0x139] sm:$0xff]  ;;  %v6053_v54 = vmax.f32 %v5941_v51, %v5997_v55 }
 0x462   : > { %v3552_v62 = vpop.f32.mrf.mxu1  ;;  %v5541_v60 = vadd.f32 %v5483_v41, %v3687_v46 }
 0x463   : > { %v3631_v30 = vadd.f32 %v3552_v62, %v12044_v37  ;;  %v4357_v13 = vpop.f32.mrf.mxu2  ;;  %v6109_v63 = vmax.f32 %v5885_v35, %v6053_v54  ;;  %v5391_v37 = vpop.permute.xlu2 %5390 }
 0x464   : > { %v11231_v32 = vadd.f32 %v11080_v1, %v5541_v60  ;;  %v4735_v34 = vadd.f32 %v11187_v9, %v4357_v13  ;;  %v5886_v9 = vmax.f32 %v5658_v3, %v5830_v6 }
 0x465   : > { %v3689_v47 = vadd.f32 %v3631_v30, %v12045_v38 }
 0x466   : > { %v5661_v21 = vmax.f32 %v11231_v32, 0.0  ;;  %v5194_v27 = vadd.f32 %v5113_v2, %v4735_v34  ;;  %v4744_v2 = vpop.f32.mrf.mxu3 }
 0x467   : > { %v5942_v22 = vld [vmem:[#allocation2 + $0x146] sm:$0xff] }
 0x468   : > { %v5998_v43 = vld [vmem:[#allocation2 + $0x147] sm:$0xff]  ;;  %5719 = vst [vmem:[#allocation2 + $0x150] sm:$0xff] %v5661_v21  ;;  %v5484_v14 = vmul.f32 %v5383_v23, %v5194_v27 }
 0x469   : > { %v6054_v59 = vmax.f32 %v5942_v22, %v5998_v43  ;;  %v5118_v46 = vpop.f32.mrf.mxu0  ;;  %v5831_v4 = vld [vmem:[#allocation2 + $0x141] sm:$0xff]  ;;  %v12050_v23 = vld [vmem:[#allocation17_spill] sm:$0xff] }
 0x46a   : > { %v3554_v53 = vpop.f32.mrf.mxu1  ;;  %v5542_v45 = vadd.f32 %v5484_v14, %v3688_v15  ;;  %v12049_v15 = vld [vmem:[#allocation20_spill] sm:$0xff]  ;;  %v5887_v55 = vmax.f32 %v5659_v61, %v5831_v4  ;;  %v5395_v14 = vpop.permute.xlu0 %5394 }
 0x46b   : > { %v6110_v28 = vmax.f32 %v5886_v9, %v6054_v59  ;;  %v3632_v44 = vadd.f32 %v3554_v53, %v12046_v12  ;;  %v4360_v58 = vpop.f32.mrf.mxu2 }
 0x46c   : > { %v11246_v0 = vadd.f32 %v11080_v1, %v5542_v45  ;;  %v4738_v20 = vadd.f32 %v11204_v10, %v4360_v58  ;;  %v12052_v45 = vld [vmem:[#allocation44_spill] sm:$0xff] }
 0x46d   : > { %v7107_v57 = vpack.c.bf16 %v6110_v28, %v6109_v63  ;;  %v3690_v3 = vadd.f32 %v3632_v44, %v12047_v42 }
 0x46e   : > { %v5662_v33 = vmax.f32 %v11246_v0, 0.0  ;;  %v5195_v17 = vadd.f32 %v5116_v56, %v4738_v20  ;;  %v4747_v31 = vpop.f32.mrf.mxu3  ;;  %v12055_v0 = vld [vmem:[#allocation15_spill] sm:$0xff] }
 0x46f   : > { %7199 = vst [vmem:[%s10091_s29 + $0x98] sm:$0xff] %v7107_v57   ;;  %v5943_v8 = vld [vmem:[#allocation2 + $0x14e] sm:$0xff] }
 0x470   : > { %5720 = vst [vmem:[#allocation2 + $0x158] sm:$0xff] %v5662_v33  ;;  %v5485_v19 = vmul.f32 %v5387_v18, %v5195_v17  ;;  %v5999_v25 = vld [vmem:[#allocation2 + $0x14f] sm:$0xff] }
 0x471   : > { %v5121_v29 = vpop.f32.mrf.mxu0  ;;  %v5832_v41 = vld [vmem:[#allocation2 + $0x149] sm:$0xff]  ;;  %v6055_v56 = vmax.f32 %v5943_v8, %v5999_v25 }
 0x472   : > { %v3557_v49 = vpop.f32.mrf.mxu1  ;;  %v5543_v24 = vadd.f32 %v5485_v19, %v3689_v47  ;;  %v5888_v13 = vmax.f32 %v5660_v40, %v5832_v41  ;;  %v12051_v40 = vld [vmem:[#allocation46_spill] sm:$0xff] }
 0x473   : > { %v3633_v26 = vadd.f32 %v3557_v49, %v12048_v39  ;;  %v4362_v10 = vpop.f32.mrf.mxu2  ;;  %v6111_v6 = vmax.f32 %v5887_v55, %v6055_v56  ;;  %v5399_v39 = vpop.permute.xlu1 %5398 }
 0x474   : > { %v11256_v7 = vadd.f32 %v11080_v1, %v5543_v24  ;;  %v4740_v50 = vadd.f32 %v4739_v48, %v4362_v10 }
 0x475   : > { %v3691_v11 = vadd.f32 %v3633_v26, %v12049_v15 }
 0x476   : > { %v5663_v62 = vmax.f32 %v11256_v7, 0.0  ;;  %v5196_v60 = vadd.f32 %v5118_v46, %v4740_v50 }
 0x477   : > { %v5944_v30 = vld [vmem:[#allocation2 + $0x156] sm:$0xff] }
 0x478   : > { %v6000_v51 = vld [vmem:[#allocation2 + $0x157] sm:$0xff]  ;;  %5721 = vst [vmem:[#allocation2 + $0x160] sm:$0xff] %v5663_v62  ;;  %v5486_v48 = vmul.f32 %v5391_v37, %v5196_v60 }
 0x479   : > { %v6056_v34 = vmax.f32 %v5944_v30, %v6000_v51  ;;  %v5123_v38 = vpop.f32.mrf.mxu0  ;;  %v5833_v18 = vld [vmem:[#allocation2 + $0x151] sm:$0xff] }
 0x47a   : > { %v3559_v47 = vpop.f32.mrf.mxu1  ;;  %v5544_v27 = vadd.f32 %v5486_v48, %v3690_v3  ;;  %v12053_v3 = vld [vmem:[#allocation26_spill] sm:$0xff]  ;;  %v5889_v25 = vmax.f32 %v5661_v21, %v5833_v18  ;;  %v5403_v48 = vpop.permute.xlu2 %5402 }
 0x47b   : > { %v6112_v54 = vmax.f32 %v5888_v13, %v6056_v34  ;;  %v3634_v22 = vadd.f32 %v3559_v47, %v12050_v23  ;;  %v4365_v43 = vpop.f32.mrf.mxu2  ;;  %v12054_v60 = vld [vmem:[#allocation22_spill] sm:$0xff] }
 0x47c   : > { %v11268_v61 = vadd.f32 %v11080_v1, %v5544_v27  ;;  %v4743_v5 = vadd.f32 %v11235_v16, %v4365_v43  ;;  %v4749_v16 = vpop.f32.mrf.mxu3  ;;  %v12056_v27 = vld [vmem:[#allocation14_spill] sm:$0xff] }
 0x47d   : > { %v7112_v36 = vpack.c.bf16 %v6112_v54, %v6111_v6  ;;  %v3692_v35 = vadd.f32 %v3634_v22, %v12051_v40  ;;  %v12057_v40 = vld [vmem:[#allocation32_spill] sm:$0xff] }
 0x47e   : > { %v5664_v9 = vmax.f32 %v11268_v61, 0.0  ;;  %v5197_v59 = vadd.f32 %v5121_v29, %v4743_v5  ;;  %v12059_v61 = vld [vmem:[#allocation19_spill] sm:$0xff] }
 0x47f   : > { %7200 = vst [vmem:[%s10091_s29 + $0xa0] sm:$0xff] %v7112_v36   ;;  %v5945_v44 = vld [vmem:[#allocation2 + $0x15e] sm:$0xff] }
 0x480   : > { %5722 = vst [vmem:[#allocation2 + $0x168] sm:$0xff] %v5664_v9  ;;  %v5487_v46 = vmul.f32 %v5395_v14, %v5197_v59  ;;  %v6001_v58 = vld [vmem:[#allocation2 + $0x15f] sm:$0xff] }
 0x481   : > { %v5126_v53 = vpop.f32.mrf.mxu0  ;;  %v5834_v19 = vld [vmem:[#allocation2 + $0x159] sm:$0xff]  ;;  %v6057_v29 = vmax.f32 %v5945_v44, %v6001_v58 }
 0x482   : > { %v3562_v63 = vpop.f32.mrf.mxu1  ;;  %v5545_v28 = vadd.f32 %v5487_v46, %v3691_v11  ;;  %v5890_v10 = vmax.f32 %v5662_v33, %v5834_v19 }
 0x483   : > { %v3635_v12 = vadd.f32 %v3562_v63, %v12052_v45  ;;  %v4367_v57 = vpop.f32.mrf.mxu2  ;;  %v6113_v4 = vmax.f32 %v5889_v25, %v6057_v29 }
 0x484   : > { %v11278_v20 = vadd.f32 %v11080_v1, %v5545_v28  ;;  %v4745_v42 = vadd.f32 %v4744_v2, %v4367_v57  ;;  %v4752_v55 = vpop.f32.mrf.mxu3  ;;  %v5407_v28 = vpop.permute.xlu0 %5406 }
 0x485   : > { %v3693_v17 = vadd.f32 %v3635_v12, %v12053_v3 }
 0x486   : > { %v5665_v49 = vmax.f32 %v11278_v20, 0.0  ;;  %v5198_v24 = vadd.f32 %v5123_v38, %v4745_v42 }
 0x487   : > { %v5946_v26 = vld [vmem:[#allocation2 + $0x166] sm:$0xff] }
 0x488   : > { %v6002_v8 = vld [vmem:[#allocation2 + $0x167] sm:$0xff]  ;;  %5723 = vst [vmem:[#allocation2 + $0x170] sm:$0xff] %v5665_v49  ;;  %v5488_v2 = vmul.f32 %v5399_v39, %v5198_v24 }
 0x489   : > { %v6058_v50 = vmax.f32 %v5946_v26, %v6002_v8  ;;  %v5128_v15 = vpop.f32.mrf.mxu0  ;;  %v5835_v59 = vld [vmem:[#allocation2 + $0x161] sm:$0xff] }
 0x48a   : > { %v3564_v11 = vpop.f32.mrf.mxu1  ;;  %v5546_v56 = vadd.f32 %v5488_v2, %v3692_v35  ;;  %v5891_v58 = vmax.f32 %v5663_v62, %v5835_v59  ;;  %v12058_v24 = vld [vmem:[#allocation28_spill] sm:$0xff] }
 0x48b   : > { %v6114_v41 = vmax.f32 %v5890_v10, %v6058_v50  ;;  %v3636_v37 = vadd.f32 %v3564_v11, %v12054_v60  ;;  %v4370_v30 = vpop.f32.mrf.mxu2  ;;  %v5411_v50 = vpop.permute.xlu1 %5410 }
 0x48c   : > { %v11290_v32 = vadd.f32 %v11080_v1, %v5546_v56  ;;  %v4748_v21 = vadd.f32 %v4747_v31, %v4370_v30  ;;  %v4754_v44 = vpop.f32.mrf.mxu3 }
 0x48d   : > { %v7117_v51 = vpack.c.bf16 %v6114_v41, %v6113_v4  ;;  %v3694_v33 = vadd.f32 %v3636_v37, %v12055_v0  ;;  %v12060_v41 = vld [vmem:[#allocation18_spill] sm:$0xff] }
 0x48e   : > { %v5666_v13 = vmax.f32 %v11290_v32, 0.0  ;;  %v5199_v34 = vadd.f32 %v5126_v53, %v4748_v21 }
 0x48f   : > { %7201 = vst [vmem:[%s10091_s29 + $0xa8] sm:$0xff] %v7117_v51   ;;  %v5947_v22 = vld [vmem:[#allocation2 + $0x16e] sm:$0xff] }
 0x490   : > { %5724 = vst [vmem:[#allocation2 + $0x178] sm:$0xff] %v5666_v13  ;;  %v5489_v38 = vmul.f32 %v5403_v48, %v5199_v34  ;;  %v6003_v43 = vld [vmem:[#allocation2 + $0x16f] sm:$0xff] }
 0x491   : > { %v5131_v47 = vpop.f32.mrf.mxu0  ;;  %v5836_v14 = vld [vmem:[#allocation2 + $0x169] sm:$0xff]  ;;  %v6059_v46 = vmax.f32 %v5947_v22, %v6003_v43 }
 0x492   : > { %v3567_v6 = vpop.f32.mrf.mxu1  ;;  %v5547_v54 = vadd.f32 %v5489_v38, %v3693_v17  ;;  %v5892_v57 = vmax.f32 %v5664_v9, %v5836_v14 }
 0x493   : > { %v3637_v23 = vadd.f32 %v3567_v6, %v12056_v27  ;;  %v4372_v31 = vpop.f32.mrf.mxu2  ;;  %v6115_v18 = vmax.f32 %v5891_v58, %v6059_v46  ;;  %v12062_v46 = vld [vmem:[#allocation34_spill] sm:$0xff] }
 0x494   : > { %v11299_v36 = vadd.f32 %v11080_v1, %v5547_v54  ;;  %v4750_v5 = vadd.f32 %v4749_v16, %v4372_v31  ;;  %v5415_v54 = vpop.permute.xlu2 %5414 }
 0x495   : > { %v3695_v35 = vadd.f32 %v3637_v23, %v12057_v40 }
 0x496   : > { %v5667_v53 = vmax.f32 %v11299_v36, 0.0  ;;  %v5200_v63 = vadd.f32 %v5128_v15, %v4750_v5  ;;  %v4757_v15 = vpop.f32.mrf.mxu3 }
 0x497   : > { %v5948_v45 = vld [vmem:[#allocation2 + $0x176] sm:$0xff] }
 0x498   : > { %v6004_v12 = vld [vmem:[#allocation2 + $0x177] sm:$0xff]  ;;  %5725 = vst [vmem:[#allocation2 + $0x180] sm:$0xff] %v5667_v53  ;;  %v5490_v42 = vmul.f32 %v5407_v28, %v5200_v63 }
 0x499   : > { %v6060_v16 = vmax.f32 %v5948_v45, %v6004_v12  ;;  %v5133_v17 = vpop.f32.mrf.mxu0  ;;  %v5837_v34 = vld [vmem:[#allocation2 + $0x171] sm:$0xff] }
 0x49a   : > { %v3569_v3 = vpop.f32.mrf.mxu1  ;;  %v5548_v29 = vadd.f32 %v5490_v42, %v3694_v33  ;;  %v12061_v33 = vld [vmem:[#allocation38_spill] sm:$0xff]  ;;  %v5893_v22 = vmax.f32 %v5665_v49, %v5837_v34  ;;  %v12065_v34 = vld [vmem:[#allocation25_spill] sm:$0xff] }
 0x49b   : > { %v6116_v19 = vmax.f32 %v5892_v57, %v6060_v16  ;;  %v3638_v39 = vadd.f32 %v3569_v3, %v12058_v24  ;;  %v4375_v26 = vpop.f32.mrf.mxu2  ;;  %v5419_v57 = vpop.permute.xlu0 %5418 }
 0x49c   : > { %v11311_v7 = vadd.f32 %v11080_v1, %v5548_v29  ;;  %v4753_v62 = vadd.f32 %v4752_v55, %v4375_v26  ;;  %v12064_v26 = vld [vmem:[#allocation40_spill] sm:$0xff] }
 0x49d   : > { %v7122_v8 = vpack.c.bf16 %v6116_v19, %v6115_v18  ;;  %v3696_v9 = vadd.f32 %v3638_v39, %v12059_v61 }
 0x49e   : > { %v5668_v25 = vmax.f32 %v11311_v7, 0.0  ;;  %v5201_v10 = vadd.f32 %v5131_v47, %v4753_v62  ;;  %v4759_v45 = vpop.f32.mrf.mxu3 }
 0x49f   : > { %7202 = vst [vmem:[%s10091_s29 + $0xb0] sm:$0xff] %v7122_v8   ;;  %v5949_v60 = vld [vmem:[#allocation2 + $0x17e] sm:$0xff] }
 0x4a0   : > { %5726 = vst [vmem:[#allocation2 + $0x188] sm:$0xff] %v5668_v25  ;;  %v5491_v2 = vmul.f32 %v5411_v50, %v5201_v10  ;;  %v6005_v37 = vld [vmem:[#allocation2 + $0x17f] sm:$0xff] }
 0x4a1   : > { %v5136_v51 = vpop.f32.mrf.mxu0  ;;  %v5838_v48 = vld [vmem:[#allocation2 + $0x179] sm:$0xff]  ;;  %v6061_v38 = vmax.f32 %v5949_v60, %v6005_v37 }
 0x4a2   : > { %v3572_v11 = vpop.f32.mrf.mxu1  ;;  %v5549_v4 = vadd.f32 %v5491_v2, %v3695_v35  ;;  %v5894_v43 = vmax.f32 %v5666_v13, %v5838_v48 }
 0x4a3   : > { %v3639_v56 = vadd.f32 %v3572_v11, %v12060_v41  ;;  %v4377_v30 = vpop.f32.mrf.mxu2  ;;  %v6117_v35 = vmax.f32 %v5893_v22, %v6061_v38 }
 0x4a4   : > { %v11320_v21 = vadd.f32 %v11080_v1, %v5549_v4  ;;  %v4755_v0 = vadd.f32 %v4754_v44, %v4377_v30 }
 0x4a5   : > { %v3697_v55 = vadd.f32 %v3639_v56, %v12061_v33 }
 0x4a6   : > { %v5669_v47 = vmax.f32 %v11320_v21, 0.0  ;;  %v5202_v6 = vadd.f32 %v5133_v17, %v4755_v0  ;;  %v12063_v17 = vld [vmem:[#allocation23_spill] sm:$0xff] }
 0x4a7   : > { %v5950_v27 = vld [vmem:[#allocation2 + $0x186] sm:$0xff] }
 0x4a8   : > { %v6006_v23 = vld [vmem:[#allocation2 + $0x187] sm:$0xff]  ;;  %5727 = vst [vmem:[#allocation2 + $0x190] sm:$0xff] %v5669_v47  ;;  %v5492_v5 = vmul.f32 %v5415_v54, %v5202_v6  ;;  %v12066_v54 = vld [vmem:[#allocation31_spill] sm:$0xff] }
 0x4a9   : > { %v6062_v31 = vmax.f32 %v5950_v27, %v6006_v23  ;;  %v5138_v13 = vpop.f32.mrf.mxu0  ;;  %v5839_v62 = vld [vmem:[#allocation2 + $0x181] sm:$0xff]  ;;  %v5427_v23 = vpop.permute.xlu2 %5426 }
 0x4aa   : > { %v3574_v40 = vpop.f32.mrf.mxu1  ;;  %v5550_v14 = vadd.f32 %v5492_v5, %v3696_v9  ;;  %v4762_v9 = vpop.f32.mrf.mxu3  ;;  %v5895_v56 = vmax.f32 %v5667_v53, %v5839_v62 }
 0x4ab   : > { %v6118_v59 = vmax.f32 %v5894_v43, %v6062_v31  ;;  %v3640_v63 = vadd.f32 %v3574_v40, %v12062_v46  ;;  %v4380_v28 = vpop.f32.mrf.mxu2 }
 0x4ac   : > { %v11332_v20 = vadd.f32 %v11080_v1, %v5550_v14  ;;  %v4758_v49 = vadd.f32 %v4757_v15, %v4380_v28  ;;  %v5423_v15 = vpop.permute.xlu1 %5422 }
 0x4ad   : > { %v7127_v12 = vpack.c.bf16 %v6118_v59, %v6117_v35  ;;  %v3698_v32 = vadd.f32 %v3640_v63, %v9752_v52  ;;  %v12067_v35 = vld [vmem:[#allocation29_spill] sm:$0xff] }
 0x4ae   : > { %v5670_v44 = vmax.f32 %v11332_v20, 0.0  ;;  %v5203_v58 = vadd.f32 %v5136_v51, %v4758_v49 }
 0x4af   : > { %7203 = vst [vmem:[%s10091_s29 + $0xb8] sm:$0xff] %v7127_v12   ;;  %v5951_v19 = vld [vmem:[#allocation2 + $0x18e] sm:$0xff]  ;;  %v12068_v12 = vld [vmem:[#allocation35_spill] sm:$0xff] }
 0x4b0   : > { %5728 = vst [vmem:[#allocation2 + $0x198] sm:$0xff] %v5670_v44  ;;  %v5493_v16 = vmul.f32 %v5419_v57, %v5203_v58  ;;  %v6007_v29 = vld [vmem:[#allocation2 + $0x18f] sm:$0xff] }
 0x4b1   : > { %v5840_v61 = vld [vmem:[#allocation2 + $0x189] sm:$0xff]  ;;  %v6063_v10 = vmax.f32 %v5951_v19, %v6007_v29  ;;  %v5141_v41 = vpop.f32.mrf.mxu0 }
 0x4b2   : > { %v3577_v42 = vpop.f32.mrf.mxu1  ;;  %v5551_v3 = vadd.f32 %v5493_v16, %v3697_v55  ;;  %v5896_v60 = vmax.f32 %v5668_v25, %v5840_v61  ;;  %v4764_v22 = vpop.f32.mrf.mxu3 }
 0x4b3   : > { %v3641_v18 = vadd.f32 %v3577_v42, %v12063_v17  ;;  %v4382_v24 = vpop.f32.mrf.mxu2  ;;  %v6119_v0 = vmax.f32 %v5895_v56, %v6063_v10  ;;  %v5431_v42 = vpop.permute.xlu0 %5430 }
 0x4b4   : > { %v11341_v39 = vadd.f32 %v11080_v1, %v5551_v3  ;;  %v4760_v52 = vadd.f32 %v4759_v45, %v4382_v24  ;;  %v5435_v56 = vpop.permute.xlu1 %5434 }
 0x4b5   : > { %v3699_v8 = vadd.f32 %v3641_v18, %v12064_v26 }
 0x4b6   : > { %v5671_v50 = vmax.f32 %v11341_v39, 0.0  ;;  %v5204_v2 = vadd.f32 %v5138_v13, %v4760_v52 }
 0x4b7   : > { %v5952_v11 = vld [vmem:[#allocation2 + $0x196] sm:$0xff] }
 0x4b8   : > { %v6008_v4 = vld [vmem:[#allocation2 + $0x197] sm:$0xff]  ;;  %5729 = vst [vmem:[#allocation2 + $0x1a0] sm:$0xff] %v5671_v50  ;;  %v5494_v30 = vmul.f32 %v5423_v15, %v5204_v2 }
 0x4b9   : > { %v6064_v37 = vmax.f32 %v5952_v11, %v6008_v4  ;;  %v5143_v31 = vpop.f32.mrf.mxu0 }
 0x4ba   : > { %v3579_v51 = vpop.f32.mrf.mxu1  ;;  %v5552_v55 = vadd.f32 %v5494_v30, %v3698_v32  ;;  %v5841_v32 = vld [vmem:[#allocation2 + $0x191] sm:$0xff]  ;;  %v4767_v52 = vpop.f32.mrf.mxu3 }
 0x4bb   : > { %v6120_v33 = vmax.f32 %v5896_v60, %v6064_v37  ;;  %v3642_v48 = vadd.f32 %v3579_v51, %v12065_v34  ;;  %v4385_v38 = vpop.f32.mrf.mxu2  ;;  %v5897_v18 = vmax.f32 %v5669_v47, %v5841_v32 }
 0x4bc   : > { %v11353_v36 = vadd.f32 %v11080_v1, %v5552_v55  ;;  %v4763_v53 = vadd.f32 %v4762_v9, %v4385_v38  ;;  %v12069_v9 = vld [vmem:[#allocation43_spill] sm:$0xff] }
 0x4bd   : > { %v7132_v6 = vpack.c.bf16 %v6120_v33, %v6119_v0  ;;  %v3700_v7 = vadd.f32 %v3642_v48, %v12066_v54 }
 0x4be   : > { %v5672_v25 = vmax.f32 %v11353_v36, 0.0  ;;  %v5205_v27 = vadd.f32 %v5141_v41, %v4763_v53 }
 0x4bf   : > { %7204 = vst [vmem:[%s10091_s29 + $0xc0] sm:$0xff] %v7132_v6   ;;  %v5953_v14 = vld [vmem:[#allocation2 + $0x19e] sm:$0xff] }
 0x4c0   : > { %5730 = vst [vmem:[#allocation2 + $0x1a8] sm:$0xff] %v5672_v25  ;;  %v5495_v43 = vmul.f32 %v5427_v23, %v5205_v27  ;;  %v6009_v46 = vld [vmem:[#allocation2 + $0x19f] sm:$0xff]  ;;  %v5439_v27 = vpop.permute.xlu2 %5438 }
 0x4c1   : > { %v5842_v13 = vld [vmem:[#allocation2 + $0x199] sm:$0xff]  ;;  %v6065_v58 = vmax.f32 %v5953_v14, %v6009_v46  ;;  %v5146_v2 = vpop.f32.mrf.mxu0 }
 0x4c2   : > { %v3582_v5 = vpop.f32.mrf.mxu1  ;;  %v5553_v40 = vadd.f32 %v5495_v43, %v3699_v8  ;;  %v5898_v19 = vmax.f32 %v5670_v44, %v5842_v13  ;;  %v12070_v44 = vld [vmem:[#allocation37_spill] sm:$0xff]  ;;  %v4769_v0 = vpop.f32.mrf.mxu3  ;;  %v7549_v46 = vld [vmem:[%s7710_s22] ss:$0 sm:$0xff] }
 0x4c3   : > { %v3643_v59 = vadd.f32 %v3582_v5, %v12067_v35  ;;  %v4387_v63 = vpop.f32.mrf.mxu2  ;;  %v6121_v8 = vmax.f32 %v5897_v18, %v6065_v58 }
 0x4c4   : > { %v11362_v28 = vadd.f32 %v11080_v1, %v5553_v40  ;;  %v4765_v45 = vadd.f32 %v4764_v22, %v4387_v63 }
 0x4c5   : > { %v3701_v49 = vadd.f32 %v3643_v59, %v12068_v12 }
 0x4c6   : > { %v5673_v57 = vmax.f32 %v11362_v28, 0.0  ;;  %v5206_v16 = vadd.f32 %v5143_v31, %v4765_v45 }
 0x4c7   : > { %v5954_v3 = vld [vmem:[#allocation2 + $0x1a6] sm:$0xff] }
 0x4c8   : > { %v6010_v17 = vld [vmem:[#allocation2 + $0x1a7] sm:$0xff]  ;;  %5731 = vst [vmem:[#allocation2 + $0x1b0] sm:$0xff] %v5673_v57  ;;  %v5496_v24 = vmul.f32 %v5431_v42, %v5206_v16 }
 0x4c9   : > { %v6066_v29 = vmax.f32 %v5954_v3, %v6010_v17  ;;  %v5843_v48 = vld [vmem:[#allocation2 + $0x1a1] sm:$0xff]  ;;  %v5148_v6 = vpop.f32.mrf.mxu0 }
 0x4ca   : > { %v3584_v26 = vpop.f32.mrf.mxu1  ;;  %v5554_v61 = vadd.f32 %v5496_v24, %v3700_v7  ;;  %v5899_v43 = vmax.f32 %v5671_v50, %v5843_v48 }
 0x4cb   : > { %v6122_v62 = vmax.f32 %v5898_v19, %v6066_v29  ;;  %v3644_v10 = vadd.f32 %v3584_v26, %v12069_v9  ;;  %v4390_v15 = vpop.f32.mrf.mxu2 }
 0x4cc   : > { %v5616_v47 = vadd.f32 %v11080_v1, %v5554_v61  ;;  %v4768_v20 = vadd.f32 %v4767_v52, %v4390_v15 }
 0x4cd   : > { %v7137_v21 = vpack.c.bf16 %v6122_v62, %v6121_v8  ;;  %v3702_v11 = vadd.f32 %v3644_v10, %v12070_v44 }
 0x4ce   : > { %v5674_v4 = vmax.f32 %v5616_v47, 0.0  ;;  %v5207_v41 = vadd.f32 %v5146_v2, %v4768_v20 }
 0x4cf   : > { %7205 = vst [vmem:[%s10091_s29 + $0xc8] sm:$0xff] %v7137_v21   ;;  %v5955_v30 = vld [vmem:[#allocation2 + $0x1ae] sm:$0xff] }
 0x4d0   : > { %5732 = vst [vmem:[#allocation2 + $0x1b8] sm:$0xff] %v5674_v4  ;;  %v5497_v60 = vmul.f32 %v5435_v56, %v5207_v41  ;;  %v6011_v51 = vld [vmem:[#allocation2 + $0x1af] sm:$0xff] }
 0x4d1   : > { %v5844_v38 = vld [vmem:[#allocation2 + $0x1a9] sm:$0xff]  ;;  %v6067_v53 = vmax.f32 %v5955_v30, %v6011_v51 }
 0x4d2   : > { %v5555_v37 = vadd.f32 %v5497_v60, %v3701_v49  ;;  %v5900_v31 = vmax.f32 %v5672_v25, %v5844_v38 }
 0x4d3   : > { %v4392_v33 = vpop.f32.mrf.mxu2  ;;  %v6123_v40 = vmax.f32 %v5899_v43, %v6067_v53 }
 0x4d4   : > { %v5617_v55 = vadd.f32 %v11080_v1, %v5555_v37  ;;  %v4770_v34 = vadd.f32 %v4769_v0, %v4392_v33 }
 0x4d6   : > { %v5675_v54 = vmax.f32 %v5617_v55, 0.0  ;;  %v5208_v7 = vadd.f32 %v5148_v6, %v4770_v34 }
 0x4d7   : > { %v5956_v23 = vld [vmem:[#allocation2 + $0x1b6] sm:$0xff] }
 0x4d8   : > { %v6012_v22 = vld [vmem:[#allocation2 + $0x1b7] sm:$0xff]  ;;  %5733 = vst [vmem:[#allocation2 + $0x1c0] sm:$0xff] %v5675_v54  ;;  %v5498_v1 = vmul.f32 %v5439_v27, %v5208_v7 }
 0x4d9   : > { %v6068_v5 = vmax.f32 %v5956_v23, %v6012_v22  ;;  %v5845_v39 = vld [vmem:[#allocation2 + $0x1b1] sm:$0xff] }
 0x4da   : > { %v5556_v59 = vadd.f32 %v5498_v1, %v3702_v11  ;;  %v5901_v13 = vmax.f32 %v5673_v57, %v5845_v39 }
 0x4db   : > { %v6124_v35 = vmax.f32 %v5900_v31, %v6068_v5 }
 0x4dc   : > { %v5618_v63 = vadd.f32 %v7549_v46, %v5556_v59 }
 0x4dd   : > { %v7142_v14 = vpack.c.bf16 %v6124_v35, %v6123_v40 }
 0x4de   : > { %v5676_v45 = vmax.f32 %v5618_v63, 0.0 }
 0x4df   : > { %7206 = vst [vmem:[%s10091_s29 + $0xd0] sm:$0xff] %v7142_v14   ;;  %v5957_v12 = vld [vmem:[#allocation2 + $0x1be] sm:$0xff] }
 0x4e0   : > { %5734 = vst [vmem:[#allocation2 + $0x1c8] sm:$0xff] %v5676_v45  ;;  %v6013_v49 = vld [vmem:[#allocation2 + $0x1bf] sm:$0xff] }
 0x4e1   : > { %v5846_v50 = vld [vmem:[#allocation2 + $0x1b9] sm:$0xff]  ;;  %v6069_v32 = vmax.f32 %v5957_v12, %v6013_v49 }
 0x4e2   : > { %v5902_v58 = vmax.f32 %v5674_v4, %v5846_v50 }
 0x4e3   : > { %v6125_v42 = vmax.f32 %v5901_v13, %v6069_v32 }
 0x4e7   : > { %v5958_v36 = vld [vmem:[#allocation2 + $0x1c6] sm:$0xff] }
 0x4e8   : > { %v6014_v25 = vld [vmem:[#allocation2 + $0x1c7] sm:$0xff] }
 0x4e9   : > { %v6070_v16 = vmax.f32 %v5958_v36, %v6014_v25 }
 0x4eb   : > { %v6126_v3 = vmax.f32 %v5902_v58, %v6070_v16 }
 0x4ed   : > { %v7147_v17 = vpack.c.bf16 %v6126_v3, %v6125_v42 }
 0x4ef   : > { %7207 = vst [vmem:[%s10091_s29 + $0xd8] sm:$0xff] %v7147_v17  }
 0x4f0 PF: > { %p14_p7 = scmp.ge.s32.totalorder %s7666_s20, 4   ;;  %s12071_s15 = smov %s7606_s16 }
 0x4f1   : > { %s12072_s16 = smov %s7610_s17  ;;  %s12073_s17 = smov %s7676_s23 }
 0x4f2   : > { %s12074_s18 = smov %s7666_s20  ;;  %16 = sbr.rel (!%p14_p7) target bundleno = 3 (0x3), region = 90 }
 0x4f7   :  { %6260 = vsyncpa [#allocation4], 1 }
 0x4f8   :  { %6262 = vsyncpa [#allocation4 + $0x1], 1 }

// kernel: vgg_fc6_forward.3
= control target key start
LH: loop header
LB: loop body
LE: loop exit
PB: predicated region body
PF: predicated region fallthrough
CT: control target
= control target key end

     0   :  { %12 = vsyncpa [#allocation3], 0  ;;  %s12559_s0 = inlined_call_operand.vmem [shape: bf16[2,2,6272], index: 0, kind: input, shape index: {}]   ;;  %s12560_s1 = inlined_call_operand.hbm [shape: bf16[2,6272,128], index: 1, kind: input, shape index: {}]   ;;  %s12561_s2 = inlined_call_operand.hbm [shape: f32[2,1,128], index: 2, kind: input, shape index: {}]   ;;  %s12562_s3 = inlined_call_operand.hbm [shape: bf16[2,128,128], index: 3, kind: input, shape index: {}]   ;;  %s12563_s4 = inlined_call_operand.hbm [shape: f32[1,128], index: 4, kind: input, shape index: {}]   ;;  %s12564_s5 = inlined_call_operand.vmem [shape: bf16[128,2], index: 5, kind: input, shape index: {}]   ;;  %s12565_s6 = inlined_call_operand.hbm [shape: f32[1,2], index: 6, kind: input, shape index: {}]   ;;  %s12566_s7 = inlined_call_operand.hbm [shape: f32[2,2], index: 7, kind: output, shape index: {}]  }
   0x1   :  { %13 = vsyncpa [#allocation6], 0 }
   0x2   :  { %14 = vsyncpa [#allocation9], 0  ;;  %s35_s26 = sshll.u32 %s12561_s2, 4  ;;  %s36_s26 = int_to_ptr.hbm [resolvable:$true] %s35_s26 }
   0x3   :  { %15 = vsyncpa [#allocation4], 0  ;;  %s12377_s27 = smov [#allocation5]   ;;  %s62_s8 = sshll.u32 %s12563_s4, 4  ;;  %s63_s8 = int_to_ptr.hbm [resolvable:$true] %s62_s8 }
   0x4   :  { %s37_s28 = sshll.u32 %s12377_s27, 4  ;;  %s12378_s9 = smov 16   ;;  %s38_s28 = int_to_ptr.vmem [resolvable:$true] %s37_s28 }
   0x5   :  { %s12379_s10 = smov 1   ;;  %s12380_s11 = smov [#allocation8]  }
   0x6   :  { %43 = dma.hbm_to_vmem [thread:$0]  %s36_s26, 32, %s38_s28, [#allocation6], %s12378_s9, %s12378_s9, %s12379_s10  }
   0x7   :  { %s64_s12 = sshll.u32 %s12380_s11, 4  ;;  %s22_s15 = sshll.u32 %s12560_s1, 4  ;;  %s65_s12 = int_to_ptr.vmem [resolvable:$true] %s64_s12  ;;  %s23_s15 = int_to_ptr.hbm [resolvable:$true] %s22_s15 }
   0x8   :  { %67 = dma.hbm_to_vmem [thread:$0]  %s63_s8, 16, %s65_s12, [#allocation9]  }
   0x9   :  { %s12381_s2 = smov [#allocation2]   ;;  %s48_s4 = sshll.u32 %s12562_s3, 4  ;;  %s49_s4 = int_to_ptr.hbm [resolvable:$true] %s48_s4 }
   0xa   :  { %s24_s16 = sshll.u32 %s12381_s2, 4  ;;  %s12382_s19 = smov 64   ;;  %s25_s16 = int_to_ptr.vmem [resolvable:$true] %s24_s16 }
   0xb   :  { %s12383_s20 = smov 4   ;;  %s12384_s21 = smov [#allocation7]  }
   0xc   :  { %30 = dma.hbm_to_vmem [thread:$0]  %s23_s15, 100352, %s25_s16, [#allocation3], %s12382_s19, %s12382_s19, %s12383_s20  }
   0xd   :  { %s50_s22 = sshll.u32 %s12384_s21, 4  ;;  %s75_s1 = sshll.u32 %s12565_s6, 4  ;;  %s51_s22 = int_to_ptr.vmem [resolvable:$true] %s50_s22  ;;  %s76_s1 = int_to_ptr.hbm [resolvable:$true] %s75_s1 }
   0xe   :  { %56 = dma.hbm_to_vmem [thread:$0]  %s49_s4, 2048, %s51_s22, [#allocation6], %s12382_s19, %s12382_s19, %s12383_s20  }
   0xf   :  { %s12385_s25 = smov [#allocation10]  }
  0x10   :  { %s77_s26 = sshll.u32 %s12385_s25, 4  ;;  %s78_s26 = int_to_ptr.vmem [resolvable:$true] %s77_s26 }
  0x11   :  { %80 = dma.hbm_to_vmem [thread:$0]  %s76_s1, 16, %s78_s26, [#allocation9]  }
  0x12   :  { %12369 = dma.done.wait [#allocation3], 100352  }
  0x13   :  { %12370 = vsyncadd [#allocation3], 4294866944 }
  0x14   :  { %12371 = dma.done.wait [#allocation6], 2080  }
  0x15   :  { %12372 = vsyncadd [#allocation6], 4294965216 }
  0x16   :  { %12373 = dma.done.wait [#allocation9], 32  }
  0x17   :  { %12374 = vsyncadd [#allocation9], 4294967264  ;;  %v11410_v0 = vld [vmem:[#allocation2 + $0x38] sm:$0xff]  ;;  %v11409_v4 = vld [vmem:[#allocation2 + $0x30] sm:$0xff]  ;;  %s12386_s16 = smov [#allocation11]   ;;  %s8152_s19 = sshll.u32 %s12566_s7, 4  ;;  %s8153_s19 = int_to_ptr.hbm [resolvable:$true] %s8152_s19 }
  0x18   :  { %v11418_v1 = vld [vmem:[#allocation2 + $0x78] sm:$0xff]  ;;  %3368 = vmatpush.bf16.msra.mxu0 %v11410_v0  ;;  %v11417_v5 = vld [vmem:[#allocation2 + $0x70] sm:$0xff]  ;;  %v11408_v8 = vld [vmem:[#allocation2 + $0x28] sm:$0xff]  ;;  %s8150_s17 = sshll.u32 %s12386_s16, 4  ;;  %vm8143_vm0 = vcmask 9216   ;;  %s8151_s17 = int_to_ptr.vmem [resolvable:$true] %s8150_s17 }
  0x19   :  { %v11426_v2 = vld [vmem:[#allocation2 + $0xb8] sm:$0xff]  ;;  %3381 = vmatpush.bf16.msra.mxu1 %v11418_v1  ;;  %v11425_v6 = vld [vmem:[#allocation2 + $0xb0] sm:$0xff]  ;;  %v11416_v9 = vld [vmem:[#allocation2 + $0x68] sm:$0xff] }
  0x1a   :  { %v11434_v3 = vld [vmem:[#allocation2 + $0xf8] sm:$0xff]  ;;  %3394 = vmatpush.bf16.msra.mxu2 %v11426_v2  ;;  %v11433_v7 = vld [vmem:[#allocation2 + $0xf0] sm:$0xff]  ;;  %v11424_v10 = vld [vmem:[#allocation2 + $0xa8] sm:$0xff] }
  0x1b   :  { %3407 = vmatpush.bf16.msra.mxu3 %v11434_v3  ;;  %v11432_v11 = vld [vmem:[#allocation2 + $0xe8] sm:$0xff]  ;;  %v11407_v12 = vld [vmem:[#allocation2 + $0x20] sm:$0xff]  ;;  %v11406_v16 = vld [vmem:[#allocation2 + $0x18] sm:$0xff] }
  0x1c   :  { %3369 = vmatpush.bf16.msra.mxu0 %v11409_v4  ;;  %v11415_v13 = vld [vmem:[#allocation2 + $0x60] sm:$0xff]  ;;  %v11414_v17 = vld [vmem:[#allocation2 + $0x58] sm:$0xff]  ;;  %v11405_v20 = vld [vmem:[#allocation2 + $0x10] sm:$0xff] }
  0x1d   :  { %3382 = vmatpush.bf16.msra.mxu1 %v11417_v5  ;;  %v11423_v14 = vld [vmem:[#allocation2 + $0xa0] sm:$0xff]  ;;  %v11422_v18 = vld [vmem:[#allocation2 + $0x98] sm:$0xff]  ;;  %v11413_v21 = vld [vmem:[#allocation2 + $0x50] sm:$0xff] }
  0x1e   :  { %3395 = vmatpush.bf16.msra.mxu2 %v11425_v6  ;;  %v11431_v15 = vld [vmem:[#allocation2 + $0xe0] sm:$0xff]  ;;  %v11430_v19 = vld [vmem:[#allocation2 + $0xd8] sm:$0xff]  ;;  %v11421_v23 = vld [vmem:[#allocation2 + $0x90] sm:$0xff] }
  0x1f   :  { %3408 = vmatpush.bf16.msra.mxu3 %v11433_v7  ;;  %v101_v22 = vld [vmem:[%s12559_s0] sm:$0xff]  ;;  %v11429_v24 = vld [vmem:[#allocation2 + $0xd0] sm:$0xff]  ;;  %v11404_v25 = vld [vmem:[#allocation2 + $0x8] sm:$0xff] }
  0x20   :  { %3370 = vmatpush.bf16.msra.mxu0 %v11408_v8  ;;  %905 = vst [vmem:[#allocation1] ss:$9 sm:$0xff] %v101_v22  ;;  %v11412_v26 = vld [vmem:[#allocation2 + $0x48] sm:$0xff]  ;;  %v11403_v29 = vld [vmem:[#allocation2] sm:$0xff]  ;;  %v11442_v33 = vld [vmem:[#allocation2 + $0x138] sm:$0xff] }
  0x21   :  { %3383 = vmatpush.bf16.msra.mxu1 %v11416_v9  ;;  %v11420_v27 = vld [vmem:[#allocation2 + $0x88] sm:$0xff]  ;;  %v11411_v30 = vld [vmem:[#allocation2 + $0x40] sm:$0xff]  ;;  %v11450_v34 = vld [vmem:[#allocation2 + $0x178] sm:$0xff] }
  0x22   :  { %3396 = vmatpush.bf16.msra.mxu2 %v11424_v10  ;;  %v11428_v28 = vld [vmem:[#allocation2 + $0xc8] sm:$0xff]  ;;  %v11419_v31 = vld [vmem:[#allocation2 + $0x80] sm:$0xff]  ;;  %v11458_v35 = vld [vmem:[#allocation2 + $0x1b8] sm:$0xff] }
  0x23   :  { %3409 = vmatpush.bf16.msra.mxu3 %v11432_v11  ;;  %v11427_v32 = vld [vmem:[#allocation2 + $0xc0] sm:$0xff]  ;;  %v11466_v36 = vld [vmem:[#allocation2 + $0x1f8] sm:$0xff]  ;;  %v11441_v37 = vld [vmem:[#allocation2 + $0x130] sm:$0xff] }
  0x24   :  { %3371 = vmatpush.bf16.msra.mxu0 %v11407_v12  ;;  %v11449_v40 = vld [vmem:[#allocation2 + $0x170] sm:$0xff]  ;;  %v11440_v45 = vld [vmem:[#allocation2 + $0x128] sm:$0xff]  ;;  %v11439_v49 = vld [vmem:[#allocation2 + $0x120] sm:$0xff] }
  0x25   :  { %3384 = vmatpush.bf16.msra.mxu1 %v11415_v13  ;;  %v11457_v43 = vld [vmem:[#allocation2 + $0x1b0] sm:$0xff]  ;;  %v11448_v46 = vld [vmem:[#allocation2 + $0x168] sm:$0xff]  ;;  %v11447_v50 = vld [vmem:[#allocation2 + $0x160] sm:$0xff] }
  0x26   :  { %3397 = vmatpush.bf16.msra.mxu2 %v11423_v14  ;;  %v11465_v44 = vld [vmem:[#allocation2 + $0x1f0] sm:$0xff]  ;;  %v11456_v47 = vld [vmem:[#allocation2 + $0x1a8] sm:$0xff]  ;;  %v11455_v51 = vld [vmem:[#allocation2 + $0x1a0] sm:$0xff] }
  0x27   :  { %3410 = vmatpush.bf16.msra.mxu3 %v11431_v15  ;;  %v908_v38 = vld [vmem:[#allocation1 + $0x12] sm:$0xff]  ;;  %v906_v39 = vld [vmem:[#allocation1] sm:$0xff]  ;;  %v907_v42 = vld [vmem:[#allocation1 + $0x9] sm:$0xff] }
  0x28   :  { %3372 = vmatpush.bf16.msra.mxu0 %v11406_v16  ;;  %v909_v41 = vld [vmem:[#allocation1 + $0x1b] sm:$0xff]  ;;  %v11464_v48 = vld [vmem:[#allocation2 + $0x1e8] sm:$0xff]  ;;  %v11463_v52 = vld [vmem:[#allocation2 + $0x1e0] sm:$0xff] }
  0x29   :  { %3385 = vmatpush.bf16.msra.mxu1 %v11414_v17  ;;  %v11438_v53 = vld [vmem:[#allocation2 + $0x118] sm:$0xff]  ;;  %v11437_v57 = vld [vmem:[#allocation2 + $0x110] sm:$0xff]  ;;  %v11436_v61 = vld [vmem:[#allocation2 + $0x108] sm:$0xff] }
  0x2a   :  { %3398 = vmatpush.bf16.msra.mxu2 %v11422_v18  ;;  %v11446_v54 = vld [vmem:[#allocation2 + $0x158] sm:$0xff]  ;;  %v11445_v58 = vld [vmem:[#allocation2 + $0x150] sm:$0xff]  ;;  %v11444_v62 = vld [vmem:[#allocation2 + $0x148] sm:$0xff] }
  0x2b   :  { %3411 = vmatpush.bf16.msra.mxu3 %v11430_v19  ;;  %v11454_v55 = vld [vmem:[#allocation2 + $0x198] sm:$0xff]  ;;  %v11453_v59 = vld [vmem:[#allocation2 + $0x190] sm:$0xff]  ;;  %v11452_v63 = vld [vmem:[#allocation2 + $0x188] sm:$0xff] }
  0x2c   :  { %3373 = vmatpush.bf16.msra.mxu0 %v11405_v20  ;;  %v11462_v56 = vld [vmem:[#allocation2 + $0x1d8] sm:$0xff]  ;;  %v11461_v60 = vld [vmem:[#allocation2 + $0x1d0] sm:$0xff]  ;;  %v11460_v0 = vld [vmem:[#allocation2 + $0x1c8] sm:$0xff] }
  0x2d   :  { %3386 = vmatpush.bf16.msra.mxu1 %v11413_v21  ;;  %v912_v1 = vld [vmem:[#allocation1 + $0x36] sm:$0xff]  ;;  %v910_v2 = vld [vmem:[#allocation1 + $0x24] sm:$0xff]  ;;  %v911_v4 = vld [vmem:[#allocation1 + $0x2d] sm:$0xff] }
  0x2e   :  { %3399 = vmatpush.bf16.msra.mxu2 %v11421_v23  ;;  %v913_v3 = vld [vmem:[#allocation1 + $0x3f] sm:$0xff]  ;;  %v102_v5 = vld [vmem:[%s12559_s0 + $0x8] sm:$0xff]  ;;  %v11472_v18 = vld [vmem:[#allocation2 + $0x228] sm:$0xff] }
  0x2f   :  { %3412 = vmatpush.bf16.msra.mxu3 %v11429_v24  ;;  %915 = vst [vmem:[#allocation1] ss:$9 sm:$0xff] %v102_v5  ;;  %v11435_v6 = vld [vmem:[#allocation2 + $0x100] sm:$0xff]  ;;  %v11474_v10 = vld [vmem:[#allocation2 + $0x238] sm:$0xff]  ;;  %v11473_v14 = vld [vmem:[#allocation2 + $0x230] sm:$0xff] }
  0x30   :  { %3374 = vmatpush.bf16.msra.mxu0 %v11404_v25  ;;  %v11443_v7 = vld [vmem:[#allocation2 + $0x140] sm:$0xff]  ;;  %v11482_v11 = vld [vmem:[#allocation2 + $0x278] sm:$0xff]  ;;  %v11481_v15 = vld [vmem:[#allocation2 + $0x270] sm:$0xff] }
  0x31   :  { %3387 = vmatpush.bf16.msra.mxu1 %v11412_v26  ;;  %v11451_v8 = vld [vmem:[#allocation2 + $0x180] sm:$0xff]  ;;  %v11490_v12 = vld [vmem:[#allocation2 + $0x2b8] sm:$0xff]  ;;  %v11489_v16 = vld [vmem:[#allocation2 + $0x2b0] sm:$0xff] }
  0x32   :  { %3400 = vmatpush.bf16.msra.mxu2 %v11420_v27  ;;  %v11459_v9 = vld [vmem:[#allocation2 + $0x1c0] sm:$0xff]  ;;  %v11498_v13 = vld [vmem:[#allocation2 + $0x2f8] sm:$0xff]  ;;  %v11497_v17 = vld [vmem:[#allocation2 + $0x2f0] sm:$0xff] }
  0x33   :  { %3413 = vmatpush.bf16.msra.mxu3 %v11428_v28  ;;  %v11480_v19 = vld [vmem:[#allocation2 + $0x268] sm:$0xff]  ;;  %v11471_v22 = vld [vmem:[#allocation2 + $0x220] sm:$0xff]  ;;  %v11470_v26 = vld [vmem:[#allocation2 + $0x218] sm:$0xff] }
  0x34   :  { %3375 = vmatpush.bf16.msra.mxu0 %v11403_v29  ;;  %v11488_v20 = vld [vmem:[#allocation2 + $0x2a8] sm:$0xff]  ;;  %v11479_v23 = vld [vmem:[#allocation2 + $0x260] sm:$0xff]  ;;  %v11478_v27 = vld [vmem:[#allocation2 + $0x258] sm:$0xff] }
  0x35   :  { %3388 = vmatpush.bf16.msra.mxu1 %v11411_v30  ;;  %v11496_v21 = vld [vmem:[#allocation2 + $0x2e8] sm:$0xff]  ;;  %v11487_v24 = vld [vmem:[#allocation2 + $0x2a0] sm:$0xff]  ;;  %v11486_v28 = vld [vmem:[#allocation2 + $0x298] sm:$0xff] }
  0x36   :  { %3401 = vmatpush.bf16.msra.mxu2 %v11419_v31  ;;  %v11495_v25 = vld [vmem:[#allocation2 + $0x2e0] sm:$0xff]  ;;  %v11494_v29 = vld [vmem:[#allocation2 + $0x2d8] sm:$0xff]  ;;  %v11469_v30 = vld [vmem:[#allocation2 + $0x210] sm:$0xff] }
  0x37   :  { %3414 = vmatpush.bf16.msra.mxu3 %v11427_v32  ;;  %3376 = vmatmul.bf16.vlgmr.msra.gmra.mxu0 %v906_v39  ;;  %v11477_v31 = vld [vmem:[#allocation2 + $0x250] sm:$0xff]  ;;  %v11475_v39 = vld [vmem:[#allocation2 + $0x240] sm:$0xff] }
  0x38   :  { %3420 = vmatpush.bf16.msrb.mxu0 %v11442_v33  ;;  %3389 = vmatmul.bf16.vlgmr.msra.gmra.mxu1 %v907_v42  ;;  %v11485_v32 = vld [vmem:[#allocation2 + $0x290] sm:$0xff]  ;;  %v11506_v42 = vld [vmem:[#allocation2 + $0x338] sm:$0xff] }
  0x39   :  { %3433 = vmatpush.bf16.msrb.mxu1 %v11450_v34  ;;  %3402 = vmatmul.bf16.vlgmr.msra.gmra.mxu2 %v908_v38  ;;  %v11493_v33 = vld [vmem:[#allocation2 + $0x2d0] sm:$0xff]  ;;  %v11468_v34 = vld [vmem:[#allocation2 + $0x208] sm:$0xff]  ;;  %v11467_v38 = vld [vmem:[#allocation2 + $0x200] sm:$0xff] }
  0x3a   :  { %3446 = vmatpush.bf16.msrb.mxu2 %v11458_v35  ;;  %3415 = vmatmul.bf16.vlgmr.msra.gmra.mxu3 %v909_v41  ;;  %v11476_v35 = vld [vmem:[#allocation2 + $0x248] sm:$0xff]  ;;  %v11491_v41 = vld [vmem:[#allocation2 + $0x2c0] sm:$0xff]  ;;  %v11525_v5 = vld [vmem:[#allocation2 + $0x3d0] sm:$0xff] }
  0x3b   :  { %3459 = vmatpush.bf16.msrb.mxu3 %v11466_v36  ;;  %v11484_v36 = vld [vmem:[#allocation2 + $0x288] sm:$0xff] }
  0x3c   :  { %3421 = vmatpush.bf16.msrb.mxu0 %v11441_v37  ;;  %v11492_v37 = vld [vmem:[#allocation2 + $0x2c8] sm:$0xff] }
  0x3d   :  { %3434 = vmatpush.bf16.msrb.mxu1 %v11449_v40  ;;  %v11483_v40 = vld [vmem:[#allocation2 + $0x280] sm:$0xff] }
  0x3e   :  { %3447 = vmatpush.bf16.msrb.mxu2 %v11457_v43  ;;  %v11514_v43 = vld [vmem:[#allocation2 + $0x378] sm:$0xff] }
  0x3f   :  { %3460 = vmatpush.bf16.msrb.mxu3 %v11465_v44  ;;  %v11522_v44 = vld [vmem:[#allocation2 + $0x3b8] sm:$0xff] }
  0x40   :  { %3422 = vmatpush.bf16.msrb.mxu0 %v11440_v45  ;;  %v11530_v45 = vld [vmem:[#allocation2 + $0x3f8] sm:$0xff] }
  0x41   :  { %3435 = vmatpush.bf16.msrb.mxu1 %v11448_v46  ;;  %v916_v46 = vld [vmem:[#allocation1] sm:$0xff] }
  0x42   :  { %3448 = vmatpush.bf16.msrb.mxu2 %v11456_v47  ;;  %v918_v47 = vld [vmem:[#allocation1 + $0x12] sm:$0xff] }
  0x43   :  { %3461 = vmatpush.bf16.msrb.mxu3 %v11464_v48  ;;  %v917_v48 = vld [vmem:[#allocation1 + $0x9] sm:$0xff] }
  0x44   :  { %3423 = vmatpush.bf16.msrb.mxu0 %v11439_v49  ;;  %v919_v49 = vld [vmem:[#allocation1 + $0x1b] sm:$0xff] }
  0x45   :  { %3436 = vmatpush.bf16.msrb.mxu1 %v11447_v50  ;;  %v11505_v50 = vld [vmem:[#allocation2 + $0x330] sm:$0xff] }
  0x46   :  { %3449 = vmatpush.bf16.msrb.mxu2 %v11455_v51  ;;  %v11513_v51 = vld [vmem:[#allocation2 + $0x370] sm:$0xff] }
  0x47   :  { %3462 = vmatpush.bf16.msrb.mxu3 %v11463_v52  ;;  %v11521_v52 = vld [vmem:[#allocation2 + $0x3b0] sm:$0xff] }
  0x48   :  { %3424 = vmatpush.bf16.msrb.mxu0 %v11438_v53  ;;  %v11529_v53 = vld [vmem:[#allocation2 + $0x3f0] sm:$0xff] }
  0x49   :  { %3437 = vmatpush.bf16.msrb.mxu1 %v11446_v54  ;;  %v11504_v54 = vld [vmem:[#allocation2 + $0x328] sm:$0xff] }
  0x4a   :  { %3450 = vmatpush.bf16.msrb.mxu2 %v11454_v55  ;;  %v11512_v55 = vld [vmem:[#allocation2 + $0x368] sm:$0xff] }
  0x4b   :  { %3463 = vmatpush.bf16.msrb.mxu3 %v11462_v56  ;;  %v11520_v56 = vld [vmem:[#allocation2 + $0x3a8] sm:$0xff] }
  0x4c   :  { %3425 = vmatpush.bf16.msrb.mxu0 %v11437_v57  ;;  %v11528_v57 = vld [vmem:[#allocation2 + $0x3e8] sm:$0xff] }
  0x4d   :  { %3438 = vmatpush.bf16.msrb.mxu1 %v11445_v58  ;;  %v11503_v58 = vld [vmem:[#allocation2 + $0x320] sm:$0xff] }
  0x4e   :  { %3451 = vmatpush.bf16.msrb.mxu2 %v11453_v59  ;;  %v11511_v59 = vld [vmem:[#allocation2 + $0x360] sm:$0xff] }
  0x4f   :  { %3464 = vmatpush.bf16.msrb.mxu3 %v11461_v60  ;;  %v11519_v60 = vld [vmem:[#allocation2 + $0x3a0] sm:$0xff] }
  0x50   :  { %3426 = vmatpush.bf16.msrb.mxu0 %v11436_v61  ;;  %v11527_v61 = vld [vmem:[#allocation2 + $0x3e0] sm:$0xff] }
  0x51   :  { %3439 = vmatpush.bf16.msrb.mxu1 %v11444_v62  ;;  %v11502_v62 = vld [vmem:[#allocation2 + $0x318] sm:$0xff] }
  0x52   :  { %3452 = vmatpush.bf16.msrb.mxu2 %v11452_v63  ;;  %v11510_v63 = vld [vmem:[#allocation2 + $0x358] sm:$0xff] }
  0x53   :  { %3465 = vmatpush.bf16.msrb.mxu3 %v11460_v0  ;;  %v11518_v0 = vld [vmem:[#allocation2 + $0x398] sm:$0xff] }
  0x54   :  { %3427 = vmatpush.bf16.msrb.mxu0 %v11435_v6  ;;  %v11500_v6 = vld [vmem:[#allocation2 + $0x308] sm:$0xff] }
  0x55   :  { %3440 = vmatpush.bf16.msrb.mxu1 %v11443_v7  ;;  %v11508_v7 = vld [vmem:[#allocation2 + $0x348] sm:$0xff] }
  0x56   :  { %3453 = vmatpush.bf16.msrb.mxu2 %v11451_v8  ;;  %v11516_v8 = vld [vmem:[#allocation2 + $0x388] sm:$0xff] }
  0x57   :  { %3466 = vmatpush.bf16.msrb.mxu3 %v11459_v9  ;;  %3428 = vmatmul.bf16.vlgmr.msrb.gmra.mxu0 %v910_v2  ;;  %v11501_v2 = vld [vmem:[#allocation2 + $0x310] sm:$0xff]  ;;  %v11524_v9 = vld [vmem:[#allocation2 + $0x3c8] sm:$0xff] }
  0x58   :  { %3472 = vmatpush.bf16.msra.mxu0 %v11474_v10  ;;  %3441 = vmatmul.bf16.vlgmr.msrb.gmra.mxu1 %v911_v4  ;;  %v11517_v4 = vld [vmem:[#allocation2 + $0x390] sm:$0xff]  ;;  %v920_v10 = vld [vmem:[#allocation1 + $0x24] sm:$0xff] }
  0x59   :  { %3485 = vmatpush.bf16.msra.mxu1 %v11482_v11  ;;  %3454 = vmatmul.bf16.vlgmr.msrb.gmra.mxu2 %v912_v1  ;;  %v11526_v1 = vld [vmem:[#allocation2 + $0x3d8] sm:$0xff]  ;;  %v922_v11 = vld [vmem:[#allocation1 + $0x36] sm:$0xff] }
  0x5a   :  { %3498 = vmatpush.bf16.msra.mxu2 %v11490_v12  ;;  %3467 = vmatmul.bf16.vlgmr.msrb.gmra.mxu3 %v913_v3  ;;  %v11509_v3 = vld [vmem:[#allocation2 + $0x350] sm:$0xff]  ;;  %v921_v12 = vld [vmem:[#allocation1 + $0x2d] sm:$0xff] }
  0x5b   :  { %3511 = vmatpush.bf16.msra.mxu3 %v11498_v13  ;;  %v923_v13 = vld [vmem:[#allocation1 + $0x3f] sm:$0xff] }
  0x5c   :  { %3473 = vmatpush.bf16.msra.mxu0 %v11473_v14  ;;  %v103_v14 = vld [vmem:[%s12559_s0 + $0x10] sm:$0xff] }
  0x5d   :  { %3486 = vmatpush.bf16.msra.mxu1 %v11481_v15  ;;  %925 = vst [vmem:[#allocation1] ss:$9 sm:$0xff] %v103_v14  ;;  %v11499_v15 = vld [vmem:[#allocation2 + $0x300] sm:$0xff]  ;;  %v11582_v14 = vld [vmem:[#allocation2 + $0x598] sm:$0xff] }
  0x5e   :  { %3499 = vmatpush.bf16.msra.mxu2 %v11489_v16  ;;  %v11507_v16 = vld [vmem:[#allocation2 + $0x340] sm:$0xff] }
  0x5f   :  { %3512 = vmatpush.bf16.msra.mxu3 %v11497_v17  ;;  %v11515_v17 = vld [vmem:[#allocation2 + $0x380] sm:$0xff] }
  0x60   :  { %3474 = vmatpush.bf16.msra.mxu0 %v11472_v18  ;;  %v11523_v18 = vld [vmem:[#allocation2 + $0x3c0] sm:$0xff] }
  0x61   :  { %3487 = vmatpush.bf16.msra.mxu1 %v11480_v19  ;;  %v11538_v19 = vld [vmem:[#allocation2 + $0x438] sm:$0xff] }
  0x62   :  { %3500 = vmatpush.bf16.msra.mxu2 %v11488_v20  ;;  %v11546_v20 = vld [vmem:[#allocation2 + $0x478] sm:$0xff] }
  0x63   :  { %3513 = vmatpush.bf16.msra.mxu3 %v11496_v21  ;;  %v11554_v21 = vld [vmem:[#allocation2 + $0x4b8] sm:$0xff] }
  0x64   :  { %3475 = vmatpush.bf16.msra.mxu0 %v11471_v22  ;;  %v11562_v22 = vld [vmem:[#allocation2 + $0x4f8] sm:$0xff] }
  0x65   :  { %3488 = vmatpush.bf16.msra.mxu1 %v11479_v23  ;;  %v11537_v23 = vld [vmem:[#allocation2 + $0x430] sm:$0xff] }
  0x66   :  { %3501 = vmatpush.bf16.msra.mxu2 %v11487_v24  ;;  %v11545_v24 = vld [vmem:[#allocation2 + $0x470] sm:$0xff] }
  0x67   :  { %3514 = vmatpush.bf16.msra.mxu3 %v11495_v25  ;;  %v11553_v25 = vld [vmem:[#allocation2 + $0x4b0] sm:$0xff] }
  0x68   :  { %3476 = vmatpush.bf16.msra.mxu0 %v11470_v26  ;;  %v11561_v26 = vld [vmem:[#allocation2 + $0x4f0] sm:$0xff] }
  0x69   :  { %3489 = vmatpush.bf16.msra.mxu1 %v11478_v27  ;;  %v11536_v27 = vld [vmem:[#allocation2 + $0x428] sm:$0xff] }
  0x6a   :  { %3502 = vmatpush.bf16.msra.mxu2 %v11486_v28  ;;  %v11544_v28 = vld [vmem:[#allocation2 + $0x468] sm:$0xff] }
  0x6b   :  { %3515 = vmatpush.bf16.msra.mxu3 %v11494_v29  ;;  %v11552_v29 = vld [vmem:[#allocation2 + $0x4a8] sm:$0xff] }
  0x6c   :  { %3477 = vmatpush.bf16.msra.mxu0 %v11469_v30  ;;  %v11560_v30 = vld [vmem:[#allocation2 + $0x4e8] sm:$0xff] }
  0x6d   :  { %3490 = vmatpush.bf16.msra.mxu1 %v11477_v31  ;;  %v11535_v31 = vld [vmem:[#allocation2 + $0x420] sm:$0xff] }
  0x6e   :  { %3503 = vmatpush.bf16.msra.mxu2 %v11485_v32  ;;  %v11543_v32 = vld [vmem:[#allocation2 + $0x460] sm:$0xff] }
  0x6f   :  { %3516 = vmatpush.bf16.msra.mxu3 %v11493_v33  ;;  %v11551_v33 = vld [vmem:[#allocation2 + $0x4a0] sm:$0xff] }
  0x70   :  { %3478 = vmatpush.bf16.msra.mxu0 %v11468_v34  ;;  %v11559_v34 = vld [vmem:[#allocation2 + $0x4e0] sm:$0xff] }
  0x71   :  { %3491 = vmatpush.bf16.msra.mxu1 %v11476_v35  ;;  %v11534_v35 = vld [vmem:[#allocation2 + $0x418] sm:$0xff] }
  0x72   :  { %3504 = vmatpush.bf16.msra.mxu2 %v11484_v36  ;;  %v11542_v36 = vld [vmem:[#allocation2 + $0x458] sm:$0xff] }
  0x73   :  { %3517 = vmatpush.bf16.msra.mxu3 %v11492_v37  ;;  %v11550_v37 = vld [vmem:[#allocation2 + $0x498] sm:$0xff] }
  0x74   :  { %3479 = vmatpush.bf16.msra.mxu0 %v11467_v38  ;;  %v11558_v38 = vld [vmem:[#allocation2 + $0x4d8] sm:$0xff] }
  0x75   :  { %3492 = vmatpush.bf16.msra.mxu1 %v11475_v39  ;;  %v11533_v39 = vld [vmem:[#allocation2 + $0x410] sm:$0xff] }
  0x76   :  { %3505 = vmatpush.bf16.msra.mxu2 %v11483_v40  ;;  %v11541_v40 = vld [vmem:[#allocation2 + $0x450] sm:$0xff] }
  0x77   :  { %3518 = vmatpush.bf16.msra.mxu3 %v11491_v41  ;;  %3480 = vmatmul.bf16.vlgmr.msra.gmra.mxu0 %v916_v46  ;;  %v11549_v41 = vld [vmem:[#allocation2 + $0x490] sm:$0xff]  ;;  %v11556_v46 = vld [vmem:[#allocation2 + $0x4c8] sm:$0xff] }
  0x78   :  { %3524 = vmatpush.bf16.msrb.mxu0 %v11506_v42  ;;  %3493 = vmatmul.bf16.vlgmr.msra.gmra.mxu1 %v917_v48  ;;  %v11557_v42 = vld [vmem:[#allocation2 + $0x4d0] sm:$0xff]  ;;  %v11539_v48 = vld [vmem:[#allocation2 + $0x440] sm:$0xff] }
  0x79   :  { %3537 = vmatpush.bf16.msrb.mxu1 %v11514_v43  ;;  %3506 = vmatmul.bf16.vlgmr.msra.gmra.mxu2 %v918_v47  ;;  %v11532_v43 = vld [vmem:[#allocation2 + $0x408] sm:$0xff]  ;;  %v11531_v47 = vld [vmem:[#allocation2 + $0x400] sm:$0xff] }
  0x7a   :  { %3550 = vmatpush.bf16.msrb.mxu2 %v11522_v44  ;;  %3519 = vmatmul.bf16.vlgmr.msra.gmra.mxu3 %v919_v49  ;;  %v11540_v44 = vld [vmem:[#allocation2 + $0x448] sm:$0xff]  ;;  %v11547_v49 = vld [vmem:[#allocation2 + $0x480] sm:$0xff] }
  0x7b   :  { %3563 = vmatpush.bf16.msrb.mxu3 %v11530_v45  ;;  %v11548_v45 = vld [vmem:[#allocation2 + $0x488] sm:$0xff] }
  0x7c   :  { %3525 = vmatpush.bf16.msrb.mxu0 %v11505_v50  ;;  %v11555_v50 = vld [vmem:[#allocation2 + $0x4c0] sm:$0xff] }
  0x7d   :  { %3538 = vmatpush.bf16.msrb.mxu1 %v11513_v51  ;;  %v11570_v51 = vld [vmem:[#allocation2 + $0x538] sm:$0xff] }
  0x7e   :  { %3551 = vmatpush.bf16.msrb.mxu2 %v11521_v52  ;;  %v11578_v52 = vld [vmem:[#allocation2 + $0x578] sm:$0xff] }
  0x7f   :  { %3564 = vmatpush.bf16.msrb.mxu3 %v11529_v53  ;;  %v11586_v53 = vld [vmem:[#allocation2 + $0x5b8] sm:$0xff] }
  0x80   :  { %3526 = vmatpush.bf16.msrb.mxu0 %v11504_v54  ;;  %v11594_v54 = vld [vmem:[#allocation2 + $0x5f8] sm:$0xff] }
  0x81   :  { %3539 = vmatpush.bf16.msrb.mxu1 %v11512_v55  ;;  %v926_v55 = vld [vmem:[#allocation1] sm:$0xff] }
  0x82   :  { %3552 = vmatpush.bf16.msrb.mxu2 %v11520_v56  ;;  %v928_v56 = vld [vmem:[#allocation1 + $0x12] sm:$0xff] }
  0x83   :  { %3565 = vmatpush.bf16.msrb.mxu3 %v11528_v57  ;;  %v927_v57 = vld [vmem:[#allocation1 + $0x9] sm:$0xff] }
  0x84   :  { %3527 = vmatpush.bf16.msrb.mxu0 %v11503_v58  ;;  %v929_v58 = vld [vmem:[#allocation1 + $0x1b] sm:$0xff] }
  0x85   :  { %3540 = vmatpush.bf16.msrb.mxu1 %v11511_v59  ;;  %v11569_v59 = vld [vmem:[#allocation2 + $0x530] sm:$0xff] }
  0x86   :  { %3553 = vmatpush.bf16.msrb.mxu2 %v11519_v60  ;;  %v11577_v60 = vld [vmem:[#allocation2 + $0x570] sm:$0xff] }
  0x87   :  { %3566 = vmatpush.bf16.msrb.mxu3 %v11527_v61  ;;  %v11585_v61 = vld [vmem:[#allocation2 + $0x5b0] sm:$0xff] }
  0x88   :  { %3528 = vmatpush.bf16.msrb.mxu0 %v11502_v62  ;;  %v11593_v62 = vld [vmem:[#allocation2 + $0x5f0] sm:$0xff] }
  0x89   :  { %3541 = vmatpush.bf16.msrb.mxu1 %v11510_v63  ;;  %v11568_v63 = vld [vmem:[#allocation2 + $0x528] sm:$0xff] }
  0x8a   :  { %3554 = vmatpush.bf16.msrb.mxu2 %v11518_v0  ;;  %v11576_v0 = vld [vmem:[#allocation2 + $0x568] sm:$0xff] }
  0x8b   :  { %3567 = vmatpush.bf16.msrb.mxu3 %v11526_v1  ;;  %v12221_v1 = vld [vmem:[#allocation5] ss:$0 sm:$0xff] }
  0x8c   :  { %3529 = vmatpush.bf16.msrb.mxu0 %v11501_v2  ;;  %v11584_v2 = vld [vmem:[#allocation2 + $0x5a8] sm:$0xff] }
  0x8d   :  { %3542 = vmatpush.bf16.msrb.mxu1 %v11509_v3  ;;  %v11592_v3 = vld [vmem:[#allocation2 + $0x5e8] sm:$0xff] }
  0x8e   :  { %3555 = vmatpush.bf16.msrb.mxu2 %v11517_v4 }
  0x8f   :  { %3568 = vmatpush.bf16.msrb.mxu3 %v11525_v5  ;;  %v11567_v5 = vld [vmem:[#allocation2 + $0x520] sm:$0xff] }
  0x90   :  { %3530 = vmatpush.bf16.msrb.mxu0 %v11500_v6  ;;  %v11575_v6 = vld [vmem:[#allocation2 + $0x560] sm:$0xff] }
  0x91   :  { %3543 = vmatpush.bf16.msrb.mxu1 %v11508_v7 }
  0x92   :  { %3556 = vmatpush.bf16.msrb.mxu2 %v11516_v8 }
  0x93   :  { %3569 = vmatpush.bf16.msrb.mxu3 %v11524_v9  ;;  %v11583_v9 = vld [vmem:[#allocation2 + $0x5a0] sm:$0xff] }
  0x94   :  { %3531 = vmatpush.bf16.msrb.mxu0 %v11499_v15  ;;  %v11590_v15 = vld [vmem:[#allocation2 + $0x5d8] sm:$0xff] }
  0x95   :  { %3544 = vmatpush.bf16.msrb.mxu1 %v11507_v16 }
  0x96   :  { %3557 = vmatpush.bf16.msrb.mxu2 %v11515_v17 }
  0x97   :  { %3570 = vmatpush.bf16.msrb.mxu3 %v11523_v18  ;;  %3532 = vmatmul.bf16.vlgmr.msrb.gmra.mxu0 %v920_v10  ;;  %v11591_v10 = vld [vmem:[#allocation2 + $0x5e0] sm:$0xff] }
  0x98   :  { %3576 = vmatpush.bf16.msra.mxu0 %v11538_v19  ;;  %3545 = vmatmul.bf16.vlgmr.msrb.gmra.mxu1 %v921_v12  ;;  %v11566_v12 = vld [vmem:[#allocation2 + $0x518] sm:$0xff] }
  0x99   :  { %3589 = vmatpush.bf16.msra.mxu1 %v11546_v20  ;;  %3558 = vmatmul.bf16.vlgmr.msrb.gmra.mxu2 %v922_v11  ;;  %v11565_v20 = vld [vmem:[#allocation2 + $0x510] sm:$0xff] }
  0x9a   :  { %3602 = vmatpush.bf16.msra.mxu2 %v11554_v21  ;;  %3571 = vmatmul.bf16.vlgmr.msrb.gmra.mxu3 %v923_v13  ;;  %v11574_v13 = vld [vmem:[#allocation2 + $0x558] sm:$0xff]  ;;  %v11573_v21 = vld [vmem:[#allocation2 + $0x550] sm:$0xff] }
  0x9b   :  { %3615 = vmatpush.bf16.msra.mxu3 %v11562_v22 }
  0x9c   :  { %3577 = vmatpush.bf16.msra.mxu0 %v11537_v23 }
  0x9d   :  { %3590 = vmatpush.bf16.msra.mxu1 %v11545_v24  ;;  %v11581_v24 = vld [vmem:[#allocation2 + $0x590] sm:$0xff] }
  0x9e   :  { %3603 = vmatpush.bf16.msra.mxu2 %v11553_v25  ;;  %v11589_v25 = vld [vmem:[#allocation2 + $0x5d0] sm:$0xff] }
  0x9f   :  { %3616 = vmatpush.bf16.msra.mxu3 %v11561_v26  ;;  %v11564_v26 = vld [vmem:[#allocation2 + $0x508] sm:$0xff] }
  0xa0   :  { %3578 = vmatpush.bf16.msra.mxu0 %v11536_v27  ;;  %v11572_v27 = vld [vmem:[#allocation2 + $0x548] sm:$0xff] }
  0xa1   :  { %3591 = vmatpush.bf16.msra.mxu1 %v11544_v28  ;;  %v11580_v28 = vld [vmem:[#allocation2 + $0x588] sm:$0xff] }
  0xa2   :  { %3604 = vmatpush.bf16.msra.mxu2 %v11552_v29  ;;  %v11588_v29 = vld [vmem:[#allocation2 + $0x5c8] sm:$0xff] }
  0xa3   :  { %3617 = vmatpush.bf16.msra.mxu3 %v11560_v30  ;;  %v930_v30 = vld [vmem:[#allocation1 + $0x24] sm:$0xff] }
  0xa4   :  { %3579 = vmatpush.bf16.msra.mxu0 %v11535_v31  ;;  %v932_v31 = vld [vmem:[#allocation1 + $0x36] sm:$0xff] }
  0xa5   :  { %3592 = vmatpush.bf16.msra.mxu1 %v11543_v32 }
  0xa6   :  { %3605 = vmatpush.bf16.msra.mxu2 %v11551_v33  ;;  %v931_v33 = vld [vmem:[#allocation1 + $0x2d] sm:$0xff] }
  0xa7   :  { %3618 = vmatpush.bf16.msra.mxu3 %v11559_v34  ;;  %v933_v34 = vld [vmem:[#allocation1 + $0x3f] sm:$0xff] }
  0xa8   :  { %3580 = vmatpush.bf16.msra.mxu0 %v11534_v35 }
  0xa9   :  { %3593 = vmatpush.bf16.msra.mxu1 %v11542_v36  ;;  %v104_v36 = vld [vmem:[%s12559_s0 + $0x18] sm:$0xff] }
  0xaa   :  { %3606 = vmatpush.bf16.msra.mxu2 %v11550_v37  ;;  %935 = vst [vmem:[#allocation1] ss:$9 sm:$0xff] %v104_v36  ;;  %v11563_v37 = vld [vmem:[#allocation2 + $0x500] sm:$0xff]  ;;  %v11656_v36 = vld [vmem:[#allocation2 + $0x7e8] sm:$0xff] }
  0xab   :  { %3619 = vmatpush.bf16.msra.mxu3 %v11558_v38  ;;  %v11571_v38 = vld [vmem:[#allocation2 + $0x540] sm:$0xff] }
  0xac   :  { %3581 = vmatpush.bf16.msra.mxu0 %v11533_v39  ;;  %v11579_v39 = vld [vmem:[#allocation2 + $0x580] sm:$0xff] }
  0xad   :  { %3594 = vmatpush.bf16.msra.mxu1 %v11541_v40  ;;  %v11587_v40 = vld [vmem:[#allocation2 + $0x5c0] sm:$0xff] }
  0xae   :  { %3607 = vmatpush.bf16.msra.mxu2 %v11549_v41  ;;  %v11602_v41 = vld [vmem:[#allocation2 + $0x638] sm:$0xff] }
  0xaf   :  { %3620 = vmatpush.bf16.msra.mxu3 %v11557_v42  ;;  %v11610_v42 = vld [vmem:[#allocation2 + $0x678] sm:$0xff] }
  0xb0   :  { %3582 = vmatpush.bf16.msra.mxu0 %v11532_v43  ;;  %v11618_v43 = vld [vmem:[#allocation2 + $0x6b8] sm:$0xff] }
  0xb1   :  { %3595 = vmatpush.bf16.msra.mxu1 %v11540_v44  ;;  %v11626_v44 = vld [vmem:[#allocation2 + $0x6f8] sm:$0xff] }
  0xb2   :  { %3608 = vmatpush.bf16.msra.mxu2 %v11548_v45  ;;  %v11601_v45 = vld [vmem:[#allocation2 + $0x630] sm:$0xff] }
  0xb3   :  { %3621 = vmatpush.bf16.msra.mxu3 %v11556_v46  ;;  %v11609_v46 = vld [vmem:[#allocation2 + $0x670] sm:$0xff] }
  0xb4   :  { %3583 = vmatpush.bf16.msra.mxu0 %v11531_v47  ;;  %v3377_v4 = vpop.f32.mrf.mxu0  ;;  %v11617_v47 = vld [vmem:[#allocation2 + $0x6b0] sm:$0xff] }
  0xb5   :  { %3596 = vmatpush.bf16.msra.mxu1 %v11539_v48  ;;  %v3378_v7 = vadd.f32 %v12221_v1, %v3377_v4  ;;  %v3390_v8 = vpop.f32.mrf.mxu1  ;;  %v11625_v48 = vld [vmem:[#allocation2 + $0x6f0] sm:$0xff] }
  0xb6   :  { %3609 = vmatpush.bf16.msra.mxu2 %v11547_v49  ;;  %v11600_v49 = vld [vmem:[#allocation2 + $0x628] sm:$0xff] }
  0xb7   :  { %3622 = vmatpush.bf16.msra.mxu3 %v11555_v50  ;;  %3584 = vmatmul.bf16.vlgmr.msra.gmra.mxu0 %v926_v55  ;;  %v3391_v11 = vadd.f32 %v3390_v8, %v3378_v7  ;;  %v11608_v50 = vld [vmem:[#allocation2 + $0x668] sm:$0xff]  ;;  %v11607_v55 = vld [vmem:[#allocation2 + $0x660] sm:$0xff] }
  0xb8   :  { %3628 = vmatpush.bf16.msrb.mxu0 %v11570_v51  ;;  %3597 = vmatmul.bf16.vlgmr.msra.gmra.mxu1 %v927_v57  ;;  %v11616_v51 = vld [vmem:[#allocation2 + $0x6a8] sm:$0xff] }
  0xb9   :  { %3641 = vmatpush.bf16.msrb.mxu1 %v11578_v52  ;;  %3610 = vmatmul.bf16.vlgmr.msra.gmra.mxu2 %v928_v56  ;;  %v11624_v52 = vld [vmem:[#allocation2 + $0x6e8] sm:$0xff] }
  0xba   :  { %3654 = vmatpush.bf16.msrb.mxu2 %v11586_v53  ;;  %3623 = vmatmul.bf16.vlgmr.msra.gmra.mxu3 %v929_v58  ;;  %v11615_v58 = vld [vmem:[#allocation2 + $0x6a0] sm:$0xff] }
  0xbb   :  { %3667 = vmatpush.bf16.msrb.mxu3 %v11594_v54  ;;  %v11599_v54 = vld [vmem:[#allocation2 + $0x620] sm:$0xff] }
  0xbc   :  { %3629 = vmatpush.bf16.msrb.mxu0 %v11569_v59  ;;  %v3403_v16 = vpop.f32.mrf.mxu2  ;;  %v3379_v19 = vpop.f32.mrf.mxu0  ;;  %v11623_v59 = vld [vmem:[#allocation2 + $0x6e0] sm:$0xff] }
  0xbd   :  { %3642 = vmatpush.bf16.msrb.mxu1 %v11577_v60  ;;  %v3404_v17 = vadd.f32 %v3403_v16, %v3391_v11  ;;  %v3416_v18 = vpop.f32.mrf.mxu3  ;;  %v3392_v23 = vpop.f32.mrf.mxu1  ;;  %v11596_v11 = vld [vmem:[#allocation2 + $0x608] sm:$0xff]  ;;  %v11611_v19 = vld [vmem:[#allocation2 + $0x680] sm:$0xff] }
  0xbe   :  { %3655 = vmatpush.bf16.msrb.mxu2 %v11585_v61  ;;  %v11598_v61 = vld [vmem:[#allocation2 + $0x618] sm:$0xff] }
  0xbf   :  { %3668 = vmatpush.bf16.msrb.mxu3 %v11593_v62  ;;  %v12451_v22 = vadd.f32 %v3416_v18, %v3404_v17  ;;  %v11606_v62 = vld [vmem:[#allocation2 + $0x658] sm:$0xff]  ;;  %v11595_v17 = vld [vmem:[#allocation2 + $0x600] sm:$0xff] }
  0xc0   :  { %3630 = vmatpush.bf16.msrb.mxu0 %v11568_v63  ;;  %v11614_v63 = vld [vmem:[#allocation2 + $0x698] sm:$0xff]  ;;  %v11603_v18 = vld [vmem:[#allocation2 + $0x640] sm:$0xff] }
  0xc1   :  { %3643 = vmatpush.bf16.msrb.mxu1 %v11576_v0  ;;  %v11622_v0 = vld [vmem:[#allocation2 + $0x6d8] sm:$0xff] }
  0xc2   :  { %3656 = vmatpush.bf16.msrb.mxu2 %v11584_v2  ;;  %v11650_v23 = vld [vmem:[#allocation2 + $0x7b8] sm:$0xff] }
  0xc3   :  { %3669 = vmatpush.bf16.msrb.mxu3 %v11592_v3 }
  0xc4   :  { %3631 = vmatpush.bf16.msrb.mxu0 %v11567_v5  ;;  %v3405_v32 = vpop.f32.mrf.mxu2  ;;  %v11597_v5 = vld [vmem:[#allocation2 + $0x610] sm:$0xff] }
  0xc5   :  { %3644 = vmatpush.bf16.msrb.mxu1 %v11575_v6  ;;  %v3418_v35 = vpop.f32.mrf.mxu3  ;;  %v11605_v6 = vld [vmem:[#allocation2 + $0x650] sm:$0xff] }
  0xc6   :  { %3657 = vmatpush.bf16.msrb.mxu2 %v11583_v9  ;;  %v11613_v9 = vld [vmem:[#allocation2 + $0x690] sm:$0xff]  ;;  %v11648_v35 = vld [vmem:[#allocation2 + $0x7a8] sm:$0xff] }
  0xc7   :  { %3670 = vmatpush.bf16.msrb.mxu3 %v11591_v10  ;;  %v11621_v10 = vld [vmem:[#allocation2 + $0x6d0] sm:$0xff] }
  0xc8   :  { %3632 = vmatpush.bf16.msrb.mxu0 %v11566_v12  ;;  %v11604_v12 = vld [vmem:[#allocation2 + $0x648] sm:$0xff]  ;;  %v11657_v32 = vld [vmem:[#allocation2 + $0x7f0] sm:$0xff] }
  0xc9   :  { %3645 = vmatpush.bf16.msrb.mxu1 %v11574_v13  ;;  %v11612_v13 = vld [vmem:[#allocation2 + $0x688] sm:$0xff] }
  0xca   :  { %3658 = vmatpush.bf16.msrb.mxu2 %v11582_v14  ;;  %v11620_v14 = vld [vmem:[#allocation2 + $0x6c8] sm:$0xff] }
  0xcb   :  { %3671 = vmatpush.bf16.msrb.mxu3 %v11590_v15 }
  0xcc   :  { %3633 = vmatpush.bf16.msrb.mxu0 %v11565_v20  ;;  %v11619_v20 = vld [vmem:[#allocation2 + $0x6c0] sm:$0xff] }
  0xcd   :  { %3646 = vmatpush.bf16.msrb.mxu1 %v11573_v21  ;;  %v11634_v21 = vld [vmem:[#allocation2 + $0x738] sm:$0xff] }
  0xce   :  { %3659 = vmatpush.bf16.msrb.mxu2 %v11581_v24  ;;  %v11658_v24 = vld [vmem:[#allocation2 + $0x7f8] sm:$0xff] }
  0xcf   :  { %3672 = vmatpush.bf16.msrb.mxu3 %v11589_v25  ;;  %v936_v25 = vld [vmem:[#allocation1] sm:$0xff] }
  0xd0   :  { %3634 = vmatpush.bf16.msrb.mxu0 %v11564_v26  ;;  %v938_v26 = vld [vmem:[#allocation1 + $0x12] sm:$0xff] }
  0xd1   :  { %3647 = vmatpush.bf16.msrb.mxu1 %v11572_v27  ;;  %v937_v27 = vld [vmem:[#allocation1 + $0x9] sm:$0xff] }
  0xd2   :  { %3660 = vmatpush.bf16.msrb.mxu2 %v11580_v28  ;;  %v939_v28 = vld [vmem:[#allocation1 + $0x1b] sm:$0xff] }
  0xd3   :  { %3673 = vmatpush.bf16.msrb.mxu3 %v11588_v29  ;;  %v11633_v29 = vld [vmem:[#allocation2 + $0x730] sm:$0xff] }
  0xd4   :  { %3635 = vmatpush.bf16.msrb.mxu0 %v11563_v37  ;;  %v3429_v53 = vpop.f32.mrf.mxu0 }
  0xd5   :  { %3648 = vmatpush.bf16.msrb.mxu1 %v11571_v38  ;;  %v3430_v56 = vadd.f32 %v3429_v53, %v12451_v22  ;;  %v3442_v57 = vpop.f32.mrf.mxu1  ;;  %v11642_v22 = vld [vmem:[#allocation2 + $0x778] sm:$0xff] }
  0xd6   :  { %3661 = vmatpush.bf16.msrb.mxu2 %v11579_v39  ;;  %v11631_v39 = vld [vmem:[#allocation2 + $0x720] sm:$0xff] }
  0xd7   :  { %3674 = vmatpush.bf16.msrb.mxu3 %v11587_v40  ;;  %3636 = vmatmul.bf16.vlgmr.msrb.gmra.mxu0 %v930_v30  ;;  %v3443_v60 = vadd.f32 %v3442_v57, %v3430_v56  ;;  %v11641_v30 = vld [vmem:[#allocation2 + $0x770] sm:$0xff]  ;;  %v11639_v40 = vld [vmem:[#allocation2 + $0x760] sm:$0xff] }
  0xd8   :  { %3680 = vmatpush.bf16.msra.mxu0 %v11602_v41  ;;  %3649 = vmatmul.bf16.vlgmr.msrb.gmra.mxu1 %v931_v33  ;;  %v11632_v33 = vld [vmem:[#allocation2 + $0x728] sm:$0xff]  ;;  %v11645_v57 = vld [vmem:[#allocation2 + $0x790] sm:$0xff] }
  0xd9   :  { %3693 = vmatpush.bf16.msra.mxu1 %v11610_v42  ;;  %3662 = vmatmul.bf16.vlgmr.msrb.gmra.mxu2 %v932_v31  ;;  %v11649_v31 = vld [vmem:[#allocation2 + $0x7b0] sm:$0xff]  ;;  %v11647_v42 = vld [vmem:[#allocation2 + $0x7a0] sm:$0xff] }
  0xda   :  { %3706 = vmatpush.bf16.msra.mxu2 %v11618_v43  ;;  %3675 = vmatmul.bf16.vlgmr.msrb.gmra.mxu3 %v933_v34  ;;  %v11640_v34 = vld [vmem:[#allocation2 + $0x768] sm:$0xff]  ;;  %v11655_v43 = vld [vmem:[#allocation2 + $0x7e0] sm:$0xff] }
  0xdb   :  { %3719 = vmatpush.bf16.msra.mxu3 %v11626_v44 }
  0xdc   :  { %3681 = vmatpush.bf16.msra.mxu0 %v11601_v45  ;;  %v3455_v1 = vpop.f32.mrf.mxu2  ;;  %v3431_v4 = vpop.f32.mrf.mxu0  ;;  %v11630_v45 = vld [vmem:[#allocation2 + $0x718] sm:$0xff] }
  0xdd   :  { %3694 = vmatpush.bf16.msra.mxu1 %v11609_v46  ;;  %v3456_v2 = vadd.f32 %v3455_v1, %v3443_v60  ;;  %v3468_v3 = vpop.f32.mrf.mxu3  ;;  %v3444_v8 = vpop.f32.mrf.mxu1  ;;  %v11638_v46 = vld [vmem:[#allocation2 + $0x758] sm:$0xff]  ;;  %v11636_v60 = vld [vmem:[#allocation2 + $0x748] sm:$0xff] }
  0xde   :  { %3707 = vmatpush.bf16.msra.mxu2 %v11617_v47  ;;  %v11646_v47 = vld [vmem:[#allocation2 + $0x798] sm:$0xff]  ;;  %v11643_v8 = vld [vmem:[#allocation2 + $0x780] sm:$0xff] }
  0xdf   :  { %3720 = vmatpush.bf16.msra.mxu3 %v11625_v48  ;;  %v3469_v7 = vadd.f32 %v3468_v3, %v3456_v2  ;;  %v11654_v48 = vld [vmem:[#allocation2 + $0x7d8] sm:$0xff]  ;;  %v941_v2 = vld [vmem:[#allocation1 + $0x2d] sm:$0xff] }
  0xe0   :  { %3682 = vmatpush.bf16.msra.mxu0 %v11600_v49  ;;  %v943_v3 = vld [vmem:[#allocation1 + $0x3f] sm:$0xff] }
  0xe1   :  { %3695 = vmatpush.bf16.msra.mxu1 %v11608_v50 }
  0xe2   :  { %3708 = vmatpush.bf16.msra.mxu2 %v11616_v51 }
  0xe3   :  { %3721 = vmatpush.bf16.msra.mxu3 %v11624_v52 }
  0xe4   :  { %3683 = vmatpush.bf16.msra.mxu0 %v11599_v54  ;;  %v3457_v15 = vpop.f32.mrf.mxu2  ;;  %v11629_v54 = vld [vmem:[#allocation2 + $0x710] sm:$0xff] }
  0xe5   :  { %3696 = vmatpush.bf16.msra.mxu1 %v11607_v55  ;;  %v3470_v16 = vpop.f32.mrf.mxu3  ;;  %v11637_v55 = vld [vmem:[#allocation2 + $0x750] sm:$0xff] }
  0xe6   :  { %3709 = vmatpush.bf16.msra.mxu2 %v11615_v58  ;;  %v11653_v58 = vld [vmem:[#allocation2 + $0x7d0] sm:$0xff] }
  0xe7   :  { %3722 = vmatpush.bf16.msra.mxu3 %v11623_v59  ;;  %v11628_v59 = vld [vmem:[#allocation2 + $0x708] sm:$0xff]  ;;  %v11673_v15 = vld [vmem:[#allocation2 + $0x870] sm:$0xff] }
  0xe8   :  { %3684 = vmatpush.bf16.msra.mxu0 %v11598_v61  ;;  %v11644_v61 = vld [vmem:[#allocation2 + $0x788] sm:$0xff]  ;;  %v11681_v16 = vld [vmem:[#allocation2 + $0x8b0] sm:$0xff] }
  0xe9   :  { %3697 = vmatpush.bf16.msra.mxu1 %v11606_v62  ;;  %v11652_v62 = vld [vmem:[#allocation2 + $0x7c8] sm:$0xff] }
  0xea   :  { %3710 = vmatpush.bf16.msra.mxu2 %v11614_v63  ;;  %v940_v63 = vld [vmem:[#allocation1 + $0x24] sm:$0xff] }
  0xeb   :  { %3723 = vmatpush.bf16.msra.mxu3 %v11622_v0  ;;  %v942_v0 = vld [vmem:[#allocation1 + $0x36] sm:$0xff] }
  0xec   :  { %3685 = vmatpush.bf16.msra.mxu0 %v11597_v5  ;;  %v105_v5 = vld [vmem:[%s12559_s0 + $0x20] sm:$0xff] }
  0xed   :  { %3698 = vmatpush.bf16.msra.mxu1 %v11605_v6  ;;  %945 = vst [vmem:[#allocation1] ss:$9 sm:$0xff] %v105_v5  ;;  %v11627_v6 = vld [vmem:[#allocation2 + $0x700] sm:$0xff]  ;;  %v11720_v5 = vld [vmem:[#allocation2 + $0x9e8] sm:$0xff] }
  0xee   :  { %3711 = vmatpush.bf16.msra.mxu2 %v11613_v9  ;;  %v11651_v9 = vld [vmem:[#allocation2 + $0x7c0] sm:$0xff] }
  0xef   :  { %3724 = vmatpush.bf16.msra.mxu3 %v11621_v10  ;;  %v11666_v10 = vld [vmem:[#allocation2 + $0x838] sm:$0xff] }
  0xf0   :  { %3686 = vmatpush.bf16.msra.mxu0 %v11596_v11  ;;  %v11674_v11 = vld [vmem:[#allocation2 + $0x878] sm:$0xff] }
  0xf1   :  { %3699 = vmatpush.bf16.msra.mxu1 %v11604_v12  ;;  %v11682_v12 = vld [vmem:[#allocation2 + $0x8b8] sm:$0xff] }
  0xf2   :  { %3712 = vmatpush.bf16.msra.mxu2 %v11612_v13  ;;  %v11690_v13 = vld [vmem:[#allocation2 + $0x8f8] sm:$0xff] }
  0xf3   :  { %3725 = vmatpush.bf16.msra.mxu3 %v11620_v14  ;;  %v11665_v14 = vld [vmem:[#allocation2 + $0x830] sm:$0xff] }
  0xf4   :  { %3687 = vmatpush.bf16.msra.mxu0 %v11595_v17  ;;  %v3481_v37 = vpop.f32.mrf.mxu0  ;;  %v11689_v17 = vld [vmem:[#allocation2 + $0x8f0] sm:$0xff] }
  0xf5   :  { %3700 = vmatpush.bf16.msra.mxu1 %v11603_v18  ;;  %v3482_v38 = vadd.f32 %v3481_v37, %v3469_v7  ;;  %v3494_v41 = vpop.f32.mrf.mxu1  ;;  %v11635_v7 = vld [vmem:[#allocation2 + $0x740] sm:$0xff]  ;;  %v11664_v18 = vld [vmem:[#allocation2 + $0x828] sm:$0xff] }
  0xf6   :  { %3713 = vmatpush.bf16.msra.mxu2 %v11611_v19  ;;  %v11672_v19 = vld [vmem:[#allocation2 + $0x868] sm:$0xff] }
  0xf7   :  { %3726 = vmatpush.bf16.msra.mxu3 %v11619_v20  ;;  %3688 = vmatmul.bf16.vlgmr.msra.gmra.mxu0 %v936_v25  ;;  %v3495_v44 = vadd.f32 %v3494_v41, %v3482_v38  ;;  %v11680_v20 = vld [vmem:[#allocation2 + $0x8a8] sm:$0xff]  ;;  %v11671_v25 = vld [vmem:[#allocation2 + $0x860] sm:$0xff] }
  0xf8   :  { %3732 = vmatpush.bf16.msrb.mxu0 %v11634_v21  ;;  %3701 = vmatmul.bf16.vlgmr.msra.gmra.mxu1 %v937_v27  ;;  %v11688_v21 = vld [vmem:[#allocation2 + $0x8e8] sm:$0xff]  ;;  %v11679_v27 = vld [vmem:[#allocation2 + $0x8a0] sm:$0xff] }
  0xf9   :  { %3745 = vmatpush.bf16.msrb.mxu1 %v11642_v22  ;;  %3714 = vmatmul.bf16.vlgmr.msra.gmra.mxu2 %v938_v26 }
  0xfa   :  { %3758 = vmatpush.bf16.msrb.mxu2 %v11650_v23  ;;  %3727 = vmatmul.bf16.vlgmr.msra.gmra.mxu3 %v939_v28  ;;  %v11687_v28 = vld [vmem:[#allocation2 + $0x8e0] sm:$0xff] }
  0xfb   :  { %3771 = vmatpush.bf16.msrb.mxu3 %v11658_v24  ;;  %v11663_v24 = vld [vmem:[#allocation2 + $0x820] sm:$0xff] }
  0xfc   :  { %3733 = vmatpush.bf16.msrb.mxu0 %v11633_v29  ;;  %v3507_v49 = vpop.f32.mrf.mxu2  ;;  %v3483_v52 = vpop.f32.mrf.mxu0 }
  0xfd   :  { %3746 = vmatpush.bf16.msrb.mxu1 %v11641_v30  ;;  %v3508_v50 = vadd.f32 %v3507_v49, %v3495_v44  ;;  %v3520_v51 = vpop.f32.mrf.mxu3  ;;  %v3496_v56 = vpop.f32.mrf.mxu1  ;;  %v11662_v30 = vld [vmem:[#allocation2 + $0x818] sm:$0xff]  ;;  %v11660_v44 = vld [vmem:[#allocation2 + $0x808] sm:$0xff]  ;;  %v11675_v52 = vld [vmem:[#allocation2 + $0x880] sm:$0xff] }
  0xfe   :  { %3759 = vmatpush.bf16.msrb.mxu2 %v11649_v31  ;;  %v11670_v31 = vld [vmem:[#allocation2 + $0x858] sm:$0xff] }
  0xff   :  { %3772 = vmatpush.bf16.msrb.mxu3 %v11657_v32  ;;  %v12457_v53 = vadd.f32 %v3520_v51, %v3508_v50  ;;  %v11678_v32 = vld [vmem:[#allocation2 + $0x898] sm:$0xff]  ;;  %v11659_v50 = vld [vmem:[#allocation2 + $0x800] sm:$0xff] }
 0x100   :  { %3734 = vmatpush.bf16.msrb.mxu0 %v11632_v33  ;;  %v11686_v33 = vld [vmem:[#allocation2 + $0x8d8] sm:$0xff]  ;;  %v11667_v51 = vld [vmem:[#allocation2 + $0x840] sm:$0xff] }
 0x101   :  { %3747 = vmatpush.bf16.msrb.mxu1 %v11640_v34  ;;  %v11714_v56 = vld [vmem:[#allocation2 + $0x9b8] sm:$0xff] }
 0x102   :  { %3760 = vmatpush.bf16.msrb.mxu2 %v11648_v35 }
 0x103   :  { %3773 = vmatpush.bf16.msrb.mxu3 %v11656_v36 }
 0x104   :  { %3735 = vmatpush.bf16.msrb.mxu0 %v11631_v39  ;;  %v3509_v1 = vpop.f32.mrf.mxu2  ;;  %v11661_v39 = vld [vmem:[#allocation2 + $0x810] sm:$0xff] }
 0x105   :  { %3748 = vmatpush.bf16.msrb.mxu1 %v11639_v40  ;;  %v3522_v4 = vpop.f32.mrf.mxu3  ;;  %v11669_v40 = vld [vmem:[#allocation2 + $0x850] sm:$0xff] }
 0x106   :  { %3761 = vmatpush.bf16.msrb.mxu2 %v11647_v42  ;;  %v11677_v42 = vld [vmem:[#allocation2 + $0x890] sm:$0xff]  ;;  %v11712_v4 = vld [vmem:[#allocation2 + $0x9a8] sm:$0xff] }
 0x107   :  { %3774 = vmatpush.bf16.msrb.mxu3 %v11655_v43  ;;  %v11685_v43 = vld [vmem:[#allocation2 + $0x8d0] sm:$0xff] }
 0x108   :  { %3736 = vmatpush.bf16.msrb.mxu0 %v11630_v45  ;;  %v11668_v45 = vld [vmem:[#allocation2 + $0x848] sm:$0xff]  ;;  %v11721_v1 = vld [vmem:[#allocation2 + $0x9f0] sm:$0xff] }
 0x109   :  { %3749 = vmatpush.bf16.msrb.mxu1 %v11638_v46  ;;  %v11676_v46 = vld [vmem:[#allocation2 + $0x888] sm:$0xff] }
 0x10a   :  { %3762 = vmatpush.bf16.msrb.mxu2 %v11646_v47  ;;  %v11684_v47 = vld [vmem:[#allocation2 + $0x8c8] sm:$0xff] }
 0x10b   :  { %3775 = vmatpush.bf16.msrb.mxu3 %v11654_v48 }
 0x10c   :  { %3737 = vmatpush.bf16.msrb.mxu0 %v11629_v54  ;;  %v11698_v54 = vld [vmem:[#allocation2 + $0x938] sm:$0xff] }
 0x10d   :  { %3750 = vmatpush.bf16.msrb.mxu1 %v11637_v55  ;;  %v11706_v55 = vld [vmem:[#allocation2 + $0x978] sm:$0xff] }
 0x10e   :  { %3763 = vmatpush.bf16.msrb.mxu2 %v11645_v57  ;;  %v11722_v57 = vld [vmem:[#allocation2 + $0x9f8] sm:$0xff] }
 0x10f   :  { %3776 = vmatpush.bf16.msrb.mxu3 %v11653_v58  ;;  %v946_v58 = vld [vmem:[#allocation1] sm:$0xff] }
 0x110   :  { %3738 = vmatpush.bf16.msrb.mxu0 %v11628_v59  ;;  %v948_v59 = vld [vmem:[#allocation1 + $0x12] sm:$0xff] }
 0x111   :  { %3751 = vmatpush.bf16.msrb.mxu1 %v11636_v60  ;;  %v947_v60 = vld [vmem:[#allocation1 + $0x9] sm:$0xff] }
 0x112   :  { %3764 = vmatpush.bf16.msrb.mxu2 %v11644_v61  ;;  %v949_v61 = vld [vmem:[#allocation1 + $0x1b] sm:$0xff] }
 0x113   :  { %3777 = vmatpush.bf16.msrb.mxu3 %v11652_v62  ;;  %v11697_v62 = vld [vmem:[#allocation2 + $0x930] sm:$0xff] }
 0x114   :  { %3739 = vmatpush.bf16.msrb.mxu0 %v11627_v6  ;;  %v3533_v22 = vpop.f32.mrf.mxu0 }
 0x115   :  { %3752 = vmatpush.bf16.msrb.mxu1 %v11635_v7  ;;  %v3534_v23 = vadd.f32 %v3533_v22, %v12457_v53  ;;  %v3546_v26 = vpop.f32.mrf.mxu1  ;;  %v11683_v53 = vld [vmem:[#allocation2 + $0x8c0] sm:$0xff] }
 0x116   :  { %3765 = vmatpush.bf16.msrb.mxu2 %v11643_v8  ;;  %v11695_v8 = vld [vmem:[#allocation2 + $0x920] sm:$0xff] }
 0x117   :  { %3778 = vmatpush.bf16.msrb.mxu3 %v11651_v9  ;;  %3740 = vmatmul.bf16.vlgmr.msrb.gmra.mxu0 %v940_v63  ;;  %v3547_v29 = vadd.f32 %v3546_v26, %v3534_v23  ;;  %v11705_v63 = vld [vmem:[#allocation2 + $0x970] sm:$0xff]  ;;  %v11703_v9 = vld [vmem:[#allocation2 + $0x960] sm:$0xff] }
 0x118   :  { %3784 = vmatpush.bf16.msra.mxu0 %v11666_v10  ;;  %3753 = vmatmul.bf16.vlgmr.msrb.gmra.mxu1 %v941_v2  ;;  %v11696_v2 = vld [vmem:[#allocation2 + $0x928] sm:$0xff]  ;;  %v11693_v23 = vld [vmem:[#allocation2 + $0x910] sm:$0xff] }
 0x119   :  { %3797 = vmatpush.bf16.msra.mxu1 %v11674_v11  ;;  %3766 = vmatmul.bf16.vlgmr.msrb.gmra.mxu2 %v942_v0  ;;  %v11713_v0 = vld [vmem:[#allocation2 + $0x9b0] sm:$0xff]  ;;  %v11711_v11 = vld [vmem:[#allocation2 + $0x9a0] sm:$0xff] }
 0x11a   :  { %3810 = vmatpush.bf16.msra.mxu2 %v11682_v12  ;;  %3779 = vmatmul.bf16.vlgmr.msrb.gmra.mxu3 %v943_v3  ;;  %v11704_v3 = vld [vmem:[#allocation2 + $0x968] sm:$0xff]  ;;  %v11719_v12 = vld [vmem:[#allocation2 + $0x9e0] sm:$0xff]  ;;  %v11709_v26 = vld [vmem:[#allocation2 + $0x990] sm:$0xff] }
 0x11b   :  { %3823 = vmatpush.bf16.msra.mxu3 %v11690_v13 }
 0x11c   :  { %3785 = vmatpush.bf16.msra.mxu0 %v11665_v14  ;;  %v3559_v34 = vpop.f32.mrf.mxu2  ;;  %v3535_v37 = vpop.f32.mrf.mxu0  ;;  %v11694_v14 = vld [vmem:[#allocation2 + $0x918] sm:$0xff] }
 0x11d   :  { %3798 = vmatpush.bf16.msra.mxu1 %v11673_v15  ;;  %v3560_v35 = vadd.f32 %v3559_v34, %v3547_v29  ;;  %v3572_v36 = vpop.f32.mrf.mxu3  ;;  %v3548_v41 = vpop.f32.mrf.mxu1  ;;  %v11702_v15 = vld [vmem:[#allocation2 + $0x958] sm:$0xff]  ;;  %v11700_v29 = vld [vmem:[#allocation2 + $0x948] sm:$0xff] }
 0x11e   :  { %3811 = vmatpush.bf16.msra.mxu2 %v11681_v16  ;;  %v11710_v16 = vld [vmem:[#allocation2 + $0x998] sm:$0xff]  ;;  %v11707_v41 = vld [vmem:[#allocation2 + $0x980] sm:$0xff] }
 0x11f   :  { %3824 = vmatpush.bf16.msra.mxu3 %v11689_v17  ;;  %v3573_v38 = vadd.f32 %v3572_v36, %v3560_v35  ;;  %v11718_v17 = vld [vmem:[#allocation2 + $0x9d8] sm:$0xff]  ;;  %v951_v35 = vld [vmem:[#allocation1 + $0x2d] sm:$0xff] }
 0x120   :  { %3786 = vmatpush.bf16.msra.mxu0 %v11664_v18  ;;  %v953_v36 = vld [vmem:[#allocation1 + $0x3f] sm:$0xff] }
 0x121   :  { %3799 = vmatpush.bf16.msra.mxu1 %v11672_v19 }
 0x122   :  { %3812 = vmatpush.bf16.msra.mxu2 %v11680_v20 }
 0x123   :  { %3825 = vmatpush.bf16.msra.mxu3 %v11688_v21 }
 0x124   :  { %3787 = vmatpush.bf16.msra.mxu0 %v11663_v24  ;;  %v3561_v48 = vpop.f32.mrf.mxu2  ;;  %v11701_v24 = vld [vmem:[#allocation2 + $0x950] sm:$0xff] }
 0x125   :  { %3800 = vmatpush.bf16.msra.mxu1 %v11671_v25  ;;  %v3574_v49 = vpop.f32.mrf.mxu3  ;;  %v11737_v48 = vld [vmem:[#allocation2 + $0xa70] sm:$0xff] }
 0x126   :  { %3813 = vmatpush.bf16.msra.mxu2 %v11679_v27  ;;  %v11717_v27 = vld [vmem:[#allocation2 + $0x9d0] sm:$0xff] }
 0x127   :  { %3826 = vmatpush.bf16.msra.mxu3 %v11687_v28  ;;  %v11692_v28 = vld [vmem:[#allocation2 + $0x908] sm:$0xff]  ;;  %v11745_v49 = vld [vmem:[#allocation2 + $0xab0] sm:$0xff] }
 0x128   :  { %3788 = vmatpush.bf16.msra.mxu0 %v11662_v30  ;;  %v11708_v30 = vld [vmem:[#allocation2 + $0x988] sm:$0xff] }
 0x129   :  { %3801 = vmatpush.bf16.msra.mxu1 %v11670_v31  ;;  %v11716_v31 = vld [vmem:[#allocation2 + $0x9c8] sm:$0xff] }
 0x12a   :  { %3814 = vmatpush.bf16.msra.mxu2 %v11678_v32  ;;  %v950_v32 = vld [vmem:[#allocation1 + $0x24] sm:$0xff] }
 0x12b   :  { %3827 = vmatpush.bf16.msra.mxu3 %v11686_v33  ;;  %v952_v33 = vld [vmem:[#allocation1 + $0x36] sm:$0xff] }
 0x12c   :  { %3789 = vmatpush.bf16.msra.mxu0 %v11661_v39  ;;  %v11691_v39 = vld [vmem:[#allocation2 + $0x900] sm:$0xff] }
 0x12d   :  { %3802 = vmatpush.bf16.msra.mxu1 %v11669_v40  ;;  %v11699_v40 = vld [vmem:[#allocation2 + $0x940] sm:$0xff] }
 0x12e   :  { %3815 = vmatpush.bf16.msra.mxu2 %v11677_v42  ;;  %v11715_v42 = vld [vmem:[#allocation2 + $0x9c0] sm:$0xff] }
 0x12f   :  { %3828 = vmatpush.bf16.msra.mxu3 %v11685_v43  ;;  %v11730_v43 = vld [vmem:[#allocation2 + $0xa38] sm:$0xff] }
 0x130   :  { %3790 = vmatpush.bf16.msra.mxu0 %v11660_v44  ;;  %v11738_v44 = vld [vmem:[#allocation2 + $0xa78] sm:$0xff] }
 0x131   :  { %3803 = vmatpush.bf16.msra.mxu1 %v11668_v45  ;;  %v11746_v45 = vld [vmem:[#allocation2 + $0xab8] sm:$0xff] }
 0x132   :  { %3816 = vmatpush.bf16.msra.mxu2 %v11676_v46  ;;  %v11754_v46 = vld [vmem:[#allocation2 + $0xaf8] sm:$0xff] }
 0x133   :  { %3829 = vmatpush.bf16.msra.mxu3 %v11684_v47  ;;  %v11729_v47 = vld [vmem:[#allocation2 + $0xa30] sm:$0xff] }
 0x134   :  { %3791 = vmatpush.bf16.msra.mxu0 %v11659_v50  ;;  %v3585_v6 = vpop.f32.mrf.mxu0  ;;  %v11753_v50 = vld [vmem:[#allocation2 + $0xaf0] sm:$0xff] }
 0x135   :  { %3804 = vmatpush.bf16.msra.mxu1 %v11667_v51  ;;  %v3586_v7 = vadd.f32 %v3585_v6, %v3573_v38  ;;  %v3598_v10 = vpop.f32.mrf.mxu1  ;;  %v106_v38 = vld [vmem:[%s12559_s0 + $0x28] sm:$0xff]  ;;  %v11728_v51 = vld [vmem:[#allocation2 + $0xa28] sm:$0xff] }
 0x136   :  { %3817 = vmatpush.bf16.msra.mxu2 %v11675_v52  ;;  %955 = vst [vmem:[#allocation1] ss:$9 sm:$0xff] %v106_v38  ;;  %v11736_v52 = vld [vmem:[#allocation2 + $0xa68] sm:$0xff] }
 0x137   :  { %3830 = vmatpush.bf16.msra.mxu3 %v11683_v53  ;;  %3792 = vmatmul.bf16.vlgmr.msra.gmra.mxu0 %v946_v58  ;;  %v3599_v13 = vadd.f32 %v3598_v10, %v3586_v7  ;;  %v11744_v53 = vld [vmem:[#allocation2 + $0xaa8] sm:$0xff]  ;;  %v11735_v58 = vld [vmem:[#allocation2 + $0xa60] sm:$0xff] }
 0x138   :  { %3836 = vmatpush.bf16.msrb.mxu0 %v11698_v54  ;;  %3805 = vmatmul.bf16.vlgmr.msra.gmra.mxu1 %v947_v60  ;;  %v11752_v54 = vld [vmem:[#allocation2 + $0xae8] sm:$0xff]  ;;  %v11743_v60 = vld [vmem:[#allocation2 + $0xaa0] sm:$0xff] }
 0x139   :  { %3849 = vmatpush.bf16.msrb.mxu1 %v11706_v55  ;;  %3818 = vmatmul.bf16.vlgmr.msra.gmra.mxu2 %v948_v59  ;;  %v11784_v38 = vld [vmem:[#allocation2 + $0xbe8] sm:$0xff] }
 0x13a   :  { %3862 = vmatpush.bf16.msrb.mxu2 %v11714_v56  ;;  %3831 = vmatmul.bf16.vlgmr.msra.gmra.mxu3 %v949_v61  ;;  %v11751_v61 = vld [vmem:[#allocation2 + $0xae0] sm:$0xff] }
 0x13b   :  { %3875 = vmatpush.bf16.msrb.mxu3 %v11722_v57  ;;  %v11727_v57 = vld [vmem:[#allocation2 + $0xa20] sm:$0xff] }
 0x13c   :  { %3837 = vmatpush.bf16.msrb.mxu0 %v11697_v62  ;;  %v3611_v18 = vpop.f32.mrf.mxu2  ;;  %v3587_v21 = vpop.f32.mrf.mxu0 }
 0x13d   :  { %3850 = vmatpush.bf16.msrb.mxu1 %v11705_v63  ;;  %v3612_v19 = vadd.f32 %v3611_v18, %v3599_v13  ;;  %v3624_v20 = vpop.f32.mrf.mxu3  ;;  %v3600_v25 = vpop.f32.mrf.mxu1  ;;  %v11726_v63 = vld [vmem:[#allocation2 + $0xa18] sm:$0xff]  ;;  %v11724_v13 = vld [vmem:[#allocation2 + $0xa08] sm:$0xff]  ;;  %v11739_v21 = vld [vmem:[#allocation2 + $0xa80] sm:$0xff] }
 0x13e   :  { %3863 = vmatpush.bf16.msrb.mxu2 %v11713_v0  ;;  %v11734_v0 = vld [vmem:[#allocation2 + $0xa58] sm:$0xff] }
 0x13f   :  { %3876 = vmatpush.bf16.msrb.mxu3 %v11721_v1  ;;  %v12463_v22 = vadd.f32 %v3624_v20, %v3612_v19  ;;  %v11742_v1 = vld [vmem:[#allocation2 + $0xa98] sm:$0xff]  ;;  %v11723_v19 = vld [vmem:[#allocation2 + $0xa00] sm:$0xff] }
 0x140   :  { %3838 = vmatpush.bf16.msrb.mxu0 %v11696_v2  ;;  %v11750_v2 = vld [vmem:[#allocation2 + $0xad8] sm:$0xff]  ;;  %v11731_v20 = vld [vmem:[#allocation2 + $0xa40] sm:$0xff] }
 0x141   :  { %3851 = vmatpush.bf16.msrb.mxu1 %v11704_v3  ;;  %v11778_v25 = vld [vmem:[#allocation2 + $0xbb8] sm:$0xff] }
 0x142   :  { %3864 = vmatpush.bf16.msrb.mxu2 %v11712_v4 }
 0x143   :  { %3877 = vmatpush.bf16.msrb.mxu3 %v11720_v5 }
 0x144   :  { %3839 = vmatpush.bf16.msrb.mxu0 %v11695_v8  ;;  %v3613_v34 = vpop.f32.mrf.mxu2  ;;  %v11725_v8 = vld [vmem:[#allocation2 + $0xa10] sm:$0xff] }
 0x145   :  { %3852 = vmatpush.bf16.msrb.mxu1 %v11703_v9  ;;  %v3626_v37 = vpop.f32.mrf.mxu3  ;;  %v11733_v9 = vld [vmem:[#allocation2 + $0xa50] sm:$0xff] }
 0x146   :  { %3865 = vmatpush.bf16.msrb.mxu2 %v11711_v11  ;;  %v11741_v11 = vld [vmem:[#allocation2 + $0xa90] sm:$0xff]  ;;  %v11776_v37 = vld [vmem:[#allocation2 + $0xba8] sm:$0xff] }
 0x147   :  { %3878 = vmatpush.bf16.msrb.mxu3 %v11719_v12  ;;  %v11749_v12 = vld [vmem:[#allocation2 + $0xad0] sm:$0xff] }
 0x148   :  { %3840 = vmatpush.bf16.msrb.mxu0 %v11694_v14  ;;  %v11732_v14 = vld [vmem:[#allocation2 + $0xa48] sm:$0xff]  ;;  %v11785_v34 = vld [vmem:[#allocation2 + $0xbf0] sm:$0xff] }
 0x149   :  { %3853 = vmatpush.bf16.msrb.mxu1 %v11702_v15  ;;  %v11740_v15 = vld [vmem:[#allocation2 + $0xa88] sm:$0xff] }
 0x14a   :  { %3866 = vmatpush.bf16.msrb.mxu2 %v11710_v16  ;;  %v11748_v16 = vld [vmem:[#allocation2 + $0xac8] sm:$0xff] }
 0x14b   :  { %3879 = vmatpush.bf16.msrb.mxu3 %v11718_v17 }
 0x14c   :  { %3841 = vmatpush.bf16.msrb.mxu0 %v11693_v23  ;;  %v11762_v23 = vld [vmem:[#allocation2 + $0xb38] sm:$0xff] }
 0x14d   :  { %3854 = vmatpush.bf16.msrb.mxu1 %v11701_v24  ;;  %v11770_v24 = vld [vmem:[#allocation2 + $0xb78] sm:$0xff] }
 0x14e   :  { %3867 = vmatpush.bf16.msrb.mxu2 %v11709_v26  ;;  %v11786_v26 = vld [vmem:[#allocation2 + $0xbf8] sm:$0xff] }
 0x14f   :  { %3880 = vmatpush.bf16.msrb.mxu3 %v11717_v27  ;;  %v956_v27 = vld [vmem:[#allocation1] sm:$0xff] }
 0x150   :  { %3842 = vmatpush.bf16.msrb.mxu0 %v11692_v28  ;;  %v958_v28 = vld [vmem:[#allocation1 + $0x12] sm:$0xff] }
 0x151   :  { %3855 = vmatpush.bf16.msrb.mxu1 %v11700_v29  ;;  %v957_v29 = vld [vmem:[#allocation1 + $0x9] sm:$0xff] }
 0x152   :  { %3868 = vmatpush.bf16.msrb.mxu2 %v11708_v30  ;;  %v959_v30 = vld [vmem:[#allocation1 + $0x1b] sm:$0xff] }
 0x153   :  { %3881 = vmatpush.bf16.msrb.mxu3 %v11716_v31  ;;  %v11761_v31 = vld [vmem:[#allocation2 + $0xb30] sm:$0xff] }
 0x154   :  { %3843 = vmatpush.bf16.msrb.mxu0 %v11691_v39  ;;  %v3637_v55 = vpop.f32.mrf.mxu0 }
 0x155   :  { %3856 = vmatpush.bf16.msrb.mxu1 %v11699_v40  ;;  %v3638_v56 = vadd.f32 %v3637_v55, %v12463_v22  ;;  %v3650_v59 = vpop.f32.mrf.mxu1  ;;  %v11747_v22 = vld [vmem:[#allocation2 + $0xac0] sm:$0xff] }
 0x156   :  { %3869 = vmatpush.bf16.msrb.mxu2 %v11707_v41  ;;  %v11759_v41 = vld [vmem:[#allocation2 + $0xb20] sm:$0xff] }
 0x157   :  { %3882 = vmatpush.bf16.msrb.mxu3 %v11715_v42  ;;  %3844 = vmatmul.bf16.vlgmr.msrb.gmra.mxu0 %v950_v32  ;;  %v3651_v62 = vadd.f32 %v3650_v59, %v3638_v56  ;;  %v11769_v32 = vld [vmem:[#allocation2 + $0xb70] sm:$0xff]  ;;  %v11767_v42 = vld [vmem:[#allocation2 + $0xb60] sm:$0xff] }
 0x158   :  { %3888 = vmatpush.bf16.msra.mxu0 %v11730_v43  ;;  %3857 = vmatmul.bf16.vlgmr.msrb.gmra.mxu1 %v951_v35  ;;  %v11760_v35 = vld [vmem:[#allocation2 + $0xb28] sm:$0xff]  ;;  %v11757_v56 = vld [vmem:[#allocation2 + $0xb10] sm:$0xff] }
 0x159   :  { %3901 = vmatpush.bf16.msra.mxu1 %v11738_v44  ;;  %3870 = vmatmul.bf16.vlgmr.msrb.gmra.mxu2 %v952_v33  ;;  %v11777_v33 = vld [vmem:[#allocation2 + $0xbb0] sm:$0xff]  ;;  %v11775_v44 = vld [vmem:[#allocation2 + $0xba0] sm:$0xff] }
 0x15a   :  { %3914 = vmatpush.bf16.msra.mxu2 %v11746_v45  ;;  %3883 = vmatmul.bf16.vlgmr.msrb.gmra.mxu3 %v953_v36  ;;  %v11768_v36 = vld [vmem:[#allocation2 + $0xb68] sm:$0xff]  ;;  %v11783_v45 = vld [vmem:[#allocation2 + $0xbe0] sm:$0xff]  ;;  %v11773_v59 = vld [vmem:[#allocation2 + $0xb90] sm:$0xff] }
 0x15b   :  { %3927 = vmatpush.bf16.msra.mxu3 %v11754_v46 }
 0x15c   :  { %3889 = vmatpush.bf16.msra.mxu0 %v11729_v47  ;;  %v3663_v3 = vpop.f32.mrf.mxu2  ;;  %v3639_v6 = vpop.f32.mrf.mxu0  ;;  %v11758_v47 = vld [vmem:[#allocation2 + $0xb18] sm:$0xff] }
 0x15d   :  { %3902 = vmatpush.bf16.msra.mxu1 %v11737_v48  ;;  %v3664_v4 = vadd.f32 %v3663_v3, %v3651_v62  ;;  %v3676_v5 = vpop.f32.mrf.mxu3  ;;  %v3652_v10 = vpop.f32.mrf.mxu1  ;;  %v11766_v48 = vld [vmem:[#allocation2 + $0xb58] sm:$0xff]  ;;  %v11764_v62 = vld [vmem:[#allocation2 + $0xb48] sm:$0xff] }
 0x15e   :  { %3915 = vmatpush.bf16.msra.mxu2 %v11745_v49  ;;  %v11774_v49 = vld [vmem:[#allocation2 + $0xb98] sm:$0xff]  ;;  %v11771_v10 = vld [vmem:[#allocation2 + $0xb80] sm:$0xff] }
 0x15f   :  { %3928 = vmatpush.bf16.msra.mxu3 %v11753_v50  ;;  %v3677_v7 = vadd.f32 %v3676_v5, %v3664_v4  ;;  %v11782_v50 = vld [vmem:[#allocation2 + $0xbd8] sm:$0xff]  ;;  %v961_v4 = vld [vmem:[#allocation1 + $0x2d] sm:$0xff] }
 0x160   :  { %3890 = vmatpush.bf16.msra.mxu0 %v11728_v51  ;;  %v963_v5 = vld [vmem:[#allocation1 + $0x3f] sm:$0xff] }
 0x161   :  { %3903 = vmatpush.bf16.msra.mxu1 %v11736_v52 }
 0x162   :  { %3916 = vmatpush.bf16.msra.mxu2 %v11744_v53 }
 0x163   :  { %3929 = vmatpush.bf16.msra.mxu3 %v11752_v54 }
 0x164   :  { %3891 = vmatpush.bf16.msra.mxu0 %v11727_v57  ;;  %v3665_v17 = vpop.f32.mrf.mxu2  ;;  %v11765_v57 = vld [vmem:[#allocation2 + $0xb50] sm:$0xff] }
 0x165   :  { %3904 = vmatpush.bf16.msra.mxu1 %v11735_v58  ;;  %v3678_v18 = vpop.f32.mrf.mxu3  ;;  %v11801_v17 = vld [vmem:[#allocation2 + $0xc70] sm:$0xff] }
 0x166   :  { %3917 = vmatpush.bf16.msra.mxu2 %v11743_v60  ;;  %v11781_v60 = vld [vmem:[#allocation2 + $0xbd0] sm:$0xff] }
 0x167   :  { %3930 = vmatpush.bf16.msra.mxu3 %v11751_v61  ;;  %v11756_v61 = vld [vmem:[#allocation2 + $0xb08] sm:$0xff]  ;;  %v11809_v18 = vld [vmem:[#allocation2 + $0xcb0] sm:$0xff] }
 0x168   :  { %3892 = vmatpush.bf16.msra.mxu0 %v11726_v63  ;;  %v11772_v63 = vld [vmem:[#allocation2 + $0xb88] sm:$0xff] }
 0x169   :  { %3905 = vmatpush.bf16.msra.mxu1 %v11734_v0  ;;  %v11780_v0 = vld [vmem:[#allocation2 + $0xbc8] sm:$0xff] }
 0x16a   :  { %3918 = vmatpush.bf16.msra.mxu2 %v11742_v1  ;;  %v960_v1 = vld [vmem:[#allocation1 + $0x24] sm:$0xff] }
 0x16b   :  { %3931 = vmatpush.bf16.msra.mxu3 %v11750_v2  ;;  %v962_v2 = vld [vmem:[#allocation1 + $0x36] sm:$0xff] }
 0x16c   :  { %3893 = vmatpush.bf16.msra.mxu0 %v11725_v8  ;;  %v11755_v8 = vld [vmem:[#allocation2 + $0xb00] sm:$0xff] }
 0x16d   :  { %3906 = vmatpush.bf16.msra.mxu1 %v11733_v9  ;;  %v11763_v9 = vld [vmem:[#allocation2 + $0xb40] sm:$0xff] }
 0x16e   :  { %3919 = vmatpush.bf16.msra.mxu2 %v11741_v11  ;;  %v11779_v11 = vld [vmem:[#allocation2 + $0xbc0] sm:$0xff] }
 0x16f   :  { %3932 = vmatpush.bf16.msra.mxu3 %v11749_v12  ;;  %v11794_v12 = vld [vmem:[#allocation2 + $0xc38] sm:$0xff] }
 0x170   :  { %3894 = vmatpush.bf16.msra.mxu0 %v11724_v13  ;;  %v11802_v13 = vld [vmem:[#allocation2 + $0xc78] sm:$0xff] }
 0x171   :  { %3907 = vmatpush.bf16.msra.mxu1 %v11732_v14  ;;  %v11810_v14 = vld [vmem:[#allocation2 + $0xcb8] sm:$0xff] }
 0x172   :  { %3920 = vmatpush.bf16.msra.mxu2 %v11740_v15  ;;  %v11818_v15 = vld [vmem:[#allocation2 + $0xcf8] sm:$0xff] }
 0x173   :  { %3933 = vmatpush.bf16.msra.mxu3 %v11748_v16  ;;  %v11793_v16 = vld [vmem:[#allocation2 + $0xc30] sm:$0xff] }
 0x174   :  { %3895 = vmatpush.bf16.msra.mxu0 %v11723_v19  ;;  %v3689_v39 = vpop.f32.mrf.mxu0  ;;  %v11817_v19 = vld [vmem:[#allocation2 + $0xcf0] sm:$0xff] }
 0x175   :  { %3908 = vmatpush.bf16.msra.mxu1 %v11731_v20  ;;  %v3690_v40 = vadd.f32 %v3689_v39, %v3677_v7  ;;  %v3702_v43 = vpop.f32.mrf.mxu1  ;;  %v107_v7 = vld [vmem:[%s12559_s0 + $0x30] sm:$0x1] }
 0x176   :  { %3921 = vmatpush.bf16.msra.mxu2 %v11739_v21  ;;  %965 = vst [vmem:[#allocation1] ss:$9 sm:$0xff] %v107_v7  ;;  %v11792_v20 = vld [vmem:[#allocation2 + $0xc28] sm:$0xff] }
 0x177   :  { %3934 = vmatpush.bf16.msra.mxu3 %v11747_v22  ;;  %3896 = vmatmul.bf16.vlgmr.msra.gmra.mxu0 %v956_v27  ;;  %v3703_v46 = vadd.f32 %v3702_v43, %v3690_v40  ;;  %v11800_v21 = vld [vmem:[#allocation2 + $0xc68] sm:$0xff]  ;;  %v11799_v27 = vld [vmem:[#allocation2 + $0xc60] sm:$0xff]  ;;  %v11789_v43 = vld [vmem:[#allocation2 + $0xc10] sm:$0xff] }
 0x178   :  { %3940 = vmatpush.bf16.msrb.mxu0 %v11762_v23  ;;  %3909 = vmatmul.bf16.vlgmr.msra.gmra.mxu1 %v957_v29  ;;  %v11808_v22 = vld [vmem:[#allocation2 + $0xca8] sm:$0xff]  ;;  %v11807_v29 = vld [vmem:[#allocation2 + $0xca0] sm:$0xff] }
 0x179   :  { %3953 = vmatpush.bf16.msrb.mxu1 %v11770_v24  ;;  %3922 = vmatmul.bf16.vlgmr.msra.gmra.mxu2 %v958_v28  ;;  %v11816_v23 = vld [vmem:[#allocation2 + $0xce8] sm:$0xff] }
 0x17a   :  { %3966 = vmatpush.bf16.msrb.mxu2 %v11778_v25  ;;  %3935 = vmatmul.bf16.vlgmr.msra.gmra.mxu3 %v959_v30  ;;  %v11815_v30 = vld [vmem:[#allocation2 + $0xce0] sm:$0xff]  ;;  %v11840_v7 = vld [vmem:[#allocation2 + $0xda8] sm:$0xff] }
 0x17b   :  { %3979 = vmatpush.bf16.msrb.mxu3 %v11786_v26  ;;  %v11791_v26 = vld [vmem:[#allocation2 + $0xc20] sm:$0xff] }
 0x17c   :  { %3941 = vmatpush.bf16.msrb.mxu0 %v11761_v31  ;;  %v3715_v51 = vpop.f32.mrf.mxu2  ;;  %v3691_v54 = vpop.f32.mrf.mxu0 }
 0x17d   :  { %3954 = vmatpush.bf16.msrb.mxu1 %v11769_v32  ;;  %v3716_v52 = vadd.f32 %v3715_v51, %v3703_v46  ;;  %v3728_v53 = vpop.f32.mrf.mxu3  ;;  %v3704_v58 = vpop.f32.mrf.mxu1  ;;  %v966_v32 = vld [vmem:[#allocation1] sm:$0xff]  ;;  %v11805_v46 = vld [vmem:[#allocation2 + $0xc90] sm:$0xff]  ;;  %v11812_v51 = vld [vmem:[#allocation2 + $0xcc8] sm:$0xff] }
 0x17e   :  { %3967 = vmatpush.bf16.msrb.mxu2 %v11777_v33  ;;  %v8164_v33 = vld [vmem:[%s12559_s0 + $0x31] sm:$0xff]  ;;  %v11787_v54 = vld [vmem:[#allocation2 + $0xc00] sm:$0xff]  ;;  %v11826_v58 = vld [vmem:[#allocation2 + $0xd38] sm:$0xff] }
 0x17f   :  { %3980 = vmatpush.bf16.msrb.mxu3 %v11785_v34  ;;  %v12469_v55 = vadd.f32 %v3728_v53, %v3716_v52  ;;  %4797 = vst [vmem:[#allocation1] ss:$9 sm:$0xff] %v8164_v33  ;;  %v11790_v34 = vld [vmem:[#allocation2 + $0xc18] sm:$0xff]  ;;  %v11836_v33 = vld [vmem:[#allocation2 + $0xd88] sm:$0xff] }
 0x180   :  { %3942 = vmatpush.bf16.msrb.mxu0 %v11760_v35  ;;  %v11798_v35 = vld [vmem:[#allocation2 + $0xc58] sm:$0xff] }
 0x181   :  { %3955 = vmatpush.bf16.msrb.mxu1 %v11768_v36  ;;  %v11806_v36 = vld [vmem:[#allocation2 + $0xc98] sm:$0xff] }
 0x182   :  { %3968 = vmatpush.bf16.msrb.mxu2 %v11776_v37  ;;  %v11814_v37 = vld [vmem:[#allocation2 + $0xcd8] sm:$0xff] }
 0x183   :  { %3981 = vmatpush.bf16.msrb.mxu3 %v11784_v38 }
 0x184   :  { %3943 = vmatpush.bf16.msrb.mxu0 %v11759_v41  ;;  %v3717_v3 = vpop.f32.mrf.mxu2 }
 0x185   :  { %3956 = vmatpush.bf16.msrb.mxu1 %v11767_v42  ;;  %v3730_v6 = vpop.f32.mrf.mxu3  ;;  %v11841_v3 = vld [vmem:[#allocation2 + $0xdb0] sm:$0xff] }
 0x186   :  { %3969 = vmatpush.bf16.msrb.mxu2 %v11775_v44  ;;  %v11797_v44 = vld [vmem:[#allocation2 + $0xc50] sm:$0xff]  ;;  %v11832_v6 = vld [vmem:[#allocation2 + $0xd68] sm:$0xff] }
 0x187   :  { %3982 = vmatpush.bf16.msrb.mxu3 %v11783_v45 }
 0x188   :  { %3944 = vmatpush.bf16.msrb.mxu0 %v11758_v47  ;;  %v11813_v47 = vld [vmem:[#allocation2 + $0xcd0] sm:$0xff] }
 0x189   :  { %3957 = vmatpush.bf16.msrb.mxu1 %v11766_v48  ;;  %v11788_v48 = vld [vmem:[#allocation2 + $0xc08] sm:$0xff] }
 0x18a   :  { %3970 = vmatpush.bf16.msrb.mxu2 %v11774_v49  ;;  %v11796_v49 = vld [vmem:[#allocation2 + $0xc48] sm:$0xff] }
 0x18b   :  { %3983 = vmatpush.bf16.msrb.mxu3 %v11782_v50  ;;  %v11804_v50 = vld [vmem:[#allocation2 + $0xc88] sm:$0xff] }
 0x18c   :  { %3945 = vmatpush.bf16.msrb.mxu0 %v11757_v56  ;;  %v11803_v56 = vld [vmem:[#allocation2 + $0xc80] sm:$0xff] }
 0x18d   :  { %3958 = vmatpush.bf16.msrb.mxu1 %v11765_v57  ;;  %v11811_v57 = vld [vmem:[#allocation2 + $0xcc0] sm:$0xff] }
 0x18e   :  { %3971 = vmatpush.bf16.msrb.mxu2 %v11773_v59  ;;  %v11834_v59 = vld [vmem:[#allocation2 + $0xd78] sm:$0xff] }
 0x18f   :  { %3984 = vmatpush.bf16.msrb.mxu3 %v11781_v60  ;;  %v11842_v60 = vld [vmem:[#allocation2 + $0xdb8] sm:$0xff] }
 0x190   :  { %3946 = vmatpush.bf16.msrb.mxu0 %v11756_v61  ;;  %v11850_v61 = vld [vmem:[#allocation2 + $0xdf8] sm:$0xff] }
 0x191   :  { %3959 = vmatpush.bf16.msrb.mxu1 %v11764_v62  ;;  %v11825_v62 = vld [vmem:[#allocation2 + $0xd30] sm:$0xff] }
 0x192   :  { %3972 = vmatpush.bf16.msrb.mxu2 %v11772_v63  ;;  %v4799_v63 = vld [vmem:[#allocation1 + $0x9] sm:$0xff] }
 0x193   :  { %3985 = vmatpush.bf16.msrb.mxu3 %v11780_v0  ;;  %v11833_v0 = vld [vmem:[#allocation2 + $0xd70] sm:$0xff] }
 0x194   :  { %3947 = vmatpush.bf16.msrb.mxu0 %v11755_v8  ;;  %v3741_v24 = vpop.f32.mrf.mxu0  ;;  %v11848_v8 = vld [vmem:[#allocation2 + $0xde8] sm:$0xff] }
 0x195   :  { %3960 = vmatpush.bf16.msrb.mxu1 %v11763_v9  ;;  %v3742_v25 = vadd.f32 %v3741_v24, %v12469_v55  ;;  %v3754_v28 = vpop.f32.mrf.mxu1  ;;  %v11795_v55 = vld [vmem:[#allocation2 + $0xc40] sm:$0xff] }
 0x196   :  { %3973 = vmatpush.bf16.msrb.mxu2 %v11771_v10 }
 0x197   :  { %3986 = vmatpush.bf16.msrb.mxu3 %v11779_v11  ;;  %3948 = vmatmul.bf16.vlgmr.msrb.gmra.mxu0 %v960_v1  ;;  %v3755_v31 = vadd.f32 %v3754_v28, %v3742_v25  ;;  %v4800_v1 = vld [vmem:[#allocation1 + $0x12] sm:$0xff]  ;;  %v11823_v11 = vld [vmem:[#allocation2 + $0xd20] sm:$0xff] }
 0x198   :  { %3992 = vmatpush.bf16.msra.mxu0 %v11794_v12  ;;  %3961 = vmatmul.bf16.vlgmr.msrb.gmra.mxu1 %v961_v4  ;;  %v11849_v4 = vld [vmem:[#allocation2 + $0xdf0] sm:$0xff]  ;;  %v11831_v12 = vld [vmem:[#allocation2 + $0xd60] sm:$0xff] }
 0x199   :  { %7260 = vmatpush.bf16.msra.mxu1 %v11802_v13  ;;  %3974 = vmatmul.bf16.vlgmr.msrb.gmra.mxu2 %v962_v2  ;;  %v4798_v2 = vld [vmem:[#allocation1] sm:$0xff] }
 0x19a   :  { %7273 = vmatpush.bf16.msra.mxu2 %v11810_v14  ;;  %3987 = vmatmul.bf16.vlgmr.msrb.gmra.mxu3 %v963_v5  ;;  %v11824_v5 = vld [vmem:[#allocation2 + $0xd28] sm:$0xff]  ;;  %v11839_v14 = vld [vmem:[#allocation2 + $0xda0] sm:$0xff] }
 0x19b   :  { %7286 = vmatpush.bf16.msra.mxu3 %v11818_v15  ;;  %v11847_v15 = vld [vmem:[#allocation2 + $0xde0] sm:$0xff] }
 0x19c   :  { %3993 = vmatpush.bf16.msra.mxu0 %v11793_v16  ;;  %v3767_v38 = vpop.f32.mrf.mxu2  ;;  %v3743_v41 = vpop.f32.mrf.mxu0 }
 0x19d   :  { %7261 = vmatpush.bf16.msra.mxu1 %v11801_v17  ;;  %v3768_v39 = vadd.f32 %v3767_v38, %v3755_v31  ;;  %v3780_v40 = vpop.f32.mrf.mxu3  ;;  %v3756_v45 = vpop.f32.mrf.mxu1  ;;  %v11822_v17 = vld [vmem:[#allocation2 + $0xd18] sm:$0xff]  ;;  %v11820_v31 = vld [vmem:[#allocation2 + $0xd08] sm:$0xff] }
 0x19e   :  { %7274 = vmatpush.bf16.msra.mxu2 %v11809_v18  ;;  %v11830_v18 = vld [vmem:[#allocation2 + $0xd58] sm:$0xff]  ;;  %v11835_v45 = vld [vmem:[#allocation2 + $0xd80] sm:$0xff] }
 0x19f   :  { %7287 = vmatpush.bf16.msra.mxu3 %v11817_v19  ;;  %v3781_v42 = vadd.f32 %v3780_v40, %v3768_v39  ;;  %v11838_v19 = vld [vmem:[#allocation2 + $0xd98] sm:$0xff] }
 0x1a0   :  { %3994 = vmatpush.bf16.msra.mxu0 %v11792_v20  ;;  %v11846_v20 = vld [vmem:[#allocation2 + $0xdd8] sm:$0xff] }
 0x1a1   :  { %7262 = vmatpush.bf16.msra.mxu1 %v11800_v21  ;;  %v4802_v39 = vld [vmem:[#allocation1 + $0x24] sm:$0xff] }
 0x1a2   :  { %7275 = vmatpush.bf16.msra.mxu2 %v11808_v22  ;;  %v12480_v41 = vld [vmem:[#allocation1 + $0x3f] sm:$0xff] }
 0x1a3   :  { %7288 = vmatpush.bf16.msra.mxu3 %v11816_v23 }
 0x1a4   :  { %3995 = vmatpush.bf16.msra.mxu0 %v11791_v26  ;;  %v3769_v52 = vpop.f32.mrf.mxu2  ;;  %v11821_v26 = vld [vmem:[#allocation2 + $0xd10] sm:$0xff] }
 0x1a5   :  { %7263 = vmatpush.bf16.msra.mxu1 %v11799_v27  ;;  %v3782_v53 = vpop.f32.mrf.mxu3  ;;  %v11829_v27 = vld [vmem:[#allocation2 + $0xd50] sm:$0xff] }
 0x1a6   :  { %7276 = vmatpush.bf16.msra.mxu2 %v11807_v29  ;;  %v11837_v29 = vld [vmem:[#allocation2 + $0xd90] sm:$0xff] }
 0x1a7   :  { %7289 = vmatpush.bf16.msra.mxu3 %v11815_v30  ;;  %v11845_v30 = vld [vmem:[#allocation2 + $0xdd0] sm:$0xff] }
 0x1a8   :  { %3996 = vmatpush.bf16.msra.mxu0 %v11790_v34  ;;  %v11844_v34 = vld [vmem:[#allocation2 + $0xdc8] sm:$0xff]  ;;  %v11865_v52 = vld [vmem:[#allocation2 + $0xe70] sm:$0xff] }
 0x1a9   :  { %7264 = vmatpush.bf16.msra.mxu1 %v11798_v35  ;;  %v4803_v35 = vld [vmem:[#allocation1 + $0x2d] sm:$0xff]  ;;  %v11873_v53 = vld [vmem:[#allocation2 + $0xeb0] sm:$0xff] }
 0x1aa   :  { %7277 = vmatpush.bf16.msra.mxu2 %v11806_v36  ;;  %v4801_v36 = vld [vmem:[#allocation1 + $0x1b] sm:$0xff] }
 0x1ab   :  { %7290 = vmatpush.bf16.msra.mxu3 %v11814_v37  ;;  %v4804_v37 = vld [vmem:[#allocation1 + $0x36] sm:$0xff] }
 0x1ac   :  { %3997 = vmatpush.bf16.msra.mxu0 %v11789_v43  ;;  %v11819_v43 = vld [vmem:[#allocation2 + $0xd00] sm:$0xff] }
 0x1ad   :  { %7265 = vmatpush.bf16.msra.mxu1 %v11797_v44  ;;  %v11827_v44 = vld [vmem:[#allocation2 + $0xd40] sm:$0xff] }
 0x1ae   :  { %7278 = vmatpush.bf16.msra.mxu2 %v11805_v46  ;;  %v11843_v46 = vld [vmem:[#allocation2 + $0xdc0] sm:$0xff] }
 0x1af   :  { %7291 = vmatpush.bf16.msra.mxu3 %v11813_v47  ;;  %v11858_v47 = vld [vmem:[#allocation2 + $0xe38] sm:$0xff] }
 0x1b0   :  { %3998 = vmatpush.bf16.msra.mxu0 %v11788_v48  ;;  %v11866_v48 = vld [vmem:[#allocation2 + $0xe78] sm:$0xff] }
 0x1b1   :  { %7266 = vmatpush.bf16.msra.mxu1 %v11796_v49  ;;  %v11874_v49 = vld [vmem:[#allocation2 + $0xeb8] sm:$0xff] }
 0x1b2   :  { %7279 = vmatpush.bf16.msra.mxu2 %v11804_v50  ;;  %v11882_v50 = vld [vmem:[#allocation2 + $0xef8] sm:$0xff] }
 0x1b3   :  { %7292 = vmatpush.bf16.msra.mxu3 %v11812_v51  ;;  %v11857_v51 = vld [vmem:[#allocation2 + $0xe30] sm:$0xff] }
 0x1b4   :  { %3999 = vmatpush.bf16.msra.mxu0 %v11787_v54  ;;  %v3793_v9 = vpop.f32.mrf.mxu0  ;;  %v11881_v54 = vld [vmem:[#allocation2 + $0xef0] sm:$0xff] }
 0x1b5   :  { %7267 = vmatpush.bf16.msra.mxu1 %v11795_v55  ;;  %v3794_v10 = vadd.f32 %v3793_v9, %v3781_v42  ;;  %v3806_v13 = vpop.f32.mrf.mxu1  ;;  %v8165_v42 = vld [vmem:[%s12559_s0 + $0x39] sm:$0xff]  ;;  %v11856_v55 = vld [vmem:[#allocation2 + $0xe28] sm:$0xff] }
 0x1b6   :  { %7280 = vmatpush.bf16.msra.mxu2 %v11803_v56  ;;  %4807 = vst [vmem:[#allocation1] ss:$9 sm:$0xff] %v8165_v42  ;;  %v11864_v56 = vld [vmem:[#allocation2 + $0xe68] sm:$0xff] }
 0x1b7   :  { %7293 = vmatpush.bf16.msra.mxu3 %v11811_v57  ;;  %4000 = vmatmul.bf16.vlgmr.msra.gmra.mxu0 %v966_v32  ;;  %v3807_v16 = vadd.f32 %v3806_v13, %v3794_v10  ;;  %v11828_v32 = vld [vmem:[#allocation2 + $0xd48] sm:$0xff]  ;;  %v11861_v13 = vld [vmem:[#allocation2 + $0xe50] sm:$0xff] }
 0x1b8   :  { %7299 = vmatpush.bf16.msrb.mxu0 %v11826_v58  ;;  %7268 = vmatmul.bf16.vlgmr.msra.gmra.mxu1 %v4798_v2  ;;  %v11872_v57 = vld [vmem:[#allocation2 + $0xea8] sm:$0xff] }
 0x1b9   :  { %7312 = vmatpush.bf16.msrb.mxu1 %v11834_v59  ;;  %7281 = vmatmul.bf16.vlgmr.msra.gmra.mxu2 %v4799_v63  ;;  %v11880_v58 = vld [vmem:[#allocation2 + $0xee8] sm:$0xff] }
 0x1ba   :  { %7325 = vmatpush.bf16.msrb.mxu2 %v11842_v60  ;;  %7294 = vmatmul.bf16.vlgmr.msra.gmra.mxu3 %v4800_v1  ;;  %v11879_v1 = vld [vmem:[#allocation2 + $0xee0] sm:$0xff]  ;;  %v11912_v42 = vld [vmem:[#allocation2 + $0xfe8] sm:$0xff] }
 0x1bb   :  { %7338 = vmatpush.bf16.msrb.mxu3 %v11850_v61  ;;  %v11855_v61 = vld [vmem:[#allocation2 + $0xe20] sm:$0xff] }
 0x1bc   :  { %7300 = vmatpush.bf16.msrb.mxu0 %v11825_v62  ;;  %v3819_v21 = vpop.f32.mrf.mxu2  ;;  %v3795_v24 = vpop.f32.mrf.mxu0  ;;  %v11863_v62 = vld [vmem:[#allocation2 + $0xe60] sm:$0xff] }
 0x1bd   :  { %7313 = vmatpush.bf16.msrb.mxu1 %v11833_v0  ;;  %v3820_v22 = vadd.f32 %v3819_v21, %v3807_v16  ;;  %v3832_v23 = vpop.f32.mrf.mxu3  ;;  %v3808_v28 = vpop.f32.mrf.mxu1  ;;  %v11871_v0 = vld [vmem:[#allocation2 + $0xea0] sm:$0xff]  ;;  %v11877_v16 = vld [vmem:[#allocation2 + $0xed0] sm:$0xff] }
 0x1be   :  { %7326 = vmatpush.bf16.msrb.mxu2 %v11841_v3  ;;  %v11854_v3 = vld [vmem:[#allocation2 + $0xe18] sm:$0xff]  ;;  %v11859_v24 = vld [vmem:[#allocation2 + $0xe40] sm:$0xff] }
 0x1bf   :  { %7339 = vmatpush.bf16.msrb.mxu3 %v11849_v4  ;;  %v12478_v25 = vadd.f32 %v3832_v23, %v3820_v22  ;;  %v11862_v4 = vld [vmem:[#allocation2 + $0xe58] sm:$0xff]  ;;  %v11851_v23 = vld [vmem:[#allocation2 + $0xe00] sm:$0xff] }
 0x1c0   :  { %7301 = vmatpush.bf16.msrb.mxu0 %v11824_v5  ;;  %v11870_v5 = vld [vmem:[#allocation2 + $0xe98] sm:$0xff] }
 0x1c1   :  { %7314 = vmatpush.bf16.msrb.mxu1 %v11832_v6  ;;  %v11878_v6 = vld [vmem:[#allocation2 + $0xed8] sm:$0xff] }
 0x1c2   :  { %7327 = vmatpush.bf16.msrb.mxu2 %v11840_v7  ;;  %v11898_v28 = vld [vmem:[#allocation2 + $0xf78] sm:$0xff] }
 0x1c3   :  { %7340 = vmatpush.bf16.msrb.mxu3 %v11848_v8 }
 0x1c4   :  { %7302 = vmatpush.bf16.msrb.mxu0 %v11823_v11  ;;  %v3821_v38 = vpop.f32.mrf.mxu2 }
 0x1c5   :  { %7315 = vmatpush.bf16.msrb.mxu1 %v11831_v12  ;;  %v3834_v40 = vpop.f32.mrf.mxu3  ;;  %v11853_v12 = vld [vmem:[#allocation2 + $0xe10] sm:$0xff]  ;;  %v11888_v38 = vld [vmem:[#allocation2 + $0xf28] sm:$0xff] }
 0x1c6   :  { %7328 = vmatpush.bf16.msrb.mxu2 %v11839_v14  ;;  %v11904_v40 = vld [vmem:[#allocation2 + $0xfa8] sm:$0xff] }
 0x1c7   :  { %7341 = vmatpush.bf16.msrb.mxu3 %v11847_v15  ;;  %v11869_v15 = vld [vmem:[#allocation2 + $0xe90] sm:$0xff] }
 0x1c8   :  { %7303 = vmatpush.bf16.msrb.mxu0 %v11822_v17  ;;  %v11852_v17 = vld [vmem:[#allocation2 + $0xe08] sm:$0xff] }
 0x1c9   :  { %7316 = vmatpush.bf16.msrb.mxu1 %v11830_v18  ;;  %v11860_v18 = vld [vmem:[#allocation2 + $0xe48] sm:$0xff] }
 0x1ca   :  { %7329 = vmatpush.bf16.msrb.mxu2 %v11838_v19  ;;  %v11868_v19 = vld [vmem:[#allocation2 + $0xe88] sm:$0xff] }
 0x1cb   :  { %7342 = vmatpush.bf16.msrb.mxu3 %v11846_v20  ;;  %v11876_v20 = vld [vmem:[#allocation2 + $0xec8] sm:$0xff] }
 0x1cc   :  { %7304 = vmatpush.bf16.msrb.mxu0 %v11821_v26  ;;  %v11875_v26 = vld [vmem:[#allocation2 + $0xec0] sm:$0xff] }
 0x1cd   :  { %7317 = vmatpush.bf16.msrb.mxu1 %v11829_v27  ;;  %v11890_v27 = vld [vmem:[#allocation2 + $0xf38] sm:$0xff] }
 0x1ce   :  { %7330 = vmatpush.bf16.msrb.mxu2 %v11837_v29  ;;  %v11906_v29 = vld [vmem:[#allocation2 + $0xfb8] sm:$0xff] }
 0x1cf   :  { %7343 = vmatpush.bf16.msrb.mxu3 %v11845_v30  ;;  %v11914_v30 = vld [vmem:[#allocation2 + $0xff8] sm:$0xff] }
 0x1d0   :  { %7305 = vmatpush.bf16.msrb.mxu0 %v11820_v31  ;;  %v4809_v31 = vld [vmem:[#allocation1 + $0x9] sm:$0xff] }
 0x1d1   :  { %7318 = vmatpush.bf16.msrb.mxu1 %v11828_v32  ;;  %v4808_v32 = vld [vmem:[#allocation1] sm:$0xff] }
 0x1d2   :  { %7331 = vmatpush.bf16.msrb.mxu2 %v11836_v33  ;;  %v4810_v33 = vld [vmem:[#allocation1 + $0x12] sm:$0xff] }
 0x1d3   :  { %7344 = vmatpush.bf16.msrb.mxu3 %v11844_v34  ;;  %v11889_v34 = vld [vmem:[#allocation2 + $0xf30] sm:$0xff] }
 0x1d4   :  { %7306 = vmatpush.bf16.msrb.mxu0 %v11819_v43  ;;  %v3845_v59 = vpop.f32.mrf.mxu0 }
 0x1d5   :  { %7319 = vmatpush.bf16.msrb.mxu1 %v11827_v44  ;;  %v3846_v60 = vadd.f32 %v3845_v59, %v12478_v25  ;;  %v3858_v63 = vpop.f32.mrf.mxu1  ;;  %v11867_v25 = vld [vmem:[#allocation2 + $0xe80] sm:$0xff]  ;;  %v11885_v59 = vld [vmem:[#allocation2 + $0xf10] sm:$0xff] }
 0x1d6   :  { %7332 = vmatpush.bf16.msrb.mxu2 %v11835_v45  ;;  %v11887_v45 = vld [vmem:[#allocation2 + $0xf20] sm:$0xff] }
 0x1d7   :  { %7345 = vmatpush.bf16.msrb.mxu3 %v11843_v46  ;;  %7307 = vmatmul.bf16.vlgmr.msrb.gmra.mxu0 %v4801_v36  ;;  %v3859_v2 = vadd.f32 %v3858_v63, %v3846_v60  ;;  %v11905_v36 = vld [vmem:[#allocation2 + $0xfb0] sm:$0xff]  ;;  %v11895_v46 = vld [vmem:[#allocation2 + $0xf60] sm:$0xff] }
 0x1d8   :  { %7351 = vmatpush.bf16.msra.mxu0 %v11858_v47  ;;  %7320 = vmatmul.bf16.vlgmr.msrb.gmra.mxu1 %v4802_v39  ;;  %v11896_v39 = vld [vmem:[#allocation2 + $0xf68] sm:$0xff]  ;;  %v11893_v60 = vld [vmem:[#allocation2 + $0xf50] sm:$0xff] }
 0x1d9   :  { %7364 = vmatpush.bf16.msra.mxu1 %v11866_v48  ;;  %7333 = vmatmul.bf16.vlgmr.msrb.gmra.mxu2 %v4803_v35  ;;  %v11897_v35 = vld [vmem:[#allocation2 + $0xf70] sm:$0xff]  ;;  %v11911_v48 = vld [vmem:[#allocation2 + $0xfe0] sm:$0xff] }
 0x1da   :  { %7377 = vmatpush.bf16.msra.mxu2 %v11874_v49  ;;  %7346 = vmatmul.bf16.vlgmr.msrb.gmra.mxu3 %v4804_v37  ;;  %v11913_v37 = vld [vmem:[#allocation2 + $0xff0] sm:$0xff] }
 0x1db   :  { %7390 = vmatpush.bf16.msra.mxu3 %v11882_v50  ;;  %v11886_v50 = vld [vmem:[#allocation2 + $0xf18] sm:$0xff]  ;;  %v11909_v63 = vld [vmem:[#allocation2 + $0xfd0] sm:$0xff] }
 0x1dc   :  { %7352 = vmatpush.bf16.msra.mxu0 %v11857_v51  ;;  %v3871_v7 = vpop.f32.mrf.mxu2  ;;  %v3847_v10 = vpop.f32.mrf.mxu0  ;;  %v11894_v51 = vld [vmem:[#allocation2 + $0xf58] sm:$0xff] }
 0x1dd   :  { %7365 = vmatpush.bf16.msra.mxu1 %v11865_v52  ;;  %v3872_v8 = vadd.f32 %v3871_v7, %v3859_v2  ;;  %v3884_v9 = vpop.f32.mrf.mxu3  ;;  %v3860_v14 = vpop.f32.mrf.mxu1  ;;  %v11902_v52 = vld [vmem:[#allocation2 + $0xf98] sm:$0xff]  ;;  %v11900_v2 = vld [vmem:[#allocation2 + $0xf88] sm:$0xff] }
 0x1de   :  { %7378 = vmatpush.bf16.msra.mxu2 %v11873_v53  ;;  %v11910_v53 = vld [vmem:[#allocation2 + $0xfd8] sm:$0xff]  ;;  %v11899_v14 = vld [vmem:[#allocation2 + $0xf80] sm:$0xff] }
 0x1df   :  { %7391 = vmatpush.bf16.msra.mxu3 %v11881_v54  ;;  %v3885_v11 = vadd.f32 %v3884_v9, %v3872_v8  ;;  %v4814_v8 = vld [vmem:[#allocation1 + $0x36] sm:$0xff]  ;;  %v12489_v10 = vld [vmem:[#allocation1 + $0x3f] sm:$0xff] }
 0x1e0   :  { %7353 = vmatpush.bf16.msra.mxu0 %v11856_v55 }
 0x1e1   :  { %7366 = vmatpush.bf16.msra.mxu1 %v11864_v56 }
 0x1e2   :  { %7379 = vmatpush.bf16.msra.mxu2 %v11872_v57 }
 0x1e3   :  { %7392 = vmatpush.bf16.msra.mxu3 %v11880_v58 }
 0x1e4   :  { %7354 = vmatpush.bf16.msra.mxu0 %v11855_v61  ;;  %v3873_v21 = vpop.f32.mrf.mxu2 }
 0x1e5   :  { %7367 = vmatpush.bf16.msra.mxu1 %v11863_v62  ;;  %v3886_v22 = vpop.f32.mrf.mxu3  ;;  %v11901_v62 = vld [vmem:[#allocation2 + $0xf90] sm:$0xff] }
 0x1e6   :  { %7380 = vmatpush.bf16.msra.mxu2 %v11871_v0  ;;  %v11884_v0 = vld [vmem:[#allocation2 + $0xf08] sm:$0xff]  ;;  %v11929_v21 = vld [vmem:[#allocation2 + $0x1070] sm:$0xff] }
 0x1e7   :  { %7393 = vmatpush.bf16.msra.mxu3 %v11879_v1  ;;  %v11892_v1 = vld [vmem:[#allocation2 + $0xf48] sm:$0xff]  ;;  %v11937_v22 = vld [vmem:[#allocation2 + $0x10b0] sm:$0xff] }
 0x1e8   :  { %7355 = vmatpush.bf16.msra.mxu0 %v11854_v3  ;;  %v11908_v3 = vld [vmem:[#allocation2 + $0xfc8] sm:$0xff] }
 0x1e9   :  { %7368 = vmatpush.bf16.msra.mxu1 %v11862_v4  ;;  %v4811_v4 = vld [vmem:[#allocation1 + $0x1b] sm:$0xff] }
 0x1ea   :  { %7381 = vmatpush.bf16.msra.mxu2 %v11870_v5  ;;  %v4813_v5 = vld [vmem:[#allocation1 + $0x2d] sm:$0xff] }
 0x1eb   :  { %7394 = vmatpush.bf16.msra.mxu3 %v11878_v6  ;;  %v4812_v6 = vld [vmem:[#allocation1 + $0x24] sm:$0xff] }
 0x1ec   :  { %7356 = vmatpush.bf16.msra.mxu0 %v11853_v12  ;;  %v11883_v12 = vld [vmem:[#allocation2 + $0xf00] sm:$0xff] }
 0x1ed   :  { %7369 = vmatpush.bf16.msra.mxu1 %v11861_v13  ;;  %v11891_v13 = vld [vmem:[#allocation2 + $0xf40] sm:$0xff] }
 0x1ee   :  { %7382 = vmatpush.bf16.msra.mxu2 %v11869_v15  ;;  %v11907_v15 = vld [vmem:[#allocation2 + $0xfc0] sm:$0xff] }
 0x1ef   :  { %7395 = vmatpush.bf16.msra.mxu3 %v11877_v16  ;;  %v11922_v16 = vld [vmem:[#allocation2 + $0x1038] sm:$0xff] }
 0x1f0   :  { %7357 = vmatpush.bf16.msra.mxu0 %v11852_v17  ;;  %v11930_v17 = vld [vmem:[#allocation2 + $0x1078] sm:$0xff] }
 0x1f1   :  { %7370 = vmatpush.bf16.msra.mxu1 %v11860_v18  ;;  %v11938_v18 = vld [vmem:[#allocation2 + $0x10b8] sm:$0xff] }
 0x1f2   :  { %7383 = vmatpush.bf16.msra.mxu2 %v11868_v19  ;;  %v11946_v19 = vld [vmem:[#allocation2 + $0x10f8] sm:$0xff] }
 0x1f3   :  { %7396 = vmatpush.bf16.msra.mxu3 %v11876_v20  ;;  %v11921_v20 = vld [vmem:[#allocation2 + $0x1030] sm:$0xff] }
 0x1f4   :  { %7358 = vmatpush.bf16.msra.mxu0 %v11851_v23  ;;  %v3897_v43 = vpop.f32.mrf.mxu0  ;;  %v11945_v23 = vld [vmem:[#allocation2 + $0x10f0] sm:$0xff] }
 0x1f5   :  { %7371 = vmatpush.bf16.msra.mxu1 %v11859_v24  ;;  %v3898_v44 = vadd.f32 %v3897_v43, %v3885_v11  ;;  %v3910_v47 = vpop.f32.mrf.mxu1  ;;  %v8166_v11 = vld [vmem:[%s12559_s0 + $0x41] sm:$0xff]  ;;  %v11920_v24 = vld [vmem:[#allocation2 + $0x1028] sm:$0xff] }
 0x1f6   :  { %7384 = vmatpush.bf16.msra.mxu2 %v11867_v25  ;;  %4817 = vst [vmem:[#allocation1] ss:$9 sm:$0xff] %v8166_v11  ;;  %v11928_v25 = vld [vmem:[#allocation2 + $0x1068] sm:$0xff] }
 0x1f7   :  { %7397 = vmatpush.bf16.msra.mxu3 %v11875_v26  ;;  %7359 = vmatmul.bf16.vlgmr.msra.gmra.mxu0 %v12480_v41  ;;  %v11903_v41 = vld [vmem:[#allocation2 + $0xfa0] sm:$0xff]  ;;  %v3911_v49 = vadd.f32 %v3910_v47, %v3898_v44  ;;  %v11936_v26 = vld [vmem:[#allocation2 + $0x10a8] sm:$0xff]  ;;  %v11925_v47 = vld [vmem:[#allocation2 + $0x1050] sm:$0xff] }
 0x1f8   :  { %7403 = vmatpush.bf16.msrb.mxu0 %v11890_v27  ;;  %7372 = vmatmul.bf16.vlgmr.msra.gmra.mxu1 %v4808_v32  ;;  %v11944_v27 = vld [vmem:[#allocation2 + $0x10e8] sm:$0xff] }
 0x1f9   :  { %7416 = vmatpush.bf16.msrb.mxu1 %v11898_v28  ;;  %7385 = vmatmul.bf16.vlgmr.msra.gmra.mxu2 %v4809_v31  ;;  %v11927_v31 = vld [vmem:[#allocation2 + $0x1060] sm:$0xff]  ;;  %v11976_v11 = vld [vmem:[#allocation2 + $0x11e8] sm:$0xff] }
 0x1fa   :  { %7429 = vmatpush.bf16.msrb.mxu2 %v11906_v29  ;;  %7398 = vmatmul.bf16.vlgmr.msra.gmra.mxu3 %v4810_v33  ;;  %v11935_v33 = vld [vmem:[#allocation2 + $0x10a0] sm:$0xff] }
 0x1fb   :  { %7442 = vmatpush.bf16.msrb.mxu3 %v11914_v30  ;;  %v11919_v30 = vld [vmem:[#allocation2 + $0x1020] sm:$0xff] }
 0x1fc   :  { %7404 = vmatpush.bf16.msrb.mxu0 %v11889_v34  ;;  %v3923_v54 = vpop.f32.mrf.mxu2  ;;  %v3899_v57 = vpop.f32.mrf.mxu0  ;;  %v11943_v34 = vld [vmem:[#allocation2 + $0x10e0] sm:$0xff] }
 0x1fd   :  { %7417 = vmatpush.bf16.msrb.mxu1 %v11897_v35  ;;  %v3924_v55 = vadd.f32 %v3923_v54, %v3911_v49  ;;  %v3936_v56 = vpop.f32.mrf.mxu3  ;;  %v3912_v61 = vpop.f32.mrf.mxu1  ;;  %v11941_v49 = vld [vmem:[#allocation2 + $0x10d0] sm:$0xff]  ;;  %v11923_v57 = vld [vmem:[#allocation2 + $0x1040] sm:$0xff] }
 0x1fe   :  { %7430 = vmatpush.bf16.msrb.mxu2 %v11905_v36  ;;  %v11918_v36 = vld [vmem:[#allocation2 + $0x1018] sm:$0xff] }
 0x1ff   :  { %7443 = vmatpush.bf16.msrb.mxu3 %v11913_v37  ;;  %v12487_v58 = vadd.f32 %v3936_v56, %v3924_v55  ;;  %v11926_v37 = vld [vmem:[#allocation2 + $0x1058] sm:$0xff]  ;;  %v11915_v56 = vld [vmem:[#allocation2 + $0x1000] sm:$0xff] }
 0x200   :  { %7405 = vmatpush.bf16.msrb.mxu0 %v11888_v38  ;;  %v11934_v38 = vld [vmem:[#allocation2 + $0x1098] sm:$0xff] }
 0x201   :  { %7418 = vmatpush.bf16.msrb.mxu1 %v11896_v39  ;;  %v11942_v39 = vld [vmem:[#allocation2 + $0x10d8] sm:$0xff] }
 0x202   :  { %7431 = vmatpush.bf16.msrb.mxu2 %v11904_v40  ;;  %v11962_v61 = vld [vmem:[#allocation2 + $0x1178] sm:$0xff] }
 0x203   :  { %7444 = vmatpush.bf16.msrb.mxu3 %v11912_v42 }
 0x204   :  { %7406 = vmatpush.bf16.msrb.mxu0 %v11887_v45  ;;  %v3925_v7 = vpop.f32.mrf.mxu2 }
 0x205   :  { %7419 = vmatpush.bf16.msrb.mxu1 %v11895_v46  ;;  %v3938_v9 = vpop.f32.mrf.mxu3  ;;  %v11917_v46 = vld [vmem:[#allocation2 + $0x1010] sm:$0xff]  ;;  %v11952_v7 = vld [vmem:[#allocation2 + $0x1128] sm:$0xff] }
 0x206   :  { %7432 = vmatpush.bf16.msrb.mxu2 %v11903_v41  ;;  %v11968_v9 = vld [vmem:[#allocation2 + $0x11a8] sm:$0xff] }
 0x207   :  { %7445 = vmatpush.bf16.msrb.mxu3 %v11911_v48  ;;  %v11933_v48 = vld [vmem:[#allocation2 + $0x1090] sm:$0xff] }
 0x208   :  { %7407 = vmatpush.bf16.msrb.mxu0 %v11886_v50  ;;  %v11916_v50 = vld [vmem:[#allocation2 + $0x1008] sm:$0xff] }
 0x209   :  { %7420 = vmatpush.bf16.msrb.mxu1 %v11894_v51  ;;  %v11924_v51 = vld [vmem:[#allocation2 + $0x1048] sm:$0xff] }
 0x20a   :  { %7433 = vmatpush.bf16.msrb.mxu2 %v11902_v52  ;;  %v11932_v52 = vld [vmem:[#allocation2 + $0x1088] sm:$0xff] }
 0x20b   :  { %7446 = vmatpush.bf16.msrb.mxu3 %v11910_v53  ;;  %v11940_v53 = vld [vmem:[#allocation2 + $0x10c8] sm:$0xff] }
 0x20c   :  { %7408 = vmatpush.bf16.msrb.mxu0 %v11885_v59  ;;  %v11939_v59 = vld [vmem:[#allocation2 + $0x10c0] sm:$0xff] }
 0x20d   :  { %7421 = vmatpush.bf16.msrb.mxu1 %v11893_v60  ;;  %v11954_v60 = vld [vmem:[#allocation2 + $0x1138] sm:$0xff] }
 0x20e   :  { %7434 = vmatpush.bf16.msrb.mxu2 %v11901_v62  ;;  %v11970_v62 = vld [vmem:[#allocation2 + $0x11b8] sm:$0xff] }
 0x20f   :  { %7447 = vmatpush.bf16.msrb.mxu3 %v11909_v63  ;;  %v11978_v63 = vld [vmem:[#allocation2 + $0x11f8] sm:$0xff] }
 0x210   :  { %7409 = vmatpush.bf16.msrb.mxu0 %v11884_v0  ;;  %v4819_v0 = vld [vmem:[#allocation1 + $0x9] sm:$0xff] }
 0x211   :  { %7422 = vmatpush.bf16.msrb.mxu1 %v11892_v1  ;;  %v4818_v1 = vld [vmem:[#allocation1] sm:$0xff] }
 0x212   :  { %7435 = vmatpush.bf16.msrb.mxu2 %v11900_v2  ;;  %v4820_v2 = vld [vmem:[#allocation1 + $0x12] sm:$0xff] }
 0x213   :  { %7448 = vmatpush.bf16.msrb.mxu3 %v11908_v3  ;;  %v11953_v3 = vld [vmem:[#allocation2 + $0x1130] sm:$0xff] }
 0x214   :  { %7410 = vmatpush.bf16.msrb.mxu0 %v11883_v12  ;;  %v3949_v28 = vpop.f32.mrf.mxu0  ;;  %v12222_v12 = vld [vmem:[#allocation5 + $0x1] ss:$0 sm:$0xff] }
 0x215   :  { %7423 = vmatpush.bf16.msrb.mxu1 %v11891_v13  ;;  %v3950_v29 = vadd.f32 %v3949_v28, %v12487_v58  ;;  %v3962_v32 = vpop.f32.mrf.mxu1  ;;  %v11931_v58 = vld [vmem:[#allocation2 + $0x1080] sm:$0xff]  ;;  %v11949_v28 = vld [vmem:[#allocation2 + $0x1110] sm:$0xff] }
 0x216   :  { %7436 = vmatpush.bf16.msrb.mxu2 %v11899_v14 }
 0x217   :  { %7449 = vmatpush.bf16.msrb.mxu3 %v11907_v15  ;;  %7411 = vmatmul.bf16.vlgmr.msrb.gmra.mxu0 %v4811_v4  ;;  %v3963_v35 = vadd.f32 %v3962_v32, %v3950_v29  ;;  %v11961_v4 = vld [vmem:[#allocation2 + $0x1170] sm:$0xff]  ;;  %v11951_v15 = vld [vmem:[#allocation2 + $0x1120] sm:$0xff] }
 0x218   :  { %7455 = vmatpush.bf16.msra.mxu0 %v11922_v16  ;;  %7424 = vmatmul.bf16.vlgmr.msrb.gmra.mxu1 %v4812_v6  ;;  %v11977_v6 = vld [vmem:[#allocation2 + $0x11f0] sm:$0xff]  ;;  %v11959_v16 = vld [vmem:[#allocation2 + $0x1160] sm:$0xff] }
 0x219   :  { %7468 = vmatpush.bf16.msra.mxu1 %v11930_v17  ;;  %7437 = vmatmul.bf16.vlgmr.msrb.gmra.mxu2 %v4813_v5  ;;  %v11969_v5 = vld [vmem:[#allocation2 + $0x11b0] sm:$0xff]  ;;  %v11967_v17 = vld [vmem:[#allocation2 + $0x11a0] sm:$0xff] }
 0x21a   :  { %7481 = vmatpush.bf16.msra.mxu2 %v11938_v18  ;;  %7450 = vmatmul.bf16.vlgmr.msrb.gmra.mxu3 %v4814_v8  ;;  %v11960_v8 = vld [vmem:[#allocation2 + $0x1168] sm:$0xff]  ;;  %v11975_v18 = vld [vmem:[#allocation2 + $0x11e0] sm:$0xff]  ;;  %v11957_v29 = vld [vmem:[#allocation2 + $0x1150] sm:$0xff] }
 0x21b   :  { %7494 = vmatpush.bf16.msra.mxu3 %v11946_v19  ;;  %v11965_v32 = vld [vmem:[#allocation2 + $0x1190] sm:$0xff] }
 0x21c   :  { %7456 = vmatpush.bf16.msra.mxu0 %v11921_v20  ;;  %v3975_v40 = vpop.f32.mrf.mxu2  ;;  %v3951_v44 = vpop.f32.mrf.mxu0  ;;  %v11950_v20 = vld [vmem:[#allocation2 + $0x1118] sm:$0xff] }
 0x21d   :  { %7469 = vmatpush.bf16.msra.mxu1 %v11929_v21  ;;  %v3976_v42 = vadd.f32 %v3975_v40, %v3963_v35  ;;  %v3988_v43 = vpop.f32.mrf.mxu3  ;;  %v3964_v41 = vpop.f32.mrf.mxu1  ;;  %v11958_v21 = vld [vmem:[#allocation2 + $0x1158] sm:$0xff]  ;;  %v11956_v35 = vld [vmem:[#allocation2 + $0x1148] sm:$0xff] }
 0x21e   :  { %7482 = vmatpush.bf16.msra.mxu2 %v11937_v22  ;;  %v11966_v22 = vld [vmem:[#allocation2 + $0x1198] sm:$0xff]  ;;  %v11955_v41 = vld [vmem:[#allocation2 + $0x1140] sm:$0xff] }
 0x21f   :  { %7495 = vmatpush.bf16.msra.mxu3 %v11945_v23  ;;  %v3989_v45 = vadd.f32 %v3988_v43, %v3976_v42  ;;  %v11974_v23 = vld [vmem:[#allocation2 + $0x11d8] sm:$0xff]  ;;  %v4824_v43 = vld [vmem:[#allocation1 + $0x36] sm:$0xff] }
 0x220   :  { %7457 = vmatpush.bf16.msra.mxu0 %v11920_v24  ;;  %v4822_v40 = vld [vmem:[#allocation1 + $0x24] sm:$0xff] }
 0x221   :  { %7470 = vmatpush.bf16.msra.mxu1 %v11928_v25 }
 0x222   :  { %7483 = vmatpush.bf16.msra.mxu2 %v11936_v26 }
 0x223   :  { %7496 = vmatpush.bf16.msra.mxu3 %v11944_v27 }
 0x224   :  { %7458 = vmatpush.bf16.msra.mxu0 %v11919_v30  ;;  %v3977_v54 = vpop.f32.mrf.mxu2 }
 0x225   :  { %7471 = vmatpush.bf16.msra.mxu1 %v11927_v31  ;;  %v3990_v55 = vpop.f32.mrf.mxu3  ;;  %v11985_v54 = vld [vmem:[#allocation2 + $0x1230] sm:$0xff] }
 0x226   :  { %7484 = vmatpush.bf16.msra.mxu2 %v11935_v33  ;;  %v11973_v33 = vld [vmem:[#allocation2 + $0x11d0] sm:$0xff] }
 0x227   :  { %7497 = vmatpush.bf16.msra.mxu3 %v11943_v34  ;;  %v11948_v34 = vld [vmem:[#allocation2 + $0x1108] sm:$0xff]  ;;  %v11993_v55 = vld [vmem:[#allocation2 + $0x1270] sm:$0xff] }
 0x228   :  { %7459 = vmatpush.bf16.msra.mxu0 %v11918_v36  ;;  %v11964_v36 = vld [vmem:[#allocation2 + $0x1188] sm:$0xff] }
 0x229   :  { %7472 = vmatpush.bf16.msra.mxu1 %v11926_v37  ;;  %v11972_v37 = vld [vmem:[#allocation2 + $0x11c8] sm:$0xff] }
 0x22a   :  { %7485 = vmatpush.bf16.msra.mxu2 %v11934_v38  ;;  %v4821_v38 = vld [vmem:[#allocation1 + $0x1b] sm:$0xff] }
 0x22b   :  { %7498 = vmatpush.bf16.msra.mxu3 %v11942_v39  ;;  %v4823_v39 = vld [vmem:[#allocation1 + $0x2d] sm:$0xff] }
 0x22c   :  { %7460 = vmatpush.bf16.msra.mxu0 %v11917_v46  ;;  %v8167_v46 = vld [vmem:[%s12559_s0 + $0x49] sm:$0xff] }
 0x22d   :  { %7473 = vmatpush.bf16.msra.mxu1 %v11925_v47  ;;  %v11947_v47 = vld [vmem:[#allocation2 + $0x1100] sm:$0xff] }
 0x22e   :  { %7486 = vmatpush.bf16.msra.mxu2 %v11933_v48  ;;  %v11963_v48 = vld [vmem:[#allocation2 + $0x1180] sm:$0xff] }
 0x22f   :  { %7499 = vmatpush.bf16.msra.mxu3 %v11941_v49  ;;  %v11971_v49 = vld [vmem:[#allocation2 + $0x11c0] sm:$0xff] }
 0x230   :  { %7461 = vmatpush.bf16.msra.mxu0 %v11916_v50  ;;  %v11986_v50 = vld [vmem:[#allocation2 + $0x1238] sm:$0xff] }
 0x231   :  { %7474 = vmatpush.bf16.msra.mxu1 %v11924_v51  ;;  %v11994_v51 = vld [vmem:[#allocation2 + $0x1278] sm:$0xff] }
 0x232   :  { %7487 = vmatpush.bf16.msra.mxu2 %v11932_v52  ;;  %v12002_v52 = vld [vmem:[#allocation2 + $0x12b8] sm:$0xff] }
 0x233   :  { %7500 = vmatpush.bf16.msra.mxu3 %v11940_v53  ;;  %v12010_v53 = vld [vmem:[#allocation2 + $0x12f8] sm:$0xff] }
 0x234   :  { %7462 = vmatpush.bf16.msra.mxu0 %v11915_v56  ;;  %v4001_v13 = vpop.f32.mrf.mxu0  ;;  %v12001_v56 = vld [vmem:[#allocation2 + $0x12b0] sm:$0xff] }
 0x235   :  { %7475 = vmatpush.bf16.msra.mxu1 %v11923_v57  ;;  %v12496_v14 = vadd.f32 %v4001_v13, %v3989_v45  ;;  %v12500_v45 = vld [vmem:[#allocation1 + $0x3f] sm:$0xff] }
 0x236   :  { %7488 = vmatpush.bf16.msra.mxu2 %v11931_v58  ;;  %4827 = vst [vmem:[#allocation1] ss:$9 sm:$0xff] %v8167_v46  ;;  %v12009_v57 = vld [vmem:[#allocation2 + $0x12f0] sm:$0xff]  ;;  %v11984_v58 = vld [vmem:[#allocation2 + $0x1228] sm:$0xff] }
 0x237   :  { %7501 = vmatpush.bf16.msra.mxu3 %v11939_v59  ;;  %7463 = vmatmul.bf16.vlgmr.msra.gmra.mxu0 %v12489_v10  ;;  %v7269_v10 = vpop.f32.mrf.mxu1  ;;  %v11992_v59 = vld [vmem:[#allocation2 + $0x1268] sm:$0xff] }
 0x238   :  { %7507 = vmatpush.bf16.msrb.mxu0 %v11954_v60  ;;  %7476 = vmatmul.bf16.vlgmr.msra.gmra.mxu1 %v4818_v1  ;;  %v7270_v19 = vadd.f32 %v12222_v12, %v7269_v10  ;;  %v12000_v60 = vld [vmem:[#allocation2 + $0x12a8] sm:$0xff]  ;;  %v11989_v10 = vld [vmem:[#allocation2 + $0x1250] sm:$0xff] }
 0x239   :  { %7520 = vmatpush.bf16.msrb.mxu1 %v11962_v61  ;;  %7489 = vmatmul.bf16.vlgmr.msra.gmra.mxu2 %v4819_v0  ;;  %v12008_v61 = vld [vmem:[#allocation2 + $0x12e8] sm:$0xff]  ;;  %v11991_v0 = vld [vmem:[#allocation2 + $0x1260] sm:$0xff] }
 0x23a   :  { %7533 = vmatpush.bf16.msrb.mxu2 %v11970_v62  ;;  %7502 = vmatmul.bf16.vlgmr.msra.gmra.mxu3 %v4820_v2  ;;  %v12032_v46 = vld [vmem:[#allocation2 + $0x13a8] sm:$0xff] }
 0x23b   :  { %7546 = vmatpush.bf16.msrb.mxu3 %v11978_v63  ;;  %v11983_v63 = vld [vmem:[#allocation2 + $0x1220] sm:$0xff] }
 0x23c   :  { %7508 = vmatpush.bf16.msrb.mxu0 %v11953_v3  ;;  %v7282_v24 = vpop.f32.mrf.mxu2  ;;  %v4003_v27 = vpop.f32.mrf.mxu0  ;;  %v11999_v3 = vld [vmem:[#allocation2 + $0x12a0] sm:$0xff] }
 0x23d   :  { %7521 = vmatpush.bf16.msrb.mxu1 %v11961_v4  ;;  %v7283_v25 = vadd.f32 %v7282_v24, %v7270_v19  ;;  %v7295_v26 = vpop.f32.mrf.mxu3  ;;  %v12007_v4 = vld [vmem:[#allocation2 + $0x12e0] sm:$0xff]  ;;  %v11997_v19 = vld [vmem:[#allocation2 + $0x1290] sm:$0xff]  ;;  %v12004_v24 = vld [vmem:[#allocation2 + $0x12c8] sm:$0xff] }
 0x23e   :  { %7534 = vmatpush.bf16.msrb.mxu2 %v11969_v5  ;;  %v11979_v27 = vld [vmem:[#allocation2 + $0x1200] sm:$0xff] }
 0x23f   :  { %7547 = vmatpush.bf16.msrb.mxu3 %v11977_v6  ;;  %v12498_v30 = vadd.f32 %v7295_v26, %v7283_v25  ;;  %v7271_v31 = vpop.f32.mrf.mxu1  ;;  %v11982_v6 = vld [vmem:[#allocation2 + $0x1218] sm:$0xff] }
 0x240   :  { %7509 = vmatpush.bf16.msrb.mxu0 %v11952_v7  ;;  %v11990_v7 = vld [vmem:[#allocation2 + $0x1258] sm:$0xff] }
 0x241   :  { %7522 = vmatpush.bf16.msrb.mxu1 %v11960_v8  ;;  %v11998_v8 = vld [vmem:[#allocation2 + $0x1298] sm:$0xff] }
 0x242   :  { %7535 = vmatpush.bf16.msrb.mxu2 %v11968_v9  ;;  %v12006_v9 = vld [vmem:[#allocation2 + $0x12d8] sm:$0xff] }
 0x243   :  { %7548 = vmatpush.bf16.msrb.mxu3 %v11976_v11  ;;  %v12018_v31 = vld [vmem:[#allocation2 + $0x1338] sm:$0xff] }
 0x244   :  { %7510 = vmatpush.bf16.msrb.mxu0 %v11951_v15  ;;  %v7284_v42 = vpop.f32.mrf.mxu2 }
 0x245   :  { %7523 = vmatpush.bf16.msrb.mxu1 %v11959_v16  ;;  %v7297_v44 = vpop.f32.mrf.mxu3  ;;  %v11981_v16 = vld [vmem:[#allocation2 + $0x1210] sm:$0xff] }
 0x246   :  { %7536 = vmatpush.bf16.msrb.mxu2 %v11967_v17  ;;  %v12041_v42 = vld [vmem:[#allocation2 + $0x13f0] sm:$0xff]  ;;  %v12024_v44 = vld [vmem:[#allocation2 + $0x1368] sm:$0xff] }
 0x247   :  { %7549 = vmatpush.bf16.msrb.mxu3 %v11975_v18 }
 0x248   :  { %7511 = vmatpush.bf16.msrb.mxu0 %v11950_v20  ;;  %v12005_v20 = vld [vmem:[#allocation2 + $0x12d0] sm:$0xff] }
 0x249   :  { %7524 = vmatpush.bf16.msrb.mxu1 %v11958_v21  ;;  %v11980_v21 = vld [vmem:[#allocation2 + $0x1208] sm:$0xff] }
 0x24a   :  { %7537 = vmatpush.bf16.msrb.mxu2 %v11966_v22  ;;  %v11988_v22 = vld [vmem:[#allocation2 + $0x1248] sm:$0xff] }
 0x24b   :  { %7550 = vmatpush.bf16.msrb.mxu3 %v11974_v23  ;;  %v11996_v23 = vld [vmem:[#allocation2 + $0x1288] sm:$0xff] }
 0x24c   :  { %7512 = vmatpush.bf16.msrb.mxu0 %v11949_v28  ;;  %v11987_v28 = vld [vmem:[#allocation2 + $0x1240] sm:$0xff] }
 0x24d   :  { %7525 = vmatpush.bf16.msrb.mxu1 %v11957_v29  ;;  %v11995_v29 = vld [vmem:[#allocation2 + $0x1280] sm:$0xff] }
 0x24e   :  { %7538 = vmatpush.bf16.msrb.mxu2 %v11965_v32  ;;  %v12026_v32 = vld [vmem:[#allocation2 + $0x1378] sm:$0xff] }
 0x24f   :  { %7551 = vmatpush.bf16.msrb.mxu3 %v11973_v33  ;;  %v12034_v33 = vld [vmem:[#allocation2 + $0x13b8] sm:$0xff] }
 0x250   :  { %7513 = vmatpush.bf16.msrb.mxu0 %v11948_v34  ;;  %v12042_v34 = vld [vmem:[#allocation2 + $0x13f8] sm:$0xff] }
 0x251   :  { %7526 = vmatpush.bf16.msrb.mxu1 %v11956_v35  ;;  %v4829_v35 = vld [vmem:[#allocation1 + $0x9] sm:$0xff] }
 0x252   :  { %7539 = vmatpush.bf16.msrb.mxu2 %v11964_v36  ;;  %v4828_v36 = vld [vmem:[#allocation1] sm:$0xff] }
 0x253   :  { %7552 = vmatpush.bf16.msrb.mxu3 %v11972_v37  ;;  %v4830_v37 = vld [vmem:[#allocation1 + $0x12] sm:$0xff] }
 0x254   :  { %7514 = vmatpush.bf16.msrb.mxu0 %v11947_v47  ;;  %v7308_v62 = vpop.f32.mrf.mxu0  ;;  %v12040_v47 = vld [vmem:[#allocation2 + $0x13e8] sm:$0xff] }
 0x255   :  { %7527 = vmatpush.bf16.msrb.mxu1 %v11955_v41  ;;  %v7309_v1 = vadd.f32 %v7308_v62, %v12498_v30  ;;  %v7321_v2 = vpop.f32.mrf.mxu1  ;;  %v12003_v30 = vld [vmem:[#allocation2 + $0x12c0] sm:$0xff] }
 0x256   :  { %7540 = vmatpush.bf16.msrb.mxu2 %v11963_v48 }
 0x257   :  { %7553 = vmatpush.bf16.msrb.mxu3 %v11971_v49  ;;  %7515 = vmatmul.bf16.vlgmr.msrb.gmra.mxu0 %v4821_v38  ;;  %v7322_v5 = vadd.f32 %v7321_v2, %v7309_v1  ;;  %v12017_v38 = vld [vmem:[#allocation2 + $0x1330] sm:$0xff]  ;;  %v12015_v49 = vld [vmem:[#allocation2 + $0x1320] sm:$0xff] }
 0x258   :  { %7559 = vmatpush.bf16.msra.mxu0 %v11986_v50  ;;  %7528 = vmatmul.bf16.vlgmr.msrb.gmra.mxu1 %v4822_v40  ;;  %v12033_v40 = vld [vmem:[#allocation2 + $0x13b0] sm:$0xff]  ;;  %v12023_v50 = vld [vmem:[#allocation2 + $0x1360] sm:$0xff] }
 0x259   :  { %7572 = vmatpush.bf16.msra.mxu1 %v11994_v51  ;;  %7541 = vmatmul.bf16.vlgmr.msrb.gmra.mxu2 %v4823_v39  ;;  %v12025_v39 = vld [vmem:[#allocation2 + $0x1370] sm:$0xff] }
 0x25a   :  { %7585 = vmatpush.bf16.msra.mxu2 %v12002_v52  ;;  %7554 = vmatmul.bf16.vlgmr.msrb.gmra.mxu3 %v4824_v43  ;;  %v12016_v43 = vld [vmem:[#allocation2 + $0x1328] sm:$0xff]  ;;  %v12039_v52 = vld [vmem:[#allocation2 + $0x13e0] sm:$0xff]  ;;  %v12029_v2 = vld [vmem:[#allocation2 + $0x1390] sm:$0xff] }
 0x25b   :  { %7598 = vmatpush.bf16.msra.mxu3 %v12010_v53 }
 0x25c   :  { %7560 = vmatpush.bf16.msra.mxu0 %v11985_v54  ;;  %v7334_v11 = vpop.f32.mrf.mxu2  ;;  %v7310_v15 = vpop.f32.mrf.mxu0  ;;  %v12014_v54 = vld [vmem:[#allocation2 + $0x1318] sm:$0xff] }
 0x25d   :  { %7573 = vmatpush.bf16.msra.mxu1 %v11993_v55  ;;  %v7335_v12 = vadd.f32 %v7334_v11, %v7322_v5  ;;  %v7347_v13 = vpop.f32.mrf.mxu3  ;;  %v7323_v18 = vpop.f32.mrf.mxu1  ;;  %v12022_v55 = vld [vmem:[#allocation2 + $0x1358] sm:$0xff]  ;;  %v12020_v5 = vld [vmem:[#allocation2 + $0x1348] sm:$0xff] }
 0x25e   :  { %7586 = vmatpush.bf16.msra.mxu2 %v12001_v56  ;;  %v12030_v56 = vld [vmem:[#allocation2 + $0x1398] sm:$0xff]  ;;  %v12019_v18 = vld [vmem:[#allocation2 + $0x1340] sm:$0xff] }
 0x25f   :  { %7599 = vmatpush.bf16.msra.mxu3 %v12009_v57  ;;  %v7348_v17 = vadd.f32 %v7347_v13, %v7335_v12  ;;  %v12038_v57 = vld [vmem:[#allocation2 + $0x13d8] sm:$0xff]  ;;  %v4834_v13 = vld [vmem:[#allocation1 + $0x36] sm:$0xff] }
 0x260   :  { %7561 = vmatpush.bf16.msra.mxu0 %v11984_v58  ;;  %v4832_v11 = vld [vmem:[#allocation1 + $0x24] sm:$0xff] }
 0x261   :  { %7574 = vmatpush.bf16.msra.mxu1 %v11992_v59 }
 0x262   :  { %7587 = vmatpush.bf16.msra.mxu2 %v12000_v60 }
 0x263   :  { %7600 = vmatpush.bf16.msra.mxu3 %v12008_v61 }
 0x264   :  { %7562 = vmatpush.bf16.msra.mxu0 %v11983_v63  ;;  %v7336_v25 = vpop.f32.mrf.mxu2  ;;  %v12013_v63 = vld [vmem:[#allocation2 + $0x1310] sm:$0xff] }
 0x265   :  { %7575 = vmatpush.bf16.msra.mxu1 %v11991_v0  ;;  %v7349_v26 = vpop.f32.mrf.mxu3  ;;  %v12021_v0 = vld [vmem:[#allocation2 + $0x1350] sm:$0xff] }
 0x266   :  { %7588 = vmatpush.bf16.msra.mxu2 %v11999_v3  ;;  %v12037_v3 = vld [vmem:[#allocation2 + $0x13d0] sm:$0xff] }
 0x267   :  { %7601 = vmatpush.bf16.msra.mxu3 %v12007_v4  ;;  %v12012_v4 = vld [vmem:[#allocation2 + $0x1308] sm:$0xff]  ;;  %v12049_v25 = vld [vmem:[#allocation2 + $0x1430] sm:$0xff] }
 0x268   :  { %7563 = vmatpush.bf16.msra.mxu0 %v11982_v6  ;;  %v12028_v6 = vld [vmem:[#allocation2 + $0x1388] sm:$0xff]  ;;  %v12057_v26 = vld [vmem:[#allocation2 + $0x1470] sm:$0xff] }
 0x269   :  { %7576 = vmatpush.bf16.msra.mxu1 %v11990_v7  ;;  %v12036_v7 = vld [vmem:[#allocation2 + $0x13c8] sm:$0xff] }
 0x26a   :  { %7589 = vmatpush.bf16.msra.mxu2 %v11998_v8  ;;  %v4831_v8 = vld [vmem:[#allocation1 + $0x1b] sm:$0xff] }
 0x26b   :  { %7602 = vmatpush.bf16.msra.mxu3 %v12006_v9  ;;  %v4833_v9 = vld [vmem:[#allocation1 + $0x2d] sm:$0xff] }
 0x26c   :  { %7564 = vmatpush.bf16.msra.mxu0 %v11981_v16  ;;  %v12509_v16 = vld [vmem:[#allocation1 + $0x3f] sm:$0xff] }
 0x26d   :  { %7577 = vmatpush.bf16.msra.mxu1 %v11989_v10  ;;  %v8168_v10 = vld [vmem:[%s12559_s0 + $0x51] sm:$0xff] }
 0x26e   :  { %7590 = vmatpush.bf16.msra.mxu2 %v11997_v19  ;;  %4837 = vst [vmem:[#allocation1] ss:$9 sm:$0xff] %v8168_v10  ;;  %v12027_v19 = vld [vmem:[#allocation2 + $0x1380] sm:$0xff]  ;;  %v12096_v10 = vld [vmem:[#allocation2 + $0x15a8] sm:$0xff] }
 0x26f   :  { %7603 = vmatpush.bf16.msra.mxu3 %v12005_v20  ;;  %v12035_v20 = vld [vmem:[#allocation2 + $0x13c0] sm:$0xff] }
 0x270   :  { %7565 = vmatpush.bf16.msra.mxu0 %v11980_v21  ;;  %v12050_v21 = vld [vmem:[#allocation2 + $0x1438] sm:$0xff] }
 0x271   :  { %7578 = vmatpush.bf16.msra.mxu1 %v11988_v22  ;;  %v12058_v22 = vld [vmem:[#allocation2 + $0x1478] sm:$0xff] }
 0x272   :  { %7591 = vmatpush.bf16.msra.mxu2 %v11996_v23  ;;  %v12066_v23 = vld [vmem:[#allocation2 + $0x14b8] sm:$0xff] }
 0x273   :  { %7604 = vmatpush.bf16.msra.mxu3 %v12004_v24  ;;  %v12074_v24 = vld [vmem:[#allocation2 + $0x14f8] sm:$0xff] }
 0x274   :  { %7566 = vmatpush.bf16.msra.mxu0 %v11979_v27  ;;  %v7360_v41 = vpop.f32.mrf.mxu0  ;;  %v12065_v27 = vld [vmem:[#allocation2 + $0x14b0] sm:$0xff] }
 0x275   :  { %7579 = vmatpush.bf16.msra.mxu1 %v11987_v28  ;;  %v7361_v48 = vadd.f32 %v7360_v41, %v7348_v17  ;;  %v7373_v51 = vpop.f32.mrf.mxu1  ;;  %v12011_v17 = vld [vmem:[#allocation2 + $0x1300] sm:$0xff]  ;;  %v12073_v28 = vld [vmem:[#allocation2 + $0x14f0] sm:$0xff] }
 0x276   :  { %7592 = vmatpush.bf16.msra.mxu2 %v11995_v29  ;;  %v12048_v29 = vld [vmem:[#allocation2 + $0x1428] sm:$0xff] }
 0x277   :  { %7605 = vmatpush.bf16.msra.mxu3 %v12003_v30  ;;  %7567 = vmatmul.bf16.vlgmr.msra.gmra.mxu0 %v12500_v45  ;;  %v12031_v45 = vld [vmem:[#allocation2 + $0x13a0] sm:$0xff]  ;;  %v7374_v53 = vadd.f32 %v7373_v51, %v7361_v48  ;;  %v12056_v30 = vld [vmem:[#allocation2 + $0x1468] sm:$0xff]  ;;  %v12045_v51 = vld [vmem:[#allocation2 + $0x1410] sm:$0xff] }
 0x278   :  { %7611 = vmatpush.bf16.msrb.mxu0 %v12018_v31  ;;  %7580 = vmatmul.bf16.vlgmr.msra.gmra.mxu1 %v4828_v36  ;;  %v12064_v31 = vld [vmem:[#allocation2 + $0x14a8] sm:$0xff]  ;;  %v12055_v36 = vld [vmem:[#allocation2 + $0x1460] sm:$0xff] }
 0x279   :  { %7624 = vmatpush.bf16.msrb.mxu1 %v12026_v32  ;;  %7593 = vmatmul.bf16.vlgmr.msra.gmra.mxu2 %v4829_v35  ;;  %v12072_v32 = vld [vmem:[#allocation2 + $0x14e8] sm:$0xff]  ;;  %v12047_v35 = vld [vmem:[#allocation2 + $0x1420] sm:$0xff] }
 0x27a   :  { %7637 = vmatpush.bf16.msrb.mxu2 %v12034_v33  ;;  %7606 = vmatmul.bf16.vlgmr.msra.gmra.mxu3 %v4830_v37 }
 0x27b   :  { %7650 = vmatpush.bf16.msrb.mxu3 %v12042_v34 }
 0x27c   :  { %7612 = vmatpush.bf16.msrb.mxu0 %v12017_v38  ;;  %v7386_v58 = vpop.f32.mrf.mxu2  ;;  %v7362_v61 = vpop.f32.mrf.mxu0  ;;  %v12063_v38 = vld [vmem:[#allocation2 + $0x14a0] sm:$0xff] }
 0x27d   :  { %7625 = vmatpush.bf16.msrb.mxu1 %v12025_v39  ;;  %v7387_v59 = vadd.f32 %v7386_v58, %v7374_v53  ;;  %v7399_v60 = vpop.f32.mrf.mxu3  ;;  %v7375_v1 = vpop.f32.mrf.mxu1  ;;  %v12071_v39 = vld [vmem:[#allocation2 + $0x14e0] sm:$0xff]  ;;  %v12061_v53 = vld [vmem:[#allocation2 + $0x1490] sm:$0xff]  ;;  %v12068_v58 = vld [vmem:[#allocation2 + $0x14c8] sm:$0xff] }
 0x27e   :  { %7638 = vmatpush.bf16.msrb.mxu2 %v12033_v40  ;;  %v12043_v61 = vld [vmem:[#allocation2 + $0x1400] sm:$0xff]  ;;  %v12082_v1 = vld [vmem:[#allocation2 + $0x1538] sm:$0xff] }
 0x27f   :  { %7651 = vmatpush.bf16.msrb.mxu3 %v12041_v42  ;;  %v12507_v62 = vadd.f32 %v7399_v60, %v7387_v59  ;;  %v12046_v42 = vld [vmem:[#allocation2 + $0x1418] sm:$0xff] }
 0x280   :  { %7613 = vmatpush.bf16.msrb.mxu0 %v12016_v43  ;;  %v12054_v43 = vld [vmem:[#allocation2 + $0x1458] sm:$0xff] }
 0x281   :  { %7626 = vmatpush.bf16.msrb.mxu1 %v12024_v44  ;;  %v12062_v44 = vld [vmem:[#allocation2 + $0x1498] sm:$0xff] }
 0x282   :  { %7639 = vmatpush.bf16.msrb.mxu2 %v12032_v46  ;;  %v12070_v46 = vld [vmem:[#allocation2 + $0x14d8] sm:$0xff] }
 0x283   :  { %7652 = vmatpush.bf16.msrb.mxu3 %v12040_v47 }
 0x284   :  { %7614 = vmatpush.bf16.msrb.mxu0 %v12015_v49  ;;  %v7388_v12 = vpop.f32.mrf.mxu2 }
 0x285   :  { %7627 = vmatpush.bf16.msrb.mxu1 %v12023_v50  ;;  %v7401_v15 = vpop.f32.mrf.mxu3  ;;  %v12105_v12 = vld [vmem:[#allocation2 + $0x15f0] sm:$0xff] }
 0x286   :  { %7640 = vmatpush.bf16.msrb.mxu2 %v12031_v45  ;;  %v12053_v45 = vld [vmem:[#allocation2 + $0x1450] sm:$0xff]  ;;  %v12088_v15 = vld [vmem:[#allocation2 + $0x1568] sm:$0xff] }
 0x287   :  { %7653 = vmatpush.bf16.msrb.mxu3 %v12039_v52 }
 0x288   :  { %7615 = vmatpush.bf16.msrb.mxu0 %v12014_v54  ;;  %v12069_v54 = vld [vmem:[#allocation2 + $0x14d0] sm:$0xff] }
 0x289   :  { %7628 = vmatpush.bf16.msrb.mxu1 %v12022_v55  ;;  %v12044_v55 = vld [vmem:[#allocation2 + $0x1408] sm:$0xff] }
 0x28a   :  { %7641 = vmatpush.bf16.msrb.mxu2 %v12030_v56  ;;  %v12052_v56 = vld [vmem:[#allocation2 + $0x1448] sm:$0xff] }
 0x28b   :  { %7654 = vmatpush.bf16.msrb.mxu3 %v12038_v57  ;;  %v12060_v57 = vld [vmem:[#allocation2 + $0x1488] sm:$0xff] }
 0x28c   :  { %7616 = vmatpush.bf16.msrb.mxu0 %v12013_v63  ;;  %v12059_v63 = vld [vmem:[#allocation2 + $0x1480] sm:$0xff] }
 0x28d   :  { %7629 = vmatpush.bf16.msrb.mxu1 %v12021_v0  ;;  %v12067_v0 = vld [vmem:[#allocation2 + $0x14c0] sm:$0xff] }
 0x28e   :  { %7642 = vmatpush.bf16.msrb.mxu2 %v12029_v2  ;;  %v12090_v2 = vld [vmem:[#allocation2 + $0x1578] sm:$0xff] }
 0x28f   :  { %7655 = vmatpush.bf16.msrb.mxu3 %v12037_v3  ;;  %v12098_v3 = vld [vmem:[#allocation2 + $0x15b8] sm:$0xff] }
 0x290   :  { %7617 = vmatpush.bf16.msrb.mxu0 %v12012_v4  ;;  %v12106_v4 = vld [vmem:[#allocation2 + $0x15f8] sm:$0xff] }
 0x291   :  { %7630 = vmatpush.bf16.msrb.mxu1 %v12020_v5  ;;  %v4839_v5 = vld [vmem:[#allocation1 + $0x9] sm:$0xff] }
 0x292   :  { %7643 = vmatpush.bf16.msrb.mxu2 %v12028_v6  ;;  %v4838_v6 = vld [vmem:[#allocation1] sm:$0xff] }
 0x293   :  { %7656 = vmatpush.bf16.msrb.mxu3 %v12036_v7  ;;  %v4840_v7 = vld [vmem:[#allocation1 + $0x12] sm:$0xff] }
 0x294   :  { %7618 = vmatpush.bf16.msrb.mxu0 %v12011_v17  ;;  %v7412_v33 = vpop.f32.mrf.mxu0  ;;  %v12104_v17 = vld [vmem:[#allocation2 + $0x15e8] sm:$0xff] }
 0x295   :  { %7631 = vmatpush.bf16.msrb.mxu1 %v12019_v18  ;;  %v7413_v34 = vadd.f32 %v7412_v33, %v12507_v62  ;;  %v7425_v37 = vpop.f32.mrf.mxu1  ;;  %v12051_v62 = vld [vmem:[#allocation2 + $0x1440] sm:$0xff] }
 0x296   :  { %7644 = vmatpush.bf16.msrb.mxu2 %v12027_v19 }
 0x297   :  { %7657 = vmatpush.bf16.msrb.mxu3 %v12035_v20  ;;  %7619 = vmatmul.bf16.vlgmr.msrb.gmra.mxu0 %v4831_v8  ;;  %v7426_v40 = vadd.f32 %v7425_v37, %v7413_v34  ;;  %v12081_v8 = vld [vmem:[#allocation2 + $0x1530] sm:$0xff]  ;;  %v12079_v20 = vld [vmem:[#allocation2 + $0x1520] sm:$0xff] }
 0x298   :  { %7663 = vmatpush.bf16.msra.mxu0 %v12050_v21  ;;  %7632 = vmatmul.bf16.vlgmr.msrb.gmra.mxu1 %v4832_v11  ;;  %v12097_v11 = vld [vmem:[#allocation2 + $0x15b0] sm:$0xff]  ;;  %v12087_v21 = vld [vmem:[#allocation2 + $0x1560] sm:$0xff] }
 0x299   :  { %7676 = vmatpush.bf16.msra.mxu1 %v12058_v22  ;;  %7645 = vmatmul.bf16.vlgmr.msrb.gmra.mxu2 %v4833_v9  ;;  %v12089_v9 = vld [vmem:[#allocation2 + $0x1570] sm:$0xff] }
 0x29a   :  { %7689 = vmatpush.bf16.msra.mxu2 %v12066_v23  ;;  %7658 = vmatmul.bf16.vlgmr.msrb.gmra.mxu3 %v4834_v13  ;;  %v12080_v13 = vld [vmem:[#allocation2 + $0x1528] sm:$0xff]  ;;  %v12103_v23 = vld [vmem:[#allocation2 + $0x15e0] sm:$0xff]  ;;  %v12077_v34 = vld [vmem:[#allocation2 + $0x1510] sm:$0xff] }
 0x29b   :  { %7702 = vmatpush.bf16.msra.mxu3 %v12074_v24  ;;  %v12093_v37 = vld [vmem:[#allocation2 + $0x1590] sm:$0xff] }
 0x29c   :  { %7664 = vmatpush.bf16.msra.mxu0 %v12049_v25  ;;  %v7438_v47 = vpop.f32.mrf.mxu2  ;;  %v7414_v49 = vpop.f32.mrf.mxu0  ;;  %v12078_v25 = vld [vmem:[#allocation2 + $0x1518] sm:$0xff] }
 0x29d   :  { %7677 = vmatpush.bf16.msra.mxu1 %v12057_v26  ;;  %v7439_v41 = vadd.f32 %v7438_v47, %v7426_v40  ;;  %v7451_v48 = vpop.f32.mrf.mxu3  ;;  %v7427_v52 = vpop.f32.mrf.mxu1  ;;  %v12086_v26 = vld [vmem:[#allocation2 + $0x1558] sm:$0xff]  ;;  %v12084_v40 = vld [vmem:[#allocation2 + $0x1548] sm:$0xff] }
 0x29e   :  { %7690 = vmatpush.bf16.msra.mxu2 %v12065_v27  ;;  %v12094_v27 = vld [vmem:[#allocation2 + $0x1598] sm:$0xff]  ;;  %v12083_v52 = vld [vmem:[#allocation2 + $0x1540] sm:$0xff] }
 0x29f   :  { %7703 = vmatpush.bf16.msra.mxu3 %v12073_v28  ;;  %v7452_v50 = vadd.f32 %v7451_v48, %v7439_v41  ;;  %v12102_v28 = vld [vmem:[#allocation2 + $0x15d8] sm:$0xff]  ;;  %v4844_v48 = vld [vmem:[#allocation1 + $0x36] sm:$0xff] }
 0x2a0   :  { %7665 = vmatpush.bf16.msra.mxu0 %v12048_v29  ;;  %v4842_v47 = vld [vmem:[#allocation1 + $0x24] sm:$0xff] }
 0x2a1   :  { %7678 = vmatpush.bf16.msra.mxu1 %v12056_v30 }
 0x2a2   :  { %7691 = vmatpush.bf16.msra.mxu2 %v12064_v31 }
 0x2a3   :  { %7704 = vmatpush.bf16.msra.mxu3 %v12072_v32 }
 0x2a4   :  { %7666 = vmatpush.bf16.msra.mxu0 %v12047_v35  ;;  %v7440_v59 = vpop.f32.mrf.mxu2  ;;  %v12085_v35 = vld [vmem:[#allocation2 + $0x1550] sm:$0xff] }
 0x2a5   :  { %7679 = vmatpush.bf16.msra.mxu1 %v12055_v36  ;;  %v7453_v60 = vpop.f32.mrf.mxu3  ;;  %v12113_v59 = vld [vmem:[#allocation2 + $0x1630] sm:$0xff] }
 0x2a6   :  { %7692 = vmatpush.bf16.msra.mxu2 %v12063_v38  ;;  %v12101_v38 = vld [vmem:[#allocation2 + $0x15d0] sm:$0xff] }
 0x2a7   :  { %7705 = vmatpush.bf16.msra.mxu3 %v12071_v39  ;;  %v12076_v39 = vld [vmem:[#allocation2 + $0x1508] sm:$0xff]  ;;  %v12121_v60 = vld [vmem:[#allocation2 + $0x1670] sm:$0xff] }
 0x2a8   :  { %7667 = vmatpush.bf16.msra.mxu0 %v12046_v42  ;;  %v12092_v42 = vld [vmem:[#allocation2 + $0x1588] sm:$0xff] }
 0x2a9   :  { %7680 = vmatpush.bf16.msra.mxu1 %v12054_v43  ;;  %v12100_v43 = vld [vmem:[#allocation2 + $0x15c8] sm:$0xff] }
 0x2aa   :  { %7693 = vmatpush.bf16.msra.mxu2 %v12062_v44  ;;  %v4841_v44 = vld [vmem:[#allocation1 + $0x1b] sm:$0xff] }
 0x2ab   :  { %7706 = vmatpush.bf16.msra.mxu3 %v12070_v46  ;;  %v4843_v46 = vld [vmem:[#allocation1 + $0x2d] sm:$0xff] }
 0x2ac   :  { %7668 = vmatpush.bf16.msra.mxu0 %v12045_v51  ;;  %v8169_v51 = vld [vmem:[%s12559_s0 + $0x59] sm:$0xff] }
 0x2ad   :  { %7681 = vmatpush.bf16.msra.mxu1 %v12053_v45  ;;  %v12075_v45 = vld [vmem:[#allocation2 + $0x1500] sm:$0xff] }
 0x2ae   :  { %7694 = vmatpush.bf16.msra.mxu2 %v12061_v53  ;;  %v12091_v53 = vld [vmem:[#allocation2 + $0x1580] sm:$0xff] }
 0x2af   :  { %7707 = vmatpush.bf16.msra.mxu3 %v12069_v54  ;;  %v12099_v54 = vld [vmem:[#allocation2 + $0x15c0] sm:$0xff] }
 0x2b0   :  { %7669 = vmatpush.bf16.msra.mxu0 %v12044_v55  ;;  %v12114_v55 = vld [vmem:[#allocation2 + $0x1638] sm:$0xff] }
 0x2b1   :  { %7682 = vmatpush.bf16.msra.mxu1 %v12052_v56  ;;  %v12122_v56 = vld [vmem:[#allocation2 + $0x1678] sm:$0xff] }
 0x2b2   :  { %7695 = vmatpush.bf16.msra.mxu2 %v12060_v57  ;;  %v12130_v57 = vld [vmem:[#allocation2 + $0x16b8] sm:$0xff] }
 0x2b3   :  { %7708 = vmatpush.bf16.msra.mxu3 %v12068_v58  ;;  %v12138_v58 = vld [vmem:[#allocation2 + $0x16f8] sm:$0xff] }
 0x2b4   :  { %7670 = vmatpush.bf16.msra.mxu0 %v12043_v61  ;;  %v7464_v18 = vpop.f32.mrf.mxu0  ;;  %v12129_v61 = vld [vmem:[#allocation2 + $0x16b0] sm:$0xff] }
 0x2b5   :  { %7683 = vmatpush.bf16.msra.mxu1 %v12051_v62  ;;  %v7465_v19 = vadd.f32 %v7464_v18, %v7452_v50  ;;  %v7477_v22 = vpop.f32.mrf.mxu1  ;;  %v12518_v50 = vld [vmem:[#allocation1 + $0x3f] sm:$0xff] }
 0x2b6   :  { %7696 = vmatpush.bf16.msra.mxu2 %v12059_v63  ;;  %4847 = vst [vmem:[#allocation1] ss:$9 sm:$0xff] %v8169_v51  ;;  %v12137_v62 = vld [vmem:[#allocation2 + $0x16f0] sm:$0xff]  ;;  %v12112_v63 = vld [vmem:[#allocation2 + $0x1628] sm:$0xff] }
 0x2b7   :  { %7709 = vmatpush.bf16.msra.mxu3 %v12067_v0  ;;  %7671 = vmatmul.bf16.vlgmr.msra.gmra.mxu0 %v12509_v16  ;;  %v12095_v16 = vld [vmem:[#allocation2 + $0x15a0] sm:$0xff]  ;;  %v7478_v24 = vadd.f32 %v7477_v22, %v7465_v19  ;;  %v12120_v0 = vld [vmem:[#allocation2 + $0x1668] sm:$0xff]  ;;  %v12109_v22 = vld [vmem:[#allocation2 + $0x1610] sm:$0xff] }
 0x2b8   :  { %7715 = vmatpush.bf16.msrb.mxu0 %v12082_v1  ;;  %7684 = vmatmul.bf16.vlgmr.msra.gmra.mxu1 %v4838_v6  ;;  %v12128_v1 = vld [vmem:[#allocation2 + $0x16a8] sm:$0xff]  ;;  %v12119_v6 = vld [vmem:[#allocation2 + $0x1660] sm:$0xff] }
 0x2b9   :  { %7728 = vmatpush.bf16.msrb.mxu1 %v12090_v2  ;;  %7697 = vmatmul.bf16.vlgmr.msra.gmra.mxu2 %v4839_v5  ;;  %v12136_v2 = vld [vmem:[#allocation2 + $0x16e8] sm:$0xff]  ;;  %v12111_v5 = vld [vmem:[#allocation2 + $0x1620] sm:$0xff] }
 0x2ba   :  { %7741 = vmatpush.bf16.msrb.mxu2 %v12098_v3  ;;  %7710 = vmatmul.bf16.vlgmr.msra.gmra.mxu3 %v4840_v7  ;;  %v12160_v51 = vld [vmem:[#allocation2 + $0x17a8] sm:$0xff] }
 0x2bb   :  { %7754 = vmatpush.bf16.msrb.mxu3 %v12106_v4 }
 0x2bc   :  { %7716 = vmatpush.bf16.msrb.mxu0 %v12081_v8  ;;  %v7490_v29 = vpop.f32.mrf.mxu2  ;;  %v7466_v32 = vpop.f32.mrf.mxu0  ;;  %v12127_v8 = vld [vmem:[#allocation2 + $0x16a0] sm:$0xff] }
 0x2bd   :  { %7729 = vmatpush.bf16.msrb.mxu1 %v12089_v9  ;;  %v7491_v30 = vadd.f32 %v7490_v29, %v7478_v24  ;;  %v7503_v31 = vpop.f32.mrf.mxu3  ;;  %v7479_v36 = vpop.f32.mrf.mxu1  ;;  %v12135_v9 = vld [vmem:[#allocation2 + $0x16e0] sm:$0xff]  ;;  %v12125_v24 = vld [vmem:[#allocation2 + $0x1690] sm:$0xff]  ;;  %v12132_v29 = vld [vmem:[#allocation2 + $0x16c8] sm:$0xff] }
 0x2be   :  { %7742 = vmatpush.bf16.msrb.mxu2 %v12097_v11  ;;  %v12107_v32 = vld [vmem:[#allocation2 + $0x1600] sm:$0xff]  ;;  %v12146_v36 = vld [vmem:[#allocation2 + $0x1738] sm:$0xff] }
 0x2bf   :  { %7755 = vmatpush.bf16.msrb.mxu3 %v12105_v12  ;;  %v12516_v33 = vadd.f32 %v7503_v31, %v7491_v30  ;;  %v12110_v12 = vld [vmem:[#allocation2 + $0x1618] sm:$0xff] }
 0x2c0   :  { %7717 = vmatpush.bf16.msrb.mxu0 %v12080_v13  ;;  %v12118_v13 = vld [vmem:[#allocation2 + $0x1658] sm:$0xff] }
 0x2c1   :  { %7730 = vmatpush.bf16.msrb.mxu1 %v12088_v15  ;;  %v12126_v15 = vld [vmem:[#allocation2 + $0x1698] sm:$0xff] }
 0x2c2   :  { %7743 = vmatpush.bf16.msrb.mxu2 %v12096_v10  ;;  %v12134_v10 = vld [vmem:[#allocation2 + $0x16d8] sm:$0xff] }
 0x2c3   :  { %7756 = vmatpush.bf16.msrb.mxu3 %v12104_v17 }
 0x2c4   :  { %7718 = vmatpush.bf16.msrb.mxu0 %v12079_v20  ;;  %v7492_v41 = vpop.f32.mrf.mxu2 }
 0x2c5   :  { %7731 = vmatpush.bf16.msrb.mxu1 %v12087_v21  ;;  %v7505_v49 = vpop.f32.mrf.mxu3  ;;  %v12169_v41 = vld [vmem:[#allocation2 + $0x17f0] sm:$0xff] }
 0x2c6   :  { %7744 = vmatpush.bf16.msrb.mxu2 %v12095_v16  ;;  %v12117_v16 = vld [vmem:[#allocation2 + $0x1650] sm:$0xff]  ;;  %v12152_v49 = vld [vmem:[#allocation2 + $0x1768] sm:$0xff] }
 0x2c7   :  { %7757 = vmatpush.bf16.msrb.mxu3 %v12103_v23 }
 0x2c8   :  { %7719 = vmatpush.bf16.msrb.mxu0 %v12078_v25  ;;  %v12133_v25 = vld [vmem:[#allocation2 + $0x16d0] sm:$0xff] }
 0x2c9   :  { %7732 = vmatpush.bf16.msrb.mxu1 %v12086_v26  ;;  %v12108_v26 = vld [vmem:[#allocation2 + $0x1608] sm:$0xff] }
 0x2ca   :  { %7745 = vmatpush.bf16.msrb.mxu2 %v12094_v27  ;;  %v12116_v27 = vld [vmem:[#allocation2 + $0x1648] sm:$0xff] }
 0x2cb   :  { %7758 = vmatpush.bf16.msrb.mxu3 %v12102_v28  ;;  %v12124_v28 = vld [vmem:[#allocation2 + $0x1688] sm:$0xff] }
 0x2cc   :  { %7720 = vmatpush.bf16.msrb.mxu0 %v12077_v34  ;;  %v12123_v34 = vld [vmem:[#allocation2 + $0x1680] sm:$0xff] }
 0x2cd   :  { %7733 = vmatpush.bf16.msrb.mxu1 %v12085_v35  ;;  %v12131_v35 = vld [vmem:[#allocation2 + $0x16c0] sm:$0xff] }
 0x2ce   :  { %7746 = vmatpush.bf16.msrb.mxu2 %v12093_v37  ;;  %v12154_v37 = vld [vmem:[#allocation2 + $0x1778] sm:$0xff] }
 0x2cf   :  { %7759 = vmatpush.bf16.msrb.mxu3 %v12101_v38  ;;  %v12162_v38 = vld [vmem:[#allocation2 + $0x17b8] sm:$0xff] }
 0x2d0   :  { %7721 = vmatpush.bf16.msrb.mxu0 %v12076_v39  ;;  %v12170_v39 = vld [vmem:[#allocation2 + $0x17f8] sm:$0xff] }
 0x2d1   :  { %7734 = vmatpush.bf16.msrb.mxu1 %v12084_v40  ;;  %v4849_v40 = vld [vmem:[#allocation1 + $0x9] sm:$0xff] }
 0x2d2   :  { %7747 = vmatpush.bf16.msrb.mxu2 %v12092_v42  ;;  %v4848_v42 = vld [vmem:[#allocation1] sm:$0xff] }
 0x2d3   :  { %7760 = vmatpush.bf16.msrb.mxu3 %v12100_v43  ;;  %v4850_v43 = vld [vmem:[#allocation1 + $0x12] sm:$0xff] }
 0x2d4   :  { %7722 = vmatpush.bf16.msrb.mxu0 %v12075_v45  ;;  %v7516_v3 = vpop.f32.mrf.mxu0  ;;  %v12168_v45 = vld [vmem:[#allocation2 + $0x17e8] sm:$0xff] }
 0x2d5   :  { %7735 = vmatpush.bf16.msrb.mxu1 %v12083_v52  ;;  %v7517_v4 = vadd.f32 %v7516_v3, %v12516_v33  ;;  %v7529_v7 = vpop.f32.mrf.mxu1  ;;  %v12115_v33 = vld [vmem:[#allocation2 + $0x1640] sm:$0xff] }
 0x2d6   :  { %7748 = vmatpush.bf16.msrb.mxu2 %v12091_v53 }
 0x2d7   :  { %7761 = vmatpush.bf16.msrb.mxu3 %v12099_v54  ;;  %7723 = vmatmul.bf16.vlgmr.msrb.gmra.mxu0 %v4841_v44  ;;  %v7530_v11 = vadd.f32 %v7529_v7, %v7517_v4  ;;  %v12145_v44 = vld [vmem:[#allocation2 + $0x1730] sm:$0xff]  ;;  %v12143_v54 = vld [vmem:[#allocation2 + $0x1720] sm:$0xff] }
 0x2d8   :  { %7767 = vmatpush.bf16.msra.mxu0 %v12114_v55  ;;  %7736 = vmatmul.bf16.vlgmr.msrb.gmra.mxu1 %v4842_v47  ;;  %v12161_v47 = vld [vmem:[#allocation2 + $0x17b0] sm:$0xff]  ;;  %v12151_v55 = vld [vmem:[#allocation2 + $0x1760] sm:$0xff] }
 0x2d9   :  { %7780 = vmatpush.bf16.msra.mxu1 %v12122_v56  ;;  %7749 = vmatmul.bf16.vlgmr.msrb.gmra.mxu2 %v4843_v46  ;;  %v12153_v46 = vld [vmem:[#allocation2 + $0x1770] sm:$0xff] }
 0x2da   :  { %7793 = vmatpush.bf16.msra.mxu2 %v12130_v57  ;;  %7762 = vmatmul.bf16.vlgmr.msrb.gmra.mxu3 %v4844_v48  ;;  %v12144_v48 = vld [vmem:[#allocation2 + $0x1728] sm:$0xff]  ;;  %v12167_v57 = vld [vmem:[#allocation2 + $0x17e0] sm:$0xff]  ;;  %v12141_v4 = vld [vmem:[#allocation2 + $0x1710] sm:$0xff] }
 0x2db   :  { %7806 = vmatpush.bf16.msra.mxu3 %v12138_v58  ;;  %v12157_v7 = vld [vmem:[#allocation2 + $0x1790] sm:$0xff] }
 0x2dc   :  { %7768 = vmatpush.bf16.msra.mxu0 %v12113_v59  ;;  %v7542_v17 = vpop.f32.mrf.mxu2  ;;  %v7518_v20 = vpop.f32.mrf.mxu0  ;;  %v12142_v59 = vld [vmem:[#allocation2 + $0x1718] sm:$0xff] }
 0x2dd   :  { %7781 = vmatpush.bf16.msra.mxu1 %v12121_v60  ;;  %v7543_v18 = vadd.f32 %v7542_v17, %v7530_v11  ;;  %v7555_v19 = vpop.f32.mrf.mxu3  ;;  %v7531_v23 = vpop.f32.mrf.mxu1  ;;  %v12150_v60 = vld [vmem:[#allocation2 + $0x1758] sm:$0xff]  ;;  %v12148_v11 = vld [vmem:[#allocation2 + $0x1748] sm:$0xff] }
 0x2de   :  { %7794 = vmatpush.bf16.msra.mxu2 %v12129_v61  ;;  %v12158_v61 = vld [vmem:[#allocation2 + $0x1798] sm:$0xff]  ;;  %v4854_v20 = vld [vmem:[#allocation1 + $0x36] sm:$0xff]  ;;  %v12147_v23 = vld [vmem:[#allocation2 + $0x1740] sm:$0xff] }
 0x2df   :  { %7807 = vmatpush.bf16.msra.mxu3 %v12137_v62  ;;  %v7556_v21 = vadd.f32 %v7555_v19, %v7543_v18  ;;  %v12166_v62 = vld [vmem:[#allocation2 + $0x17d8] sm:$0xff] }
 0x2e0   :  { %7769 = vmatpush.bf16.msra.mxu0 %v12112_v63  ;;  %v12525_v18 = vld [vmem:[#allocation1 + $0x3f] sm:$0xff] }
 0x2e1   :  { %7782 = vmatpush.bf16.msra.mxu1 %v12120_v0  ;;  %v4852_v19 = vld [vmem:[#allocation1 + $0x24] sm:$0xff] }
 0x2e2   :  { %7795 = vmatpush.bf16.msra.mxu2 %v12128_v1 }
 0x2e3   :  { %7808 = vmatpush.bf16.msra.mxu3 %v12136_v2 }
 0x2e4   :  { %7770 = vmatpush.bf16.msra.mxu0 %v12111_v5  ;;  %v7544_v30 = vpop.f32.mrf.mxu2  ;;  %v12149_v5 = vld [vmem:[#allocation2 + $0x1750] sm:$0xff] }
 0x2e5   :  { %7783 = vmatpush.bf16.msra.mxu1 %v12119_v6  ;;  %v7557_v31 = vpop.f32.mrf.mxu3  ;;  %v12185_v30 = vld [vmem:[#allocation2 + $0x1870] sm:$0xff] }
 0x2e6   :  { %7796 = vmatpush.bf16.msra.mxu2 %v12127_v8  ;;  %v12165_v8 = vld [vmem:[#allocation2 + $0x17d0] sm:$0xff] }
 0x2e7   :  { %7809 = vmatpush.bf16.msra.mxu3 %v12135_v9  ;;  %v12140_v9 = vld [vmem:[#allocation2 + $0x1708] sm:$0xff]  ;;  %v12193_v31 = vld [vmem:[#allocation7 + $0x30] sm:$0xff] }
 0x2e8   :  { %7771 = vmatpush.bf16.msra.mxu0 %v12110_v12  ;;  %v12156_v12 = vld [vmem:[#allocation2 + $0x1788] sm:$0xff] }
 0x2e9   :  { %7784 = vmatpush.bf16.msra.mxu1 %v12118_v13  ;;  %v12164_v13 = vld [vmem:[#allocation2 + $0x17c8] sm:$0xff] }
 0x2ea   :  { %7797 = vmatpush.bf16.msra.mxu2 %v12126_v15  ;;  %v4851_v15 = vld [vmem:[#allocation1 + $0x1b] sm:$0xff] }
 0x2eb   :  { %7810 = vmatpush.bf16.msra.mxu3 %v12134_v10  ;;  %v4853_v10 = vld [vmem:[#allocation1 + $0x2d] sm:$0xff] }
 0x2ec   :  { %7772 = vmatpush.bf16.msra.mxu0 %v12109_v22  ;;  %v8170_v22 = vld [vmem:[%s12559_s0 + $0x61] sm:$0x1] }
 0x2ed   :  { %7785 = vmatpush.bf16.msra.mxu1 %v12117_v16  ;;  %4857 = vst [vmem:[#allocation1] ss:$9 sm:$0xff] %v8170_v22  ;;  %v12139_v16 = vld [vmem:[#allocation2 + $0x1700] sm:$0xff] }
 0x2ee   :  { %7798 = vmatpush.bf16.msra.mxu2 %v12125_v24  ;;  %v12155_v24 = vld [vmem:[#allocation2 + $0x1780] sm:$0xff] }
 0x2ef   :  { %7811 = vmatpush.bf16.msra.mxu3 %v12133_v25  ;;  %v12163_v25 = vld [vmem:[#allocation2 + $0x17c0] sm:$0xff] }
 0x2f0   :  { %7773 = vmatpush.bf16.msra.mxu0 %v12108_v26  ;;  %v12178_v26 = vld [vmem:[#allocation2 + $0x1838] sm:$0xff] }
 0x2f1   :  { %7786 = vmatpush.bf16.msra.mxu1 %v12116_v27  ;;  %v12186_v27 = vld [vmem:[#allocation2 + $0x1878] sm:$0xff] }
 0x2f2   :  { %7799 = vmatpush.bf16.msra.mxu2 %v12124_v28  ;;  %v12194_v28 = vld [vmem:[#allocation7 + $0x38] sm:$0xff] }
 0x2f3   :  { %7812 = vmatpush.bf16.msra.mxu3 %v12132_v29  ;;  %v12177_v29 = vld [vmem:[#allocation2 + $0x1830] sm:$0xff] }
 0x2f4   :  { %7774 = vmatpush.bf16.msra.mxu0 %v12107_v32  ;;  %v7568_v52 = vpop.f32.mrf.mxu0  ;;  %v12176_v32 = vld [vmem:[#allocation2 + $0x1828] sm:$0xff] }
 0x2f5   :  { %7787 = vmatpush.bf16.msra.mxu1 %v12115_v33  ;;  %v7569_v53 = vadd.f32 %v7568_v52, %v7556_v21  ;;  %v7581_v56 = vpop.f32.mrf.mxu1  ;;  %v12184_v33 = vld [vmem:[#allocation2 + $0x1868] sm:$0xff]  ;;  %v12181_v52 = vld [vmem:[#allocation2 + $0x1850] sm:$0xff] }
 0x2f6   :  { %7800 = vmatpush.bf16.msra.mxu2 %v12123_v34  ;;  %v12192_v34 = vld [vmem:[#allocation7 + $0x28] sm:$0xff] }
 0x2f7   :  { %7813 = vmatpush.bf16.msra.mxu3 %v12131_v35  ;;  %7775 = vmatmul.bf16.vlgmr.msra.gmra.mxu0 %v12518_v50  ;;  %v12159_v50 = vld [vmem:[#allocation2 + $0x17a0] sm:$0xff]  ;;  %v7582_v58 = vadd.f32 %v7581_v56, %v7569_v53  ;;  %v12180_v56 = vld [vmem:[#allocation2 + $0x1848] sm:$0xff] }
 0x2f8   :  { %7819 = vmatpush.bf16.msrb.mxu0 %v12146_v36  ;;  %7788 = vmatmul.bf16.vlgmr.msra.gmra.mxu1 %v4848_v42 }
 0x2f9   :  { %7832 = vmatpush.bf16.msrb.mxu1 %v12154_v37  ;;  %7801 = vmatmul.bf16.vlgmr.msra.gmra.mxu2 %v4849_v40  ;;  %v12175_v37 = vld [vmem:[#allocation2 + $0x1820] sm:$0xff] }
 0x2fa   :  { %7845 = vmatpush.bf16.msrb.mxu2 %v12162_v38  ;;  %7814 = vmatmul.bf16.vlgmr.msra.gmra.mxu3 %v4850_v43  ;;  %v12183_v38 = vld [vmem:[#allocation2 + $0x1860] sm:$0xff]  ;;  %v12174_v43 = vld [vmem:[#allocation2 + $0x1818] sm:$0xff] }
 0x2fb   :  { %7858 = vmatpush.bf16.msrb.mxu3 %v12170_v39  ;;  %v12191_v40 = vld [vmem:[#allocation7 + $0x20] sm:$0xff] }
 0x2fc   :  { %7820 = vmatpush.bf16.msrb.mxu0 %v12145_v44  ;;  %v7594_v63 = vpop.f32.mrf.mxu2  ;;  %v7570_v2 = vpop.f32.mrf.mxu0  ;;  %v12182_v44 = vld [vmem:[#allocation2 + $0x1858] sm:$0xff] }
 0x2fd   :  { %7833 = vmatpush.bf16.msrb.mxu1 %v12153_v46  ;;  %v7595_v0 = vadd.f32 %v7594_v63, %v7582_v58  ;;  %v7607_v1 = vpop.f32.mrf.mxu3  ;;  %v7583_v6 = vpop.f32.mrf.mxu1  ;;  %v12190_v46 = vld [vmem:[#allocation7 + $0x18] sm:$0xff] }
 0x2fe   :  { %7846 = vmatpush.bf16.msrb.mxu2 %v12161_v47  ;;  %v4858_v63 = vld [vmem:[#allocation1] sm:$0xff] }
 0x2ff   :  { %7859 = vmatpush.bf16.msrb.mxu3 %v12169_v41  ;;  %v7608_v3 = vadd.f32 %v7607_v1, %v7595_v0 }
 0x300   :  { %7821 = vmatpush.bf16.msrb.mxu0 %v12144_v48 }
 0x301   :  { %7834 = vmatpush.bf16.msrb.mxu1 %v12152_v49 }
 0x302   :  { %7847 = vmatpush.bf16.msrb.mxu2 %v12160_v51 }
 0x303   :  { %7860 = vmatpush.bf16.msrb.mxu3 %v12168_v45  ;;  %v12173_v45 = vld [vmem:[#allocation2 + $0x1810] sm:$0xff] }
 0x304   :  { %7822 = vmatpush.bf16.msrb.mxu0 %v12143_v54  ;;  %v7596_v17 = vpop.f32.mrf.mxu2  ;;  %v12189_v54 = vld [vmem:[#allocation7 + $0x10] sm:$0xff] }
 0x305   :  { %7835 = vmatpush.bf16.msrb.mxu1 %v12151_v55  ;;  %v7609_v21 = vpop.f32.mrf.mxu3  ;;  %v12172_v55 = vld [vmem:[#allocation2 + $0x1808] sm:$0xff] }
 0x306   :  { %7848 = vmatpush.bf16.msrb.mxu2 %v12159_v50  ;;  %v12188_v50 = vld [vmem:[#allocation7 + $0x8] sm:$0xff] }
 0x307   :  { %7861 = vmatpush.bf16.msrb.mxu3 %v12167_v57 }
 0x308   :  { %7823 = vmatpush.bf16.msrb.mxu0 %v12142_v59  ;;  %v12171_v59 = vld [vmem:[#allocation2 + $0x1800] sm:$0xff] }
 0x309   :  { %7836 = vmatpush.bf16.msrb.mxu1 %v12150_v60  ;;  %v12179_v60 = vld [vmem:[#allocation2 + $0x1840] sm:$0xff] }
 0x30a   :  { %7849 = vmatpush.bf16.msrb.mxu2 %v12158_v61  ;;  %v12187_v61 = vld [vmem:[#allocation7] sm:$0xff] }
 0x30b   :  { %7862 = vmatpush.bf16.msrb.mxu3 %v12166_v62  ;;  %v4005_v62 = vmax.f32 %v12496_v14, 0.0 }
 0x30c   :  { %7824 = vmatpush.bf16.msrb.mxu0 %v12141_v4 }
 0x30d   :  { %7837 = vmatpush.bf16.msrb.mxu1 %v12149_v5  ;;  %v7898_v0 = vpack.c.bf16 %v4005_v62, %v4005_v62 }
 0x30e   :  { %7850 = vmatpush.bf16.msrb.mxu2 %v12157_v7 }
 0x30f   :  { %7863 = vmatpush.bf16.msrb.mxu3 %v12165_v8 }
 0x310   :  { %7825 = vmatpush.bf16.msrb.mxu0 %v12140_v9 }
 0x311   :  { %7838 = vmatpush.bf16.msrb.mxu1 %v12148_v11 }
 0x312   :  { %7851 = vmatpush.bf16.msrb.mxu2 %v12156_v12 }
 0x313   :  { %7864 = vmatpush.bf16.msrb.mxu3 %v12164_v13 }
 0x314   :  { %7826 = vmatpush.bf16.msrb.mxu0 %v12139_v16  ;;  %v7620_v35 = vpop.f32.mrf.mxu0 }
 0x315   :  { %7839 = vmatpush.bf16.msrb.mxu1 %v12147_v23  ;;  %v7621_v36 = vadd.f32 %v7620_v35, %v7608_v3  ;;  %v7633_v39 = vpop.f32.mrf.mxu1  ;;  %v12199_v35 = vld [vmem:[#allocation7 + $0x60] sm:$0xff] }
 0x316   :  { %7852 = vmatpush.bf16.msrb.mxu2 %v12155_v24 }
 0x317   :  { %7865 = vmatpush.bf16.msrb.mxu3 %v12163_v25  ;;  %7827 = vmatmul.bf16.vlgmr.msrb.gmra.mxu0 %v4851_v15  ;;  %v7634_v42 = vadd.f32 %v7633_v39, %v7621_v36  ;;  %v12196_v39 = vld [vmem:[#allocation7 + $0x48] sm:$0xff] }
 0x318   :  { %7871 = vmatpush.bf16.msra.mxu0 %v12178_v26  ;;  %7840 = vmatmul.bf16.vlgmr.msrb.gmra.mxu1 %v4852_v19 }
 0x319   :  { %7884 = vmatpush.bf16.msra.mxu1 %v12186_v27  ;;  %7853 = vmatmul.bf16.vlgmr.msrb.gmra.mxu2 %v4853_v10  ;;  %v12202_v27 = vld [vmem:[#allocation7 + $0x78] sm:$0xff] }
 0x31a   :  { %7866 = vmatmul.bf16.vlgmr.msrb.gmra.mxu3 %v4854_v20  ;;  %7981 = vmatpush.bf16.msra.mxu2 %v12202_v27 }
 0x31b   :  { %8042 = vmatpush.bf16.msra.mxu3 %v12194_v28 }
 0x31c   :  { %7872 = vmatpush.bf16.msra.mxu0 %v12177_v29  ;;  %v7646_v47 = vpop.f32.mrf.mxu2  ;;  %v7622_v49 = vpop.f32.mrf.mxu0 }
 0x31d   :  { %7885 = vmatpush.bf16.msra.mxu1 %v12185_v30  ;;  %v7647_v41 = vadd.f32 %v7646_v47, %v7634_v42  ;;  %v7659_v48 = vpop.f32.mrf.mxu3  ;;  %v7635_v53 = vpop.f32.mrf.mxu1  ;;  %v12201_v30 = vld [vmem:[#allocation7 + $0x70] sm:$0xff] }
 0x31e   :  { %7982 = vmatpush.bf16.msra.mxu2 %v12201_v30  ;;  %v12209_v53 = vld [vmem:[%s12564_s5 + $0x30] sm:$0xff] }
 0x31f   :  { %8043 = vmatpush.bf16.msra.mxu3 %v12193_v31  ;;  %v7660_v51 = vadd.f32 %v7659_v48, %v7647_v41 }
 0x320   :  { %7873 = vmatpush.bf16.msra.mxu0 %v12176_v32 }
 0x321   :  { %7886 = vmatpush.bf16.msra.mxu1 %v12184_v33  ;;  %v12200_v33 = vld [vmem:[#allocation7 + $0x68] sm:$0xff] }
 0x322   :  { %7983 = vmatpush.bf16.msra.mxu2 %v12200_v33 }
 0x323   :  { %8044 = vmatpush.bf16.msra.mxu3 %v12192_v34 }
 0x324   :  { %7874 = vmatpush.bf16.msra.mxu0 %v12175_v37  ;;  %v7648_v57 = vpop.f32.mrf.mxu2  ;;  %v12198_v37 = vld [vmem:[#allocation7 + $0x58] sm:$0xff] }
 0x325   :  { %7887 = vmatpush.bf16.msra.mxu1 %v12183_v38  ;;  %v7661_v58 = vpop.f32.mrf.mxu3  ;;  %v12197_v38 = vld [vmem:[#allocation7 + $0x50] sm:$0xff] }
 0x326   :  { %7984 = vmatpush.bf16.msra.mxu2 %v12199_v35  ;;  %v12207_v58 = vld [vmem:[%s12564_s5 + $0x20] sm:$0xff] }
 0x327   :  { %8045 = vmatpush.bf16.msra.mxu3 %v12191_v40 }
 0x328   :  { %7875 = vmatpush.bf16.msra.mxu0 %v12174_v43  ;;  %v12195_v43 = vld [vmem:[#allocation7 + $0x40] sm:$0xff] }
 0x329   :  { %7888 = vmatpush.bf16.msra.mxu1 %v12182_v44 }
 0x32a   :  { %7985 = vmatpush.bf16.msra.mxu2 %v12198_v37 }
 0x32b   :  { %8046 = vmatpush.bf16.msra.mxu3 %v12190_v46 }
 0x32c   :  { %7876 = vmatpush.bf16.msra.mxu0 %v12173_v45  ;;  %v12210_v45 = vld [vmem:[%s12564_s5 + $0x38] sm:$0xff] }
 0x32d   :  { %7889 = vmatpush.bf16.msra.mxu1 %v12181_v52 }
 0x32e   :  { %7986 = vmatpush.bf16.msra.mxu2 %v12197_v38 }
 0x32f   :  { %8047 = vmatpush.bf16.msra.mxu3 %v12189_v54 }
 0x330   :  { %7877 = vmatpush.bf16.msra.mxu0 %v12172_v55 }
 0x331   :  { %7890 = vmatpush.bf16.msra.mxu1 %v12180_v56 }
 0x332   :  { %7987 = vmatpush.bf16.msra.mxu2 %v12196_v39 }
 0x333   :  { %8048 = vmatpush.bf16.msra.mxu3 %v12188_v50  ;;  %v12208_v50 = vld [vmem:[%s12564_s5 + $0x28] sm:$0xff] }
 0x334   :  { %7878 = vmatpush.bf16.msra.mxu0 %v12171_v59  ;;  %v7672_v1 = vpop.f32.mrf.mxu0 }
 0x335   :  { %7891 = vmatpush.bf16.msra.mxu1 %v12179_v60  ;;  %v7673_v2 = vadd.f32 %v7672_v1, %v7660_v51  ;;  %v7685_v3 = vpop.f32.mrf.mxu1  ;;  %v12206_v60 = vld [vmem:[%s12564_s5 + $0x18] sm:$0xff]  ;;  %v12205_v1 = vld [vmem:[%s12564_s5 + $0x10] sm:$0xff] }
 0x336   :  { %7988 = vmatpush.bf16.msra.mxu2 %v12195_v43 }
 0x337   :  { %8049 = vmatpush.bf16.msra.mxu3 %v12187_v61  ;;  %7879 = vmatmul.bf16.vlgmr.msra.gmra.mxu0 %v12525_v18  ;;  %v7686_v4 = vadd.f32 %v7685_v3, %v7673_v2 }
 0x338   :  { %7892 = vmatmul.bf16.vlgmr.msra.gmra.mxu1 %v4858_v63  ;;  %8130 = vmatpush.bf16.msrb.mxu0 %v12210_v45 }
 0x33a   :  { %8050 = vmatmul.bf16.vlgmr.msra.gmra.mxu3 %v7898_v0 }
 0x33c   :  { %v7698_v5 = vpop.f32.mrf.mxu2  ;;  %v7674_v8 = vpop.f32.mrf.mxu0  ;;  %8131 = vmatpush.bf16.msrb.mxu0 %v12209_v53 }
 0x33d   :  { %v7699_v6 = vadd.f32 %v7698_v5, %v7686_v4  ;;  %v7711_v7 = vpop.f32.mrf.mxu3  ;;  %v7687_v11 = vpop.f32.mrf.mxu1 }
 0x33e   :  { %v12203_v11 = vld [vmem:[%s12564_s5] sm:$0xff] }
 0x33f   :  { %v7712_v9 = vadd.f32 %v7711_v7, %v7699_v6 }
 0x340   :  { %8132 = vmatpush.bf16.msrb.mxu0 %v12208_v50 }
 0x344   :  { %v7700_v14 = vpop.f32.mrf.mxu2  ;;  %8133 = vmatpush.bf16.msrb.mxu0 %v12207_v58 }
 0x345   :  { %v7713_v12 = vpop.f32.mrf.mxu3  ;;  %v12223_v14 = vld [vmem:[#allocation8] ss:$0 sm:$0xff] }
 0x348   :  { %8134 = vmatpush.bf16.msrb.mxu0 %v12206_v60 }
 0x34c   :  { %8135 = vmatpush.bf16.msrb.mxu0 %v12205_v1 }
 0x354   :  { %v7724_v13 = vpop.f32.mrf.mxu0 }
 0x355   :  { %v7725_v15 = vadd.f32 %v7724_v13, %v7712_v9  ;;  %v7737_v10 = vpop.f32.mrf.mxu1  ;;  %v12204_v9 = vld [vmem:[%s12564_s5 + $0x8] sm:$0xff] }
 0x356   :  { %8136 = vmatpush.bf16.msrb.mxu0 %v12204_v9 }
 0x357   :  { %v7738_v17 = vadd.f32 %v7737_v10, %v7725_v15 }
 0x35a   :  { %8137 = vmatpush.bf16.msrb.mxu0 %v12203_v11 }
 0x35c   :  { %v7750_v19 = vpop.f32.mrf.mxu2  ;;  %v7726_v21 = vpop.f32.mrf.mxu0 }
 0x35d   :  { %v7751_v18 = vadd.f32 %v7750_v19, %v7738_v17  ;;  %v7763_v20 = vpop.f32.mrf.mxu3  ;;  %v7739_v16 = vpop.f32.mrf.mxu1 }
 0x35f   :  { %v7764_v22 = vadd.f32 %v7763_v20, %v7751_v18  ;;  %v12224_v18 = vld [vmem:[#allocation10] ss:$0 sm:$0xff] }
 0x364   :  { %v7752_v23 = vpop.f32.mrf.mxu2 }
 0x365   :  { %v7765_v24 = vpop.f32.mrf.mxu3 }
 0x374   :  { %v7776_v25 = vpop.f32.mrf.mxu0 }
 0x375   :  { %v7789_v26 = vpop.f32.mrf.mxu1  ;;  %v7777_v44 = vadd.f32 %v7776_v25, %v7764_v22 }
 0x377   :  { %v7790_v49 = vadd.f32 %v7789_v26, %v7777_v44 }
 0x37c   :  { %v7802_v28 = vpop.f32.mrf.mxu2  ;;  %v7778_v31 = vpop.f32.mrf.mxu0 }
 0x37d   :  { %v7815_v29 = vpop.f32.mrf.mxu3  ;;  %v7791_v32 = vpop.f32.mrf.mxu1  ;;  %v7803_v51 = vadd.f32 %v7802_v28, %v7790_v49 }
 0x37f   :  { %v7816_v55 = vadd.f32 %v7815_v29, %v7803_v51 }
 0x384   :  { %v7804_v34 = vpop.f32.mrf.mxu2 }
 0x385   :  { %v7817_v36 = vpop.f32.mrf.mxu3 }
 0x394   :  { %v7828_v40 = vpop.f32.mrf.mxu0 }
 0x395   :  { %v7841_v42 = vpop.f32.mrf.mxu1  ;;  %v7829_v56 = vadd.f32 %v7828_v40, %v7816_v55 }
 0x397   :  { %v7842_v57 = vadd.f32 %v7841_v42, %v7829_v56 }
 0x39c   :  { %v7854_v46 = vpop.f32.mrf.mxu2  ;;  %v7830_v41 = vpop.f32.mrf.mxu0 }
 0x39d   :  { %v7867_v47 = vpop.f32.mrf.mxu3  ;;  %v7843_v48 = vpop.f32.mrf.mxu1  ;;  %v7855_v59 = vadd.f32 %v7854_v46, %v7842_v57 }
 0x39f   :  { %v7868_v61 = vadd.f32 %v7867_v47, %v7855_v59 }
 0x3a4   :  { %v7856_v52 = vpop.f32.mrf.mxu2 }
 0x3a5   :  { %v7869_v54 = vpop.f32.mrf.mxu3 }
 0x3b4   :  { %v7880_v62 = vpop.f32.mrf.mxu0 }
 0x3b5   :  { %v7893_v63 = vpop.f32.mrf.mxu1  ;;  %v7881_v0 = vadd.f32 %v7880_v62, %v7868_v61 }
 0x3b7   :  { %v7894_v2 = vadd.f32 %v7893_v63, %v7881_v0 }
 0x3b9   :  { %v7897_v3 = vmax.f32 %v7894_v2, 0.0 }
 0x3bb   :  { %v7915_v4 = vpack.c.bf16 %v7897_v3, %v7897_v3 }
 0x3bc   :  { %v7882_v6 = vpop.f32.mrf.mxu0 }
 0x3bd   :  { %v8051_v5 = vpop.f32.mrf.mxu3  ;;  %v7895_v7 = vpop.f32.mrf.mxu1  ;;  %7989 = vmatmul.bf16.vlgmr.msra.gmra.mxu2 %v7915_v4 }
 0x3c5   :  { %v8053_v8 = vpop.f32.mrf.mxu3 }
 0x440   :  { %v7990_v12 = vpop.f32.mrf.mxu2 }
 0x441   :  { %v8052_v13 = vadd.f32 %v8051_v5, %v7990_v12 }
 0x443   :  { %v8059_v15 = vadd.f32 %v12223_v14, %v8052_v13 }
 0x445   :  { %v8060_v10 = vmax.f32 %v8059_v15, 0.0 }
 0x447   :  { %v8061_v17 = vpack.c.bf16 %v8060_v10, %v8060_v10 }
 0x448   :  { %v7992_v19 = vpop.f32.mrf.mxu2 }
 0x449   :  { %8138 = vmatmul.bf16.vlgmr.msrb.gmra.mxu0 %v8061_v17 }
 0x4c6   :  { %v8139_v20 = vpop.f32.mrf.mxu0 }
 0x4c7   :  { %v8140_v21 = vadd.f32 %v12224_v18, %v8139_v20 }
 0x4c9   :  { %8144 = vst.msk [vmem:[#allocation11] sm:$0x3] %vm8143_vm0, %v8140_v21 }
 0x4ca   :  { %8155 = dma.vmem_to_hbm [thread:$0]  %s8151_s17, 32, %s8153_s19, [#allocation4]  }
 0x4ce   :  { %v8141_v22 = vpop.f32.mrf.mxu0 }
 0x4cf   :  { %12375 = dma.done.wait [#allocation4], 32  }
 0x4d0   :  { %12376 = vsyncadd [#allocation4], 4294967264 }
 0x4d1   :  { %8160 = vsyncpa [#allocation3], 1 }
 0x4d2   :  { %8161 = vsyncpa [#allocation6], 1 }
 0x4d3   :  { %8162 = vsyncpa [#allocation9], 1 }
 0x4d4   :  { %8163 = vsyncpa [#allocation4], 1 }

</bundles_post_ra>
